<compile_context>
chip_gen: v7x
topology: tpu7x:2x2x1
jax: 0.10.0
libtpu: 0.0.40
codegen_flags: <defaults>
</compile_context>

<pallas_src>
import jax
import jax.numpy as jnp
from jax.experimental import pallas as pl
from jax.experimental.pallas import tpu as pltpu


# ---------------------------------------------------------------------------
# Fused kernel: conv1 -> BN -> ReLU -> conv2 -> BN -> ReLU -> maxpool(2,2)+idx
# one batch element per grid step; everything stays in VMEM.
# ---------------------------------------------------------------------------
def encoder2_pool_kernel(x_ref, w1_ref, s1_ref, w2_ref, s2_ref,
                         pooled_ref, idx_ref, pad1, pad2):
    """
    x_ref:      (1, H, W, Cin)        NHWC input tile
    w1_ref:     (9*Cin,  Cout)        conv1 weights, BN1 scale folded in, (dy,dx,cin) order
    s1_ref:     (1, Cout)             BN1 shift (beta + (bias - mean) * scale)
    w2_ref:     (9*Cout, Cout)        conv2 weights, BN2 scale folded in
    s2_ref:     (1, Cout)             BN2 shift
    pooled_ref: (1, Ho, Wo*Cout)      pooled values (lane-packed Wo*Cout)
    idx_ref:    (1, Ho, Wo*Cout)      int32 flat indices into the H*W plane (PyTorch style)
    pad1:       VMEM (H+2, W+2, Cin)  f32 halo scratch for conv1
    pad2:       VMEM (H+2, W+2, Cout) f32 halo scratch for conv2
    """
    H, W, Cin = x_ref.shape[1], x_ref.shape[2], x_ref.shape[3]
    Cout = s1_ref.shape[1]
    Ho, Wo = H // 2, W // 2

    def conv3x3_bn_relu(pad_ref, x_val, w_ref, shift_ref, cin):
        # in-kernel halo: zero scratch, write interior (border stays 0).
        pad_ref[...] = jnp.zeros_like(pad_ref)
        pad_ref[pl.ds(1, H), pl.ds(1, W), :] = x_val
        # im2col: one (H*W, 9*cin) x (9*cin, Cout) matmul instead of 9 tiny matmuls.
        cols = [pad_ref[pl.ds(dy, H), pl.ds(dx, W), :].reshape(H * W, cin)
                for dy in range(3) for dx in range(3)]
        patches = jnp.concatenate(cols, axis=-1)                  # (H*W, 9*cin)
        y = jnp.dot(patches, w_ref[...], preferred_element_type=jnp.float32)
        return jnp.maximum(y + shift_ref[...], 0.0)               # (H*W, Cout)

    y1 = conv3x3_bn_relu(pad1, x_ref[0].astype(jnp.float32), w1_ref, s1_ref, Cin)
    y2 = conv3x3_bn_relu(pad2, y1.reshape(H, W, Cout), w2_ref, s2_ref, Cout)

    # Fused 2x2 / stride-2 max pool on the accumulator already in vregs.
    # Tie-break: first occurrence in row-major window order (strict '>').
    y4 = y2.reshape(Ho, 2, Wo, 2, Cout)
    ry = jax.lax.broadcasted_iota(jnp.int32, (Ho, Wo, Cout), 0)
    cx = jax.lax.broadcasted_iota(jnp.int32, (Ho, Wo, Cout), 1)

    best_val = y4[:, 0, :, 0, :]                       # post-ReLU, so (0,0) tap init is fine
    best_idx = (2 * ry) * W + (2 * cx)
    for dy in range(2):
        for dx in range(2):
            if dy == 0 and dx == 0:
                continue
            cand = y4[:, dy, :, dx, :]
            cidx = (2 * ry + dy) * W + (2 * cx + dx)
            take = cand > best_val
            best_idx = jnp.where(take, cidx, best_idx)
            best_val = jnp.where(take, cand, best_val)

    pooled_ref[0] = best_val.reshape(Ho, Wo * Cout).astype(pooled_ref.dtype)
    idx_ref[0] = best_idx.reshape(Ho, Wo * Cout)


# ---------------------------------------------------------------------------
# Parameter init (deterministic, synthetic) with BN folded into the conv
# ---------------------------------------------------------------------------
def init_encoder_params(key, in_channels, out_channels, n_blocks=2):
    # TODO(synk): BatchNorm folded in inference (running-stats) mode; training-mode
    # batch statistics and the nn.Dropout branch (n_blocks == 3) are not implemented.
    eps = 1e-5
    chans = [(in_channels, out_channels)] + [(out_channels, out_channels)] * (n_blocks - 1)
    params = []
    for cin, cout in chans:
        key, k1, k2, k3, k4, k5, k6 = jax.random.split(key, 7)
        w = 0.1 * jax.random.normal(k1, (3, 3, cin, cout), jnp.float32)   # HWIO
        b = 0.1 * jax.random.normal(k2, (cout,), jnp.float32)
        gamma = 1.0 + 0.1 * jax.random.normal(k3, (cout,), jnp.float32)
        beta = 0.1 * jax.random.normal(k4, (cout,), jnp.float32)
        r_mean = 0.1 * jax.random.normal(k5, (cout,), jnp.float32)
        r_var = 1.0 + 0.1 * jnp.abs(jax.random.normal(k6, (cout,), jnp.float32))
        scale = gamma / jnp.sqrt(r_var + eps)
        w_folded = w * scale.reshape(1, 1, 1, cout)      # exact: per-Cout scale
        shift = beta + (b - r_mean) * scale
        params.append((w_folded, shift.reshape(1, cout)))
    return params


# ---------------------------------------------------------------------------
# Forward (single fused pallas_call over the batch grid)
# ---------------------------------------------------------------------------
def encoder_forward(x_nchw, params):
    """Pallas version of Encoder.forward: returns ((pooled, indices), conv_out_size)."""
    assert len(params) == 2, "fused Pallas encoder implements n_blocks=2 (module default)"
    (w1, s1), (w2, s2) = params
    N, Cin, H, W = x_nchw.shape
    Cout = s1.shape[1]
    Ho, Wo = H // 2, W // 2

    x = jnp.transpose(x_nchw, (0, 2, 3, 1))              # NCHW -> NHWC (glue)
    # (3,3,Cin,Cout) -> (9*Cin,Cout); row-major (dy,dx,cin) matches the in-kernel im2col.
    w1r = w1.reshape(9 * Cin, Cout)
    w2r = w2.reshape(9 * Cout, Cout)

    pooled_flat, idx_flat = pl.pallas_call(
        encoder2_pool_kernel,
        out_shape=(
            jax.ShapeDtypeStruct((N, Ho, Wo * Cout), x.dtype),
            jax.ShapeDtypeStruct((N, Ho, Wo * Cout), jnp.int32),
        ),
        grid=(N,),
        in_specs=[
            pl.BlockSpec((1, H, W, Cin), lambda n: (n, 0, 0, 0)),
            pl.BlockSpec((9 * Cin, Cout), lambda n: (0, 0)),
            pl.BlockSpec((1, Cout), lambda n: (0, 0)),
            pl.BlockSpec((9 * Cout, Cout), lambda n: (0, 0)),
            pl.BlockSpec((1, Cout), lambda n: (0, 0)),
        ],
        out_specs=(
            pl.BlockSpec((1, Ho, Wo * Cout), lambda n: (n, 0, 0)),
            pl.BlockSpec((1, Ho, Wo * Cout), lambda n: (n, 0, 0)),
        ),
        scratch_shapes=[
            pltpu.VMEM((H + 2, W + 2, Cin), jnp.float32),
            pltpu.VMEM((H + 2, W + 2, Cout), jnp.float32),
        ],
        compiler_params=pltpu.CompilerParams(dimension_semantics=("parallel",)),
    )(x, w1r, s1, w2r, s2)

    pooled = jnp.transpose(pooled_flat.reshape(N, Ho, Wo, Cout), (0, 3, 1, 2))
    idx = jnp.transpose(idx_flat.reshape(N, Ho, Wo, Cout), (0, 3, 1, 2))
    out_size = (N, Cout, H, W)   # conv-output .size(); the tensor itself never leaves VMEM
    return (pooled, idx), out_size


# ---------------------------------------------------------------------------
# Pure-JAX reference for a sanity check
# ---------------------------------------------------------------------------
def _ref_forward(x_nchw, params):
    x = jnp.transpose(x_nchw, (0, 2, 3, 1))
    for w, shift in params:
        y = jax.lax.conv_general_dilated(
            x, w, window_strides=(1, 1), padding="SAME",
            dimension_numbers=("NHWC", "HWIO", "NHWC"))
        x = jnp.maximum(y + shift.reshape(1, 1, 1, -1), 0.0)
    N, H, W, C = x.shape
    pooled = x.reshape(N, H // 2, 2, W // 2, 2, C).max(axis=(2, 4))
    return jnp.transpose(pooled, (0, 3, 1, 2)), jnp.transpose(x, (0, 3, 1, 2))


if __name__ == "__main__":
    key = jax.random.PRNGKey(0)
    k_x, k_p = jax.random.split(key)

    N, Cin, Cout, H, W = 2, 4, 8, 16, 16
    x = jax.random.normal(k_x, (N, Cin, H, W), jnp.float32)
    params = init_encoder_params(k_p, Cin, Cout, n_blocks=2)

    (pooled, indices), out_size = encoder_forward(x, params)
    pooled = jax.block_until_ready(pooled)
    indices = jax.block_until_ready(indices)

    # sanity checks vs. pure-JAX reference
    ref_pooled, ref_out = _ref_forward(x, params)
    assert pooled.shape == (N, Cout, H // 2, W // 2)
    assert indices.shape == (N, Cout, H // 2, W // 2)
    assert out_size == (N, Cout, H, W)
    assert jnp.allclose(pooled, ref_pooled, atol=1e-3, rtol=1e-3), "pooled values mismatch"
    # indices must point at the max value in the flattened (H*W) plane of the conv output
    gathered = jnp.take_along_axis(
        ref_out.reshape(N, Cout, H * W), indices.reshape(N, Cout, -1), axis=-1
    ).reshape(indices.shape)
    assert jnp.allclose(gathered, ref_pooled, atol=1e-3, rtol=1e-3), "indices mismatch"

    print("KERNEL_OK")
</pallas_src>

<mosaic_0001>
module attributes {stable_mosaic.version = 11 : i64} {
  func.func @encoder2_pool_kernel(%arg0: i32, %arg1: memref<1x16x16x4xf32, #tpu.memory_space<vmem>>, %arg2: memref<36x8xf32, #tpu.memory_space<vmem>>, %arg3: memref<1x8xf32, #tpu.memory_space<vmem>>, %arg4: memref<72x8xf32, #tpu.memory_space<vmem>>, %arg5: memref<1x8xf32, #tpu.memory_space<vmem>>, %arg6: memref<1x8x64xf32, #tpu.memory_space<vmem>>, %arg7: memref<1x8x64xi32, #tpu.memory_space<vmem>>, %arg8: memref<18x18x4xf32, #tpu.memory_space<vmem>>, %arg9: memref<18x18x8xf32, #tpu.memory_space<vmem>>) attributes {dimension_semantics = [#tpu.dimension_semantics<parallel>], iteration_bounds = array<i64: 2>, scalar_prefetch = 0 : i64, scratch_operands = 2 : i64, tpu.core_type = #tpu.core_type<tc>, window_params = [{transform_indices = @transform_0, window_bounds = array<i64: 1, 16, 16, 4>}, {pipeline_mode = #tpu.pipeline_mode<synchronous>, transform_indices = @transform_1, window_bounds = array<i64: 36, 8>}, {pipeline_mode = #tpu.pipeline_mode<synchronous>, transform_indices = @transform_2, window_bounds = array<i64: 1, 8>}, {pipeline_mode = #tpu.pipeline_mode<synchronous>, transform_indices = @transform_3, window_bounds = array<i64: 72, 8>}, {pipeline_mode = #tpu.pipeline_mode<synchronous>, transform_indices = @transform_4, window_bounds = array<i64: 1, 8>}, {transform_indices = @transform_5, window_bounds = array<i64: 1, 8, 64>}, {transform_indices = @transform_6, window_bounds = array<i64: 1, 8, 64>}]} {
    %c0 = arith.constant 0 : index
    %c0_0 = arith.constant 0 : index
    %c0_1 = arith.constant 0 : index
    %c0_2 = arith.constant 0 : index
    %0 = vector.load %arg1[%c0, %c0_0, %c0_1, %c0_2] : memref<1x16x16x4xf32, #tpu.memory_space<vmem>>, vector<1x16x16x4xf32>
    %1 = vector.shape_cast %0 : vector<1x16x16x4xf32> to vector<16x16x4xf32>
    %cst = arith.constant 0.000000e+00 : f32
    %2 = vector.broadcast %cst : f32 to vector<18x18x4xf32>
    %c0_3 = arith.constant 0 : index
    %c0_4 = arith.constant 0 : index
    %c0_5 = arith.constant 0 : index
    %3 = vector.load %arg8[%c0_3, %c0_4, %c0_5] : memref<18x18x4xf32, #tpu.memory_space<vmem>>, vector<18x18x4xf32>
    tpu.vector_store %arg8[%c0_3, %c0_4, %c0_5], %2 {strides = array<i32>} : memref<18x18x4xf32, #tpu.memory_space<vmem>>, vector<18x18x4xf32>,
    %c1 = arith.constant 1 : index
    %c1_6 = arith.constant 1 : index
    %c0_7 = arith.constant 0 : index
    %4 = vector.load %arg8[%c1, %c1_6, %c0_7] : memref<18x18x4xf32, #tpu.memory_space<vmem>>, vector<16x16x4xf32>
    tpu.vector_store %arg8[%c1, %c1_6, %c0_7], %1 {strides = array<i32>} : memref<18x18x4xf32, #tpu.memory_space<vmem>>, vector<16x16x4xf32>,
    %c0_8 = arith.constant 0 : index
    %c0_9 = arith.constant 0 : index
    %c0_10 = arith.constant 0 : index
    %5 = vector.load %arg8[%c0_8, %c0_9, %c0_10] : memref<18x18x4xf32, #tpu.memory_space<vmem>>, vector<16x16x4xf32>
    %6 = vector.shape_cast %5 : vector<16x16x4xf32> to vector<256x4xf32>
    %c0_11 = arith.constant 0 : index
    %c1_12 = arith.constant 1 : index
    %c0_13 = arith.constant 0 : index
    %7 = vector.load %arg8[%c0_11, %c1_12, %c0_13] : memref<18x18x4xf32, #tpu.memory_space<vmem>>, vector<16x16x4xf32>
    %8 = vector.shape_cast %7 : vector<16x16x4xf32> to vector<256x4xf32>
    %c0_14 = arith.constant 0 : index
    %c2 = arith.constant 2 : index
    %c0_15 = arith.constant 0 : index
    %9 = vector.load %arg8[%c0_14, %c2, %c0_15] : memref<18x18x4xf32, #tpu.memory_space<vmem>>, vector<16x16x4xf32>
    %10 = vector.shape_cast %9 : vector<16x16x4xf32> to vector<256x4xf32>
    %c1_16 = arith.constant 1 : index
    %c0_17 = arith.constant 0 : index
    %c0_18 = arith.constant 0 : index
    %11 = vector.load %arg8[%c1_16, %c0_17, %c0_18] : memref<18x18x4xf32, #tpu.memory_space<vmem>>, vector<16x16x4xf32>
    %12 = vector.shape_cast %11 : vector<16x16x4xf32> to vector<256x4xf32>
    %c1_19 = arith.constant 1 : index
    %c1_20 = arith.constant 1 : index
    %c0_21 = arith.constant 0 : index
    %13 = vector.load %arg8[%c1_19, %c1_20, %c0_21] : memref<18x18x4xf32, #tpu.memory_space<vmem>>, vector<16x16x4xf32>
    %14 = vector.shape_cast %13 : vector<16x16x4xf32> to vector<256x4xf32>
    %c1_22 = arith.constant 1 : index
    %c2_23 = arith.constant 2 : index
    %c0_24 = arith.constant 0 : index
    %15 = vector.load %arg8[%c1_22, %c2_23, %c0_24] : memref<18x18x4xf32, #tpu.memory_space<vmem>>, vector<16x16x4xf32>
    %16 = vector.shape_cast %15 : vector<16x16x4xf32> to vector<256x4xf32>
    %c2_25 = arith.constant 2 : index
    %c0_26 = arith.constant 0 : index
    %c0_27 = arith.constant 0 : index
    %17 = vector.load %arg8[%c2_25, %c0_26, %c0_27] : memref<18x18x4xf32, #tpu.memory_space<vmem>>, vector<16x16x4xf32>
    %18 = vector.shape_cast %17 : vector<16x16x4xf32> to vector<256x4xf32>
    %c2_28 = arith.constant 2 : index
    %c1_29 = arith.constant 1 : index
    %c0_30 = arith.constant 0 : index
    %19 = vector.load %arg8[%c2_28, %c1_29, %c0_30] : memref<18x18x4xf32, #tpu.memory_space<vmem>>, vector<16x16x4xf32>
    %20 = vector.shape_cast %19 : vector<16x16x4xf32> to vector<256x4xf32>
    %c2_31 = arith.constant 2 : index
    %c2_32 = arith.constant 2 : index
    %c0_33 = arith.constant 0 : index
    %21 = vector.load %arg8[%c2_31, %c2_32, %c0_33] : memref<18x18x4xf32, #tpu.memory_space<vmem>>, vector<16x16x4xf32>
    %22 = vector.shape_cast %21 : vector<16x16x4xf32> to vector<256x4xf32>
    %23 = tpu.concatenate %6, %8, %10, %12, %14, %16, %18, %20, %22 in 1 : vector<256x4xf32>, vector<256x4xf32>, vector<256x4xf32>, vector<256x4xf32>, vector<256x4xf32>, vector<256x4xf32>, vector<256x4xf32>, vector<256x4xf32>, vector<256x4xf32> -> vector<256x36xf32>
    %c0_34 = arith.constant 0 : index
    %c0_35 = arith.constant 0 : index
    %24 = vector.load %arg2[%c0_34, %c0_35] : memref<36x8xf32, #tpu.memory_space<vmem>>, vector<36x8xf32>
    %cst_36 = arith.constant dense<0.000000e+00> : vector<256x8xf32>
    %25 = tpu.matmul %23, %24, %cst_36 {dimension_numbers = #tpu.dot_dimension_numbers<[1], [0], [0], [1], [0, 0, 1, 1], [], []>} : vector<256x36xf32>, vector<36x8xf32>, vector<256x8xf32> -> vector<256x8xf32>
    %c0_37 = arith.constant 0 : index
    %c0_38 = arith.constant 0 : index
    %26 = vector.load %arg3[%c0_37, %c0_38] : memref<1x8xf32, #tpu.memory_space<vmem>>, vector<1x8xf32>
    %27 = vector.broadcast %26 : vector<1x8xf32> to vector<256x8xf32>
    %28 = arith.addf %25, %27 : vector<256x8xf32>
    %cst_39 = arith.constant 0.000000e+00 : f32
    %29 = vector.broadcast %cst_39 : f32 to vector<256x8xf32>
    %30 = arith.maximumf %28, %29 : vector<256x8xf32>
    %31 = vector.shape_cast %30 : vector<256x8xf32> to vector<16x16x8xf32>
    %cst_40 = arith.constant 0.000000e+00 : f32
    %32 = vector.broadcast %cst_40 : f32 to vector<18x18x8xf32>
    %c0_41 = arith.constant 0 : index
    %c0_42 = arith.constant 0 : index
    %c0_43 = arith.constant 0 : index
    %33 = vector.load %arg9[%c0_41, %c0_42, %c0_43] : memref<18x18x8xf32, #tpu.memory_space<vmem>>, vector<18x18x8xf32>
    tpu.vector_store %arg9[%c0_41, %c0_42, %c0_43], %32 {strides = array<i32>} : memref<18x18x8xf32, #tpu.memory_space<vmem>>, vector<18x18x8xf32>,
    %c1_44 = arith.constant 1 : index
    %c1_45 = arith.constant 1 : index
    %c0_46 = arith.constant 0 : index
    %34 = vector.load %arg9[%c1_44, %c1_45, %c0_46] : memref<18x18x8xf32, #tpu.memory_space<vmem>>, vector<16x16x8xf32>
    tpu.vector_store %arg9[%c1_44, %c1_45, %c0_46], %31 {strides = array<i32>} : memref<18x18x8xf32, #tpu.memory_space<vmem>>, vector<16x16x8xf32>,
    %c0_47 = arith.constant 0 : index
    %c0_48 = arith.constant 0 : index
    %c0_49 = arith.constant 0 : index
    %35 = vector.load %arg9[%c0_47, %c0_48, %c0_49] : memref<18x18x8xf32, #tpu.memory_space<vmem>>, vector<16x16x8xf32>
    %36 = vector.shape_cast %35 : vector<16x16x8xf32> to vector<256x8xf32>
    %c0_50 = arith.constant 0 : index
    %c1_51 = arith.constant 1 : index
    %c0_52 = arith.constant 0 : index
    %37 = vector.load %arg9[%c0_50, %c1_51, %c0_52] : memref<18x18x8xf32, #tpu.memory_space<vmem>>, vector<16x16x8xf32>
    %38 = vector.shape_cast %37 : vector<16x16x8xf32> to vector<256x8xf32>
    %c0_53 = arith.constant 0 : index
    %c2_54 = arith.constant 2 : index
    %c0_55 = arith.constant 0 : index
    %39 = vector.load %arg9[%c0_53, %c2_54, %c0_55] : memref<18x18x8xf32, #tpu.memory_space<vmem>>, vector<16x16x8xf32>
    %40 = vector.shape_cast %39 : vector<16x16x8xf32> to vector<256x8xf32>
    %c1_56 = arith.constant 1 : index
    %c0_57 = arith.constant 0 : index
    %c0_58 = arith.constant 0 : index
    %41 = vector.load %arg9[%c1_56, %c0_57, %c0_58] : memref<18x18x8xf32, #tpu.memory_space<vmem>>, vector<16x16x8xf32>
    %42 = vector.shape_cast %41 : vector<16x16x8xf32> to vector<256x8xf32>
    %c1_59 = arith.constant 1 : index
    %c1_60 = arith.constant 1 : index
    %c0_61 = arith.constant 0 : index
    %43 = vector.load %arg9[%c1_59, %c1_60, %c0_61] : memref<18x18x8xf32, #tpu.memory_space<vmem>>, vector<16x16x8xf32>
    %44 = vector.shape_cast %43 : vector<16x16x8xf32> to vector<256x8xf32>
    %c1_62 = arith.constant 1 : index
    %c2_63 = arith.constant 2 : index
    %c0_64 = arith.constant 0 : index
    %45 = vector.load %arg9[%c1_62, %c2_63, %c0_64] : memref<18x18x8xf32, #tpu.memory_space<vmem>>, vector<16x16x8xf32>
    %46 = vector.shape_cast %45 : vector<16x16x8xf32> to vector<256x8xf32>
    %c2_65 = arith.constant 2 : index
    %c0_66 = arith.constant 0 : index
    %c0_67 = arith.constant 0 : index
    %47 = vector.load %arg9[%c2_65, %c0_66, %c0_67] : memref<18x18x8xf32, #tpu.memory_space<vmem>>, vector<16x16x8xf32>
    %48 = vector.shape_cast %47 : vector<16x16x8xf32> to vector<256x8xf32>
    %c2_68 = arith.constant 2 : index
    %c1_69 = arith.constant 1 : index
    %c0_70 = arith.constant 0 : index
    %49 = vector.load %arg9[%c2_68, %c1_69, %c0_70] : memref<18x18x8xf32, #tpu.memory_space<vmem>>, vector<16x16x8xf32>
    %50 = vector.shape_cast %49 : vector<16x16x8xf32> to vector<256x8xf32>
    %c2_71 = arith.constant 2 : index
    %c2_72 = arith.constant 2 : index
    %c0_73 = arith.constant 0 : index
    %51 = vector.load %arg9[%c2_71, %c2_72, %c0_73] : memref<18x18x8xf32, #tpu.memory_space<vmem>>, vector<16x16x8xf32>
    %52 = vector.shape_cast %51 : vector<16x16x8xf32> to vector<256x8xf32>
    %53 = tpu.concatenate %36, %38, %40, %42, %44, %46, %48, %50, %52 in 1 : vector<256x8xf32>, vector<256x8xf32>, vector<256x8xf32>, vector<256x8xf32>, vector<256x8xf32>, vector<256x8xf32>, vector<256x8xf32>, vector<256x8xf32>, vector<256x8xf32> -> vector<256x72xf32>
    %c0_74 = arith.constant 0 : index
    %c0_75 = arith.constant 0 : index
    %54 = vector.load %arg4[%c0_74, %c0_75] : memref<72x8xf32, #tpu.memory_space<vmem>>, vector<72x8xf32>
    %cst_76 = arith.constant dense<0.000000e+00> : vector<256x8xf32>
    %55 = tpu.matmul %53, %54, %cst_76 {dimension_numbers = #tpu.dot_dimension_numbers<[1], [0], [0], [1], [0, 0, 1, 1], [], []>} : vector<256x72xf32>, vector<72x8xf32>, vector<256x8xf32> -> vector<256x8xf32>
    %c0_77 = arith.constant 0 : index
    %c0_78 = arith.constant 0 : index
    %56 = vector.load %arg5[%c0_77, %c0_78] : memref<1x8xf32, #tpu.memory_space<vmem>>, vector<1x8xf32>
    %57 = vector.broadcast %56 : vector<1x8xf32> to vector<256x8xf32>
    %58 = arith.addf %55, %57 : vector<256x8xf32>
    %cst_79 = arith.constant 0.000000e+00 : f32
    %59 = vector.broadcast %cst_79 : f32 to vector<256x8xf32>
    %60 = arith.maximumf %58, %59 : vector<256x8xf32>
    %61 = vector.shape_cast %60 : vector<256x8xf32> to vector<8x2x8x2x8xf32>
    %62 = tpu.iota {dimensions = array<i32: 0>} : vector<8x8x8xi32>
    %63 = tpu.iota {dimensions = array<i32: 1>} : vector<8x8x8xi32>
    %64 = vector.extract_strided_slice %61 {offsets = [0, 0, 0, 0, 0], sizes = [8, 1, 8, 1, 8], strides = [1, 1, 1, 1, 1]} : vector<8x2x8x2x8xf32> to vector<8x1x8x1x8xf32>
    %65 = vector.shape_cast %64 : vector<8x1x8x1x8xf32> to vector<8x8x8xf32>
    %c2_i32 = arith.constant 2 : i32
    %66 = vector.broadcast %c2_i32 : i32 to vector<8x8x8xi32>
    %67 = arith.muli %66, %62 : vector<8x8x8xi32>
    %c16_i32 = arith.constant 16 : i32
    %68 = vector.broadcast %c16_i32 : i32 to vector<8x8x8xi32>
    %69 = arith.muli %67, %68 : vector<8x8x8xi32>
    %c2_i32_80 = arith.constant 2 : i32
    %70 = vector.broadcast %c2_i32_80 : i32 to vector<8x8x8xi32>
    %71 = arith.muli %70, %63 : vector<8x8x8xi32>
    %72 = arith.addi %69, %71 : vector<8x8x8xi32>
    %73 = vector.extract_strided_slice %61 {offsets = [0, 0, 0, 1, 0], sizes = [8, 1, 8, 1, 8], strides = [1, 1, 1, 1, 1]} : vector<8x2x8x2x8xf32> to vector<8x1x8x1x8xf32>
    %74 = vector.shape_cast %73 : vector<8x1x8x1x8xf32> to vector<8x8x8xf32>
    %c2_i32_81 = arith.constant 2 : i32
    %75 = vector.broadcast %c2_i32_81 : i32 to vector<8x8x8xi32>
    %76 = arith.muli %75, %62 : vector<8x8x8xi32>
    %c0_i32 = arith.constant 0 : i32
    %77 = vector.broadcast %c0_i32 : i32 to vector<8x8x8xi32>
    %78 = arith.addi %76, %77 : vector<8x8x8xi32>
    %c16_i32_82 = arith.constant 16 : i32
    %79 = vector.broadcast %c16_i32_82 : i32 to vector<8x8x8xi32>
    %80 = arith.muli %78, %79 : vector<8x8x8xi32>
    %c2_i32_83 = arith.constant 2 : i32
    %81 = vector.broadcast %c2_i32_83 : i32 to vector<8x8x8xi32>
    %82 = arith.muli %81, %63 : vector<8x8x8xi32>
    %c1_i32 = arith.constant 1 : i32
    %83 = vector.broadcast %c1_i32 : i32 to vector<8x8x8xi32>
    %84 = arith.addi %82, %83 : vector<8x8x8xi32>
    %85 = arith.addi %80, %84 : vector<8x8x8xi32>
    %86 = arith.cmpf ogt, %74, %65 : vector<8x8x8xf32>
    %87 = arith.select %86, %85, %72 : vector<8x8x8xi1>, vector<8x8x8xi32>
    %88 = arith.select %86, %74, %65 : vector<8x8x8xi1>, vector<8x8x8xf32>
    %89 = vector.extract_strided_slice %61 {offsets = [0, 1, 0, 0, 0], sizes = [8, 1, 8, 1, 8], strides = [1, 1, 1, 1, 1]} : vector<8x2x8x2x8xf32> to vector<8x1x8x1x8xf32>
    %90 = vector.shape_cast %89 : vector<8x1x8x1x8xf32> to vector<8x8x8xf32>
    %c2_i32_84 = arith.constant 2 : i32
    %91 = vector.broadcast %c2_i32_84 : i32 to vector<8x8x8xi32>
    %92 = arith.muli %91, %62 : vector<8x8x8xi32>
    %c1_i32_85 = arith.constant 1 : i32
    %93 = vector.broadcast %c1_i32_85 : i32 to vector<8x8x8xi32>
    %94 = arith.addi %92, %93 : vector<8x8x8xi32>
    %c16_i32_86 = arith.constant 16 : i32
    %95 = vector.broadcast %c16_i32_86 : i32 to vector<8x8x8xi32>
    %96 = arith.muli %94, %95 : vector<8x8x8xi32>
    %c2_i32_87 = arith.constant 2 : i32
    %97 = vector.broadcast %c2_i32_87 : i32 to vector<8x8x8xi32>
    %98 = arith.muli %97, %63 : vector<8x8x8xi32>
    %c0_i32_88 = arith.constant 0 : i32
    %99 = vector.broadcast %c0_i32_88 : i32 to vector<8x8x8xi32>
    %100 = arith.addi %98, %99 : vector<8x8x8xi32>
    %101 = arith.addi %96, %100 : vector<8x8x8xi32>
    %102 = arith.cmpf ogt, %90, %88 : vector<8x8x8xf32>
    %103 = arith.select %102, %101, %87 : vector<8x8x8xi1>, vector<8x8x8xi32>
    %104 = arith.select %102, %90, %88 : vector<8x8x8xi1>, vector<8x8x8xf32>
    %105 = vector.extract_strided_slice %61 {offsets = [0, 1, 0, 1, 0], sizes = [8, 1, 8, 1, 8], strides = [1, 1, 1, 1, 1]} : vector<8x2x8x2x8xf32> to vector<8x1x8x1x8xf32>
    %106 = vector.shape_cast %105 : vector<8x1x8x1x8xf32> to vector<8x8x8xf32>
    %c2_i32_89 = arith.constant 2 : i32
    %107 = vector.broadcast %c2_i32_89 : i32 to vector<8x8x8xi32>
    %108 = arith.muli %107, %62 : vector<8x8x8xi32>
    %c1_i32_90 = arith.constant 1 : i32
    %109 = vector.broadcast %c1_i32_90 : i32 to vector<8x8x8xi32>
    %110 = arith.addi %108, %109 : vector<8x8x8xi32>
    %c16_i32_91 = arith.constant 16 : i32
    %111 = vector.broadcast %c16_i32_91 : i32 to vector<8x8x8xi32>
    %112 = arith.muli %110, %111 : vector<8x8x8xi32>
    %c2_i32_92 = arith.constant 2 : i32
    %113 = vector.broadcast %c2_i32_92 : i32 to vector<8x8x8xi32>
    %114 = arith.muli %113, %63 : vector<8x8x8xi32>
    %c1_i32_93 = arith.constant 1 : i32
    %115 = vector.broadcast %c1_i32_93 : i32 to vector<8x8x8xi32>
    %116 = arith.addi %114, %115 : vector<8x8x8xi32>
    %117 = arith.addi %112, %116 : vector<8x8x8xi32>
    %118 = arith.cmpf ogt, %106, %104 : vector<8x8x8xf32>
    %119 = arith.select %118, %117, %103 : vector<8x8x8xi1>, vector<8x8x8xi32>
    %120 = arith.select %118, %106, %104 : vector<8x8x8xi1>, vector<8x8x8xf32>
    %121 = vector.shape_cast %120 : vector<8x8x8xf32> to vector<8x64xf32>
    %c0_94 = arith.constant 0 : index
    %c0_95 = arith.constant 0 : index
    %c0_96 = arith.constant 0 : index
    %122 = vector.load %arg6[%c0_94, %c0_95, %c0_96] : memref<1x8x64xf32, #tpu.memory_space<vmem>>, vector<1x8x64xf32>
    %123 = vector.shape_cast %122 : vector<1x8x64xf32> to vector<8x64xf32>
    %124 = vector.shape_cast %121 : vector<8x64xf32> to vector<1x8x64xf32>
    tpu.vector_store %arg6[%c0_94, %c0_95, %c0_96], %124 {strides = array<i32>} : memref<1x8x64xf32, #tpu.memory_space<vmem>>, vector<1x8x64xf32>,
    %125 = vector.shape_cast %119 : vector<8x8x8xi32> to vector<8x64xi32>
    %c0_97 = arith.constant 0 : index
    %c0_98 = arith.constant 0 : index
    %c0_99 = arith.constant 0 : index
    %126 = vector.load %arg7[%c0_97, %c0_98, %c0_99] : memref<1x8x64xi32, #tpu.memory_space<vmem>>, vector<1x8x64xi32>
    %127 = vector.shape_cast %126 : vector<1x8x64xi32> to vector<8x64xi32>
    %128 = vector.shape_cast %125 : vector<8x64xi32> to vector<1x8x64xi32>
    tpu.vector_store %arg7[%c0_97, %c0_98, %c0_99], %128 {strides = array<i32>} : memref<1x8x64xi32, #tpu.memory_space<vmem>>, vector<1x8x64xi32>,
    return
  }
  func.func @transform_0(%arg0: i32) -> (i32, i32, i32, i32) {
    %c0_i32 = arith.constant 0 : i32
    %c0_i32_0 = arith.constant 0 : i32
    %c0_i32_1 = arith.constant 0 : i32
    %c0_i32_2 = arith.constant 0 : i32
    return %arg0, %c0_i32, %c0_i32_0, %c0_i32_1 : i32, i32, i32, i32
  }
  func.func @transform_1(%arg0: i32) -> (i32, i32) {
    %c0_i32 = arith.constant 0 : i32
    %c0_i32_0 = arith.constant 0 : i32
    %c0_i32_1 = arith.constant 0 : i32
    return %c0_i32, %c0_i32_0 : i32, i32
  }
  func.func @transform_2(%arg0: i32) -> (i32, i32) {
    %c0_i32 = arith.constant 0 : i32
    %c0_i32_0 = arith.constant 0 : i32
    %c0_i32_1 = arith.constant 0 : i32
    return %c0_i32, %c0_i32_0 : i32, i32
  }
  func.func @transform_3(%arg0: i32) -> (i32, i32) {
    %c0_i32 = arith.constant 0 : i32
    %c0_i32_0 = arith.constant 0 : i32
    %c0_i32_1 = arith.constant 0 : i32
    return %c0_i32, %c0_i32_0 : i32, i32
  }
  func.func @transform_4(%arg0: i32) -> (i32, i32) {
    %c0_i32 = arith.constant 0 : i32
    %c0_i32_0 = arith.constant 0 : i32
    %c0_i32_1 = arith.constant 0 : i32
    return %c0_i32, %c0_i32_0 : i32, i32
  }
  func.func @transform_5(%arg0: i32) -> (i32, i32, i32) {
    %c0_i32 = arith.constant 0 : i32
    %c0_i32_0 = arith.constant 0 : i32
    %c0_i32_1 = arith.constant 0 : i32
    return %arg0, %c0_i32, %c0_i32_0 : i32, i32, i32
  }
  func.func @transform_6(%arg0: i32) -> (i32, i32, i32) {
    %c0_i32 = arith.constant 0 : i32
    %c0_i32_0 = arith.constant 0 : i32
    %c0_i32_1 = arith.constant 0 : i32
    return %arg0, %c0_i32, %c0_i32_0 : i32, i32, i32
  }
}

</mosaic_0001>

<bundles_post_ra>
// kernel: tpu_custom_call.1
= control target key start
LH: loop header
LB: loop body
LE: loop exit
PB: predicated region body
PF: predicated region fallthrough
CT: control target
= control target key end

     0   :  { %12 = vsyncpa [#allocation5], 0  ;;  %s15786_s0 = inlined_call_operand.vmem [shape: f32[2,16,16,4], index: 0, kind: input, shape index: {}]   ;;  %s15787_s1 = inlined_call_operand.vmem [shape: f32[36,8], index: 1, kind: input, shape index: {}]   ;;  %s15788_s2 = inlined_call_operand.vmem [shape: f32[1,8], index: 2, kind: input, shape index: {}]   ;;  %s15789_s3 = inlined_call_operand.vmem [shape: f32[72,8], index: 3, kind: input, shape index: {}]   ;;  %s15790_s4 = inlined_call_operand.vmem [shape: f32[1,8], index: 4, kind: input, shape index: {}]   ;;  %s15791_s5 = inlined_call_operand.hbm [shape: f32[2,8,64], index: 5, kind: output, shape index: {0}]   ;;  %s15792_s6 = inlined_call_operand.hbm [shape: s32[2,8,64], index: 6, kind: output, shape index: {1}]  }
   0x1   :  { %14 = vsyncpa [#allocation5 + $0x1], 0 }
   0x2   :  { %15 = vsyncpa [#allocation7], 0 }
   0x3   :  { %17 = vsyncpa [#allocation7 + $0x1], 0  ;;  %s9424_s21 = smov 0   ;;  %s9426_s22 = smov 0  }
   0x4   :  { %s9428_s23 = smov 0   ;;  %s9430_s24 = smov 0  }
   0x5 LB: > { %s9445_s25 = sadd.s32 4294967295, %s9366_s24   ;;  %s8782_s26 = sadd.s32 4294967294, %s9366_s24   ;;  %s9366_s24 = sphi %s9430_s24, %s17501_s24   ;;  %s9362_s23 = sphi %s9428_s23, %s17500_s23   ;;  %s9358_s22 = sphi %s9426_s22, %s17499_s22   ;;  %s9354_s21 = sphi %s9424_s21, %s17498_s21  }
   0x6   : > { %s9449_s27 = sadd.s32 1, %s9366_s24   ;;  %s140_s28 = sadd.s32 1, %s9362_s23 }
   0x7   : > { %s137_s29 = ssub.s32 %s9366_s24, %s9449_s27  ;;  %p150_p0 = scmp.ne.s32.totalorder %s9362_s23, %s9358_s22 }
   0x8   : > { %p138_p1 = scmp.eq.s32.totalorder %s137_s29, 0  ;;  %p151_p2 = scmp.eq.s32.totalorder %s9445_s25, 1 }
   0x9   : > { %p156_p3 = scmp.ne.s32.totalorder %s9358_s22, %s9354_s21  ;;  %p157_p4 = scmp.eq.s32.totalorder %s8782_s26, 1 }
   0xa   : > { %s9460_s30 = scalar_select %p138_p1, %s9362_s23, %s140_s28  }
   0xb   : > { %p9462_p5 = por %p151_p2, %p150_p0  ;;  %p9466_p6 = por %p157_p4, %p156_p3 }
   0xc   : > { %p8785_p7 = scmp.ge.s32.totalorder %s9366_s24, 1  ;;  %p221_p8 = scmp.lt.s32.totalorder %s9366_s24, 3 }
   0xe   : > { %p222_p9 = pnand %p8785_p7, %p221_p8 }
  0x10   : > { %225 = sbr.rel (%p222_p9) target bundleno = 2016 (0x7e0), region = 40 }
  0x17   : > { %vm293_vm0 = vcmask 31744   ;;  %vm296_vm1 = vcmask 25600   ;;  %p256_p10 = scmp.lt.s32.totalorder %s9445_s25, 1  ;;  %v15793_v0 = vmov 0.0   ;;  %s9369_s14 = smov 4   ;;  %vm15879_vm2 = vcmask 64512  }
  0x18   : > { %294 = vst.msk [vmem:[#allocation2] sm:$0xff] %vm293_vm0, %v15793_v0  ;;  %295 = vst.msk [vmem:[#allocation2 + $0x8] sm:$0xff] %vm293_vm0, %v15793_v0  ;;  %s9370_s15 = smov 8   ;;  %s9371_s16 = smov 12   ;;  %vm2067_vm3 = vcmask 1043456   ;;  %vm1760_vm4 = vcmask 97280  }
  0x19   : > { %298 = vst.msk [vmem:[#allocation2 + $0x18] sm:$0xff] %vm293_vm0, %v15793_v0  ;;  %299 = vst.msk [vmem:[#allocation2 + $0x20] sm:$0xff] %vm293_vm0, %v15793_v0  ;;  %s257_s9 = scalar_select %p256_p10, %s9445_s25, 1  ;;  %vm15935_vm5 = vcmask 130048   ;;  %vm1826_vm6 = vcmask 162816   ;;  %vm15934_vm7 = vcmask 195584  }
  0x1a   : > { %301 = vst.msk [vmem:[#allocation2 + $0x30] sm:$0xff] %vm293_vm0, %v15793_v0  ;;  %302 = vst.msk [vmem:[#allocation2 + $0x38] sm:$0xff] %vm293_vm0, %v15793_v0  ;;  %s9372_s17 = smov 16   ;;  %s9373_s18 = smov 20   ;;  %vm1892_vm8 = vcmask 228352   ;;  %vm15933_vm9 = vcmask 261120  }
  0x1b   : > { %304 = vst.msk [vmem:[#allocation2 + $0x48] sm:$0xff] %vm293_vm0, %v15793_v0  ;;  %305 = vst.msk [vmem:[#allocation2 + $0x50] sm:$0xff] %vm293_vm0, %v15793_v0  ;;  %s8943_s10 = sshll.u32 %s257_s9, 8  ;;  %s9374_s12 = smov 24   ;;  %vm1970_vm10 = vcmask 293888   ;;  %vm2330_vm11 = vcmask 58368  }
  0x1c   : > { %307 = vst.msk [vmem:[#allocation2 + $0x60] sm:$0xff] %vm293_vm0, %v15793_v0  ;;  %308 = vst.msk [vmem:[#allocation2 + $0x68] sm:$0xff] %vm293_vm0, %v15793_v0  ;;  %s9587_s13 = scalar_lea.vmem %s15786_s0, %s8943_s10  ;;  %s9378_s29 = smov 48   ;;  %vm15975_vm12 = vcmask 326656   ;;  %vm15971_vm13 = vcmask 392192   ;;  %vm16026_vm14 = vcmask 457728  }
  0x1d   : > { %310 = vst.msk [vmem:[#allocation2 + $0x78] sm:$0xff] %vm293_vm0, %v15793_v0  ;;  %311 = vst.msk [vmem:[#allocation2 + $0x80] sm:$0xff] %vm293_vm0, %v15793_v0  ;;  %v261_v1 = vld [vmem:[%s9587_s13] sm:$0xff]  ;;  %v263_v2 = vld [vmem:[%s9587_s13 + $0x10] sm:$0xff]  ;;  %s9380_s26 = smov 64   ;;  %vm16020_vm15 = vcmask 523264  }
  0x1e   : > { %313 = vst.msk [vmem:[#allocation2 + $0x90] sm:$0xff] %vm293_vm0, %v15793_v0  ;;  %314 = vst.msk [vmem:[#allocation2 + $0x98] sm:$0xff] %vm293_vm0, %v15793_v0  ;;  %v262_v3 = vld [vmem:[%s9587_s13 + $0x8] sm:$0xff]  ;;  %v265_v4 = vld [vmem:[%s9587_s13 + $0x20] sm:$0xff]  ;;  %s9387_s11 = smov [#allocation4]  }
  0x1f   : > { %316 = vst.msk [vmem:[#allocation2 + $0xa8] sm:$0xff] %vm293_vm0, %v15793_v0  ;;  %317 = vst.msk [vmem:[#allocation2 + $0xb0] sm:$0xff] %vm293_vm0, %v15793_v0  ;;  %v264_v5 = vld [vmem:[%s9587_s13 + $0x18] sm:$0xff]  ;;  %v267_v6 = vld [vmem:[%s9587_s13 + $0x30] sm:$0xff] }
  0x20   : > { %319 = vst.msk [vmem:[#allocation2 + $0xc0] sm:$0xff] %vm293_vm0, %v15793_v0  ;;  %320 = vst.msk [vmem:[#allocation2 + $0xc8] sm:$0xff] %vm293_vm0, %v15793_v0  ;;  %v414_v7 = vld [vmem:[#allocation2 + $0x1] sm:$0xff]  ;;  %v268_v11 = vld [vmem:[%s9587_s13 + $0x38] sm:$0xff] }
  0x21   : > { %322 = vst.msk [vmem:[#allocation2 + $0xd8] sm:$0xff] %vm293_vm0, %v15793_v0  ;;  %323 = vst.msk [vmem:[#allocation2 + $0xe0] sm:$0xff] %vm293_vm0, %v15793_v0  ;;  %v266_v9 = vld [vmem:[%s9587_s13 + $0x28] sm:$0xff]  ;;  %703 = vrot.lane.b32.xlu0 %v414_v7, %s9369_s14  ;;  %v269_v10 = vld [vmem:[%s9587_s13 + $0x40] sm:$0xff] }
  0x22   : > { %325 = vst.msk [vmem:[#allocation2 + $0xf0] sm:$0xff] %vm293_vm0, %v15793_v0  ;;  %326 = vst.msk [vmem:[#allocation2 + $0xf8] sm:$0xff] %vm293_vm0, %v15793_v0  ;;  %v271_v12 = vld [vmem:[%s9587_s13 + $0x50] sm:$0xff]  ;;  %v270_v13 = vld [vmem:[%s9587_s13 + $0x48] sm:$0xff] }
  0x23   : > { %328 = vst.msk [vmem:[#allocation2 + $0x108] sm:$0xff] %vm293_vm0, %v15793_v0  ;;  %329 = vst.msk [vmem:[#allocation2 + $0x110] sm:$0xff] %vm293_vm0, %v15793_v0  ;;  %v273_v14 = vld [vmem:[%s9587_s13 + $0x60] sm:$0xff]  ;;  %v272_v15 = vld [vmem:[%s9587_s13 + $0x58] sm:$0xff] }
  0x24   : > { %331 = vst.msk [vmem:[#allocation2 + $0x120] sm:$0xff] %vm293_vm0, %v15793_v0  ;;  %332 = vst.msk [vmem:[#allocation2 + $0x128] sm:$0xff] %vm293_vm0, %v15793_v0  ;;  %v275_v16 = vld [vmem:[%s9587_s13 + $0x70] sm:$0xff]  ;;  %v274_v17 = vld [vmem:[%s9587_s13 + $0x68] sm:$0xff] }
  0x25   : > { %334 = vst.msk [vmem:[#allocation2 + $0x138] sm:$0xff] %vm293_vm0, %v15793_v0  ;;  %335 = vst.msk [vmem:[#allocation2 + $0x140] sm:$0xff] %vm293_vm0, %v15793_v0  ;;  %v277_v18 = vld [vmem:[%s9587_s13 + $0x80] sm:$0xff]  ;;  %v276_v19 = vld [vmem:[%s9587_s13 + $0x78] sm:$0xff] }
  0x26   : > { %337 = vst.msk [vmem:[#allocation2 + $0x150] sm:$0xff] %vm293_vm0, %v15793_v0  ;;  %338 = vst.msk [vmem:[#allocation2 + $0x158] sm:$0xff] %vm293_vm0, %v15793_v0  ;;  %v279_v20 = vld [vmem:[%s9587_s13 + $0x90] sm:$0xff]  ;;  %v278_v21 = vld [vmem:[%s9587_s13 + $0x88] sm:$0xff] }
  0x27   : > { %340 = vst.msk [vmem:[#allocation2 + $0x168] sm:$0xff] %vm293_vm0, %v15793_v0  ;;  %341 = vst.msk [vmem:[#allocation2 + $0x170] sm:$0xff] %vm293_vm0, %v15793_v0  ;;  %v281_v22 = vld [vmem:[%s9587_s13 + $0xa0] sm:$0xff]  ;;  %v280_v23 = vld [vmem:[%s9587_s13 + $0x98] sm:$0xff] }
  0x28   : > { %343 = vst.msk [vmem:[#allocation2 + $0x180] sm:$0xff] %vm293_vm0, %v15793_v0  ;;  %344 = vst.msk [vmem:[#allocation2 + $0x188] sm:$0xff] %vm293_vm0, %v15793_v0  ;;  %v283_v24 = vld [vmem:[%s9587_s13 + $0xb0] sm:$0xff]  ;;  %v282_v28 = vld [vmem:[%s9587_s13 + $0xa8] sm:$0xff] }
  0x29   : > { %346 = vst.msk [vmem:[#allocation2 + $0x198] sm:$0xff] %vm293_vm0, %v15793_v0  ;;  %347 = vst.msk [vmem:[#allocation2 + $0x1a0] sm:$0xff] %vm293_vm0, %v15793_v0  ;;  %v285_v29 = vld [vmem:[%s9587_s13 + $0xc0] sm:$0xff]  ;;  %v284_v33 = vld [vmem:[%s9587_s13 + $0xb8] sm:$0xff] }
  0x2a   : > { %297 = vst.msk [vmem:[#allocation2 + $0x10] sm:$0x3] %vm296_vm1, %v15793_v0  ;;  %300 = vst.msk [vmem:[#allocation2 + $0x28] sm:$0x3] %vm296_vm1, %v15793_v0  ;;  %v287_v34 = vld [vmem:[%s9587_s13 + $0xd0] sm:$0xff]  ;;  %v286_v35 = vld [vmem:[%s9587_s13 + $0xc8] sm:$0xff] }
  0x2b   : > { %303 = vst.msk [vmem:[#allocation2 + $0x40] sm:$0x3] %vm296_vm1, %v15793_v0  ;;  %306 = vst.msk [vmem:[#allocation2 + $0x58] sm:$0x3] %vm296_vm1, %v15793_v0  ;;  %v289_v36 = vld [vmem:[%s9587_s13 + $0xe0] sm:$0xff]  ;;  %v288_v37 = vld [vmem:[%s9587_s13 + $0xd8] sm:$0xff] }
  0x2c   : > { %309 = vst.msk [vmem:[#allocation2 + $0x70] sm:$0x3] %vm296_vm1, %v15793_v0  ;;  %312 = vst.msk [vmem:[#allocation2 + $0x88] sm:$0x3] %vm296_vm1, %v15793_v0  ;;  %v290_v39 = vld [vmem:[%s9587_s13 + $0xe8] sm:$0xff]  ;;  %v291_v58 = vld [vmem:[%s9587_s13 + $0xf0] sm:$0xff] }
  0x2d   : > { %315 = vst.msk [vmem:[#allocation2 + $0xa0] sm:$0x3] %vm296_vm1, %v15793_v0  ;;  %318 = vst.msk [vmem:[#allocation2 + $0xb8] sm:$0x3] %vm296_vm1, %v15793_v0  ;;  %v292_v62 = vld [vmem:[%s9587_s13 + $0xf8] sm:$0xff]  ;;  %s9276_s13 = sshll.u32 %s9387_s11, 4  ;;  %s9277_s13 = int_to_ptr.vmem [resolvable:$false] %s9276_s13 }
  0x2e   : > { %321 = vst.msk [vmem:[#allocation2 + $0xd0] sm:$0x3] %vm296_vm1, %v15793_v0  ;;  %324 = vst.msk [vmem:[#allocation2 + $0xe8] sm:$0x3] %vm296_vm1, %v15793_v0  ;;  %s9278_s19 = scalar_lea.vmem %s9277_s13, 256 }
  0x2f   : > { %327 = vst.msk [vmem:[#allocation2 + $0x100] sm:$0x3] %vm296_vm1, %v15793_v0  ;;  %330 = vst.msk [vmem:[#allocation2 + $0x118] sm:$0x3] %vm296_vm1, %v15793_v0 }
  0x30   : > { %333 = vst.msk [vmem:[#allocation2 + $0x130] sm:$0x3] %vm296_vm1, %v15793_v0  ;;  %336 = vst.msk [vmem:[#allocation2 + $0x148] sm:$0x3] %vm296_vm1, %v15793_v0 }
  0x31   : > { %339 = vst.msk [vmem:[#allocation2 + $0x160] sm:$0x3] %vm296_vm1, %v15793_v0  ;;  %342 = vst.msk [vmem:[#allocation2 + $0x178] sm:$0x3] %vm296_vm1, %v15793_v0  ;;  %v415_v8 = vld [vmem:[#allocation2 + $0x9] sm:$0xff] }
  0x32   : > { %345 = vst.msk [vmem:[#allocation2 + $0x190] sm:$0x3] %vm296_vm1, %v15793_v0  ;;  %348 = vst.msk [vmem:[#allocation2 + $0x1a8] sm:$0x3] %vm296_vm1, %v15793_v0  ;;  %705 = vrot.lane.b32.xlu0 %v415_v8, %s9369_s14 }
  0x33   : > { %350 = vst.msk [vmem:[#allocation2 + $0x19] sm:$0xff] %vm293_vm0, %v261_v1  ;;  %352 = vst.msk [vmem:[#allocation2 + $0x31] sm:$0xff] %vm293_vm0, %v263_v2  ;;  %v446_v1 = vld [vmem:[#allocation2 + $0x2] sm:$0xff] }
  0x34   : > { %351 = vst.msk [vmem:[#allocation2 + $0x21] sm:$0xff] %vm293_vm0, %v262_v3  ;;  %354 = vst.msk [vmem:[#allocation2 + $0x49] sm:$0xff] %vm293_vm0, %v265_v4  ;;  %v447_v4 = vld [vmem:[#allocation2 + $0xa] sm:$0xff] }
  0x35   : > { %353 = vst.msk [vmem:[#allocation2 + $0x39] sm:$0xff] %vm293_vm0, %v264_v5  ;;  %356 = vst.msk [vmem:[#allocation2 + $0x61] sm:$0xff] %vm293_vm0, %v267_v6 }
  0x36   : > { %355 = vst.msk [vmem:[#allocation2 + $0x51] sm:$0xff] %vm293_vm0, %v266_v9  ;;  %358 = vst.msk [vmem:[#allocation2 + $0x79] sm:$0xff] %vm293_vm0, %v269_v10 }
  0x37   : > { %357 = vst.msk [vmem:[#allocation2 + $0x69] sm:$0xff] %vm293_vm0, %v268_v11  ;;  %360 = vst.msk [vmem:[#allocation2 + $0x91] sm:$0xff] %vm293_vm0, %v271_v12 }
  0x38   : > { %359 = vst.msk [vmem:[#allocation2 + $0x81] sm:$0xff] %vm293_vm0, %v270_v13  ;;  %362 = vst.msk [vmem:[#allocation2 + $0xa9] sm:$0xff] %vm293_vm0, %v273_v14 }
  0x39   : > { %361 = vst.msk [vmem:[#allocation2 + $0x99] sm:$0xff] %vm293_vm0, %v272_v15  ;;  %364 = vst.msk [vmem:[#allocation2 + $0xc1] sm:$0xff] %vm293_vm0, %v275_v16 }
  0x3a   : > { %363 = vst.msk [vmem:[#allocation2 + $0xb1] sm:$0xff] %vm293_vm0, %v274_v17  ;;  %366 = vst.msk [vmem:[#allocation2 + $0xd9] sm:$0xff] %vm293_vm0, %v277_v18  ;;  %v9632_v25 = vld [vmem:[#allocation2 + $0x19] sm:$0xff]  ;;  %v9634_v26 = vld [vmem:[#allocation2 + $0x31] sm:$0xff] }
  0x3b   : > { %365 = vst.msk [vmem:[#allocation2 + $0xc9] sm:$0xff] %vm293_vm0, %v276_v19  ;;  %368 = vst.msk [vmem:[#allocation2 + $0xf1] sm:$0xff] %vm293_vm0, %v279_v20  ;;  %707 = vrot.lane.b32.xlu1 %v9632_v25, %s9369_s14  ;;  %v9641_v27 = vld [vmem:[#allocation2 + $0x21] sm:$0xff]  ;;  %711 = vrot.lane.b32.xlu0 %v9634_v26, %s9369_s14  ;;  %v9649_v30 = vld [vmem:[#allocation2 + $0x49] sm:$0xff] }
  0x3c   : > { %367 = vst.msk [vmem:[#allocation2 + $0xe1] sm:$0xff] %vm293_vm0, %v278_v21  ;;  %370 = vst.msk [vmem:[#allocation2 + $0x109] sm:$0xff] %vm293_vm0, %v281_v22  ;;  %v9653_v31 = vld [vmem:[#allocation2 + $0x39] sm:$0xff]  ;;  %v9657_v32 = vld [vmem:[#allocation2 + $0x61] sm:$0xff] }
  0x3d   : > { %369 = vst.msk [vmem:[#allocation2 + $0xf9] sm:$0xff] %vm293_vm0, %v280_v23  ;;  %372 = vst.msk [vmem:[#allocation2 + $0x121] sm:$0xff] %vm293_vm0, %v283_v24  ;;  %v9669_v38 = vld [vmem:[#allocation2 + $0x51] sm:$0xff]  ;;  %v9677_v40 = vld [vmem:[#allocation2 + $0x79] sm:$0xff] }
  0x3e   : > { %371 = vst.msk [vmem:[#allocation2 + $0x111] sm:$0xff] %vm293_vm0, %v282_v28  ;;  %374 = vst.msk [vmem:[#allocation2 + $0x139] sm:$0xff] %vm293_vm0, %v285_v29  ;;  %v9681_v41 = vld [vmem:[#allocation2 + $0x69] sm:$0xff]  ;;  %v9685_v42 = vld [vmem:[#allocation2 + $0x91] sm:$0xff] }
  0x3f   : > { %709 = vrot.lane.b32.xlu1 %v9641_v27, %s9369_s14  ;;  %715 = vrot.lane.b32.xlu0 %v9649_v30, %s9369_s14  ;;  %373 = vst.msk [vmem:[#allocation2 + $0x129] sm:$0xff] %vm293_vm0, %v284_v33  ;;  %376 = vst.msk [vmem:[#allocation2 + $0x151] sm:$0xff] %vm293_vm0, %v287_v34  ;;  %v9689_v43 = vld [vmem:[#allocation2 + $0x81] sm:$0xff]  ;;  %v9693_v44 = vld [vmem:[#allocation2 + $0xa9] sm:$0xff] }
  0x40   : > { %375 = vst.msk [vmem:[#allocation2 + $0x141] sm:$0xff] %vm293_vm0, %v286_v35  ;;  %378 = vst.msk [vmem:[#allocation2 + $0x169] sm:$0xff] %vm293_vm0, %v289_v36  ;;  %v9697_v45 = vld [vmem:[#allocation2 + $0x99] sm:$0xff]  ;;  %v9701_v46 = vld [vmem:[#allocation2 + $0xc1] sm:$0xff] }
  0x41   : > { %377 = vst.msk [vmem:[#allocation2 + $0x159] sm:$0xff] %vm293_vm0, %v288_v37  ;;  %379 = vst.msk [vmem:[#allocation2 + $0x171] sm:$0xff] %vm293_vm0, %v290_v39  ;;  %v9705_v47 = vld [vmem:[#allocation2 + $0xb1] sm:$0xff]  ;;  %v9709_v48 = vld [vmem:[#allocation2 + $0xd9] sm:$0xff] }
  0x42   : > { %v9713_v49 = vld [vmem:[#allocation2 + $0xc9] sm:$0xff]  ;;  %v9717_v50 = vld [vmem:[#allocation2 + $0xf1] sm:$0xff]  ;;  %2328 = vst.msk [vmem:[#allocation3] sm:$0xff] %vm15879_vm2, %v15793_v0  ;;  %2329 = vst.msk [vmem:[#allocation3 + $0x8] sm:$0xff] %vm15879_vm2, %v15793_v0 }
  0x43   : > { %713 = vrot.lane.b32.xlu1 %v9653_v31, %s9369_s14  ;;  %719 = vrot.lane.b32.xlu0 %v9657_v32, %s9369_s14  ;;  %v9721_v51 = vld [vmem:[#allocation2 + $0xe1] sm:$0xff]  ;;  %v9725_v52 = vld [vmem:[#allocation2 + $0x109] sm:$0xff]  ;;  %2332 = vst.msk [vmem:[#allocation3 + $0x18] sm:$0xff] %vm15879_vm2, %v15793_v0  ;;  %2333 = vst.msk [vmem:[#allocation3 + $0x20] sm:$0xff] %vm15879_vm2, %v15793_v0 }
  0x44   : > { %v9729_v53 = vld [vmem:[#allocation2 + $0xf9] sm:$0xff]  ;;  %v9733_v54 = vld [vmem:[#allocation2 + $0x121] sm:$0xff]  ;;  %2335 = vst.msk [vmem:[#allocation3 + $0x30] sm:$0xff] %vm15879_vm2, %v15793_v0  ;;  %2336 = vst.msk [vmem:[#allocation3 + $0x38] sm:$0xff] %vm15879_vm2, %v15793_v0 }
  0x45   : > { %v9737_v55 = vld [vmem:[#allocation2 + $0x111] sm:$0xff]  ;;  %v9741_v56 = vld [vmem:[#allocation2 + $0x139] sm:$0xff]  ;;  %2338 = vst.msk [vmem:[#allocation3 + $0x48] sm:$0xff] %vm15879_vm2, %v15793_v0  ;;  %2339 = vst.msk [vmem:[#allocation3 + $0x50] sm:$0xff] %vm15879_vm2, %v15793_v0 }
  0x46   : > { %2341 = vst.msk [vmem:[#allocation3 + $0x60] sm:$0xff] %vm15879_vm2, %v15793_v0  ;;  %2342 = vst.msk [vmem:[#allocation3 + $0x68] sm:$0xff] %vm15879_vm2, %v15793_v0  ;;  %v9817_v57 = vld [vmem:[#allocation2 + $0x129] sm:$0xff]  ;;  %v9823_v59 = vld [vmem:[#allocation2 + $0x151] sm:$0xff] }
  0x47   : > { %717 = vrot.lane.b32.xlu1 %v9669_v38, %s9369_s14  ;;  %723 = vrot.lane.b32.xlu0 %v9677_v40, %s9369_s14  ;;  %2344 = vst.msk [vmem:[#allocation3 + $0x78] sm:$0xff] %vm15879_vm2, %v15793_v0  ;;  %2345 = vst.msk [vmem:[#allocation3 + $0x80] sm:$0xff] %vm15879_vm2, %v15793_v0  ;;  %v9827_v60 = vld [vmem:[#allocation2 + $0x141] sm:$0xff]  ;;  %v9831_v61 = vld [vmem:[#allocation2 + $0x169] sm:$0xff] }
  0x48   : > { %2347 = vst.msk [vmem:[#allocation3 + $0x90] sm:$0xff] %vm15879_vm2, %v15793_v0  ;;  %2348 = vst.msk [vmem:[#allocation3 + $0x98] sm:$0xff] %vm15879_vm2, %v15793_v0  ;;  %v9837_v63 = vld [vmem:[#allocation2 + $0x159] sm:$0xff]  ;;  %v9843_v2 = vld [vmem:[#allocation2 + $0x171] sm:$0xff] }
  0x49   : > { %2350 = vst.msk [vmem:[#allocation3 + $0xa8] sm:$0xff] %vm15879_vm2, %v15793_v0  ;;  %2351 = vst.msk [vmem:[#allocation3 + $0xb0] sm:$0xff] %vm15879_vm2, %v15793_v0  ;;  %v9846_v3 = vld [vmem:[#allocation2 + $0x1a] sm:$0xff]  ;;  %v9852_v5 = vld [vmem:[#allocation2 + $0x32] sm:$0xff] }
  0x4a   : > { %2353 = vst.msk [vmem:[#allocation3 + $0xc0] sm:$0xff] %vm15879_vm2, %v15793_v0  ;;  %2354 = vst.msk [vmem:[#allocation3 + $0xc8] sm:$0xff] %vm15879_vm2, %v15793_v0  ;;  %v9855_v6 = vld [vmem:[#allocation2 + $0x22] sm:$0xff]  ;;  %v9859_v7 = vld [vmem:[#allocation2 + $0x4a] sm:$0xff] }
  0x4b   : > { %721 = vrot.lane.b32.xlu1 %v9681_v41, %s9369_s14  ;;  %727 = vrot.lane.b32.xlu0 %v9685_v42, %s9369_s14  ;;  %2356 = vst.msk [vmem:[#allocation3 + $0xd8] sm:$0xff] %vm15879_vm2, %v15793_v0  ;;  %2357 = vst.msk [vmem:[#allocation3 + $0xe0] sm:$0xff] %vm15879_vm2, %v15793_v0  ;;  %v9863_v8 = vld [vmem:[#allocation2 + $0x3a] sm:$0xff]  ;;  %v9867_v9 = vld [vmem:[#allocation2 + $0x62] sm:$0xff] }
  0x4c   : > { %2359 = vst.msk [vmem:[#allocation3 + $0xf0] sm:$0xff] %vm15879_vm2, %v15793_v0  ;;  %2360 = vst.msk [vmem:[#allocation3 + $0xf8] sm:$0xff] %vm15879_vm2, %v15793_v0  ;;  %v9871_v10 = vld [vmem:[#allocation2 + $0x52] sm:$0xff]  ;;  %v9875_v11 = vld [vmem:[#allocation2 + $0x7a] sm:$0xff] }
  0x4d   : > { %2362 = vst.msk [vmem:[#allocation3 + $0x108] sm:$0xff] %vm15879_vm2, %v15793_v0  ;;  %2363 = vst.msk [vmem:[#allocation3 + $0x110] sm:$0xff] %vm15879_vm2, %v15793_v0  ;;  %v9879_v12 = vld [vmem:[#allocation2 + $0x6a] sm:$0xff]  ;;  %v9883_v13 = vld [vmem:[#allocation2 + $0x92] sm:$0xff] }
  0x4e   : > { %2365 = vst.msk [vmem:[#allocation3 + $0x120] sm:$0xff] %vm15879_vm2, %v15793_v0  ;;  %2366 = vst.msk [vmem:[#allocation3 + $0x128] sm:$0xff] %vm15879_vm2, %v15793_v0  ;;  %v9887_v14 = vld [vmem:[#allocation2 + $0x82] sm:$0xff]  ;;  %v9891_v15 = vld [vmem:[#allocation2 + $0xaa] sm:$0xff] }
  0x4f   : > { %725 = vrot.lane.b32.xlu1 %v9689_v43, %s9369_s14  ;;  %731 = vrot.lane.b32.xlu0 %v9693_v44, %s9369_s14  ;;  %2368 = vst.msk [vmem:[#allocation3 + $0x138] sm:$0xff] %vm15879_vm2, %v15793_v0  ;;  %2369 = vst.msk [vmem:[#allocation3 + $0x140] sm:$0xff] %vm15879_vm2, %v15793_v0  ;;  %v9895_v16 = vld [vmem:[#allocation2 + $0x9a] sm:$0xff]  ;;  %v9899_v17 = vld [vmem:[#allocation2 + $0xc2] sm:$0xff] }
  0x50   : > { %2371 = vst.msk [vmem:[#allocation3 + $0x150] sm:$0xff] %vm15879_vm2, %v15793_v0  ;;  %2372 = vst.msk [vmem:[#allocation3 + $0x158] sm:$0xff] %vm15879_vm2, %v15793_v0  ;;  %v9903_v18 = vld [vmem:[#allocation2 + $0xb2] sm:$0xff]  ;;  %v9907_v19 = vld [vmem:[#allocation2 + $0xda] sm:$0xff] }
  0x51   : > { %2374 = vst.msk [vmem:[#allocation3 + $0x168] sm:$0xff] %vm15879_vm2, %v15793_v0  ;;  %2375 = vst.msk [vmem:[#allocation3 + $0x170] sm:$0xff] %vm15879_vm2, %v15793_v0  ;;  %v9911_v20 = vld [vmem:[#allocation2 + $0xca] sm:$0xff]  ;;  %v9915_v21 = vld [vmem:[#allocation2 + $0xf2] sm:$0xff] }
  0x52   : > { %2377 = vst.msk [vmem:[#allocation3 + $0x180] sm:$0xff] %vm15879_vm2, %v15793_v0  ;;  %2378 = vst.msk [vmem:[#allocation3 + $0x188] sm:$0xff] %vm15879_vm2, %v15793_v0  ;;  %v9919_v22 = vld [vmem:[#allocation2 + $0xe2] sm:$0xff]  ;;  %v9923_v23 = vld [vmem:[#allocation2 + $0x10a] sm:$0xff] }
  0x53   : > { %729 = vrot.lane.b32.xlu1 %v9697_v45, %s9369_s14  ;;  %735 = vrot.lane.b32.xlu0 %v9701_v46, %s9369_s14  ;;  %2380 = vst.msk [vmem:[#allocation3 + $0x198] sm:$0xff] %vm15879_vm2, %v15793_v0  ;;  %2381 = vst.msk [vmem:[#allocation3 + $0x1a0] sm:$0xff] %vm15879_vm2, %v15793_v0  ;;  %v9927_v24 = vld [vmem:[#allocation2 + $0xfa] sm:$0xff]  ;;  %v9931_v28 = vld [vmem:[#allocation2 + $0x122] sm:$0xff] }
  0x54   : > { %380 = vst.msk [vmem:[#allocation2 + $0x181] sm:$0xff] %vm293_vm0, %v291_v58  ;;  %381 = vst.msk [vmem:[#allocation2 + $0x189] sm:$0xff] %vm293_vm0, %v292_v62  ;;  %v9935_v29 = vld [vmem:[#allocation2 + $0x112] sm:$0xff]  ;;  %v9939_v33 = vld [vmem:[#allocation2 + $0x13a] sm:$0xff] }
  0x55   : > { %v9945_v35 = vld [vmem:[#allocation2 + $0x12a] sm:$0xff]  ;;  %v9949_v36 = vld [vmem:[#allocation2 + $0x152] sm:$0xff]  ;;  %v9955_v39 = vld [vmem:[#allocation2 + $0x142] sm:$0xff] }
  0x56   : > { %16172 = vst [vmem:[#allocation11_spill] sm:$0xff] %v9945_v35  ;;  %16173 = vst [vmem:[#allocation12_spill] sm:$0xff] %v9949_v36  ;;  %v9961_v62 = vld [vmem:[#allocation2 + $0x16a] sm:$0xff] }
  0x57   : > { %733 = vrot.lane.b32.xlu1 %v9705_v47, %s9369_s14  ;;  %739 = vrot.lane.b32.xlu0 %v9709_v48, %s9369_s14  ;;  %16175 = vst [vmem:[#allocation14_spill] sm:$0xff] %v9955_v39  ;;  %16177 = vst [vmem:[#allocation16_spill] sm:$0xff] %v9961_v62 }
  0x5b   : > { %737 = vrot.lane.b32.xlu1 %v9713_v49, %s9369_s14  ;;  %743 = vrot.lane.b32.xlu0 %v9717_v50, %s9369_s14 }
  0x5f   : > { %741 = vrot.lane.b32.xlu1 %v9721_v51, %s9369_s14  ;;  %747 = vrot.lane.b32.xlu0 %v9725_v52, %s9369_s14 }
  0x63   : > { %745 = vrot.lane.b32.xlu1 %v9729_v53, %s9369_s14  ;;  %751 = vrot.lane.b32.xlu0 %v9733_v54, %s9369_s14 }
  0x67   : > { %749 = vrot.lane.b32.xlu1 %v9737_v55, %s9369_s14  ;;  %755 = vrot.lane.b32.xlu0 %v9741_v56, %s9369_s14 }
  0x6b   : > { %753 = vrot.lane.b32.xlu1 %v9817_v57, %s9369_s14  ;;  %759 = vrot.lane.b32.xlu0 %v9823_v59, %s9369_s14 }
  0x6f   : > { %757 = vrot.lane.b32.xlu1 %v9827_v60, %s9369_s14  ;;  %763 = vrot.lane.b32.xlu0 %v9831_v61, %s9369_s14 }
  0x73   : > { %761 = vrot.lane.b32.xlu1 %v9837_v63, %s9369_s14  ;;  %831 = vrot.lane.b32.xlu0 %v446_v1, %s9370_s15 }
  0x77   : > { %765 = vrot.lane.b32.xlu1 %v9843_v2, %s9369_s14  ;;  %835 = vrot.lane.b32.xlu0 %v9846_v3, %s9370_s15  ;;  %s9379_s14 = smov 56  }
  0x7b   : > { %833 = vrot.lane.b32.xlu1 %v447_v4, %s9370_s15  ;;  %839 = vrot.lane.b32.xlu0 %v9852_v5, %s9370_s15  ;;  %v9967_v4 = vld [vmem:[#allocation2 + $0x15a] sm:$0xff] }
  0x7c   : > { %16179 = vst [vmem:[#allocation18_spill] sm:$0xff] %v9967_v4 }
  0x7f   : > { %837 = vrot.lane.b32.xlu1 %v9855_v6, %s9370_s15  ;;  %843 = vrot.lane.b32.xlu0 %v9859_v7, %s9370_s15 }
  0x83   : > { %841 = vrot.lane.b32.xlu1 %v9863_v8, %s9370_s15  ;;  %847 = vrot.lane.b32.xlu0 %v9867_v9, %s9370_s15 }
  0x87   : > { %845 = vrot.lane.b32.xlu1 %v9871_v10, %s9370_s15  ;;  %851 = vrot.lane.b32.xlu0 %v9875_v11, %s9370_s15 }
  0x8b   : > { %849 = vrot.lane.b32.xlu1 %v9879_v12, %s9370_s15  ;;  %855 = vrot.lane.b32.xlu0 %v9883_v13, %s9370_s15 }
  0x8f   : > { %853 = vrot.lane.b32.xlu1 %v9887_v14, %s9370_s15  ;;  %859 = vrot.lane.b32.xlu0 %v9891_v15, %s9370_s15 }
  0x93   : > { %857 = vrot.lane.b32.xlu1 %v9895_v16, %s9370_s15  ;;  %863 = vrot.lane.b32.xlu0 %v9899_v17, %s9370_s15  ;;  %v9941_v34 = vpop.permute.xlu0 %703 }
  0x94   : > { %16171 = vst [vmem:[#allocation10_spill] sm:$0xff] %v9941_v34  ;;  %v9979_v34 = vld [vmem:[#allocation2 + $0x172] sm:$0xff] }
  0x95   : > { %16183 = vst [vmem:[#allocation22_spill] sm:$0xff] %v9979_v34 }
  0x97   : > { %861 = vrot.lane.b32.xlu1 %v9903_v18, %s9370_s15  ;;  %867 = vrot.lane.b32.xlu0 %v9907_v19, %s9370_s15 }
  0x9b   : > { %865 = vrot.lane.b32.xlu1 %v9911_v20, %s9370_s15  ;;  %871 = vrot.lane.b32.xlu0 %v9915_v21, %s9370_s15 }
  0x9f   : > { %869 = vrot.lane.b32.xlu1 %v9919_v22, %s9370_s15  ;;  %875 = vrot.lane.b32.xlu0 %v9923_v23, %s9370_s15 }
  0xa3   : > { %873 = vrot.lane.b32.xlu1 %v9927_v24, %s9370_s15  ;;  %879 = vrot.lane.b32.xlu0 %v9931_v28, %s9370_s15 }
  0xa4   : > { %v9951_v37 = vpop.permute.xlu0 %705 }
  0xa5   : > { %16174 = vst [vmem:[#allocation13_spill] sm:$0xff] %v9951_v37 }
  0xa7   : > { %877 = vrot.lane.b32.xlu1 %v9935_v29, %s9370_s15  ;;  %883 = vrot.lane.b32.xlu0 %v9939_v33, %s9370_s15 }
  0xab   : > { %881 = vrot.lane.b32.xlu1 %v9945_v35, %s9370_s15  ;;  %887 = vrot.lane.b32.xlu0 %v9949_v36, %s9370_s15 }
  0xad   : > { %v9959_v58 = vpop.permute.xlu1 %707  ;;  %v9963_v1 = vpop.permute.xlu0 %711 }
  0xae   : > { %16176 = vst [vmem:[#allocation15_spill] sm:$0xff] %v9959_v58  ;;  %16178 = vst [vmem:[#allocation17_spill] sm:$0xff] %v9963_v1  ;;  %v9977_v58 = vld [vmem:[#allocation2 + $0x18] sm:$0xff] }
  0xaf   : > { %885 = vrot.lane.b32.xlu1 %v9955_v39, %s9370_s15  ;;  %891 = vrot.lane.b32.xlu0 %v9961_v62, %s9370_s15  ;;  %16182 = vst [vmem:[#allocation21_spill] sm:$0xff] %v9977_v58 }
  0xb1   : > { %v9971_v0 = vpop.permute.xlu1 %709  ;;  %v9973_v37 = vpop.permute.xlu0 %715 }
  0xb2   : > { %16180 = vst [vmem:[#allocation19_spill] sm:$0xff] %v9971_v0  ;;  %16181 = vst [vmem:[#allocation20_spill] sm:$0xff] %v9973_v37  ;;  %v9989_v0 = vld [vmem:[#allocation2 + $0x30] sm:$0xff] }
  0xb3   : > { %889 = vrot.lane.b32.xlu1 %v9967_v4, %s9370_s15  ;;  %959 = vrot.lane.b32.xlu0 %v9977_v58, %s9371_s16  ;;  %16186 = vst [vmem:[#allocation25_spill] sm:$0xff] %v9989_v0  ;;  %v9995_v4 = vld [vmem:[#allocation2 + $0x20] sm:$0xff]  ;;  %v10007_v58 = vld [vmem:[#allocation2 + $0x38] sm:$0xff] }
  0xb4   : > { %16188 = vst [vmem:[#allocation27_spill] sm:$0xff] %v9995_v4  ;;  %16192 = vst [vmem:[#allocation31_spill] sm:$0xff] %v10007_v58 }
  0xb5   : > { %v9983_v1 = vpop.permute.xlu1 %713  ;;  %v9985_v39 = vpop.permute.xlu0 %719 }
  0xb6   : > { %16184 = vst [vmem:[#allocation23_spill] sm:$0xff] %v9983_v1  ;;  %16185 = vst [vmem:[#allocation24_spill] sm:$0xff] %v9985_v39  ;;  %v10001_v1 = vld [vmem:[#allocation2 + $0x48] sm:$0xff] }
  0xb7   : > { %893 = vrot.lane.b32.xlu1 %v9979_v34, %s9370_s15  ;;  %963 = vrot.lane.b32.xlu0 %v9989_v0, %s9371_s16  ;;  %16190 = vst [vmem:[#allocation29_spill] sm:$0xff] %v10001_v1 }
  0xb9   : > { %v9993_v37 = vpop.permute.xlu1 %717  ;;  %v9997_v62 = vpop.permute.xlu0 %723 }
  0xba   : > { %16187 = vst [vmem:[#allocation26_spill] sm:$0xff] %v9993_v37  ;;  %16189 = vst [vmem:[#allocation28_spill] sm:$0xff] %v9997_v62  ;;  %v10013_v37 = vld [vmem:[#allocation2 + $0x60] sm:$0xff] }
  0xbb   : > { %961 = vrot.lane.b32.xlu1 %v9995_v4, %s9371_s16  ;;  %967 = vrot.lane.b32.xlu0 %v10001_v1, %s9371_s16  ;;  %16194 = vst [vmem:[#allocation33_spill] sm:$0xff] %v10013_v37  ;;  %v10019_v4 = vld [vmem:[#allocation2 + $0x50] sm:$0xff] }
  0xbc   : > { %16196 = vst [vmem:[#allocation35_spill] sm:$0xff] %v10019_v4 }
  0xbd   : > { %v10005_v39 = vpop.permute.xlu1 %721  ;;  %v10009_v34 = vpop.permute.xlu0 %727 }
  0xbe   : > { %16191 = vst [vmem:[#allocation30_spill] sm:$0xff] %v10005_v39  ;;  %16193 = vst [vmem:[#allocation32_spill] sm:$0xff] %v10009_v34  ;;  %v392_v39 = vld [vmem:[#allocation2 + $0x78] sm:$0xff] }
  0xbf   : > { %965 = vrot.lane.b32.xlu1 %v10007_v58, %s9371_s16  ;;  %971 = vrot.lane.b32.xlu0 %v10013_v37, %s9371_s16  ;;  %v10028_v58 = vld [vmem:[#allocation2 + $0x68] sm:$0xff] }
  0xc0   : > { %16199 = vst [vmem:[#allocation38_spill] sm:$0xff] %v10028_v58 }
  0xc1   : > { %v10017_v62 = vpop.permute.xlu1 %725  ;;  %v10021_v0 = vpop.permute.xlu0 %731 }
  0xc2   : > { %16195 = vst [vmem:[#allocation34_spill] sm:$0xff] %v10017_v62  ;;  %16197 = vst [vmem:[#allocation36_spill] sm:$0xff] %v10021_v0  ;;  %v394_v62 = vld [vmem:[#allocation2 + $0x90] sm:$0xff]  ;;  %v10037_v0 = vld [vmem:[#allocation2 + $0x80] sm:$0xff] }
  0xc3   : > { %969 = vrot.lane.b32.xlu1 %v10019_v4, %s9371_s16  ;;  %975 = vrot.lane.b32.xlu0 %v392_v39, %s9371_s16  ;;  %16202 = vst [vmem:[#allocation41_spill] sm:$0xff] %v10037_v0  ;;  %v396_v39 = vld [vmem:[#allocation2 + $0xa8] sm:$0xff] }
  0xc5   : > { %v10026_v34 = vpop.permute.xlu1 %729  ;;  %v10030_v1 = vpop.permute.xlu0 %735 }
  0xc6   : > { %16198 = vst [vmem:[#allocation37_spill] sm:$0xff] %v10026_v34  ;;  %16200 = vst [vmem:[#allocation39_spill] sm:$0xff] %v10030_v1  ;;  %v395_v1 = vld [vmem:[#allocation2 + $0x98] sm:$0xff] }
  0xc7   : > { %973 = vrot.lane.b32.xlu1 %v10028_v58, %s9371_s16  ;;  %979 = vrot.lane.b32.xlu0 %v394_v62, %s9371_s16  ;;  %v398_v62 = vld [vmem:[#allocation2 + $0xc0] sm:$0xff]  ;;  %v397_v58 = vld [vmem:[#allocation2 + $0xb0] sm:$0xff] }
  0xc9   : > { %v10035_v37 = vpop.permute.xlu1 %733  ;;  %v10039_v4 = vpop.permute.xlu0 %739 }
  0xca   : > { %16201 = vst [vmem:[#allocation40_spill] sm:$0xff] %v10035_v37  ;;  %16203 = vst [vmem:[#allocation42_spill] sm:$0xff] %v10039_v4 }
  0xcb   : > { %977 = vrot.lane.b32.xlu1 %v10037_v0, %s9371_s16  ;;  %983 = vrot.lane.b32.xlu0 %v396_v39, %s9371_s16  ;;  %v400_v0 = vld [vmem:[#allocation2 + $0xd8] sm:$0xff] }
  0xcd   : > { %v10044_v34 = vpop.permute.xlu1 %737  ;;  %v10046_v36 = vpop.permute.xlu0 %743 }
  0xce   : > { %16204 = vst [vmem:[#allocation43_spill] sm:$0xff] %v10044_v34  ;;  %16205 = vst [vmem:[#allocation44_spill] sm:$0xff] %v10046_v36  ;;  %v399_v34 = vld [vmem:[#allocation2 + $0xc8] sm:$0xff]  ;;  %v401_v36 = vld [vmem:[#allocation2 + $0xe0] sm:$0xff] }
  0xcf   : > { %981 = vrot.lane.b32.xlu1 %v395_v1, %s9371_s16  ;;  %987 = vrot.lane.b32.xlu0 %v398_v62, %s9371_s16  ;;  %v402_v1 = vld [vmem:[#allocation2 + $0xf0] sm:$0xff] }
  0xd1   : > { %v10050_v37 = vpop.permute.xlu1 %741  ;;  %v10052_v4 = vpop.permute.xlu0 %747 }
  0xd2   : > { %16206 = vst [vmem:[#allocation45_spill] sm:$0xff] %v10050_v37  ;;  %16207 = vst [vmem:[#allocation46_spill] sm:$0xff] %v10052_v4  ;;  %v403_v4 = vld [vmem:[#allocation2 + $0xf8] sm:$0xff] }
  0xd3   : > { %985 = vrot.lane.b32.xlu1 %v397_v58, %s9371_s16  ;;  %991 = vrot.lane.b32.xlu0 %v400_v0, %s9371_s16  ;;  %v404_v58 = vld [vmem:[#allocation2 + $0x108] sm:$0xff] }
  0xd5   : > { %v10056_v39 = vpop.permute.xlu1 %745  ;;  %v10058_v35 = vpop.permute.xlu0 %751 }
  0xd6   : > { %16208 = vst [vmem:[#allocation47_spill] sm:$0xff] %v10056_v39  ;;  %16209 = vst [vmem:[#allocation48_spill] sm:$0xff] %v10058_v35  ;;  %v405_v35 = vld [vmem:[#allocation2 + $0x110] sm:$0xff] }
  0xd7   : > { %989 = vrot.lane.b32.xlu1 %v399_v34, %s9371_s16  ;;  %995 = vrot.lane.b32.xlu0 %v402_v1, %s9371_s16  ;;  %v406_v34 = vld [vmem:[#allocation2 + $0x120] sm:$0xff] }
  0xd9   : > { %v10062_v62 = vpop.permute.xlu1 %749  ;;  %v10064_v37 = vpop.permute.xlu0 %755 }
  0xda   : > { %16210 = vst [vmem:[#allocation49_spill] sm:$0xff] %v10062_v62  ;;  %16211 = vst [vmem:[#allocation50_spill] sm:$0xff] %v10064_v37  ;;  %v407_v37 = vld [vmem:[#allocation2 + $0x128] sm:$0xff] }
  0xdb   : > { %993 = vrot.lane.b32.xlu1 %v401_v36, %s9371_s16  ;;  %999 = vrot.lane.b32.xlu0 %v404_v58, %s9371_s16  ;;  %v408_v36 = vld [vmem:[#allocation2 + $0x138] sm:$0xff] }
  0xdd   : > { %v10068_v0 = vpop.permute.xlu1 %753  ;;  %v10070_v39 = vpop.permute.xlu0 %759 }
  0xde   : > { %16212 = vst [vmem:[#allocation51_spill] sm:$0xff] %v10068_v0  ;;  %16213 = vst [vmem:[#allocation52_spill] sm:$0xff] %v10070_v39  ;;  %v409_v39 = vld [vmem:[#allocation2 + $0x140] sm:$0xff] }
  0xdf   : > { %997 = vrot.lane.b32.xlu1 %v403_v4, %s9371_s16  ;;  %1003 = vrot.lane.b32.xlu0 %v406_v34, %s9371_s16  ;;  %v410_v4 = vld [vmem:[#allocation2 + $0x150] sm:$0xff] }
  0xe1   : > { %v10074_v1 = vpop.permute.xlu1 %757  ;;  %v10076_v62 = vpop.permute.xlu0 %763 }
  0xe2   : > { %16214 = vst [vmem:[#allocation53_spill] sm:$0xff] %v10074_v1  ;;  %16215 = vst [vmem:[#allocation54_spill] sm:$0xff] %v10076_v62  ;;  %v411_v62 = vld [vmem:[#allocation2 + $0x158] sm:$0xff] }
  0xe3   : > { %1001 = vrot.lane.b32.xlu1 %v405_v35, %s9371_s16  ;;  %1007 = vrot.lane.b32.xlu0 %v408_v36, %s9371_s16  ;;  %v412_v35 = vld [vmem:[#allocation2 + $0x168] sm:$0xff] }
  0xe5   : > { %v10080_v58 = vpop.permute.xlu1 %761  ;;  %v10082_v0 = vpop.permute.xlu0 %831 }
  0xe6   : > { %16216 = vst [vmem:[#allocation55_spill] sm:$0xff] %v10080_v58  ;;  %16217 = vst [vmem:[#allocation56_spill] sm:$0xff] %v10082_v0  ;;  %v508_v58 = vld [vmem:[#allocation2 + $0x180] sm:$0xff] }
  0xe7   : > { %1005 = vrot.lane.b32.xlu1 %v407_v37, %s9371_s16  ;;  %1011 = vrot.lane.b32.xlu0 %v410_v4, %s9371_s16  ;;  %v413_v4 = vld [vmem:[#allocation2 + $0x170] sm:$0xff] }
  0xe9   : > { %v10086_v34 = vpop.permute.xlu1 %765  ;;  %v10088_v1 = vpop.permute.xlu0 %835 }
  0xea   : > { %16218 = vst [vmem:[#allocation57_spill] sm:$0xff] %v10086_v34  ;;  %16219 = vst [vmem:[#allocation58_spill] sm:$0xff] %v10088_v1 }
  0xeb   : > { %1009 = vrot.lane.b32.xlu1 %v409_v39, %s9371_s16  ;;  %1015 = vrot.lane.b32.xlu0 %v412_v35, %s9371_s16  ;;  %v509_v39 = vld [vmem:[#allocation2 + $0x188] sm:$0xff] }
  0xed   : > { %v10092_v36 = vpop.permute.xlu1 %833  ;;  %v10094_v0 = vpop.permute.xlu0 %839 }
  0xef   : > { %1013 = vrot.lane.b32.xlu1 %v411_v62, %s9371_s16  ;;  %1019 = vrot.lane.b32.xlu0 %v508_v58, %s9371_s16 }
  0xf1   : > { %v10098_v37 = vpop.permute.xlu1 %837  ;;  %v10100_v34 = vpop.permute.xlu0 %843 }
  0xf3   : > { %1017 = vrot.lane.b32.xlu1 %v413_v4, %s9371_s16  ;;  %1087 = vrot.lane.b32.xlu0 %v9632_v25, %s9372_s17 }
  0xf5   : > { %v10105_v35 = vpop.permute.xlu1 %841  ;;  %v10107_v1 = vpop.permute.xlu0 %847 }
  0xf7   : > { %1021 = vrot.lane.b32.xlu1 %v509_v39, %s9371_s16  ;;  %1091 = vrot.lane.b32.xlu0 %v9634_v26, %s9372_s17  ;;  %s9375_s16 = smov 28  }
  0xf9   : > { %v10112_v62 = vpop.permute.xlu1 %845  ;;  %v10114_v58 = vpop.permute.xlu0 %851 }
  0xfb   : > { %1089 = vrot.lane.b32.xlu1 %v9641_v27, %s9372_s17  ;;  %1095 = vrot.lane.b32.xlu0 %v9649_v30, %s9372_s17 }
  0xfd   : > { %v10120_v25 = vpop.permute.xlu1 %849  ;;  %v10122_v4 = vpop.permute.xlu0 %855 }
  0xfe   : > { %16220 = vst [vmem:[#allocation59_spill] sm:$0xff] %v10122_v4 }
  0xff   : > { %1093 = vrot.lane.b32.xlu1 %v9653_v31, %s9372_s17  ;;  %1099 = vrot.lane.b32.xlu0 %v9657_v32, %s9372_s17 }
 0x101   : > { %v10128_v26 = vpop.permute.xlu1 %853  ;;  %v10130_v39 = vpop.permute.xlu0 %859 }
 0x102   : > { %16221 = vst [vmem:[#allocation60_spill] sm:$0xff] %v10128_v26  ;;  %16222 = vst [vmem:[#allocation61_spill] sm:$0xff] %v10130_v39 }
 0x103   : > { %1097 = vrot.lane.b32.xlu1 %v9669_v38, %s9372_s17  ;;  %1103 = vrot.lane.b32.xlu0 %v9677_v40, %s9372_s17 }
 0x105   : > { %v10136_v27 = vpop.permute.xlu1 %857  ;;  %v10138_v30 = vpop.permute.xlu0 %863 }
 0x106   : > { %16223 = vst [vmem:[#allocation62_spill] sm:$0xff] %v10136_v27  ;;  %16224 = vst [vmem:[#allocation63_spill] sm:$0xff] %v10138_v30  ;;  %v589_v27 = vld [vmem:[#allocation2 + $0xd8] sm:$0xff] }
 0x107   : > { %1101 = vrot.lane.b32.xlu1 %v9681_v41, %s9372_s17  ;;  %1107 = vrot.lane.b32.xlu0 %v9685_v42, %s9372_s17 }
 0x109   : > { %v10144_v31 = vpop.permute.xlu1 %861  ;;  %v10146_v32 = vpop.permute.xlu0 %867 }
 0x10a   : > { %16225 = vst [vmem:[#allocation64_spill] sm:$0xff] %v10144_v31  ;;  %16226 = vst [vmem:[#allocation65_spill] sm:$0xff] %v10146_v32  ;;  %v16279_v32 = vld [vmem:[#allocation33_spill] sm:$0xff]  ;;  %v587_v31 = vld [vmem:[#allocation2 + $0xc0] sm:$0xff] }
 0x10b   : > { %1105 = vrot.lane.b32.xlu1 %v9689_v43, %s9372_s17  ;;  %1111 = vrot.lane.b32.xlu0 %v9693_v44, %s9372_s17 }
 0x10d   : > { %v10152_v38 = vpop.permute.xlu1 %865  ;;  %v10154_v40 = vpop.permute.xlu0 %871 }
 0x10e   : > { %16227 = vst [vmem:[#allocation66_spill] sm:$0xff] %v10152_v38  ;;  %16228 = vst [vmem:[#allocation67_spill] sm:$0xff] %v10154_v40 }
 0x10f   : > { %1109 = vrot.lane.b32.xlu1 %v9697_v45, %s9372_s17  ;;  %1115 = vrot.lane.b32.xlu0 %v9701_v46, %s9372_s17 }
 0x111   : > { %v10160_v41 = vpop.permute.xlu1 %869  ;;  %v10162_v42 = vpop.permute.xlu0 %875 }
 0x112   : > { %16229 = vst [vmem:[#allocation68_spill] sm:$0xff] %v10160_v41  ;;  %16230 = vst [vmem:[#allocation69_spill] sm:$0xff] %v10162_v42 }
 0x113   : > { %1113 = vrot.lane.b32.xlu1 %v9705_v47, %s9372_s17  ;;  %1119 = vrot.lane.b32.xlu0 %v9709_v48, %s9372_s17 }
 0x115   : > { %v10168_v43 = vpop.permute.xlu1 %873  ;;  %v10170_v44 = vpop.permute.xlu0 %879 }
 0x116   : > { %16231 = vst [vmem:[#allocation70_spill] sm:$0xff] %v10168_v43  ;;  %16232 = vst [vmem:[#allocation71_spill] sm:$0xff] %v10170_v44  ;;  %v607_v44 = vld [vmem:[#allocation2 + $0x31] sm:$0xff]  ;;  %v609_v43 = vld [vmem:[#allocation2 + $0x49] sm:$0xff] }
 0x117   : > { %1117 = vrot.lane.b32.xlu1 %v9713_v49, %s9372_s17  ;;  %1123 = vrot.lane.b32.xlu0 %v9717_v50, %s9372_s17 }
 0x119   : > { %v10176_v45 = vpop.permute.xlu1 %877  ;;  %v10178_v46 = vpop.permute.xlu0 %883 }
 0x11a   : > { %16233 = vst [vmem:[#allocation72_spill] sm:$0xff] %v10176_v45  ;;  %16234 = vst [vmem:[#allocation73_spill] sm:$0xff] %v10178_v46  ;;  %v1961_v46 = vld [vmem:[%s15787_s1 + $0x18] sm:$0xff] }
 0x11b   : > { %1121 = vrot.lane.b32.xlu1 %v9721_v51, %s9372_s17  ;;  %1127 = vrot.lane.b32.xlu0 %v9725_v52, %s9372_s17 }
 0x11d   : > { %v10184_v47 = vpop.permute.xlu1 %881  ;;  %v10186_v48 = vpop.permute.xlu0 %887 }
 0x11e   : > { %16235 = vst [vmem:[#allocation74_spill] sm:$0xff] %v10184_v47  ;;  %16236 = vst [vmem:[#allocation75_spill] sm:$0xff] %v10186_v48  ;;  %v16268_v47 = vld [vmem:[#allocation25_spill] sm:$0xff] }
 0x11f   : > { %1125 = vrot.lane.b32.xlu1 %v9729_v53, %s9372_s17  ;;  %1131 = vrot.lane.b32.xlu0 %v9733_v54, %s9372_s17 }
 0x121   : > { %v10192_v49 = vpop.permute.xlu1 %885  ;;  %v10194_v50 = vpop.permute.xlu0 %891 }
 0x122   : > { %16237 = vst [vmem:[#allocation76_spill] sm:$0xff] %v10192_v49  ;;  %16238 = vst [vmem:[#allocation77_spill] sm:$0xff] %v10194_v50  ;;  %v16266_v49 = vld [vmem:[#allocation18_spill] sm:$0xff] }
 0x123   : > { %1129 = vrot.lane.b32.xlu1 %v9737_v55, %s9372_s17  ;;  %1135 = vrot.lane.b32.xlu0 %v9741_v56, %s9372_s17  ;;  %v10218_v56 = vld [vmem:[#allocation2 + $0x181] sm:$0xff] }
 0x125   : > { %v10200_v51 = vpop.permute.xlu1 %889  ;;  %v10202_v52 = vpop.permute.xlu0 %959 }
 0x126   : > { %16239 = vst [vmem:[#allocation78_spill] sm:$0xff] %v10200_v51 }
 0x127   : > { %1133 = vrot.lane.b32.xlu1 %v9817_v57, %s9372_s17  ;;  %1139 = vrot.lane.b32.xlu0 %v9823_v59, %s9372_s17 }
 0x129   : > { %v10208_v53 = vpop.permute.xlu1 %893  ;;  %v10210_v54 = vpop.permute.xlu0 %963 }
 0x12a   : > { %16240 = vst [vmem:[#allocation79_spill] sm:$0xff] %v10208_v53 }
 0x12b   : > { %1137 = vrot.lane.b32.xlu1 %v9827_v60, %s9372_s17  ;;  %1143 = vrot.lane.b32.xlu0 %v9831_v61, %s9372_s17  ;;  %v10232_v60 = vld [vmem:[#allocation2 + $0x189] sm:$0xff] }
 0x12d   : > { %v10216_v55 = vpop.permute.xlu1 %961  ;;  %v10220_v50 = vpop.permute.xlu0 %967 }
 0x12f   : > { %1141 = vrot.lane.b32.xlu1 %v9837_v63, %s9372_s17  ;;  %1147 = vrot.lane.b32.xlu0 %v10218_v56, %s9372_s17 }
 0x131   : > { %v10226_v57 = vpop.permute.xlu1 %965  ;;  %v10228_v59 = vpop.permute.xlu0 %971 }
 0x133   : > { %1145 = vrot.lane.b32.xlu1 %v9843_v2, %s9372_s17  ;;  %1215 = vrot.lane.b32.xlu0 %v9846_v3, %s9373_s18 }
 0x135   : > { %v10236_v61 = vpop.permute.xlu1 %969  ;;  %v10238_v53 = vpop.permute.xlu0 %975 }
 0x137   : > { %1149 = vrot.lane.b32.xlu1 %v10232_v60, %s9372_s17  ;;  %1219 = vrot.lane.b32.xlu0 %v9852_v5, %s9373_s18 }
 0x139   : > { %v10244_v63 = vpop.permute.xlu1 %973  ;;  %v10246_v51 = vpop.permute.xlu0 %979 }
 0x13b   : > { %1217 = vrot.lane.b32.xlu1 %v9855_v6, %s9373_s18  ;;  %1223 = vrot.lane.b32.xlu0 %v9859_v7, %s9373_s18 }
 0x13d   : > { %v10252_v2 = vpop.permute.xlu1 %977  ;;  %v10254_v3 = vpop.permute.xlu0 %983 }
 0x13e   : > { %16241 = vst [vmem:[#allocation80_spill] sm:$0xff] %v10254_v3 }
 0x13f   : > { %1221 = vrot.lane.b32.xlu1 %v9863_v8, %s9373_s18  ;;  %1227 = vrot.lane.b32.xlu0 %v9867_v9, %s9373_s18 }
 0x141   : > { %v10260_v5 = vpop.permute.xlu1 %981  ;;  %v10262_v48 = vpop.permute.xlu0 %987 }
 0x142   : > { %16242 = vst [vmem:[#allocation81_spill] sm:$0xff] %v10260_v5  ;;  %16243 = vst [vmem:[#allocation82_spill] sm:$0xff] %v10262_v48  ;;  %v619_v48 = vld [vmem:[#allocation2 + $0xc1] sm:$0xff] }
 0x143   : > { %1225 = vrot.lane.b32.xlu1 %v9871_v10, %s9373_s18  ;;  %1231 = vrot.lane.b32.xlu0 %v9875_v11, %s9373_s18 }
 0x145   : > { %v10268_v6 = vpop.permute.xlu1 %985  ;;  %v10270_v7 = vpop.permute.xlu0 %991 }
 0x146   : > { %16244 = vst [vmem:[#allocation83_spill] sm:$0xff] %v10268_v6  ;;  %16245 = vst [vmem:[#allocation84_spill] sm:$0xff] %v10270_v7 }
 0x147   : > { %1229 = vrot.lane.b32.xlu1 %v9879_v12, %s9373_s18  ;;  %1235 = vrot.lane.b32.xlu0 %v9883_v13, %s9373_s18 }
 0x149   : > { %v10276_v8 = vpop.permute.xlu1 %989  ;;  %v10278_v9 = vpop.permute.xlu0 %995 }
 0x14a   : > { %16246 = vst [vmem:[#allocation85_spill] sm:$0xff] %v10276_v8  ;;  %16247 = vst [vmem:[#allocation86_spill] sm:$0xff] %v10278_v9 }
 0x14b   : > { %1233 = vrot.lane.b32.xlu1 %v9887_v14, %s9373_s18  ;;  %1239 = vrot.lane.b32.xlu0 %v9891_v15, %s9373_s18 }
 0x14d   : > { %v10284_v10 = vpop.permute.xlu1 %993  ;;  %v10286_v11 = vpop.permute.xlu0 %999 }
 0x14e   : > { %16248 = vst [vmem:[#allocation87_spill] sm:$0xff] %v10284_v10  ;;  %16249 = vst [vmem:[#allocation88_spill] sm:$0xff] %v10286_v11  ;;  %v611_v10 = vld [vmem:[#allocation2 + $0x61] sm:$0xff] }
 0x14f   : > { %1237 = vrot.lane.b32.xlu1 %v9895_v16, %s9373_s18  ;;  %1243 = vrot.lane.b32.xlu0 %v9899_v17, %s9373_s18 }
 0x151   : > { %v10292_v12 = vpop.permute.xlu1 %997  ;;  %v10294_v13 = vpop.permute.xlu0 %1003 }
 0x152   : > { %16250 = vst [vmem:[#allocation89_spill] sm:$0xff] %v10292_v12  ;;  %16251 = vst [vmem:[#allocation90_spill] sm:$0xff] %v10294_v13  ;;  %v639_v13 = vld [vmem:[#allocation2 + $0x32] sm:$0xff]  ;;  %v641_v12 = vld [vmem:[#allocation2 + $0x4a] sm:$0xff] }
 0x153   : > { %1241 = vrot.lane.b32.xlu1 %v9903_v18, %s9373_s18  ;;  %1247 = vrot.lane.b32.xlu0 %v9907_v19, %s9373_s18 }
 0x155   : > { %v10300_v14 = vpop.permute.xlu1 %1001  ;;  %v10302_v15 = vpop.permute.xlu0 %1007 }
 0x156   : > { %16252 = vst [vmem:[#allocation91_spill] sm:$0xff] %v10300_v14  ;;  %16253 = vst [vmem:[#allocation92_spill] sm:$0xff] %v10302_v15  ;;  %v608_v14 = vld [vmem:[#allocation2 + $0x39] sm:$0xff] }
 0x157   : > { %1245 = vrot.lane.b32.xlu1 %v9911_v20, %s9373_s18  ;;  %1251 = vrot.lane.b32.xlu0 %v9915_v21, %s9373_s18 }
 0x159   : > { %v10308_v16 = vpop.permute.xlu1 %1005  ;;  %v10310_v17 = vpop.permute.xlu0 %1011 }
 0x15a   : > { %16254 = vst [vmem:[#allocation93_spill] sm:$0xff] %v10308_v16  ;;  %16255 = vst [vmem:[#allocation94_spill] sm:$0xff] %v10310_v17  ;;  %v1960_v17 = vld [vmem:[%s15787_s1 + $0x10] sm:$0xff] }
 0x15b   : > { %1249 = vrot.lane.b32.xlu1 %v9919_v22, %s9373_s18  ;;  %1255 = vrot.lane.b32.xlu0 %v9923_v23, %s9373_s18 }
 0x15d   : > { %v10316_v18 = vpop.permute.xlu1 %1009  ;;  %v10318_v19 = vpop.permute.xlu0 %1015 }
 0x15e   : > { %16256 = vst [vmem:[#allocation95_spill] sm:$0xff] %v10316_v18  ;;  %16257 = vst [vmem:[#allocation96_spill] sm:$0xff] %v10318_v19  ;;  %v16261_v19 = vld [vmem:[#allocation11_spill] sm:$0xff] }
 0x15f   : > { %1253 = vrot.lane.b32.xlu1 %v9927_v24, %s9373_s18  ;;  %1259 = vrot.lane.b32.xlu0 %v9931_v28, %s9373_s18  ;;  %v16262_v24 = vld [vmem:[#allocation12_spill] sm:$0xff] }
 0x161   : > { %v10324_v20 = vpop.permute.xlu1 %1013  ;;  %v10326_v21 = vpop.permute.xlu0 %1019 }
 0x162   : > { %16258 = vst [vmem:[#allocation97_spill] sm:$0xff] %v10324_v20  ;;  %16259 = vst [vmem:[#allocation98_spill] sm:$0xff] %v10326_v21  ;;  %v16264_v21 = vld [vmem:[#allocation14_spill] sm:$0xff] }
 0x163   : > { %1257 = vrot.lane.b32.xlu1 %v9935_v29, %s9373_s18  ;;  %1263 = vrot.lane.b32.xlu0 %v9939_v33, %s9373_s18  ;;  %v16265_v29 = vld [vmem:[#allocation16_spill] sm:$0xff] }
 0x165   : > { %v10332_v22 = vpop.permute.xlu1 %1017  ;;  %v10334_v23 = vpop.permute.xlu0 %1087 }
 0x166   : > { %16260 = vst [vmem:[#allocation99_spill] sm:$0xff] %v10332_v22  ;;  %v10350_v22 = vld [vmem:[#allocation2 + $0x182] sm:$0xff] }
 0x167   : > { %1261 = vrot.lane.b32.xlu1 %v16261_v19, %s9373_s18  ;;  %1267 = vrot.lane.b32.xlu0 %v16262_v24, %s9373_s18  ;;  %v1958_v19 = vld [vmem:[%s15787_s1] sm:$0xff]  ;;  %v1959_v24 = vld [vmem:[%s15787_s1 + $0x8] sm:$0xff] }
 0x169   : > { %v10340_v28 = vpop.permute.xlu1 %1021  ;;  %v10342_v20 = vpop.permute.xlu0 %1091 }
 0x16a   : > { %16263 = vst [vmem:[#allocation11_spill] sm:$0xff] %v10340_v28 }
 0x16b   : > { %1265 = vrot.lane.b32.xlu1 %v16264_v21, %s9373_s18  ;;  %1271 = vrot.lane.b32.xlu0 %v16265_v29, %s9373_s18  ;;  %v9146_v21 = vpack.c.bf16 %v1959_v24, %v1958_v19  ;;  %v9150_v19 = vpack.c.bf16 %v1961_v46, %v1960_v17  ;;  %v10376_v24 = vld [vmem:[#allocation2 + $0x18a] sm:$0xff]  ;;  %v16269_v46 = vld [vmem:[#allocation29_spill] sm:$0xff] }
 0x16d   : > { %v10348_v33 = vpop.permute.xlu1 %1089  ;;  %v10358_v28 = vpop.permute.xlu0 %1095  ;;  %9147 = vmatprep.subr.bf16.mxu0 %v9146_v21 }
 0x16e   : > { %9149 = vmatpush3.bf16.msra.mxu0 %v9146_v21 }
 0x16f   : > { %1269 = vrot.lane.b32.xlu1 %v16266_v49, %s9373_s18  ;;  %1275 = vrot.lane.b32.xlu0 %v10350_v22, %s9373_s18  ;;  %v16267_v49 = vld [vmem:[#allocation22_spill] sm:$0xff] }
 0x170   : > { %9151 = vmatprep.subr.bf16.mxu0 %v9150_v19 }
 0x171   : > { %v10364_v29 = vpop.permute.xlu1 %1093  ;;  %v10372_v18 = vpop.permute.xlu0 %1099 }
 0x172   : > { %9153 = vmatpush3.bf16.msra.mxu0 %v9150_v19  ;;  %v16270_v19 = vld [vmem:[#allocation31_spill] sm:$0xff] }
 0x173   : > { %1273 = vrot.lane.b32.xlu1 %v16267_v49, %s9373_s18  ;;  %1343 = vrot.lane.b32.xlu0 %v16268_v47, %s9374_s12  ;;  %v1962_v49 = vld [vmem:[%s15787_s1 + $0x20] sm:$0xf] }
 0x174   : > { %9030 = vmatprep.subr.msk.mxu0 %vm2067_vm3, %v1962_v49 }
 0x175   : > { %v10380_v21 = vpop.permute.xlu1 %1097  ;;  %v10382_v15 = vpop.permute.xlu0 %1103 }
 0x176   : > { %9031 = vmatpush3.msk.msra.mxu0 %vm2067_vm3, %v1962_v49 }
 0x177   : > { %1277 = vrot.lane.b32.xlu1 %v10376_v24, %s9373_s18  ;;  %1347 = vrot.lane.b32.xlu0 %v16269_v46, %s9374_s12  ;;  %v16272_v46 = vld [vmem:[#allocation35_spill] sm:$0xff]  ;;  %s9376_s18 = smov 32  }
 0x179   : > { %v10391_v17 = vpop.permute.xlu1 %1101  ;;  %v10393_v16 = vpop.permute.xlu0 %1107 }
 0x17b   : > { %1345 = vrot.lane.b32.xlu1 %v16270_v19, %s9374_s12  ;;  %1471 = vrot.lane.b32.xlu0 %v607_v44, %s9375_s16  ;;  %v640_v44 = vld [vmem:[#allocation2 + $0x3a] sm:$0xff] }
 0x17d   : > { %v10398_v45 = vpop.permute.xlu1 %1105  ;;  %v10400_v42 = vpop.permute.xlu0 %1111 }
 0x17e   : > { %16271 = vst [vmem:[#allocation12_spill] sm:$0xff] %v10400_v42 }
 0x17f   : > { %1349 = vrot.lane.b32.xlu1 %v16272_v46, %s9374_s12  ;;  %1599 = vrot.lane.b32.xlu0 %v639_v13, %s9376_s18  ;;  %v610_v46 = vld [vmem:[#allocation2 + $0x51] sm:$0xff] }
 0x181   : > { %v10405_v49 = vpop.permute.xlu1 %1109  ;;  %v10407_v11 = vpop.permute.xlu0 %1115 }
 0x182   : > { %16273 = vst [vmem:[#allocation14_spill] sm:$0xff] %v10405_v49  ;;  %16274 = vst [vmem:[#allocation16_spill] sm:$0xff] %v10407_v11 }
 0x183   : > { %1473 = vrot.lane.b32.xlu1 %v608_v14, %s9375_s16  ;;  %1475 = vrot.lane.b32.xlu0 %v609_v43, %s9375_s16  ;;  %v642_v14 = vld [vmem:[#allocation2 + $0x52] sm:$0xff] }
 0x185   : > { %v10411_v40 = vpop.permute.xlu1 %1113  ;;  %v10413_v41 = vpop.permute.xlu0 %1119 }
 0x186   : > { %16275 = vst [vmem:[#allocation18_spill] sm:$0xff] %v10411_v40  ;;  %16276 = vst [vmem:[#allocation22_spill] sm:$0xff] %v10413_v41  ;;  %v651_v40 = vld [vmem:[#allocation2 + $0xc2] sm:$0xff] }
 0x187   : > { %1601 = vrot.lane.b32.xlu1 %v640_v44, %s9376_s18  ;;  %1603 = vrot.lane.b32.xlu0 %v641_v12, %s9376_s18  ;;  %v643_v44 = vld [vmem:[#allocation2 + $0x62] sm:$0xff] }
 0x189   : > { %v10417_v13 = vpop.permute.xlu1 %1117  ;;  %v10419_v9 = vpop.permute.xlu0 %1123 }
 0x18a   : > { %16277 = vst [vmem:[#allocation25_spill] sm:$0xff] %v10417_v13  ;;  %16278 = vst [vmem:[#allocation29_spill] sm:$0xff] %v10419_v9  ;;  %v612_v9 = vld [vmem:[#allocation2 + $0x69] sm:$0xff] }
 0x18b   : > { %1477 = vrot.lane.b32.xlu1 %v610_v46, %s9375_s16  ;;  %1351 = vrot.lane.b32.xlu0 %v16279_v32, %s9374_s12  ;;  %v16284_v46 = vld [vmem:[#allocation38_spill] sm:$0xff]  ;;  %v649_v13 = vld [vmem:[#allocation2 + $0xaa] sm:$0xff] }
 0x18d   : > { %v10424_v43 = vpop.permute.xlu1 %1121  ;;  %v10426_v38 = vpop.permute.xlu0 %1127 }
 0x18e   : > { %16280 = vst [vmem:[#allocation31_spill] sm:$0xff] %v10424_v43  ;;  %16281 = vst [vmem:[#allocation35_spill] sm:$0xff] %v10426_v38  ;;  %v581_v43 = vld [vmem:[#allocation2 + $0x78] sm:$0xff] }
 0x18f   : > { %1605 = vrot.lane.b32.xlu1 %v642_v14, %s9376_s18  ;;  %1479 = vrot.lane.b32.xlu0 %v611_v10, %s9375_s16  ;;  %v644_v14 = vld [vmem:[#allocation2 + $0x6a] sm:$0xff]  ;;  %v613_v38 = vld [vmem:[#allocation2 + $0x79] sm:$0xff] }
 0x191   : > { %v10430_v12 = vpop.permute.xlu1 %1125  ;;  %v10432_v41 = vpop.permute.xlu0 %1131 }
 0x192   : > { %16282 = vst [vmem:[#allocation33_spill] sm:$0xff] %v10430_v12  ;;  %16283 = vst [vmem:[#allocation100_spill] sm:$0xff] %v10432_v41 }
 0x193   : > { %1353 = vrot.lane.b32.xlu1 %v16284_v46, %s9374_s12  ;;  %1607 = vrot.lane.b32.xlu0 %v643_v44, %s9376_s18  ;;  %v645_v46 = vld [vmem:[#allocation2 + $0x7a] sm:$0xff] }
 0x195   : > { %v10437_v32 = vpop.permute.xlu1 %1129  ;;  %v10439_v7 = vpop.permute.xlu0 %1135 }
 0x196   : > { %16285 = vst [vmem:[#allocation38_spill] sm:$0xff] %v10437_v32  ;;  %16286 = vst [vmem:[#allocation101_spill] sm:$0xff] %v10439_v7  ;;  %v16291_v7 = vld [vmem:[#allocation41_spill] sm:$0xff] }
 0x197   : > { %1481 = vrot.lane.b32.xlu1 %v612_v9, %s9375_s16  ;;  %1355 = vrot.lane.b32.xlu0 %v581_v43, %s9374_s12  ;;  %v614_v9 = vld [vmem:[#allocation2 + $0x81] sm:$0xff] }
 0x199   : > { %v10443_v10 = vpop.permute.xlu1 %1133  ;;  %v10445_v41 = vpop.permute.xlu0 %1139 }
 0x19a   : > { %16287 = vst [vmem:[#allocation102_spill] sm:$0xff] %v10443_v10  ;;  %16288 = vst [vmem:[#allocation103_spill] sm:$0xff] %v10445_v41  ;;  %v583_v10 = vld [vmem:[#allocation2 + $0x90] sm:$0xff] }
 0x19b   : > { %1609 = vrot.lane.b32.xlu1 %v644_v14, %s9376_s18  ;;  %1483 = vrot.lane.b32.xlu0 %v613_v38, %s9375_s16  ;;  %v646_v14 = vld [vmem:[#allocation2 + $0x82] sm:$0xff]  ;;  %v615_v41 = vld [vmem:[#allocation2 + $0x91] sm:$0xff] }
 0x19d   : > { %v10449_v44 = vpop.permute.xlu1 %1137  ;;  %v10451_v32 = vpop.permute.xlu0 %1143 }
 0x19e   : > { %16289 = vst [vmem:[#allocation104_spill] sm:$0xff] %v10449_v44  ;;  %16290 = vst [vmem:[#allocation105_spill] sm:$0xff] %v10451_v32 }
 0x19f   : > { %1357 = vrot.lane.b32.xlu1 %v16291_v7, %s9374_s12  ;;  %1611 = vrot.lane.b32.xlu0 %v645_v46, %s9376_s18  ;;  %v584_v7 = vld [vmem:[#allocation2 + $0x98] sm:$0xff] }
 0x1a1   : > { %v10456_v43 = vpop.permute.xlu1 %1141  ;;  %v10458_v12 = vpop.permute.xlu0 %1147 }
 0x1a2   : > { %16292 = vst [vmem:[#allocation41_spill] sm:$0xff] %v10456_v43  ;;  %16293 = vst [vmem:[#allocation106_spill] sm:$0xff] %v10458_v12  ;;  %v647_v43 = vld [vmem:[#allocation2 + $0x92] sm:$0xff]  ;;  %v585_v12 = vld [vmem:[#allocation2 + $0xa8] sm:$0xff] }
 0x1a3   : > { %1485 = vrot.lane.b32.xlu1 %v614_v9, %s9375_s16  ;;  %1359 = vrot.lane.b32.xlu0 %v583_v10, %s9374_s12  ;;  %v616_v9 = vld [vmem:[#allocation2 + $0x99] sm:$0xff] }
 0x1a5   : > { %v10462_v38 = vpop.permute.xlu1 %1145  ;;  %v10464_v32 = vpop.permute.xlu0 %1215 }
 0x1a6   : > { %16294 = vst [vmem:[#allocation107_spill] sm:$0xff] %v10462_v38 }
 0x1a7   : > { %1613 = vrot.lane.b32.xlu1 %v646_v14, %s9376_s18  ;;  %1487 = vrot.lane.b32.xlu0 %v615_v41, %s9375_s16  ;;  %v648_v14 = vld [vmem:[#allocation2 + $0x9a] sm:$0xff] }
 0x1a9   : > { %v10468_v46 = vpop.permute.xlu1 %1149  ;;  %v10470_v44 = vpop.permute.xlu0 %1219 }
 0x1aa   : > { %16295 = vst [vmem:[#allocation108_spill] sm:$0xff] %v10468_v46  ;;  %v617_v46 = vld [vmem:[#allocation2 + $0xa9] sm:$0xff] }
 0x1ab   : > { %1361 = vrot.lane.b32.xlu1 %v584_v7, %s9374_s12  ;;  %1615 = vrot.lane.b32.xlu0 %v647_v43, %s9376_s18  ;;  %v586_v7 = vld [vmem:[#allocation2 + $0xb0] sm:$0xff] }
 0x1ad   : > { %v10474_v10 = vpop.permute.xlu1 %1217  ;;  %v10476_v38 = vpop.permute.xlu0 %1223 }
 0x1af   : > { %1489 = vrot.lane.b32.xlu1 %v616_v9, %s9375_s16  ;;  %1363 = vrot.lane.b32.xlu0 %v585_v12, %s9374_s12  ;;  %v618_v9 = vld [vmem:[#allocation2 + $0xb1] sm:$0xff] }
 0x1b1   : > { %v10480_v41 = vpop.permute.xlu1 %1221  ;;  %v10482_v30 = vpop.permute.xlu0 %1227 }
 0x1b3   : > { %1617 = vrot.lane.b32.xlu1 %v648_v14, %s9376_s18  ;;  %1491 = vrot.lane.b32.xlu0 %v617_v46, %s9375_s16  ;;  %v650_v14 = vld [vmem:[#allocation2 + $0xb2] sm:$0xff] }
 0x1b5   : > { %v10486_v43 = vpop.permute.xlu1 %1225  ;;  %v10488_v8 = vpop.permute.xlu0 %1231 }
 0x1b7   : > { %1365 = vrot.lane.b32.xlu1 %v586_v7, %s9374_s12  ;;  %1619 = vrot.lane.b32.xlu0 %v649_v13, %s9376_s18  ;;  %v588_v7 = vld [vmem:[#allocation2 + $0xc8] sm:$0xff] }
 0x1b9   : > { %v10492_v12 = vpop.permute.xlu1 %1229  ;;  %v10494_v11 = vpop.permute.xlu0 %1235 }
 0x1bb   : > { %1493 = vrot.lane.b32.xlu1 %v618_v9, %s9375_s16  ;;  %1367 = vrot.lane.b32.xlu0 %v587_v31, %s9374_s12  ;;  %v620_v9 = vld [vmem:[#allocation2 + $0xc9] sm:$0xff] }
 0x1bd   : > { %v10498_v46 = vpop.permute.xlu1 %1233  ;;  %v10500_v39 = vpop.permute.xlu0 %1239 }
 0x1be   : > { %16296 = vst [vmem:[#allocation109_spill] sm:$0xff] %v10500_v39  ;;  %v621_v39 = vld [vmem:[#allocation2 + $0xd9] sm:$0xff] }
 0x1bf   : > { %1621 = vrot.lane.b32.xlu1 %v650_v14, %s9376_s18  ;;  %1495 = vrot.lane.b32.xlu0 %v619_v48, %s9375_s16  ;;  %v652_v14 = vld [vmem:[#allocation2 + $0xca] sm:$0xff] }
 0x1c1   : > { %v10504_v13 = vpop.permute.xlu1 %1237  ;;  %v10506_v6 = vpop.permute.xlu0 %1243 }
 0x1c2   : > { %16297 = vst [vmem:[#allocation110_spill] sm:$0xff] %v10504_v13  ;;  %16298 = vst [vmem:[#allocation111_spill] sm:$0xff] %v10506_v6  ;;  %v653_v6 = vld [vmem:[#allocation2 + $0xda] sm:$0xff] }
 0x1c3   : > { %1369 = vrot.lane.b32.xlu1 %v588_v7, %s9374_s12  ;;  %1623 = vrot.lane.b32.xlu0 %v651_v40, %s9376_s18  ;;  %v590_v7 = vld [vmem:[#allocation2 + $0xe0] sm:$0xff] }
 0x1c5   : > { %v10510_v31 = vpop.permute.xlu1 %1241  ;;  %v10512_v42 = vpop.permute.xlu0 %1247 }
 0x1c6   : > { %16299 = vst [vmem:[#allocation112_spill] sm:$0xff] %v10510_v31  ;;  %16300 = vst [vmem:[#allocation113_spill] sm:$0xff] %v10512_v42  ;;  %v591_v42 = vld [vmem:[#allocation2 + $0xf0] sm:$0xff] }
 0x1c7   : > { %1497 = vrot.lane.b32.xlu1 %v620_v9, %s9375_s16  ;;  %1371 = vrot.lane.b32.xlu0 %v589_v27, %s9374_s12  ;;  %v622_v9 = vld [vmem:[#allocation2 + $0xe1] sm:$0xff] }
 0x1c9   : > { %v10516_v48 = vpop.permute.xlu1 %1245  ;;  %v10518_v3 = vpop.permute.xlu0 %1251 }
 0x1ca   : > { %16301 = vst [vmem:[#allocation114_spill] sm:$0xff] %v10516_v48  ;;  %16302 = vst [vmem:[#allocation115_spill] sm:$0xff] %v10518_v3  ;;  %v623_v3 = vld [vmem:[#allocation2 + $0xf1] sm:$0xff] }
 0x1cb   : > { %1625 = vrot.lane.b32.xlu1 %v652_v14, %s9376_s18  ;;  %1499 = vrot.lane.b32.xlu0 %v621_v39, %s9375_s16  ;;  %v654_v14 = vld [vmem:[#allocation2 + $0xe2] sm:$0xff] }
 0x1cd   : > { %v10522_v40 = vpop.permute.xlu1 %1249  ;;  %v10524_v31 = vpop.permute.xlu0 %1255 }
 0x1ce   : > { %16303 = vst [vmem:[#allocation116_spill] sm:$0xff] %v10522_v40  ;;  %16304 = vst [vmem:[#allocation117_spill] sm:$0xff] %v10524_v31  ;;  %v655_v31 = vld [vmem:[#allocation2 + $0xf2] sm:$0xff] }
 0x1cf   : > { %1373 = vrot.lane.b32.xlu1 %v590_v7, %s9374_s12  ;;  %1627 = vrot.lane.b32.xlu0 %v653_v6, %s9376_s18  ;;  %v592_v7 = vld [vmem:[#allocation2 + $0xf8] sm:$0xff] }
 0x1d1   : > { %v10528_v27 = vpop.permute.xlu1 %1253  ;;  %v10530_v48 = vpop.permute.xlu0 %1259 }
 0x1d2   : > { %16305 = vst [vmem:[#allocation118_spill] sm:$0xff] %v10528_v27  ;;  %16306 = vst [vmem:[#allocation119_spill] sm:$0xff] %v10530_v48  ;;  %v593_v48 = vld [vmem:[#allocation2 + $0x108] sm:$0xff] }
 0x1d3   : > { %1501 = vrot.lane.b32.xlu1 %v622_v9, %s9375_s16  ;;  %1375 = vrot.lane.b32.xlu0 %v591_v42, %s9374_s12  ;;  %v624_v9 = vld [vmem:[#allocation2 + $0xf9] sm:$0xff] }
 0x1d5   : > { %v10534_v39 = vpop.permute.xlu1 %1257  ;;  %v10536_v40 = vpop.permute.xlu0 %1263 }
 0x1d6   : > { %16307 = vst [vmem:[#allocation120_spill] sm:$0xff] %v10534_v39  ;;  %16308 = vst [vmem:[#allocation121_spill] sm:$0xff] %v10536_v40  ;;  %v625_v40 = vld [vmem:[#allocation2 + $0x109] sm:$0xff] }
 0x1d7   : > { %1629 = vrot.lane.b32.xlu1 %v654_v14, %s9376_s18  ;;  %1503 = vrot.lane.b32.xlu0 %v623_v3, %s9375_s16  ;;  %v656_v14 = vld [vmem:[#allocation2 + $0xfa] sm:$0xff] }
 0x1d9   : > { %v10540_v6 = vpop.permute.xlu1 %1261  ;;  %v10542_v27 = vpop.permute.xlu0 %1267 }
 0x1da   : > { %16309 = vst [vmem:[#allocation122_spill] sm:$0xff] %v10540_v6  ;;  %16310 = vst [vmem:[#allocation123_spill] sm:$0xff] %v10542_v27  ;;  %v657_v27 = vld [vmem:[#allocation2 + $0x10a] sm:$0xff] }
 0x1db   : > { %1377 = vrot.lane.b32.xlu1 %v592_v7, %s9374_s12  ;;  %1631 = vrot.lane.b32.xlu0 %v655_v31, %s9376_s18  ;;  %v594_v7 = vld [vmem:[#allocation2 + $0x110] sm:$0xff] }
 0x1dd   : > { %v10546_v42 = vpop.permute.xlu1 %1265  ;;  %v10548_v39 = vpop.permute.xlu0 %1271 }
 0x1de   : > { %16311 = vst [vmem:[#allocation124_spill] sm:$0xff] %v10546_v42  ;;  %16312 = vst [vmem:[#allocation125_spill] sm:$0xff] %v10548_v39  ;;  %v382_v39 = vld [vmem:[#allocation2] sm:$0xff] }
 0x1df   : > { %1505 = vrot.lane.b32.xlu1 %v624_v9, %s9375_s16  ;;  %1379 = vrot.lane.b32.xlu0 %v593_v48, %s9374_s12  ;;  %v626_v9 = vld [vmem:[#allocation2 + $0x111] sm:$0xff] }
 0x1e1   : > { %v10552_v3 = vpop.permute.xlu1 %1269  ;;  %v10554_v6 = vpop.permute.xlu0 %1275 }
 0x1e2   : > { %16313 = vst [vmem:[#allocation126_spill] sm:$0xff] %v10552_v3  ;;  %16314 = vst [vmem:[#allocation127_spill] sm:$0xff] %v10554_v6  ;;  %v595_v3 = vld [vmem:[#allocation2 + $0x120] sm:$0xff] }
 0x1e3   : > { %1633 = vrot.lane.b32.xlu1 %v656_v14, %s9376_s18  ;;  %1507 = vrot.lane.b32.xlu0 %v625_v40, %s9375_s16  ;;  %v658_v14 = vld [vmem:[#allocation2 + $0x112] sm:$0xff]  ;;  %v16317_v6 = vld [vmem:[#allocation10_spill] sm:$0xff] }
 0x1e4   : > { %v1695_v40 = vsel %vm293_vm0, %v382_v39, %v16317_v6  ;;  %v596_v6 = vld [vmem:[#allocation2 + $0x128] sm:$0xff] }
 0x1e5   : > { %v10558_v31 = vpop.permute.xlu1 %1273  ;;  %v1344_v42 = vpop.permute.xlu0 %1343 }
 0x1e6   : > { %16315 = vst [vmem:[#allocation128_spill] sm:$0xff] %v10558_v31 }
 0x1e7   : > { %1381 = vrot.lane.b32.xlu1 %v594_v7, %s9374_s12  ;;  %1635 = vrot.lane.b32.xlu0 %v657_v27, %s9376_s18  ;;  %v16318_v7 = vld [vmem:[#allocation56_spill] sm:$0xff]  ;;  %v627_v27 = vld [vmem:[#allocation2 + $0x121] sm:$0xff] }
 0x1e8   : > { %v1728_v13 = vsel %vm15879_vm2, %v1695_v40, %v16318_v7 }
 0x1e9   : > { %v10562_v48 = vpop.permute.xlu1 %1277  ;;  %v1348_v4 = vpop.permute.xlu0 %1347 }
 0x1ea   : > { %16316 = vst [vmem:[#allocation129_spill] sm:$0xff] %v10562_v48  ;;  %v1761_v48 = vsel %vm1760_vm4, %v1728_v13, %v10202_v52  ;;  %v659_v52 = vld [vmem:[#allocation2 + $0x122] sm:$0xff]  ;;  %v16319_v13 = vld [vmem:[#allocation13_spill] sm:$0xff] }
 0x1eb   : > { %1509 = vrot.lane.b32.xlu1 %v626_v9, %s9375_s16  ;;  %1383 = vrot.lane.b32.xlu0 %v595_v3, %s9374_s12  ;;  %v383_v9 = vld [vmem:[#allocation2 + $0x8] sm:$0xff]  ;;  %v1794_v39 = vsel %vm15935_vm5, %v1761_v48, %v10334_v23 }
 0x1ec   : > { %v1827_v3 = vsel %vm1826_vm6, %v1794_v39, %v10464_v32  ;;  %v628_v48 = vld [vmem:[#allocation2 + $0x129] sm:$0xff]  ;;  %v16321_v39 = vld [vmem:[#allocation21_spill] sm:$0xff] }
 0x1ed   : > { %v1346_v31 = vpop.permute.xlu1 %1345  ;;  %v1472_v49 = vpop.permute.xlu0 %1471  ;;  %v1860_v7 = vsel %vm15934_vm7, %v1827_v3, %v1344_v42 }
 0x1ee   : > { %v1893_v5 = vsel %vm1892_vm8, %v1860_v7, %v1472_v49 }
 0x1ef   : > { %1637 = vrot.lane.b32.xlu1 %v658_v14, %s9376_s18  ;;  %1511 = vrot.lane.b32.xlu0 %v627_v27, %s9375_s16  ;;  %v1696_v14 = vsel %vm293_vm0, %v383_v9, %v16319_v13  ;;  %v16320_v27 = vld [vmem:[#allocation15_spill] sm:$0xff]  ;;  %v16322_v9 = vld [vmem:[#allocation58_spill] sm:$0xff] }
 0x1f0   : > { %v1729_v23 = vsel %vm15879_vm2, %v1696_v14, %v10092_v36  ;;  %v1697_v42 = vsel %vm293_vm0, %v16321_v39, %v16320_v27  ;;  %v660_v14 = vld [vmem:[#allocation2 + $0x12a] sm:$0xff]  ;;  %v629_v27 = vld [vmem:[#allocation2 + $0x139] sm:$0xff] }
 0x1f1   : > { %v1350_v40 = vpop.permute.xlu1 %1349  ;;  %v1600_v26 = vpop.permute.xlu0 %1599  ;;  %v1762_v3 = vsel %vm1760_vm4, %v1729_v23, %v10216_v55  ;;  %v16324_v39 = vld [vmem:[#allocation27_spill] sm:$0xff] }
 0x1f2   : > { %v1926_v32 = vsel %vm15933_vm9, %v1893_v5, %v1600_v26  ;;  %v1795_v36 = vsel %vm15935_vm5, %v1762_v3, %v10348_v33  ;;  %v597_v26 = vld [vmem:[#allocation2 + $0x138] sm:$0xff] }
 0x1f3   : > { %1385 = vrot.lane.b32.xlu1 %v596_v6, %s9374_s12  ;;  %1639 = vrot.lane.b32.xlu0 %v659_v52, %s9376_s18  ;;  %v1730_v6 = vsel %vm15879_vm2, %v1697_v42, %v16322_v9  ;;  %v1828_v7 = vsel %vm1826_vm6, %v1795_v36, %v10474_v10  ;;  %v661_v36 = vld [vmem:[#allocation2 + $0x13a] sm:$0xff] }
 0x1f4   : > { %9032 = vmatprep.mubr.msk.f32.mxu0 %vm1970_vm10, %v1926_v32  ;;  %v1763_v5 = vsel %vm1760_vm4, %v1730_v6, %v10210_v54  ;;  %v1861_v52 = vsel %vm15934_vm7, %v1828_v7, %v1346_v31  ;;  %v630_v7 = vld [vmem:[#allocation2 + $0x141] sm:$0xff] }
 0x1f5   : > { %v1474_v49 = vpop.permute.xlu1 %1473  ;;  %v1476_v13 = vpop.permute.xlu0 %1475  ;;  %v1796_v55 = vsel %vm15935_vm5, %v1763_v5, %v10342_v20 }
 0x1f6   : > { %v1829_v23 = vsel %vm1826_vm6, %v1796_v55, %v10470_v44  ;;  %v1894_v33 = vsel %vm1892_vm8, %v1861_v52, %v1474_v49 }
 0x1f7   : > { %1513 = vrot.lane.b32.xlu1 %v628_v48, %s9375_s16  ;;  %1387 = vrot.lane.b32.xlu0 %v597_v26, %s9374_s12  ;;  %v1862_v32 = vsel %vm15934_vm7, %v1829_v23, %v1348_v4  ;;  %v16323_v48 = vld [vmem:[#allocation19_spill] sm:$0xff]  ;;  %v598_v4 = vld [vmem:[#allocation2 + $0x140] sm:$0xff] }
 0x1f8   : > { %v1698_v20 = vsel %vm293_vm0, %v16324_v39, %v16323_v48  ;;  %v1895_v31 = vsel %vm1892_vm8, %v1862_v32, %v1476_v13  ;;  %v16325_v13 = vld [vmem:[#allocation17_spill] sm:$0xff] }
 0x1f9   : > { %v1602_v54 = vpop.permute.xlu1 %1601  ;;  %v1604_v42 = vpop.permute.xlu0 %1603  ;;  %v1731_v44 = vsel %vm15879_vm2, %v1698_v20, %v10098_v37  ;;  %v600_v20 = vld [vmem:[#allocation2 + $0x158] sm:$0xff] }
 0x1fa   : > { %v1927_v10 = vsel %vm15933_vm9, %v1894_v33, %v1602_v54  ;;  %v1928_v3 = vsel %vm15933_vm9, %v1895_v31, %v1604_v42  ;;  %v1764_v49 = vsel %vm1760_vm4, %v1731_v44, %v10226_v57  ;;  %v1699_v57 = vsel %vm293_vm0, %v16268_v47, %v16325_v13  ;;  %v662_v33 = vld [vmem:[#allocation2 + $0x142] sm:$0xff]  ;;  %v663_v44 = vld [vmem:[#allocation2 + $0x152] sm:$0xff] }
 0x1fb   : > { %1641 = vrot.lane.b32.xlu1 %v660_v14, %s9376_s18  ;;  %9033 = vmatmul.mubr.msk.f32.vlgmr.msra.gmra.mrb[0].mxu0 %vm1970_vm10, %v1927_v10  ;;  %v1797_v6 = vsel %vm15935_vm5, %v1764_v49, %v10364_v29  ;;  %v1732_v29 = vsel %vm15879_vm2, %v1699_v57, %v10094_v0  ;;  %v599_v14 = vld [vmem:[#allocation2 + $0x150] sm:$0xff]  ;;  %v632_v49 = vld [vmem:[#allocation2 + $0x159] sm:$0xff] }
 0x1fc   : > { %1515 = vrot.lane.b32.xlu0 %v629_v27, %s9375_s16  ;;  %9035 = vmatprep.mubr.msk.f32.mxu0 %vm1970_vm10, %v1928_v3  ;;  %v1830_v26 = vsel %vm1826_vm6, %v1797_v6, %v10480_v41  ;;  %v1765_v23 = vsel %vm1760_vm4, %v1732_v29, %v10220_v50  ;;  %v631_v10 = vld [vmem:[#allocation2 + $0x151] sm:$0xff]  ;;  %v16326_v27 = vld [vmem:[#allocation23_spill] sm:$0xff]  ;;  %v664_v57 = vld [vmem:[#allocation2 + $0x15a] sm:$0xff] }
 0x1fd   : > { %v1478_v9 = vpop.permute.xlu1 %1477  ;;  %v1352_v5 = vpop.permute.xlu0 %1351  ;;  %v1863_v37 = vsel %vm15934_vm7, %v1830_v26, %v1350_v40  ;;  %v1798_v47 = vsel %vm15935_vm5, %v1765_v23, %v10358_v28  ;;  %v1700_v50 = vsel %vm293_vm0, %v16270_v19, %v16326_v27  ;;  %v633_v29 = vld [vmem:[#allocation2 + $0x169] sm:$0xff] }
 0x1fe   : > { %v1896_v55 = vsel %vm1892_vm8, %v1863_v37, %v1478_v9  ;;  %v1831_v54 = vsel %vm1826_vm6, %v1798_v47, %v10476_v38  ;;  %v1733_v28 = vsel %vm15879_vm2, %v1700_v50, %v10105_v35  ;;  %v9243_v9 = vld [vmem:[#allocation2 + $0x48] sm:$0xff]  ;;  %v602_v47 = vld [vmem:[#allocation2 + $0x170] sm:$0xff] }
 0x1ff   : > { %1389 = vrot.lane.b32.xlu1 %v598_v4, %s9374_s12  ;;  %v1864_v32 = vsel %vm15934_vm7, %v1831_v54, %v1352_v5  ;;  %v1766_v31 = vsel %vm1760_vm4, %v1733_v28, %v10236_v61  ;;  %v16327_v61 = vld [vmem:[#allocation20_spill] sm:$0xff]  ;;  %v601_v5 = vld [vmem:[#allocation2 + $0x168] sm:$0xff] }
 0x200   : > { %1643 = vrot.lane.b32.xlu0 %v661_v36, %s9376_s18  ;;  %v1799_v19 = vsel %vm15935_vm5, %v1766_v31, %v10380_v21  ;;  %v1701_v6 = vsel %vm293_vm0, %v9243_v9, %v16327_v61  ;;  %v634_v50 = vld [vmem:[#allocation2 + $0x171] sm:$0xff] }
 0x201   : > { %v1606_v52 = vpop.permute.xlu1 %1605  ;;  %v1480_v40 = vpop.permute.xlu0 %1479  ;;  %v1832_v3 = vsel %vm1826_vm6, %v1799_v19, %v10486_v43  ;;  %v1734_v21 = vsel %vm15879_vm2, %v1701_v6, %v10100_v34 }
 0x202   : > { %v1929_v41 = vsel %vm15933_vm9, %v1896_v55, %v1606_v52  ;;  %v1897_v48 = vsel %vm1892_vm8, %v1864_v32, %v1480_v40  ;;  %v1767_v37 = vsel %vm1760_vm4, %v1734_v21, %v10228_v59  ;;  %v16328_v59 = vld [vmem:[#allocation26_spill] sm:$0xff]  ;;  %v665_v32 = vld [vmem:[#allocation2 + $0x16a] sm:$0xff] }
 0x203   : > { %1517 = vrot.lane.b32.xlu1 %v630_v7, %s9375_s16  ;;  %9036 = vmatmul.mubr.msk.f32.gmra.mrb[2].mxu0 %vm1970_vm10, %v1929_v41  ;;  %v1800_v13 = vsel %vm15935_vm5, %v1767_v37, %v10372_v18  ;;  %v9244_v41 = vld [vmem:[#allocation2 + $0x50] sm:$0xff]  ;;  %v9247_v37 = vld [vmem:[#allocation2 + $0x78] sm:$0xff] }
 0x204   : > { %1391 = vrot.lane.b32.xlu0 %v599_v14, %s9374_s12  ;;  %v1833_v55 = vsel %vm1826_vm6, %v1800_v13, %v10482_v30  ;;  %v1702_v14 = vsel %vm293_vm0, %v9244_v41, %v16328_v59  ;;  %v637_v41 = vld [vmem:[#allocation2 + $0x199] sm:$0xff] }
 0x205   : > { %v1354_v0 = vpop.permute.xlu1 %1353  ;;  %v1608_v39 = vpop.permute.xlu0 %1607  ;;  %v1735_v18 = vsel %vm15879_vm2, %v1702_v14, %v10112_v62  ;;  %v9248_v59 = vld [vmem:[#allocation2 + $0x80] sm:$0xff] }
 0x206   : > { %v1930_v38 = vsel %vm15933_vm9, %v1897_v48, %v1608_v39  ;;  %v1865_v35 = vsel %vm15934_vm7, %v1832_v3, %v1354_v0  ;;  %v9245_v48 = vld [vmem:[#allocation2 + $0x60] sm:$0xff] }
 0x207   : > { %1645 = vrot.lane.b32.xlu1 %v662_v33, %s9376_s18  ;;  %9038 = vmatprep.mubr.msk.f32.mxu0 %vm1970_vm10, %v1930_v38  ;;  %v1768_v33 = vsel %vm1760_vm4, %v1735_v18, %v10244_v63  ;;  %v16329_v63 = vld [vmem:[#allocation24_spill] sm:$0xff]  ;;  %v606_v18 = vld [vmem:[#allocation2 + $0x1a0] sm:$0xff] }
 0x208   : > { %1519 = vrot.lane.b32.xlu0 %v631_v10, %s9375_s16  ;;  %v1801_v0 = vsel %vm15935_vm5, %v1768_v33, %v10391_v17  ;;  %v1703_v39 = vsel %vm293_vm0, %v9245_v48, %v16329_v63  ;;  %v9249_v48 = vld [vmem:[#allocation2 + $0x90] sm:$0xff] }
 0x209   : > { %v1482_v42 = vpop.permute.xlu1 %1481  ;;  %v1356_v4 = vpop.permute.xlu0 %1355  ;;  %v1834_v10 = vsel %vm1826_vm6, %v1801_v0, %v10492_v12  ;;  %v1736_v17 = vsel %vm15879_vm2, %v1703_v39, %v10107_v1  ;;  %v16337_v63 = vld [vmem:[#allocation32_spill] sm:$0xff] }
 0x20a   : > { %v1898_v36 = vsel %vm1892_vm8, %v1865_v35, %v1482_v42  ;;  %v1866_v52 = vsel %vm15934_vm7, %v1833_v55, %v1356_v4  ;;  %v1769_v31 = vsel %vm1760_vm4, %v1736_v17, %v10238_v53  ;;  %v9246_v35 = vld [vmem:[#allocation2 + $0x68] sm:$0xff]  ;;  %v1707_v39 = vsel %vm293_vm0, %v9249_v48, %v16337_v63  ;;  %v16356_v63 = vld [vmem:[#allocation114_spill] sm:$0xff] }
 0x20b   : > { %1393 = vrot.lane.b32.xlu1 %v600_v20, %s9374_s12  ;;  %v603_v20 = vld [vmem:[#allocation2 + $0x180] sm:$0xff]  ;;  %v1802_v19 = vsel %vm15935_vm5, %v1769_v31, %v10382_v15  ;;  %v16338_v17 = vld [vmem:[#allocation59_spill] sm:$0xff]  ;;  %v16339_v31 = vld [vmem:[#allocation80_spill] sm:$0xff] }
 0x20c   : > { %1647 = vrot.lane.b32.xlu0 %v663_v44, %s9376_s18  ;;  %v666_v44 = vld [vmem:[#allocation2 + $0x172] sm:$0xff]  ;;  %v1835_v3 = vsel %vm1826_vm6, %v1802_v19, %v10488_v8  ;;  %v604_v8 = vld [vmem:[#allocation2 + $0x188] sm:$0xff] }
 0x20d   : > { %v1610_v26 = vpop.permute.xlu1 %1609  ;;  %v1484_v7 = vpop.permute.xlu0 %1483 }
 0x20e   : > { %v1931_v43 = vsel %vm15933_vm9, %v1898_v36, %v1610_v26  ;;  %v1899_v23 = vsel %vm1892_vm8, %v1866_v52, %v1484_v7  ;;  %v16331_v7 = vld [vmem:[#allocation28_spill] sm:$0xff] }
 0x20f   : > { %1521 = vrot.lane.b32.xlu1 %v632_v49, %s9375_s16  ;;  %9039 = vmatmul.mubr.msk.f32.gmra.mrb[4].mxu0 %vm1970_vm10, %v1931_v43  ;;  %v16330_v49 = vld [vmem:[#allocation30_spill] sm:$0xff] }
 0x210   : > { %1395 = vrot.lane.b32.xlu0 %v601_v5, %s9374_s12  ;;  %v1704_v53 = vsel %vm293_vm0, %v9246_v35, %v16330_v49 }
 0x211   : > { %v1358_v34 = vpop.permute.xlu1 %1357  ;;  %v1612_v40 = vpop.permute.xlu0 %1611  ;;  %v1737_v15 = vsel %vm15879_vm2, %v1704_v53, %v10120_v25 }
 0x212   : > { %v1932_v30 = vsel %vm15933_vm9, %v1899_v23, %v1612_v40  ;;  %v1867_v62 = vsel %vm15934_vm7, %v1834_v10, %v1358_v34  ;;  %v1770_v36 = vsel %vm1760_vm4, %v1737_v15, %v10252_v2  ;;  %v1705_v2 = vsel %vm293_vm0, %v9247_v37, %v16331_v7  ;;  %v16336_v10 = vld [vmem:[#allocation110_spill] sm:$0xff] }
 0x213   : > { %1649 = vrot.lane.b32.xlu1 %v664_v57, %s9376_s18  ;;  %9041 = vmatprep.mubr.msk.f32.mxu0 %vm1970_vm10, %v1932_v30  ;;  %v1803_v21 = vsel %vm15935_vm5, %v1770_v36, %v10398_v45  ;;  %v1738_v45 = vsel %vm15879_vm2, %v1705_v2, %v10114_v58  ;;  %v605_v57 = vld [vmem:[#allocation2 + $0x198] sm:$0xff]  ;;  %v16343_v36 = vld [vmem:[#allocation62_spill] sm:$0xff]  ;;  %v16346_v2 = vld [vmem:[#allocation112_spill] sm:$0xff] }
 0x214   : > { %1523 = vrot.lane.b32.xlu0 %v633_v29, %s9375_s16  ;;  %v1836_v43 = vsel %vm1826_vm6, %v1803_v21, %v10498_v46  ;;  %v1771_v55 = vsel %vm1760_vm4, %v1738_v45, %v10246_v51  ;;  %v16332_v51 = vld [vmem:[#allocation34_spill] sm:$0xff]  ;;  %v16334_v30 = vld [vmem:[#allocation81_spill] sm:$0xff] }
 0x215   : > { %v1486_v54 = vpop.permute.xlu1 %1485  ;;  %v1360_v27 = vpop.permute.xlu0 %1359  ;;  %v1804_v52 = vsel %vm15935_vm5, %v1771_v55, %v10393_v16  ;;  %v1706_v14 = vsel %vm293_vm0, %v9248_v59, %v16332_v51  ;;  %v16333_v16 = vld [vmem:[#allocation60_spill] sm:$0xff]  ;;  %v16345_v37 = vld [vmem:[#allocation18_spill] sm:$0xff] }
 0x216   : > { %v1900_v28 = vsel %vm1892_vm8, %v1867_v62, %v1486_v54  ;;  %v1868_v4 = vsel %vm15934_vm7, %v1835_v3, %v1360_v27  ;;  %v1739_v40 = vsel %vm15879_vm2, %v1706_v14, %v16333_v16  ;;  %v16335_v54 = vld [vmem:[#allocation14_spill] sm:$0xff]  ;;  %v16350_v14 = vld [vmem:[#allocation16_spill] sm:$0xff] }
 0x217   : > { %1397 = vrot.lane.b32.xlu1 %v602_v47, %s9374_s12  ;;  %v1772_v47 = vsel %vm1760_vm4, %v1739_v40, %v16334_v30  ;;  %v16352_v30 = vld [vmem:[#allocation40_spill] sm:$0xff] }
 0x218   : > { %1651 = vrot.lane.b32.xlu0 %v665_v32, %s9376_s18  ;;  %v1805_v0 = vsel %vm15935_vm5, %v1772_v47, %v16335_v54  ;;  %v669_v32 = vld [vmem:[#allocation2 + $0x19a] sm:$0xff] }
 0x219   : > { %v1614_v38 = vpop.permute.xlu1 %1613  ;;  %v1488_v42 = vpop.permute.xlu0 %1487 }
 0x21a   : > { %v1933_v12 = vsel %vm15933_vm9, %v1900_v28, %v1614_v38  ;;  %v1901_v9 = vsel %vm1892_vm8, %v1868_v4, %v1488_v42  ;;  %v16341_v4 = vld [vmem:[#allocation109_spill] sm:$0xff] }
 0x21b   : > { %1525 = vrot.lane.b32.xlu1 %v634_v50, %s9375_s16  ;;  %9042 = vmatmul.mubr.msk.f32.gmra.mrb[6].mxu0 %vm1970_vm10, %v1933_v12  ;;  %v638_v50 = vld [vmem:[#allocation2 + $0x1a1] sm:$0xff]  ;;  %v1740_v12 = vsel %vm15879_vm2, %v1707_v39, %v16338_v17 }
 0x21c   : > { %1399 = vrot.lane.b32.xlu0 %v603_v20, %s9374_s12  ;;  %v1773_v42 = vsel %vm1760_vm4, %v1740_v12, %v16339_v31  ;;  %v9253_v17 = vld [vmem:[#allocation2 + $0xc0] sm:$0xff]  ;;  %v16357_v12 = vld [vmem:[#allocation39_spill] sm:$0xff] }
 0x21d   : > { %v1362_v1 = vpop.permute.xlu1 %1361  ;;  %v1616_v61 = vpop.permute.xlu0 %1615 }
 0x21e   : > { %v1934_v6 = vsel %vm15933_vm9, %v1901_v9, %v1616_v61  ;;  %v1869_v25 = vsel %vm15934_vm7, %v1836_v43, %v1362_v1  ;;  %v670_v1 = vld [vmem:[#allocation2 + $0x1a2] sm:$0xff]  ;;  %v9250_v9 = vld [vmem:[#allocation2 + $0x98] sm:$0xff] }
 0x21f   : > { %1653 = vrot.lane.b32.xlu1 %v666_v44, %s9376_s18  ;;  %9044 = vmatprep.mubr.msk.f32.mxu0 %vm1970_vm10, %v1934_v6  ;;  %v16340_v44 = vld [vmem:[#allocation12_spill] sm:$0xff]  ;;  %v16342_v61 = vld [vmem:[#allocation37_spill] sm:$0xff]  ;;  %v16344_v43 = vld [vmem:[#allocation83_spill] sm:$0xff] }
 0x220   : > { %1527 = vrot.lane.b32.xlu0 %v10218_v56, %s9375_s16  ;;  %v1806_v3 = vsel %vm15935_vm5, %v1773_v42, %v16340_v44  ;;  %v1708_v15 = vsel %vm293_vm0, %v9250_v9, %v16342_v61  ;;  %v16361_v9 = vld [vmem:[#allocation113_spill] sm:$0xff] }
 0x221   : > { %v1490_v26 = vpop.permute.xlu1 %1489  ;;  %v1364_v5 = vpop.permute.xlu0 %1363  ;;  %v1839_v35 = vsel %vm1826_vm6, %v1806_v3, %v16341_v4 }
 0x222   : > { %v1902_v56 = vsel %vm1892_vm8, %v1869_v25, %v1490_v26  ;;  %v1741_v26 = vsel %vm15879_vm2, %v1708_v15, %v16343_v36  ;;  %v16362_v36 = vld [vmem:[#allocation43_spill] sm:$0xff] }
 0x223   : > { %1401 = vrot.lane.b32.xlu1 %v604_v8, %s9374_s12 }
 0x224   : > { %1655 = vrot.lane.b32.xlu0 %v10350_v22, %s9376_s18  ;;  %v1837_v22 = vsel %vm1826_vm6, %v1804_v52, %v10494_v11 }
 0x225   : > { %v1618_v13 = vpop.permute.xlu1 %1617  ;;  %v1492_v34 = vpop.permute.xlu0 %1491  ;;  %v1870_v29 = vsel %vm15934_vm7, %v1837_v22, %v1364_v5  ;;  %v1774_v5 = vsel %vm1760_vm4, %v1741_v26, %v16344_v43  ;;  %v16348_v22 = vld [vmem:[#allocation61_spill] sm:$0xff] }
 0x226   : > { %v1935_v46 = vsel %vm15933_vm9, %v1902_v56, %v1618_v13  ;;  %v1807_v7 = vsel %vm15935_vm5, %v1774_v5, %v16345_v37  ;;  %v16363_v5 = vmov 0.0  }
 0x227   : > { %1529 = vrot.lane.b32.xlu1 %v10232_v60, %s9375_s16  ;;  %9045 = vmatmul.mubr.msk.f32.gmra.mrb[8].mxu0 %vm1970_vm10, %v1935_v46  ;;  %v1903_v60 = vsel %vm1892_vm8, %v1870_v29, %v1492_v34  ;;  %v1840_v56 = vsel %vm1826_vm6, %v1807_v7, %v16346_v2  ;;  %v9251_v46 = vld [vmem:[#allocation2 + $0xa8] sm:$0xff]  ;;  %2334 = vst.msk [vmem:[#allocation3 + $0x28] sm:$0x3] %vm2330_vm11, %v16363_v5  ;;  %2331 = vst.msk [vmem:[#allocation3 + $0x10] sm:$0x3] %vm2330_vm11, %v16363_v5 }
 0x228   : > { %1403 = vrot.lane.b32.xlu0 %v605_v57, %s9374_s12  ;;  %v16347_v57 = vld [vmem:[#allocation36_spill] sm:$0xff]  ;;  %2337 = vst.msk [vmem:[#allocation3 + $0x40] sm:$0x3] %vm2330_vm11, %v16363_v5  ;;  %2340 = vst.msk [vmem:[#allocation3 + $0x58] sm:$0x3] %vm2330_vm11, %v16363_v5  ;;  %v16365_v2 = vld [vmem:[#allocation87_spill] sm:$0xff] }
 0x229   : > { %v1366_v58 = vpop.permute.xlu1 %1365  ;;  %v1620_v23 = vpop.permute.xlu0 %1619  ;;  %v1709_v55 = vsel %vm293_vm0, %v9251_v46, %v16347_v57  ;;  %2343 = vst.msk [vmem:[#allocation3 + $0x70] sm:$0x3] %vm2330_vm11, %v16363_v5  ;;  %2346 = vst.msk [vmem:[#allocation3 + $0x88] sm:$0x3] %vm2330_vm11, %v16363_v5  ;;  %v16367_v57 = vld [vmem:[#allocation116_spill] sm:$0xff] }
 0x22a   : > { %v1936_v11 = vsel %vm15933_vm9, %v1903_v60, %v1620_v23  ;;  %v16351_v23 = vld [vmem:[#allocation111_spill] sm:$0xff]  ;;  %2349 = vst.msk [vmem:[#allocation3 + $0xa0] sm:$0x3] %vm2330_vm11, %v16363_v5  ;;  %2352 = vst.msk [vmem:[#allocation3 + $0xb8] sm:$0x3] %vm2330_vm11, %v16363_v5 }
 0x22b   : > { %1657 = vrot.lane.b32.xlu1 %v10376_v24, %s9376_s18  ;;  %9047 = vmatprep.mubr.msk.f32.mxu0 %vm1970_vm10, %v1936_v11  ;;  %v1838_v24 = vsel %vm1826_vm6, %v1805_v0, %v16336_v10  ;;  %v16353_v0 = vld [vmem:[#allocation64_spill] sm:$0xff]  ;;  %2355 = vst.msk [vmem:[#allocation3 + $0xd0] sm:$0x3] %vm2330_vm11, %v16363_v5  ;;  %2358 = vst.msk [vmem:[#allocation3 + $0xe8] sm:$0x3] %vm2330_vm11, %v16363_v5 }
 0x22c   : > { %1531 = vrot.lane.b32.xlu0 %v637_v41, %s9375_s16  ;;  %v1871_v62 = vsel %vm15934_vm7, %v1838_v24, %v1366_v58  ;;  %v1742_v58 = vsel %vm15879_vm2, %v1709_v55, %v16348_v22  ;;  %v16349_v41 = vld [vmem:[#allocation82_spill] sm:$0xff]  ;;  %v16354_v24 = vld [vmem:[#allocation85_spill] sm:$0xff]  ;;  %2361 = vst.msk [vmem:[#allocation3 + $0x100] sm:$0x3] %vm2330_vm11, %v16363_v5  ;;  %2364 = vst.msk [vmem:[#allocation3 + $0x118] sm:$0x3] %vm2330_vm11, %v16363_v5 }
 0x22d   : > { %v1494_v33 = vpop.permute.xlu1 %1493  ;;  %v1368_v27 = vpop.permute.xlu0 %1367  ;;  %v1775_v59 = vsel %vm1760_vm4, %v1742_v58, %v16349_v41  ;;  %2367 = vst.msk [vmem:[#allocation3 + $0x130] sm:$0x3] %vm2330_vm11, %v16363_v5  ;;  %2370 = vst.msk [vmem:[#allocation3 + $0x148] sm:$0x3] %vm2330_vm11, %v16363_v5  ;;  %v9255_v22 = vld [vmem:[#allocation2 + $0xd8] sm:$0xff]  ;;  %v16368_v58 = vld [vmem:[#allocation42_spill] sm:$0xff] }
 0x22e   : > { %v1904_v28 = vsel %vm1892_vm8, %v1871_v62, %v1494_v33  ;;  %v1872_v53 = vsel %vm15934_vm7, %v1839_v35, %v1368_v27  ;;  %v1808_v60 = vsel %vm15935_vm5, %v1775_v59, %v16350_v14  ;;  %2373 = vst.msk [vmem:[#allocation3 + $0x160] sm:$0x3] %vm2330_vm11, %v16363_v5  ;;  %2376 = vst.msk [vmem:[#allocation3 + $0x178] sm:$0x3] %vm2330_vm11, %v16363_v5 }
 0x22f   : > { %1405 = vrot.lane.b32.xlu1 %v606_v18, %s9374_s12  ;;  %v1841_v16 = vsel %vm1826_vm6, %v1808_v60, %v16351_v23  ;;  %v9252_v18 = vld [vmem:[#allocation2 + $0xb0] sm:$0xff]  ;;  %2379 = vst.msk [vmem:[#allocation3 + $0x190] sm:$0x3] %vm2330_vm11, %v16363_v5  ;;  %2382 = vst.msk [vmem:[#allocation3 + $0x1a8] sm:$0x3] %vm2330_vm11, %v16363_v5  ;;  %v2449_v23 = vld [vmem:[#allocation3 + $0x9] sm:$0xff] }
 0x230   : > { %1659 = vrot.lane.b32.xlu0 %v669_v32, %s9376_s18  ;;  %v1710_v47 = vsel %vm293_vm0, %v9252_v18, %v16352_v30  ;;  %v2448_v18 = vld [vmem:[#allocation3 + $0x1] sm:$0xff] }
 0x231   : > { %v1622_v38 = vpop.permute.xlu1 %1621  ;;  %v1496_v19 = vpop.permute.xlu0 %1495  ;;  %v1743_v32 = vsel %vm15879_vm2, %v1710_v47, %v16353_v0  ;;  %v16371_v30 = vld [vmem:[#allocation29_spill] sm:$0xff] }
 0x232   : > { %v1937_v20 = vsel %vm15933_vm9, %v1904_v28, %v1622_v38  ;;  %v1905_v6 = vsel %vm1892_vm8, %v1872_v53, %v1496_v19  ;;  %v1776_v27 = vsel %vm1760_vm4, %v1743_v32, %v16354_v24  ;;  %v16358_v19 = vld [vmem:[#allocation63_spill] sm:$0xff]  ;;  %v16373_v24 = vld [vmem:[#allocation45_spill] sm:$0xff] }
 0x233   : > { %1533 = vrot.lane.b32.xlu1 %v638_v50, %s9375_s16  ;;  %9048 = vmatmul.mubr.msk.f32.gmra.mrb[10].mxu0 %vm1970_vm10, %v1937_v20  ;;  %v16355_v50 = vld [vmem:[#allocation25_spill] sm:$0xff]  ;;  %v1711_v20 = vsel %vm293_vm0, %v9253_v17, %v16357_v12  ;;  %s9377_s16 = smov 40  }
 0x234   : > { %v1809_v48 = vsel %vm15935_vm5, %v1776_v27, %v16355_v50  ;;  %v1744_v44 = vsel %vm15879_vm2, %v1711_v20, %v16358_v19  ;;  %2737 = vrot.lane.b32.xlu0 %v2448_v18, %s9370_s15  ;;  %v16376_v12 = vld [vmem:[#allocation33_spill] sm:$0xff] }
 0x235   : > { %v1370_v49 = vpop.permute.xlu1 %1369  ;;  %v1624_v8 = vpop.permute.xlu0 %1623  ;;  %v1842_v39 = vsel %vm1826_vm6, %v1809_v48, %v16356_v63  ;;  %v16374_v48 = vld [vmem:[#allocation68_spill] sm:$0xff] }
 0x236   : > { %v1938_v21 = vsel %vm15933_vm9, %v1905_v6, %v1624_v8  ;;  %v1873_v45 = vsel %vm15934_vm7, %v1840_v56, %v1370_v49  ;;  %v16360_v49 = vld [vmem:[#allocation22_spill] sm:$0xff]  ;;  %v9254_v8 = vld [vmem:[#allocation2 + $0xc8] sm:$0xff] }
 0x237   : > { %1661 = vrot.lane.b32.xlu1 %v670_v1, %s9376_s18  ;;  %9050 = vmatprep.mubr.msk.f32.mxu0 %vm1970_vm10, %v1938_v21  ;;  %v16359_v1 = vld [vmem:[#allocation84_spill] sm:$0xff]  ;;  %v1712_v26 = vsel %vm293_vm0, %v9254_v8, %v16362_v36  ;;  %v16381_v36 = vld [vmem:[#allocation35_spill] sm:$0xff] }
 0x238   : > { %v1777_v4 = vsel %vm1760_vm4, %v1744_v44, %v16359_v1  ;;  %v16378_v1 = vld [vmem:[#allocation44_spill] sm:$0xff] }
 0x239   : > { %v1498_v25 = vpop.permute.xlu1 %1497  ;;  %v1372_v13 = vpop.permute.xlu0 %1371  ;;  %v1810_v53 = vsel %vm15935_vm5, %v1777_v4, %v16360_v49 }
 0x23a   : > { %v1906_v34 = vsel %vm1892_vm8, %v1873_v45, %v1498_v25  ;;  %v1874_v11 = vsel %vm15934_vm7, %v1841_v16, %v1372_v13  ;;  %v1843_v61 = vsel %vm1826_vm6, %v1810_v53, %v16361_v9  ;;  %v16364_v25 = vld [vmem:[#allocation66_spill] sm:$0xff]  ;;  %v16366_v45 = vld [vmem:[#allocation31_spill] sm:$0xff] }
 0x23b   : > { %v1745_v37 = vsel %vm15879_vm2, %v1712_v26, %v16364_v25  ;;  %v16370_v16 = vld [vmem:[#allocation86_spill] sm:$0xff]  ;;  %2739 = vrot.lane.b32.xlu1 %v2449_v23, %s9370_s15  ;;  %v16379_v53 = vld [vmem:[#allocation67_spill] sm:$0xff] }
 0x23c   : > { %v1778_v56 = vsel %vm1760_vm4, %v1745_v37, %v16365_v2  ;;  %v9258_v37 = vld [vmem:[#allocation2 + $0xf8] sm:$0xff] }
 0x23d   : > { %v1626_v52 = vpop.permute.xlu1 %1625  ;;  %v1500_v51 = vpop.permute.xlu0 %1499  ;;  %v1811_v46 = vsel %vm15935_vm5, %v1778_v56, %v16366_v45  ;;  %v16384_v45 = vld [vmem:[#allocation70_spill] sm:$0xff] }
 0x23e   : > { %v1939_v29 = vsel %vm15933_vm9, %v1906_v34, %v1626_v52  ;;  %v1907_v33 = vsel %vm1892_vm8, %v1874_v11, %v1500_v51  ;;  %v1844_v55 = vsel %vm1826_vm6, %v1811_v46, %v16367_v57  ;;  %v16369_v51 = vld [vmem:[#allocation65_spill] sm:$0xff] }
 0x23f   : > { %9051 = vmatmul.mubr.msk.f32.gmra.mrb[12].mxu0 %vm1970_vm10, %v1939_v29  ;;  %v1713_v29 = vsel %vm293_vm0, %v9255_v22, %v16368_v58  ;;  %v16386_v22 = vld [vmem:[#allocation38_spill] sm:$0xff] }
 0x240   : > { %v1746_v14 = vsel %vm15879_vm2, %v1713_v29, %v16369_v51  ;;  %v16387_v29 = vld [vmem:[#allocation120_spill] sm:$0xff] }
 0x241   : > { %v1374_v40 = vpop.permute.xlu1 %1373  ;;  %v1628_v54 = vpop.permute.xlu0 %1627 }
 0x242   : > { %v1940_v10 = vsel %vm15933_vm9, %v1907_v33, %v1628_v54  ;;  %v1875_v38 = vsel %vm15934_vm7, %v1842_v39, %v1374_v40  ;;  %v1779_v40 = vsel %vm1760_vm4, %v1746_v14, %v16370_v16  ;;  %v16372_v33 = vld [vmem:[#allocation115_spill] sm:$0xff] }
 0x243   : > { %9053 = vmatprep.mubr.msk.f32.mxu0 %vm1970_vm10, %v1940_v10  ;;  %v1812_v47 = vsel %vm15935_vm5, %v1779_v40, %v16371_v30  ;;  %v9256_v10 = vld [vmem:[#allocation2 + $0xe0] sm:$0xff]  ;;  %v9259_v14 = vld [vmem:[#allocation2 + $0x108] sm:$0xff] }
 0x244   : > { %v1845_v54 = vsel %vm1826_vm6, %v1812_v47, %v16372_v33  ;;  %v1714_v27 = vsel %vm293_vm0, %v9256_v10, %v16373_v24  ;;  %v16390_v47 = vld [vmem:[#allocation90_spill] sm:$0xff]  ;;  %v16392_v10 = vld [vmem:[#allocation119_spill] sm:$0xff] }
 0x245   : > { %v1502_v62 = vpop.permute.xlu1 %1501  ;;  %v1376_v28 = vpop.permute.xlu0 %1375  ;;  %v1747_v63 = vsel %vm15879_vm2, %v1714_v27, %v16374_v48  ;;  %v16393_v48 = vld [vmem:[#allocation49_spill] sm:$0xff] }
 0x246   : > { %v1908_v31 = vsel %vm1892_vm8, %v1875_v38, %v1502_v62  ;;  %v1876_v6 = vsel %vm15934_vm7, %v1843_v61, %v1376_v28  ;;  %v16375_v28 = vld [vmem:[#allocation89_spill] sm:$0xff] }
 0x247   : > { %v1780_v38 = vsel %vm1760_vm4, %v1747_v63, %v16375_v28 }
 0x248   : > { %v1813_v20 = vsel %vm15935_vm5, %v1780_v38, %v16376_v12  ;;  %v16394_v38 = vld [vmem:[#allocation72_spill] sm:$0xff] }
 0x249   : > { %v1630_v42 = vpop.permute.xlu1 %1629  ;;  %v1504_v35 = vpop.permute.xlu0 %1503 }
 0x24a   : > { %v1941_v3 = vsel %vm15933_vm9, %v1908_v31, %v1630_v42  ;;  %v1909_v21 = vsel %vm1892_vm8, %v1876_v6, %v1504_v35  ;;  %v16377_v31 = vld [vmem:[#allocation118_spill] sm:$0xff] }
 0x24b   : > { %9054 = vmatmul.mubr.msk.f32.gmra.mrb[14].mxu0 %vm1970_vm10, %v1941_v3  ;;  %v1846_v42 = vsel %vm1826_vm6, %v1813_v20, %v16377_v31  ;;  %v9257_v3 = vld [vmem:[#allocation2 + $0xf0] sm:$0xff]  ;;  %v16395_v20 = vld [vmem:[#allocation93_spill] sm:$0xff] }
 0x24c   : > { %v1715_v4 = vsel %vm293_vm0, %v9257_v3, %v16378_v1  ;;  %v16397_v3 = vld [vmem:[#allocation122_spill] sm:$0xff] }
 0x24d   : > { %v1378_v15 = vpop.permute.xlu1 %1377  ;;  %v1632_v43 = vpop.permute.xlu0 %1631  ;;  %v1748_v9 = vsel %vm15879_vm2, %v1715_v4, %v16379_v53  ;;  %v16398_v53 = vld [vmem:[#allocation48_spill] sm:$0xff] }
 0x24e   : > { %v1942_v7 = vsel %vm15933_vm9, %v1909_v21, %v1632_v43  ;;  %v1877_v52 = vsel %vm15934_vm7, %v1844_v55, %v1378_v15  ;;  %v16380_v15 = vld [vmem:[#allocation88_spill] sm:$0xff]  ;;  %v16382_v21 = vld [vmem:[#allocation117_spill] sm:$0xff]  ;;  %v16385_v55 = vld [vmem:[#allocation91_spill] sm:$0xff] }
 0x24f   : > { %9056 = vmatprep.mubr.msk.f32.mxu0 %vm1970_vm10, %v1942_v7  ;;  %v1781_v6 = vsel %vm1760_vm4, %v1748_v9, %v16380_v15  ;;  %v16383_v7 = vld [vmem:[#allocation47_spill] sm:$0xff] }
 0x250   : > { %v1814_v26 = vsel %vm15935_vm5, %v1781_v6, %v16381_v36  ;;  %v1716_v2 = vsel %vm293_vm0, %v9258_v37, %v16383_v7  ;;  %v16399_v6 = vld [vmem:[#allocation71_spill] sm:$0xff]  ;;  %v16402_v37 = vld [vmem:[#allocation121_spill] sm:$0xff] }
 0x251   : > { %v1506_v13 = vpop.permute.xlu1 %1505  ;;  %v1380_v34 = vpop.permute.xlu0 %1379  ;;  %v1847_v43 = vsel %vm1826_vm6, %v1814_v26, %v16382_v21  ;;  %v1749_v46 = vsel %vm15879_vm2, %v1716_v2, %v16384_v45  ;;  %v16400_v26 = vld [vmem:[#allocation92_spill] sm:$0xff]  ;;  %v16403_v45 = vld [vmem:[#allocation51_spill] sm:$0xff] }
 0x252   : > { %v1910_v41 = vsel %vm1892_vm8, %v1877_v52, %v1506_v13  ;;  %v1878_v32 = vsel %vm15934_vm7, %v1845_v54, %v1380_v34  ;;  %v1782_v34 = vsel %vm1760_vm4, %v1749_v46, %v16385_v55 }
 0x253   : > { %v1815_v58 = vsel %vm15935_vm5, %v1782_v34, %v16386_v22  ;;  %v16404_v34 = vld [vmem:[#allocation74_spill] sm:$0xff] }
 0x255   : > { %v1634_v59 = vpop.permute.xlu1 %1633  ;;  %v1508_v11 = vpop.permute.xlu0 %1507 }
 0x256   : > { %v1943_v60 = vsel %vm15933_vm9, %v1910_v41, %v1634_v59  ;;  %v1911_v62 = vsel %vm1892_vm8, %v1878_v32, %v1508_v11  ;;  %v1848_v41 = vsel %vm1826_vm6, %v1815_v58, %v16387_v29  ;;  %v16389_v11 = vld [vmem:[#allocation69_spill] sm:$0xff]  ;;  %v16405_v58 = vld [vmem:[#allocation95_spill] sm:$0xff] }
 0x257   : > { %9057 = vmatmul.mubr.msk.f32.gmra.mrb[16].mxu0 %vm1970_vm10, %v1943_v60  ;;  %v16388_v60 = vld [vmem:[#allocation46_spill] sm:$0xff] }
 0x258   : > { %v1717_v23 = vsel %vm293_vm0, %v9259_v14, %v16388_v60  ;;  %v16407_v14 = vld [vmem:[#allocation124_spill] sm:$0xff] }
 0x259   : > { %v1382_v0 = vpop.permute.xlu1 %1381  ;;  %v1636_v50 = vpop.permute.xlu0 %1635  ;;  %v1750_v18 = vsel %vm15879_vm2, %v1717_v23, %v16389_v11  ;;  %v16408_v11 = vld [vmem:[#allocation50_spill] sm:$0xff] }
 0x25a   : > { %v1944_v39 = vsel %vm15933_vm9, %v1911_v62, %v1636_v50  ;;  %v1879_v44 = vsel %vm15934_vm7, %v1846_v42, %v1382_v0  ;;  %v1783_v33 = vsel %vm1760_vm4, %v1750_v18, %v16390_v47  ;;  %v16391_v0 = vld [vmem:[#allocation100_spill] sm:$0xff] }
 0x25b   : > { %9059 = vmatprep.mubr.msk.f32.mxu0 %vm1970_vm10, %v1944_v39  ;;  %v1816_v32 = vsel %vm15935_vm5, %v1783_v33, %v16391_v0  ;;  %v9260_v50 = vld [vmem:[#allocation2 + $0x110] sm:$0xff]  ;;  %v16409_v33 = vld [vmem:[#allocation73_spill] sm:$0xff] }
 0x25c   : > { %v1849_v24 = vsel %vm1826_vm6, %v1816_v32, %v16392_v10  ;;  %v1718_v63 = vsel %vm293_vm0, %v9260_v50, %v16393_v48  ;;  %v16410_v32 = vld [vmem:[#allocation94_spill] sm:$0xff]  ;;  %v16412_v50 = vld [vmem:[#allocation123_spill] sm:$0xff] }
 0x25d   : > { %v1510_v17 = vpop.permute.xlu1 %1509  ;;  %v1384_v19 = vpop.permute.xlu0 %1383 }
 0x25e   : > { %v1912_v35 = vsel %vm1892_vm8, %v1879_v44, %v1510_v17  ;;  %v1880_v25 = vsel %vm15934_vm7, %v1847_v43, %v1384_v19  ;;  %v1751_v17 = vsel %vm15879_vm2, %v1718_v63, %v16394_v38  ;;  %v16396_v19 = vld [vmem:[#allocation102_spill] sm:$0xff]  ;;  %v16413_v38 = vld [vmem:[#allocation53_spill] sm:$0xff] }
 0x25f   : > { %v1784_v31 = vsel %vm1760_vm4, %v1751_v17, %v16395_v20 }
 0x260   : > { %v1817_v44 = vsel %vm15935_vm5, %v1784_v31, %v16396_v19  ;;  %v16414_v31 = vld [vmem:[#allocation76_spill] sm:$0xff] }
 0x261   : > { %v1638_v49 = vpop.permute.xlu1 %1637  ;;  %v1512_v8 = vpop.permute.xlu0 %1511  ;;  %v1850_v1 = vsel %vm1826_vm6, %v1817_v44, %v16397_v3  ;;  %v16415_v44 = vld [vmem:[#allocation97_spill] sm:$0xff] }
 0x262   : > { %v1945_v61 = vsel %vm15933_vm9, %v1912_v35, %v1638_v49  ;;  %v1913_v56 = vsel %vm1892_vm8, %v1880_v25, %v1512_v8  ;;  %v9261_v49 = vld [vmem:[#allocation2 + $0x120] sm:$0xff] }
 0x263   : > { %9060 = vmatmul.mubr.msk.f32.gmra.mrb[18].mxu0 %vm1970_vm10, %v1945_v61  ;;  %v1719_v9 = vsel %vm293_vm0, %v9261_v49, %v16398_v53  ;;  %v16417_v49 = vld [vmem:[#allocation126_spill] sm:$0xff] }
 0x264   : > { %v1752_v8 = vsel %vm15879_vm2, %v1719_v9, %v16399_v6  ;;  %v16418_v6 = vld [vmem:[#allocation52_spill] sm:$0xff] }
 0x265   : > { %v1386_v5 = vpop.permute.xlu1 %1385  ;;  %v1640_v13 = vpop.permute.xlu0 %1639  ;;  %v1785_v21 = vsel %vm1760_vm4, %v1752_v8, %v16400_v26 }
 0x266   : > { %v1946_v57 = vsel %vm15933_vm9, %v1913_v56, %v1640_v13  ;;  %v1881_v51 = vsel %vm15934_vm7, %v1848_v41, %v1386_v5  ;;  %v16401_v5 = vld [vmem:[#allocation101_spill] sm:$0xff]  ;;  %v9262_v13 = vld [vmem:[#allocation2 + $0x128] sm:$0xff] }
 0x267   : > { %9062 = vmatprep.mubr.msk.f32.mxu0 %vm1970_vm10, %v1946_v57  ;;  %v1818_v25 = vsel %vm15935_vm5, %v1785_v21, %v16401_v5  ;;  %v1720_v46 = vsel %vm293_vm0, %v9262_v13, %v16403_v45  ;;  %v16419_v21 = vld [vmem:[#allocation75_spill] sm:$0xff]  ;;  %v16422_v13 = vld [vmem:[#allocation125_spill] sm:$0xff] }
 0x268   : > { %v1851_v7 = vsel %vm1826_vm6, %v1818_v25, %v16402_v37  ;;  %v16420_v25 = vld [vmem:[#allocation96_spill] sm:$0xff] }
 0x269   : > { %v1514_v52 = vpop.permute.xlu1 %1513  ;;  %v1388_v59 = vpop.permute.xlu0 %1387 }
 0x26a   : > { %v1914_v16 = vsel %vm1892_vm8, %v1881_v51, %v1514_v52  ;;  %v1882_v62 = vsel %vm15934_vm7, %v1849_v24, %v1388_v59  ;;  %v1753_v52 = vsel %vm15879_vm2, %v1720_v46, %v16404_v34  ;;  %v16406_v59 = vld [vmem:[#allocation104_spill] sm:$0xff]  ;;  %v16423_v34 = vld [vmem:[#allocation55_spill] sm:$0xff] }
 0x26b   : > { %v1786_v29 = vsel %vm1760_vm4, %v1753_v52, %v16405_v58 }
 0x26c   : > { %v1819_v51 = vsel %vm15935_vm5, %v1786_v29, %v16406_v59  ;;  %v16424_v29 = vld [vmem:[#allocation78_spill] sm:$0xff] }
 0x26d   : > { %v1642_v40 = vpop.permute.xlu1 %1641  ;;  %v1852_v60 = vsel %vm1826_vm6, %v1819_v51, %v16407_v14  ;;  %v16425_v51 = vld [vmem:[#allocation99_spill] sm:$0xff] }
 0x26e   : > { %v1947_v30 = vsel %vm15933_vm9, %v1914_v16, %v1642_v40  ;;  %v1516_v54 = vpop.permute.xlu0 %1515  ;;  %v9263_v40 = vld [vmem:[#allocation2 + $0x138] sm:$0xff] }
 0x26f   : > { %9063 = vmatmul.mubr.msk.f32.gmra.mrb[20].mxu0 %vm1970_vm10, %v1947_v30  ;;  %v1915_v39 = vsel %vm1892_vm8, %v1882_v62, %v1516_v54  ;;  %v1721_v18 = vsel %vm293_vm0, %v9263_v40, %v16408_v11  ;;  %v16427_v40 = vld [vmem:[#allocation128_spill] sm:$0xff] }
 0x270   : > { %v1754_v54 = vsel %vm15879_vm2, %v1721_v18, %v16409_v33  ;;  %v16428_v33 = vld [vmem:[#allocation54_spill] sm:$0xff] }
 0x271   : > { %v1390_v27 = vpop.permute.xlu1 %1389  ;;  %v1787_v10 = vsel %vm1760_vm4, %v1754_v54, %v16410_v32 }
 0x272   : > { %v1644_v28 = vpop.permute.xlu0 %1643  ;;  %v1883_v35 = vsel %vm15934_vm7, %v1850_v1, %v1390_v27  ;;  %v16411_v27 = vld [vmem:[#allocation103_spill] sm:$0xff] }
 0x273   : > { %v1948_v12 = vsel %vm15933_vm9, %v1915_v39, %v1644_v28  ;;  %v1820_v62 = vsel %vm15935_vm5, %v1787_v10, %v16411_v27  ;;  %v9264_v28 = vld [vmem:[#allocation2 + $0x140] sm:$0xff]  ;;  %v16429_v10 = vld [vmem:[#allocation77_spill] sm:$0xff] }
 0x274   : > { %9065 = vmatprep.mubr.msk.f32.mxu0 %vm1970_vm10, %v1948_v12  ;;  %v1853_v48 = vsel %vm1826_vm6, %v1820_v62, %v16412_v50  ;;  %v1722_v17 = vsel %vm293_vm0, %v9264_v28, %v16413_v38  ;;  %v16430_v62 = vld [vmem:[#allocation98_spill] sm:$0xff]  ;;  %v16432_v28 = vld [vmem:[#allocation127_spill] sm:$0xff] }
 0x275   : > { %v1518_v42 = vpop.permute.xlu1 %1517 }
 0x276   : > { %v1392_v4 = vpop.permute.xlu0 %1391  ;;  %v1916_v61 = vsel %vm1892_vm8, %v1883_v35, %v1518_v42  ;;  %v1755_v42 = vsel %vm15879_vm2, %v1722_v17, %v16414_v31  ;;  %v16433_v31 = vld [vmem:[#allocation57_spill] sm:$0xff] }
 0x277   : > { %v1884_v56 = vsel %vm15934_vm7, %v1851_v7, %v1392_v4  ;;  %v1788_v3 = vsel %vm1760_vm4, %v1755_v42, %v16415_v44  ;;  %v16416_v4 = vld [vmem:[#allocation41_spill] sm:$0xff] }
 0x278   : > { %v1821_v35 = vsel %vm15935_vm5, %v1788_v3, %v16416_v4  ;;  %v16434_v3 = vld [vmem:[#allocation79_spill] sm:$0xff] }
 0x279   : > { %v1646_v15 = vpop.permute.xlu1 %1645  ;;  %v1854_v53 = vsel %vm1826_vm6, %v1821_v35, %v16417_v49  ;;  %v16435_v35 = vld [vmem:[#allocation11_spill] sm:$0xff] }
 0x27a   : > { %v1949_v36 = vsel %vm15933_vm9, %v1916_v61, %v1646_v15  ;;  %v1520_v43 = vpop.permute.xlu0 %1519  ;;  %v9265_v15 = vld [vmem:[#allocation2 + $0x150] sm:$0xff] }
 0x27b   : > { %9066 = vmatmul.mubr.msk.f32.gmra.mrb[22].mxu0 %vm1970_vm10, %v1949_v36  ;;  %v1917_v57 = vsel %vm1892_vm8, %v1884_v56, %v1520_v43  ;;  %v1723_v8 = vsel %vm293_vm0, %v9265_v15, %v16418_v6  ;;  %v16437_v15 = vld [vmem:[#allocation129_spill] sm:$0xff] }
 0x27c   : > { %v1756_v43 = vsel %vm15879_vm2, %v1723_v8, %v16419_v21 }
 0x27d   : > { %v1394_v2 = vpop.permute.xlu1 %1393  ;;  %v1789_v37 = vsel %vm1760_vm4, %v1756_v43, %v16420_v25  ;;  %v11099_v43 = vld [vmem:[%s15788_s2] ss:$0 sm:$0xff] }
 0x27e   : > { %v1648_v55 = vpop.permute.xlu0 %1647  ;;  %v1885_v16 = vsel %vm15934_vm7, %v1852_v60, %v1394_v2  ;;  %v16421_v2 = vld [vmem:[#allocation105_spill] sm:$0xff] }
 0x27f   : > { %v1950_v22 = vsel %vm15933_vm9, %v1917_v57, %v1648_v55  ;;  %v1822_v56 = vsel %vm15935_vm5, %v1789_v37, %v16421_v2  ;;  %v9266_v55 = vld [vmem:[#allocation2 + $0x158] sm:$0xff] }
 0x280   : > { %9068 = vmatprep.mubr.msk.f32.mxu0 %vm1970_vm10, %v1950_v22  ;;  %v1855_v45 = vsel %vm1826_vm6, %v1822_v56, %v16422_v13  ;;  %v1724_v52 = vsel %vm293_vm0, %v9266_v55, %v16423_v34 }
 0x281   : > { %v1522_v41 = vpop.permute.xlu1 %1521 }
 0x282   : > { %v1396_v23 = vpop.permute.xlu0 %1395  ;;  %v1918_v30 = vsel %vm1892_vm8, %v1885_v16, %v1522_v41  ;;  %v1757_v41 = vsel %vm15879_vm2, %v1724_v52, %v16424_v29 }
 0x283   : > { %v1886_v39 = vsel %vm15934_vm7, %v1853_v48, %v1396_v23  ;;  %v1790_v14 = vsel %vm1760_vm4, %v1757_v41, %v16425_v51  ;;  %v16426_v23 = vld [vmem:[#allocation107_spill] sm:$0xff] }
 0x284   : > { %v1823_v16 = vsel %vm15935_vm5, %v1790_v14, %v16426_v23 }
 0x285   : > { %v1650_v47 = vpop.permute.xlu1 %1649  ;;  %v1856_v11 = vsel %vm1826_vm6, %v1823_v16, %v16427_v40 }
 0x286   : > { %v1951_v0 = vsel %vm15933_vm9, %v1918_v30, %v1650_v47  ;;  %v1524_v24 = vpop.permute.xlu0 %1523  ;;  %v9267_v47 = vld [vmem:[#allocation2 + $0x168] sm:$0xff] }
 0x287   : > { %9069 = vmatmul.mubr.msk.f32.gmra.mrb[24].mxu0 %vm1970_vm10, %v1951_v0  ;;  %v1919_v12 = vsel %vm1892_vm8, %v1886_v39, %v1524_v24  ;;  %v1725_v54 = vsel %vm293_vm0, %v9267_v47, %v16428_v33 }
 0x288   : > { %v1758_v24 = vsel %vm15879_vm2, %v1725_v54, %v16429_v10 }
 0x289   : > { %v1398_v63 = vpop.permute.xlu1 %1397  ;;  %v1791_v50 = vsel %vm1760_vm4, %v1758_v24, %v16430_v62 }
 0x28a   : > { %v1652_v20 = vpop.permute.xlu0 %1651  ;;  %v1887_v61 = vsel %vm15934_vm7, %v1854_v53, %v1398_v63  ;;  %v16431_v63 = vld [vmem:[#allocation106_spill] sm:$0xff] }
 0x28b   : > { %v1952_v19 = vsel %vm15933_vm9, %v1919_v12, %v1652_v20  ;;  %v1824_v39 = vsel %vm15935_vm5, %v1791_v50, %v16431_v63  ;;  %v9268_v20 = vld [vmem:[#allocation2 + $0x170] sm:$0xff] }
 0x28c   : > { %9071 = vmatprep.mubr.msk.f32.mxu0 %vm1970_vm10, %v1952_v19  ;;  %v1857_v38 = vsel %vm1826_vm6, %v1824_v39, %v16432_v28  ;;  %v1726_v42 = vsel %vm293_vm0, %v9268_v20, %v16433_v31  ;;  %vm4005_vm0 = vcmask 588800  }
 0x28d   : > { %v1526_v1 = vpop.permute.xlu1 %1525 }
 0x28e   : > { %v1400_v9 = vpop.permute.xlu0 %1399  ;;  %v1920_v36 = vsel %vm1892_vm8, %v1887_v61, %v1526_v1  ;;  %v1759_v1 = vsel %vm15879_vm2, %v1726_v42, %v16434_v3 }
 0x28f   : > { %v1888_v57 = vsel %vm15934_vm7, %v1855_v45, %v1400_v9  ;;  %v1792_v49 = vsel %vm1760_vm4, %v1759_v1, %v16435_v35  ;;  %v16436_v9 = vld [vmem:[#allocation108_spill] sm:$0xff] }
 0x290   : > { %v1825_v61 = vsel %vm15935_vm5, %v1792_v49, %v16436_v9 }
 0x291   : > { %v1654_v26 = vpop.permute.xlu1 %1653  ;;  %v1858_v6 = vsel %vm1826_vm6, %v1825_v61, %v16437_v15 }
 0x292   : > { %v1953_v5 = vsel %vm15933_vm9, %v1920_v36, %v1654_v26  ;;  %v1528_v7 = vpop.permute.xlu0 %1527 }
 0x293   : > { %9072 = vmatmul.mubr.msk.f32.gmra.mrb[26].mxu0 %vm1970_vm10, %v1953_v5  ;;  %v1921_v22 = vsel %vm1892_vm8, %v1888_v57, %v1528_v7 }
 0x295   : > { %v1402_v46 = vpop.permute.xlu1 %1401 }
 0x296   : > { %v1656_v58 = vpop.permute.xlu0 %1655  ;;  %v1889_v30 = vsel %vm15934_vm7, %v1856_v11, %v1402_v46 }
 0x297   : > { %v1954_v59 = vsel %vm15933_vm9, %v1921_v22, %v1656_v58 }
 0x298   : > { %9074 = vmatprep.mubr.msk.f32.mxu0 %vm1970_vm10, %v1954_v59 }
 0x299   : > { %v1530_v60 = vpop.permute.xlu1 %1529 }
 0x29a   : > { %v1404_v18 = vpop.permute.xlu0 %1403  ;;  %v1922_v0 = vsel %vm1892_vm8, %v1889_v30, %v1530_v60 }
 0x29b   : > { %v1890_v12 = vsel %vm15934_vm7, %v1857_v38, %v1404_v18 }
 0x29d   : > { %v1658_v32 = vpop.permute.xlu1 %1657 }
 0x29e   : > { %v1955_v27 = vsel %vm15933_vm9, %v1922_v0, %v1658_v32  ;;  %v1532_v48 = vpop.permute.xlu0 %1531 }
 0x29f   : > { %9075 = vmatmul.mubr.msk.f32.gmra.mrb[28].mxu0 %vm1970_vm10, %v1955_v27  ;;  %v1923_v19 = vsel %vm1892_vm8, %v1890_v12, %v1532_v48 }
 0x2a1   : > { %v1406_v17 = vpop.permute.xlu1 %1405 }
 0x2a2   : > { %v1660_v44 = vpop.permute.xlu0 %1659  ;;  %v1891_v8 = vsel %vm15934_vm7, %v1858_v6, %v1406_v17 }
 0x2a3   : > { %v1956_v4 = vsel %vm15933_vm9, %v1923_v19, %v1660_v44 }
 0x2a4   : > { %9077 = vmatprep.mubr.msk.f32.mxu0 %vm1970_vm10, %v1956_v4 }
 0x2a5   : > { %v1534_v53 = vpop.permute.xlu1 %1533 }
 0x2a6   : > { %v1924_v36 = vsel %vm1892_vm8, %v1891_v8, %v1534_v53 }
 0x2a9   : > { %v1662_v26 = vpop.permute.xlu1 %1661 }
 0x2aa   : > { %v1957_v21 = vsel %vm15933_vm9, %v1924_v36, %v1662_v26 }
 0x2ab   : > { %9078 = vmatmul.mubr.msk.f32.gmra.mrb[30].mxu0 %vm1970_vm10, %v1957_v21 }
 0x2ce   : > { %v9034_v5 = vpop.f32.mrb[0].mxu0 }
 0x2cf   : > { %v2143_v25 = vadd.f32 %v9034_v5, %v11099_v43  ;;  %v2137_v37 = vpop.f32.mrb[1].mxu0 }
 0x2d0   : > { %v2138_v7 = vadd.f32 %v11099_v43, %v2137_v37 }
 0x2d1   : > { %v2297_v2 = vmax.f32 %v2143_v25, 0.0 }
 0x2d2   : > { %v2296_v56 = vmax.f32 %v2138_v7, 0.0 }
 0x2d3   : > { %2385 = vst.msk [vmem:[#allocation3 + $0x21] sm:$0xff] %vm15879_vm2, %v2297_v2 }
 0x2d4   : > { %2384 = vst.msk [vmem:[#allocation3 + $0x19] sm:$0xff] %vm15879_vm2, %v2296_v56 }
 0x2d6   : > { %v9037_v13 = vpop.f32.mrb[2].mxu0 }
 0x2d7   : > { %v2153_v45 = vadd.f32 %v9037_v13, %v11099_v43  ;;  %v2147_v46 = vpop.f32.mrb[3].mxu0 }
 0x2d8   : > { %v2148_v57 = vadd.f32 %v11099_v43, %v2147_v46 }
 0x2d9   : > { %v2299_v55 = vmax.f32 %v2153_v45, 0.0 }
 0x2da   : > { %v2298_v34 = vmax.f32 %v2148_v57, 0.0  ;;  %v2451_v52 = vld [vmem:[#allocation3 + $0x21] sm:$0xff] }
 0x2db   : > { %2387 = vst.msk [vmem:[#allocation3 + $0x39] sm:$0xff] %vm15879_vm2, %v2299_v55  ;;  %2743 = vrot.lane.b32.xlu1 %v2451_v52, %s9370_s15  ;;  %v2450_v22 = vld [vmem:[#allocation3 + $0x19] sm:$0xff] }
 0x2dc   : > { %2386 = vst.msk [vmem:[#allocation3 + $0x31] sm:$0xff] %vm15879_vm2, %v2298_v34  ;;  %2741 = vrot.lane.b32.xlu0 %v2450_v22, %s9370_s15 }
 0x2e2   : > { %v9040_v58 = vpop.f32.mrb[4].mxu0  ;;  %v11111_v29 = vld [vmem:[#allocation3 + $0x39] sm:$0xff] }
 0x2e3   : > { %v2163_v41 = vadd.f32 %v9040_v58, %v11099_v43  ;;  %2747 = vrot.lane.b32.xlu1 %v11111_v29, %s9370_s15  ;;  %v2157_v59 = vpop.f32.mrb[5].mxu0  ;;  %v11116_v51 = vld [vmem:[#allocation3 + $0x31] sm:$0xff] }
 0x2e4   : > { %v2158_v14 = vadd.f32 %v11099_v43, %v2157_v59  ;;  %2745 = vrot.lane.b32.xlu0 %v11116_v51, %s9370_s15 }
 0x2e5   : > { %v2301_v60 = vmax.f32 %v2163_v41, 0.0 }
 0x2e6   : > { %v2300_v23 = vmax.f32 %v2158_v14, 0.0 }
 0x2e7   : > { %2389 = vst.msk [vmem:[#allocation3 + $0x51] sm:$0xff] %vm15879_vm2, %v2301_v60 }
 0x2e8   : > { %2388 = vst.msk [vmem:[#allocation3 + $0x49] sm:$0xff] %vm15879_vm2, %v2300_v23 }
 0x2ee   : > { %v9043_v16 = vpop.f32.mrb[6].mxu0  ;;  %v11123_v40 = vld [vmem:[#allocation3 + $0x51] sm:$0xff] }
 0x2ef   : > { %v2173_v11 = vadd.f32 %v9043_v16, %v11099_v43  ;;  %2751 = vrot.lane.b32.xlu1 %v11123_v40, %s9370_s15  ;;  %v2167_v18 = vpop.f32.mrb[7].mxu0  ;;  %v11128_v30 = vld [vmem:[#allocation3 + $0x49] sm:$0xff] }
 0x2f0   : > { %v2168_v47 = vadd.f32 %v11099_v43, %v2167_v18  ;;  %2749 = vrot.lane.b32.xlu0 %v11128_v30, %s9370_s15 }
 0x2f1   : > { %v2303_v33 = vmax.f32 %v2173_v11, 0.0 }
 0x2f2   : > { %v2302_v54 = vmax.f32 %v2168_v47, 0.0 }
 0x2f3   : > { %2391 = vst.msk [vmem:[#allocation3 + $0x69] sm:$0xff] %vm15879_vm2, %v2303_v33 }
 0x2f4   : > { %2390 = vst.msk [vmem:[#allocation3 + $0x61] sm:$0xff] %vm15879_vm2, %v2302_v54 }
 0x2fa   : > { %v9046_v0 = vpop.f32.mrb[8].mxu0  ;;  %v11135_v32 = vld [vmem:[#allocation3 + $0x69] sm:$0xff] }
 0x2fb   : > { %v2183_v10 = vadd.f32 %v9046_v0, %v11099_v43  ;;  %2755 = vrot.lane.b32.xlu1 %v11135_v32, %s9370_s15  ;;  %v2177_v24 = vpop.f32.mrb[9].mxu0  ;;  %v11140_v27 = vld [vmem:[#allocation3 + $0x61] sm:$0xff] }
 0x2fc   : > { %v2178_v62 = vadd.f32 %v11099_v43, %v2177_v24  ;;  %2753 = vrot.lane.b32.xlu0 %v11140_v27, %s9370_s15 }
 0x2fd   : > { %v2305_v50 = vmax.f32 %v2183_v10, 0.0 }
 0x2fe   : > { %v2304_v48 = vmax.f32 %v2178_v62, 0.0 }
 0x2ff   : > { %2393 = vst.msk [vmem:[#allocation3 + $0x81] sm:$0xff] %vm15879_vm2, %v2305_v50 }
 0x300   : > { %2392 = vst.msk [vmem:[#allocation3 + $0x79] sm:$0xff] %vm15879_vm2, %v2304_v48 }
 0x306   : > { %v9049_v63 = vpop.f32.mrb[10].mxu0  ;;  %v11147_v39 = vld [vmem:[#allocation3 + $0x81] sm:$0xff] }
 0x307   : > { %v2193_v28 = vadd.f32 %v9049_v63, %v11099_v43  ;;  %2759 = vrot.lane.b32.xlu1 %v11147_v39, %s9370_s15  ;;  %v2187_v38 = vpop.f32.mrb[11].mxu0  ;;  %v11152_v17 = vld [vmem:[#allocation3 + $0x79] sm:$0xff] }
 0x308   : > { %v2188_v12 = vadd.f32 %v11099_v43, %v2187_v38  ;;  %2757 = vrot.lane.b32.xlu0 %v11152_v17, %s9370_s15 }
 0x309   : > { %v2307_v20 = vmax.f32 %v2193_v28, 0.0 }
 0x30a   : > { %v2306_v31 = vmax.f32 %v2188_v12, 0.0 }
 0x30b   : > { %2395 = vst.msk [vmem:[#allocation3 + $0x99] sm:$0xff] %vm15879_vm2, %v2307_v20 }
 0x30c   : > { %2394 = vst.msk [vmem:[#allocation3 + $0x91] sm:$0xff] %vm15879_vm2, %v2306_v31 }
 0x312   : > { %v9052_v42 = vpop.f32.mrb[12].mxu0  ;;  %v11159_v19 = vld [vmem:[#allocation3 + $0x99] sm:$0xff] }
 0x313   : > { %v2203_v44 = vadd.f32 %v9052_v42, %v11099_v43  ;;  %2763 = vrot.lane.b32.xlu1 %v11159_v19, %s9370_s15  ;;  %v2197_v3 = vpop.f32.mrb[13].mxu0  ;;  %v11164_v1 = vld [vmem:[#allocation3 + $0x91] sm:$0xff] }
 0x314   : > { %v2198_v4 = vadd.f32 %v11099_v43, %v2197_v3  ;;  %2761 = vrot.lane.b32.xlu0 %v11164_v1, %s9370_s15 }
 0x315   : > { %v2309_v35 = vmax.f32 %v2203_v44, 0.0 }
 0x316   : > { %v2308_v49 = vmax.f32 %v2198_v4, 0.0 }
 0x317   : > { %2397 = vst.msk [vmem:[#allocation3 + $0xb1] sm:$0xff] %vm15879_vm2, %v2309_v35 }
 0x318   : > { %2396 = vst.msk [vmem:[#allocation3 + $0xa9] sm:$0xff] %vm15879_vm2, %v2308_v49 }
 0x31e   : > { %v9055_v53 = vpop.f32.mrb[14].mxu0  ;;  %v11171_v9 = vld [vmem:[#allocation3 + $0xb1] sm:$0xff] }
 0x31f   : > { %v2213_v61 = vadd.f32 %v9055_v53, %v11099_v43  ;;  %2767 = vrot.lane.b32.xlu1 %v11171_v9, %s9370_s15  ;;  %v2207_v15 = vpop.f32.mrb[15].mxu0  ;;  %v11176_v6 = vld [vmem:[#allocation3 + $0xa9] sm:$0xff] }
 0x320   : > { %v2208_v8 = vadd.f32 %v11099_v43, %v2207_v15  ;;  %2765 = vrot.lane.b32.xlu0 %v11176_v6, %s9370_s15 }
 0x321   : > { %v2311_v36 = vmax.f32 %v2213_v61, 0.0 }
 0x322   : > { %v2310_v26 = vmax.f32 %v2208_v8, 0.0 }
 0x323   : > { %2399 = vst.msk [vmem:[#allocation3 + $0xc9] sm:$0xff] %vm15879_vm2, %v2311_v36 }
 0x324   : > { %2398 = vst.msk [vmem:[#allocation3 + $0xc1] sm:$0xff] %vm15879_vm2, %v2310_v26 }
 0x32a   : > { %v9058_v21 = vpop.f32.mrb[16].mxu0  ;;  %v11183_v5 = vld [vmem:[#allocation3 + $0xc9] sm:$0xff] }
 0x32b   : > { %v2223_v25 = vadd.f32 %v9058_v21, %v11099_v43  ;;  %2771 = vrot.lane.b32.xlu1 %v11183_v5, %s9370_s15  ;;  %v2217_v37 = vpop.f32.mrb[17].mxu0  ;;  %v11188_v7 = vld [vmem:[#allocation3 + $0xc1] sm:$0xff] }
 0x32c   : > { %v2218_v2 = vadd.f32 %v11099_v43, %v2217_v37  ;;  %2769 = vrot.lane.b32.xlu0 %v11188_v7, %s9370_s15 }
 0x32d   : > { %v2313_v56 = vmax.f32 %v2223_v25, 0.0 }
 0x32e   : > { %v2312_v13 = vmax.f32 %v2218_v2, 0.0 }
 0x32f   : > { %2401 = vst.msk [vmem:[#allocation3 + $0xe1] sm:$0xff] %vm15879_vm2, %v2313_v56 }
 0x330   : > { %2400 = vst.msk [vmem:[#allocation3 + $0xd9] sm:$0xff] %vm15879_vm2, %v2312_v13 }
 0x336   : > { %v9061_v45 = vpop.f32.mrb[18].mxu0  ;;  %v2467_v46 = vld [vmem:[#allocation3 + $0xe1] sm:$0xff] }
 0x337   : > { %v2233_v57 = vadd.f32 %v9061_v45, %v11099_v43  ;;  %2775 = vrot.lane.b32.xlu1 %v2467_v46, %s9370_s15  ;;  %v2227_v55 = vpop.f32.mrb[19].mxu0  ;;  %v11197_v34 = vld [vmem:[#allocation3 + $0xd9] sm:$0xff] }
 0x338   : > { %v2228_v52 = vadd.f32 %v11099_v43, %v2227_v55  ;;  %2773 = vrot.lane.b32.xlu0 %v11197_v34, %s9370_s15 }
 0x339   : > { %v2315_v22 = vmax.f32 %v2233_v57, 0.0 }
 0x33a   : > { %v2314_v58 = vmax.f32 %v2228_v52, 0.0 }
 0x33b   : > { %2403 = vst.msk [vmem:[#allocation3 + $0xf9] sm:$0xff] %vm15879_vm2, %v2315_v22  ;;  %v2481_v22 = vld [vmem:[#allocation3 + $0xa] sm:$0xff] }
 0x33c   : > { %2402 = vst.msk [vmem:[#allocation3 + $0xf1] sm:$0xff] %vm15879_vm2, %v2314_v58 }
 0x342   : > { %v9064_v41 = vpop.f32.mrb[20].mxu0  ;;  %v2469_v59 = vld [vmem:[#allocation3 + $0xf9] sm:$0xff] }
 0x343   : > { %v2243_v14 = vadd.f32 %v9064_v41, %v11099_v43  ;;  %2779 = vrot.lane.b32.xlu1 %v2469_v59, %s9370_s15  ;;  %v2237_v60 = vpop.f32.mrb[21].mxu0  ;;  %v2468_v23 = vld [vmem:[#allocation3 + $0xf1] sm:$0xff]  ;;  %v2480_v41 = vld [vmem:[#allocation3 + $0x2] sm:$0xff] }
 0x344   : > { %v2238_v16 = vadd.f32 %v11099_v43, %v2237_v60  ;;  %2777 = vrot.lane.b32.xlu0 %v2468_v23, %s9370_s15  ;;  %v2482_v60 = vld [vmem:[#allocation3 + $0x1a] sm:$0xff]  ;;  %v2484_v23 = vld [vmem:[#allocation3 + $0x32] sm:$0xff] }
 0x345   : > { %v2317_v11 = vmax.f32 %v2243_v14, 0.0  ;;  %v2483_v14 = vld [vmem:[#allocation3 + $0x22] sm:$0xff] }
 0x346   : > { %v2316_v18 = vmax.f32 %v2238_v16, 0.0  ;;  %v11246_v16 = vld [vmem:[#allocation3 + $0x52] sm:$0xff] }
 0x347   : > { %2405 = vst.msk [vmem:[#allocation3 + $0x111] sm:$0xff] %vm15879_vm2, %v2317_v11  ;;  %v11250_v11 = vld [vmem:[#allocation3 + $0x4a] sm:$0xff] }
 0x348   : > { %2404 = vst.msk [vmem:[#allocation3 + $0x109] sm:$0xff] %vm15879_vm2, %v2316_v18  ;;  %v11254_v18 = vld [vmem:[#allocation3 + $0x6a] sm:$0xff] }
 0x34e   : > { %v9067_v47 = vpop.f32.mrb[22].mxu0  ;;  %v2471_v33 = vld [vmem:[#allocation3 + $0x111] sm:$0xff] }
 0x34f   : > { %v2253_v54 = vadd.f32 %v9067_v47, %v11099_v43  ;;  %2783 = vrot.lane.b32.xlu1 %v2471_v33, %s9370_s15  ;;  %v2247_v0 = vpop.f32.mrb[23].mxu0  ;;  %v2470_v10 = vld [vmem:[#allocation3 + $0x109] sm:$0xff] }
 0x350   : > { %v2248_v24 = vadd.f32 %v11099_v43, %v2247_v0  ;;  %2781 = vrot.lane.b32.xlu0 %v2470_v10, %s9370_s15  ;;  %v11258_v47 = vld [vmem:[#allocation3 + $0x62] sm:$0xff]  ;;  %v11270_v0 = vld [vmem:[#allocation3 + $0x9a] sm:$0xff]  ;;  %v11274_v10 = vld [vmem:[#allocation3 + $0x92] sm:$0xff] }
 0x351   : > { %v2319_v62 = vmax.f32 %v2253_v54, 0.0  ;;  %v11262_v33 = vld [vmem:[#allocation3 + $0x82] sm:$0xff]  ;;  %v11266_v54 = vld [vmem:[#allocation3 + $0x7a] sm:$0xff] }
 0x352   : > { %v2318_v50 = vmax.f32 %v2248_v24, 0.0  ;;  %v11278_v24 = vld [vmem:[#allocation3 + $0xb2] sm:$0xff] }
 0x353   : > { %2407 = vst.msk [vmem:[#allocation3 + $0x129] sm:$0xff] %vm15879_vm2, %v2319_v62  ;;  %v11282_v62 = vld [vmem:[#allocation3 + $0xaa] sm:$0xff] }
 0x354   : > { %2406 = vst.msk [vmem:[#allocation3 + $0x121] sm:$0xff] %vm15879_vm2, %v2318_v50  ;;  %v11286_v50 = vld [vmem:[#allocation3 + $0xca] sm:$0xff] }
 0x35a   : > { %v9070_v48 = vpop.f32.mrb[24].mxu0  ;;  %v2473_v63 = vld [vmem:[#allocation3 + $0x129] sm:$0xff] }
 0x35b   : > { %v2263_v28 = vadd.f32 %v9070_v48, %v11099_v43  ;;  %2787 = vrot.lane.b32.xlu1 %v2473_v63, %s9370_s15  ;;  %v2257_v38 = vpop.f32.mrb[25].mxu0  ;;  %v2472_v12 = vld [vmem:[#allocation3 + $0x121] sm:$0xff] }
 0x35c   : > { %v2258_v20 = vadd.f32 %v11099_v43, %v2257_v38  ;;  %2785 = vrot.lane.b32.xlu0 %v2472_v12, %s9370_s15  ;;  %v11290_v48 = vld [vmem:[#allocation3 + $0xc2] sm:$0xff]  ;;  %v11302_v38 = vld [vmem:[#allocation3 + $0xfa] sm:$0xff]  ;;  %v11306_v12 = vld [vmem:[#allocation3 + $0xf2] sm:$0xff] }
 0x35d   : > { %v2321_v31 = vmax.f32 %v2263_v28, 0.0  ;;  %v11294_v63 = vld [vmem:[#allocation3 + $0xe2] sm:$0xff]  ;;  %v11298_v28 = vld [vmem:[#allocation3 + $0xda] sm:$0xff] }
 0x35e   : > { %v2320_v42 = vmax.f32 %v2258_v20, 0.0  ;;  %v11310_v20 = vld [vmem:[#allocation3 + $0x38] sm:$0xff] }
 0x35f   : > { %2409 = vst.msk [vmem:[#allocation3 + $0x141] sm:$0xff] %vm15879_vm2, %v2321_v31  ;;  %v11312_v31 = vld [vmem:[#allocation3 + $0x30] sm:$0xff] }
 0x360   : > { %2408 = vst.msk [vmem:[#allocation3 + $0x139] sm:$0xff] %vm15879_vm2, %v2320_v42  ;;  %v3989_v42 = vld [vmem:[%s15789_s3] sm:$0xff] }
 0x366   : > { %v9073_v44 = vpop.f32.mrb[26].mxu0  ;;  %v2475_v3 = vld [vmem:[#allocation3 + $0x141] sm:$0xff] }
 0x367   : > { %v2273_v4 = vadd.f32 %v9073_v44, %v11099_v43  ;;  %2791 = vrot.lane.b32.xlu1 %v2475_v3, %s9370_s15  ;;  %v2267_v35 = vpop.f32.mrb[27].mxu0  ;;  %v2474_v49 = vld [vmem:[#allocation3 + $0x139] sm:$0xff] }
 0x368   : > { %v2268_v53 = vadd.f32 %v11099_v43, %v2267_v35  ;;  %2789 = vrot.lane.b32.xlu0 %v2474_v49, %s9370_s15  ;;  %v3990_v44 = vld [vmem:[%s15789_s3 + $0x8] sm:$0xff]  ;;  %v11328_v35 = vpop.permute.xlu0 %2737  ;;  %v3991_v49 = vld [vmem:[%s15789_s3 + $0x10] sm:$0xff] }
 0x369   : > { %v2323_v61 = vmax.f32 %v2273_v4, 0.0  ;;  %v9154_v3 = vpack.c.bf16 %v3990_v44, %v3989_v42  ;;  %v11324_v4 = vpop.permute.xlu1 %2739  ;;  %16439 = vst [vmem:[#allocation56_spill] sm:$0xff] %v11328_v35 }
 0x36a   : > { %v2322_v15 = vmax.f32 %v2268_v53, 0.0  ;;  %16438 = vst [vmem:[#allocation10_spill] sm:$0xff] %v11324_v4  ;;  %v3992_v53 = vld [vmem:[%s15789_s3 + $0x18] sm:$0xff]  ;;  %v11577_v4 = vld [vmem:[#allocation3 + $0xb0] sm:$0xff] }
 0x36b   : > { %2411 = vst.msk [vmem:[#allocation3 + $0x159] sm:$0xff] %vm15879_vm2, %v2323_v61  ;;  %9170 = vmatprep.subr.bf16.mxu1 %v9154_v3  ;;  %v9158_v61 = vpack.c.bf16 %v3992_v53, %v3991_v49  ;;  %9155 = vmatprep.subr.bf16.mxu0 %v9154_v3  ;;  %16466 = vst [vmem:[#allocation18_spill] sm:$0xff] %v11577_v4 }
 0x36c   : > { %2410 = vst.msk [vmem:[#allocation3 + $0x151] sm:$0xff] %vm15879_vm2, %v2322_v15  ;;  %9175 = vmatpush3.bf16.msra.mxu1 %v9154_v3  ;;  %9157 = vmatpush3.bf16.msra.mxu0 %v9154_v3 }
 0x36d   : > { %9171 = vmatprep.subr.bf16.mxu1 %v9158_v61  ;;  %v11346_v15 = vpop.permute.xlu1 %2743  ;;  %9159 = vmatprep.subr.bf16.mxu0 %v9158_v61 }
 0x370   : > { %9176 = vmatpush3.bf16.msra.mxu1 %v9158_v61  ;;  %9161 = vmatpush3.bf16.msra.mxu0 %v9158_v61 }
 0x372   : > { %v9076_v8 = vpop.f32.mrb[28].mxu0  ;;  %v2477_v36 = vld [vmem:[#allocation3 + $0x159] sm:$0xff] }
 0x373   : > { %v2283_v26 = vadd.f32 %v9076_v8, %v11099_v43  ;;  %2795 = vrot.lane.b32.xlu1 %v2477_v36, %s9370_s15  ;;  %v2277_v21 = vpop.f32.mrb[29].mxu0  ;;  %v2476_v25 = vld [vmem:[#allocation3 + $0x151] sm:$0xff]  ;;  %v11348_v36 = vpop.permute.xlu0 %2741 }
 0x374   : > { %v2278_v37 = vadd.f32 %v11099_v43, %v2277_v21  ;;  %2793 = vrot.lane.b32.xlu0 %v2476_v25, %s9370_s15  ;;  %v3995_v21 = vld [vmem:[%s15789_s3 + $0x30] sm:$0xff]  ;;  %v3996_v25 = vld [vmem:[%s15789_s3 + $0x38] sm:$0xff] }
 0x375   : > { %v2325_v2 = vmax.f32 %v2283_v26, 0.0  ;;  %v11350_v26 = vld [vmem:[#allocation3 + $0x48] sm:$0xff] }
 0x376   : > { %v2324_v56 = vmax.f32 %v2278_v37, 0.0  ;;  %v11362_v37 = vpop.permute.xlu1 %2747 }
 0x377   : > { %2413 = vst.msk [vmem:[#allocation3 + $0x171] sm:$0xff] %vm15879_vm2, %v2325_v2  ;;  %v9166_v2 = vpack.c.bf16 %v3996_v25, %v3995_v21 }
 0x378   : > { %2412 = vst.msk [vmem:[#allocation3 + $0x169] sm:$0xff] %vm15879_vm2, %v2324_v56  ;;  %v11364_v56 = vpop.permute.xlu0 %2745 }
 0x37e   : > { %v9079_v13 = vpop.f32.mrb[30].mxu0  ;;  %v2479_v45 = vld [vmem:[#allocation3 + $0x171] sm:$0xff] }
 0x37f   : > { %v2293_v46 = vadd.f32 %v9079_v13, %v11099_v43  ;;  %2799 = vrot.lane.b32.xlu1 %v2479_v45, %s9370_s15  ;;  %v2287_v57 = vpop.f32.mrb[31].mxu0  ;;  %v2478_v55 = vld [vmem:[#allocation3 + $0x169] sm:$0xff]  ;;  %v11372_v45 = vpop.permute.xlu1 %2751 }
 0x380   : > { %v2288_v52 = vadd.f32 %v11099_v43, %v2287_v57  ;;  %2797 = vrot.lane.b32.xlu0 %v2478_v55, %s9370_s15  ;;  %v2485_v43 = vld [vmem:[#allocation3 + $0x3a] sm:$0xff]  ;;  %v11366_v13 = vld [vmem:[#allocation3 + $0x50] sm:$0xff] }
 0x381   : > { %v2327_v58 = vmax.f32 %v2293_v46, 0.0  ;;  %v11374_v46 = vpop.permute.xlu0 %2749  ;;  %v3997_v57 = vld [vmem:[%s15789_s3 + $0x40] sm:$0xff] }
 0x382   : > { %v2326_v59 = vmax.f32 %v2288_v52, 0.0 }
 0x383   : > { %2415 = vst.msk [vmem:[#allocation3 + $0x189] sm:$0xff] %vm15879_vm2, %v2327_v58  ;;  %2867 = vrot.lane.b32.xlu1 %v2481_v22, %s9372_s17  ;;  %v11383_v55 = vpop.permute.xlu1 %2755 }
 0x384   : > { %2414 = vst.msk [vmem:[#allocation3 + $0x181] sm:$0xff] %vm15879_vm2, %v2326_v59  ;;  %2865 = vrot.lane.b32.xlu0 %v2480_v41, %s9372_s17 }
 0x385   : > { %v11385_v52 = vpop.permute.xlu0 %2753 }
 0x387   : > { %2871 = vrot.lane.b32.xlu1 %v2483_v14, %s9372_s17  ;;  %v11391_v22 = vpop.permute.xlu1 %2759  ;;  %v11409_v14 = vld [vmem:[#allocation3 + $0x60] sm:$0xff] }
 0x388   : > { %2869 = vrot.lane.b32.xlu0 %v2482_v60, %s9372_s17 }
 0x38b   : > { %2875 = vrot.lane.b32.xlu1 %v2485_v43, %s9372_s17  ;;  %v11399_v58 = vpop.permute.xlu1 %2763 }
 0x38c   : > { %2873 = vrot.lane.b32.xlu0 %v2484_v23, %s9372_s17 }
 0x38f   : > { %2879 = vrot.lane.b32.xlu1 %v11246_v16, %s9372_s17 }
 0x390   : > { %2877 = vrot.lane.b32.xlu0 %v11250_v11, %s9372_s17 }
 0x391   : > { %v11407_v59 = vpop.permute.xlu1 %2767 }
 0x392   : > { %16440 = vst [vmem:[#allocation13_spill] sm:$0xff] %v11407_v59 }
 0x393   : > { %2883 = vrot.lane.b32.xlu1 %v11254_v18, %s9372_s17 }
 0x394   : > { %2881 = vrot.lane.b32.xlu0 %v11258_v47, %s9372_s17 }
 0x397   : > { %2887 = vrot.lane.b32.xlu1 %v11262_v33, %s9372_s17 }
 0x398   : > { %2885 = vrot.lane.b32.xlu0 %v11266_v54, %s9372_s17 }
 0x39b   : > { %2891 = vrot.lane.b32.xlu1 %v11270_v0, %s9372_s17 }
 0x39c   : > { %2889 = vrot.lane.b32.xlu0 %v11274_v10, %s9372_s17 }
 0x39f   : > { %2895 = vrot.lane.b32.xlu1 %v11278_v24, %s9372_s17 }
 0x3a0   : > { %2893 = vrot.lane.b32.xlu0 %v11282_v62, %s9372_s17 }
 0x3a3   : > { %2899 = vrot.lane.b32.xlu1 %v11286_v50, %s9372_s17 }
 0x3a4   : > { %2897 = vrot.lane.b32.xlu0 %v11290_v48, %s9372_s17 }
 0x3a7   : > { %2903 = vrot.lane.b32.xlu1 %v11294_v63, %s9372_s17 }
 0x3a8   : > { %2901 = vrot.lane.b32.xlu0 %v11298_v28, %s9372_s17 }
 0x3ab   : > { %2907 = vrot.lane.b32.xlu1 %v11302_v38, %s9372_s17 }
 0x3ac   : > { %2905 = vrot.lane.b32.xlu0 %v11306_v12, %s9372_s17 }
 0x3af   : > { %2999 = vrot.lane.b32.xlu1 %v11310_v20, %s9374_s12 }
 0x3b0   : > { %2997 = vrot.lane.b32.xlu0 %v11312_v31, %s9374_s12 }
 0x3b3   : > { %3127 = vrot.lane.b32.xlu1 %v11111_v29, %s9376_s18  ;;  %v3993_v29 = vld [vmem:[%s15789_s3 + $0x20] sm:$0xff] }
 0x3b4   : > { %3125 = vrot.lane.b32.xlu0 %v11116_v51, %s9376_s18  ;;  %v3994_v51 = vld [vmem:[%s15789_s3 + $0x28] sm:$0xff] }
 0x3b5   : > { %v9162_v8 = vpack.c.bf16 %v3994_v51, %v3993_v29  ;;  %v11461_v29 = vld [vmem:[#allocation3 + $0x78] sm:$0xff] }
 0x3b7   : > { %3255 = vrot.lane.b32.xlu1 %v2485_v43, %s9377_s16  ;;  %9172 = vmatprep.subr.bf16.mxu1 %v9162_v8 }
 0x3b8   : > { %3253 = vrot.lane.b32.xlu0 %v2484_v23, %s9377_s16  ;;  %9177 = vmatpush3.bf16.msra.mxu1 %v9162_v8  ;;  %v11421_v23 = vld [vmem:[#allocation3 + $0x68] sm:$0xff] }
 0x3b9   : > { %9163 = vmatprep.subr.bf16.mxu0 %v9162_v8  ;;  %9173 = vmatprep.subr.bf16.mxu1 %v9166_v2 }
 0x3ba   : > { %9165 = vmatpush3.bf16.msra.mxu0 %v9162_v8  ;;  %v11473_v8 = vld [vmem:[#allocation3 + $0x80] sm:$0xff] }
 0x3bb   : > { %3001 = vrot.lane.b32.xlu1 %v11350_v26, %s9374_s12  ;;  %9167 = vmatprep.subr.bf16.mxu0 %v9166_v2 }
 0x3bc   : > { %3381 = vrot.lane.b32.xlu0 %v11350_v26, %s9378_s29  ;;  %9178 = vmatpush3.bf16.msra.mxu1 %v9166_v2 }
 0x3bd   : > { %9174 = vmatprep.subr.mxu1 %v3997_v57 }
 0x3be   : > { %9169 = vmatpush3.bf16.msra.mxu0 %v9166_v2 }
 0x3bf   : > { %3509 = vrot.lane.b32.xlu1 %v11128_v30, %s9379_s14  ;;  %9096 = vmatprep.subr.mxu0 %v3997_v57 }
 0x3c0   : > { %3383 = vrot.lane.b32.xlu0 %v11366_v13, %s9378_s29  ;;  %9179 = vmatpush3.msra.mxu1 %v3997_v57 }
 0x3c2   : > { %9097 = vmatpush3.msra.mxu0 %v3997_v57 }
 0x3c3   : > { %3129 = vrot.lane.b32.xlu1 %v11128_v30, %s9376_s18  ;;  %v11393_v30 = vpop.permute.xlu0 %2757 }
 0x3c4   : > { %3003 = vrot.lane.b32.xlu0 %v11366_v13, %s9374_s12 }
 0x3c7   : > { %3637 = vrot.lane.b32.xlu1 %v11250_v11, %s9380_s26  ;;  %v11401_v41 = vpop.permute.xlu0 %2761 }
 0x3c8   : > { %3511 = vrot.lane.b32.xlu0 %v11123_v40, %s9379_s14 }
 0x3cb   : > { %3257 = vrot.lane.b32.xlu1 %v11250_v11, %s9377_s16  ;;  %v11411_v60 = vpop.permute.xlu0 %2765 }
 0x3cc   : > { %3131 = vrot.lane.b32.xlu0 %v11123_v40, %s9376_s18  ;;  %v11417_v40 = vpop.permute.xlu1 %2771 }
 0x3cd   : > { %16441 = vst [vmem:[#allocation15_spill] sm:$0xff] %v11417_v40  ;;  %v2418_v40 = vld [vmem:[#allocation3 + $0x18] sm:$0xff] }
 0x3cf   : > { %3259 = vrot.lane.b32.xlu1 %v11246_v16, %s9377_s16  ;;  %v11419_v43 = vpop.permute.xlu0 %2769 }
 0x3d0   : > { %3639 = vrot.lane.b32.xlu0 %v11246_v16, %s9380_s26  ;;  %16442 = vst [vmem:[#allocation21_spill] sm:$0xff] %v11419_v43  ;;  %v11427_v16 = vpop.permute.xlu1 %2775 }
 0x3d1   : > { %16443 = vst [vmem:[#allocation58_spill] sm:$0xff] %v11427_v16 }
 0x3d3   : > { %3005 = vrot.lane.b32.xlu1 %v11409_v14, %s9374_s12  ;;  %v11429_v11 = vpop.permute.xlu0 %2773 }
 0x3d4   : > { %3385 = vrot.lane.b32.xlu0 %v11409_v14, %s9378_s29  ;;  %16444 = vst [vmem:[#allocation19_spill] sm:$0xff] %v11429_v11  ;;  %v11435_v42 = vpop.permute.xlu1 %2779 }
 0x3d5   : > { %16445 = vst [vmem:[#allocation27_spill] sm:$0xff] %v11435_v42  ;;  %v11565_v42 = vld [vmem:[#allocation3 + $0xa8] sm:$0xff] }
 0x3d7   : > { %3513 = vrot.lane.b32.xlu1 %v11140_v27, %s9379_s14  ;;  %v11437_v44 = vpop.permute.xlu0 %2777 }
 0x3d8   : > { %3387 = vrot.lane.b32.xlu0 %v11421_v23, %s9378_s29  ;;  %16446 = vst [vmem:[#allocation17_spill] sm:$0xff] %v11437_v44  ;;  %v11443_v3 = vpop.permute.xlu1 %2783 }
 0x3d9   : > { %16447 = vst [vmem:[#allocation23_spill] sm:$0xff] %v11443_v3 }
 0x3db   : > { %3133 = vrot.lane.b32.xlu1 %v11140_v27, %s9376_s18  ;;  %v11445_v49 = vpop.permute.xlu0 %2781 }
 0x3dc   : > { %3007 = vrot.lane.b32.xlu0 %v11421_v23, %s9374_s12  ;;  %16448 = vst [vmem:[#allocation20_spill] sm:$0xff] %v11445_v49  ;;  %v11451_v27 = vpop.permute.xlu1 %2787 }
 0x3dd   : > { %16449 = vst [vmem:[#allocation26_spill] sm:$0xff] %v11451_v27 }
 0x3df   : > { %3641 = vrot.lane.b32.xlu1 %v11258_v47, %s9380_s26  ;;  %v11453_v53 = vpop.permute.xlu0 %2785 }
 0x3e0   : > { %3515 = vrot.lane.b32.xlu0 %v11135_v32, %s9379_s14  ;;  %16450 = vst [vmem:[#allocation24_spill] sm:$0xff] %v11453_v53  ;;  %v11459_v61 = vpop.permute.xlu1 %2791 }
 0x3e1   : > { %16451 = vst [vmem:[#allocation30_spill] sm:$0xff] %v11459_v61 }
 0x3e3   : > { %3261 = vrot.lane.b32.xlu1 %v11258_v47, %s9377_s16  ;;  %v11463_v51 = vpop.permute.xlu0 %2789 }
 0x3e4   : > { %3135 = vrot.lane.b32.xlu0 %v11135_v32, %s9376_s18  ;;  %16452 = vst [vmem:[#allocation28_spill] sm:$0xff] %v11463_v51 }
 0x3e5   : > { %v11469_v32 = vpop.permute.xlu1 %2795 }
 0x3e6   : > { %16453 = vst [vmem:[#allocation34_spill] sm:$0xff] %v11469_v32  ;;  %v11525_v32 = vld [vmem:[#allocation3 + $0x98] sm:$0xff] }
 0x3e7   : > { %3263 = vrot.lane.b32.xlu1 %v11254_v18, %s9377_s16  ;;  %v11471_v47 = vpop.permute.xlu0 %2793 }
 0x3e8   : > { %3643 = vrot.lane.b32.xlu0 %v11254_v18, %s9380_s26  ;;  %16454 = vst [vmem:[#allocation60_spill] sm:$0xff] %v11471_v47 }
 0x3eb   : > { %3009 = vrot.lane.b32.xlu1 %v11461_v29, %s9374_s12 }
 0x3ec   : > { %3389 = vrot.lane.b32.xlu0 %v11461_v29, %s9378_s29 }
 0x3ef   : > { %3517 = vrot.lane.b32.xlu1 %v11152_v17, %s9379_s14 }
 0x3f0   : > { %3391 = vrot.lane.b32.xlu0 %v11473_v8, %s9378_s29 }
 0x3f1   : > { %v11479_v18 = vpop.permute.xlu1 %2799 }
 0x3f2   : > { %16455 = vst [vmem:[#allocation81_spill] sm:$0xff] %v11479_v18  ;;  %v11481_v21 = vpop.permute.xlu0 %2797 }
 0x3f3   : > { %16456 = vst [vmem:[#allocation14_spill] sm:$0xff] %v11481_v21  ;;  %3137 = vrot.lane.b32.xlu1 %v11152_v17, %s9376_s18  ;;  %v11513_v21 = vld [vmem:[#allocation3 + $0x90] sm:$0xff] }
 0x3f4   : > { %3011 = vrot.lane.b32.xlu0 %v11473_v8, %s9374_s12 }
 0x3f5   : > { %v11487_v25 = vpop.permute.xlu1 %2867 }
 0x3f6   : > { %16457 = vst [vmem:[#allocation110_spill] sm:$0xff] %v11487_v25  ;;  %v11489_v2 = vpop.permute.xlu0 %2865 }
 0x3f7   : > { %16458 = vst [vmem:[#allocation32_spill] sm:$0xff] %v11489_v2  ;;  %3645 = vrot.lane.b32.xlu1 %v11266_v54, %s9380_s26 }
 0x3f8   : > { %3519 = vrot.lane.b32.xlu0 %v11147_v39, %s9379_s14 }
 0x3f9   : > { %v11495_v57 = vpop.permute.xlu1 %2871 }
 0x3fa   : > { %v11497_v18 = vpop.permute.xlu0 %2869 }
 0x3fb   : > { %3265 = vrot.lane.b32.xlu1 %v11266_v54, %s9377_s16 }
 0x3fc   : > { %3139 = vrot.lane.b32.xlu0 %v11147_v39, %s9376_s18 }
 0x3fd   : > { %v11503_v17 = vpop.permute.xlu1 %2875 }
 0x3fe   : > { %v11505_v25 = vpop.permute.xlu0 %2873 }
 0x3ff   : > { %3267 = vrot.lane.b32.xlu1 %v11262_v33, %s9377_s16 }
 0x400   : > { %3647 = vrot.lane.b32.xlu0 %v11262_v33, %s9380_s26 }
 0x401   : > { %v11511_v2 = vpop.permute.xlu1 %2879 }
 0x402   : > { %v11515_v47 = vpop.permute.xlu0 %2877 }
 0x403   : > { %3013 = vrot.lane.b32.xlu1 %v11513_v21, %s9374_s12 }
 0x404   : > { %3393 = vrot.lane.b32.xlu0 %v11513_v21, %s9378_s29 }
 0x405   : > { %v11521_v39 = vpop.permute.xlu1 %2883 }
 0x406   : > { %v11523_v54 = vpop.permute.xlu0 %2881 }
 0x407   : > { %3521 = vrot.lane.b32.xlu1 %v11164_v1, %s9379_s14 }
 0x408   : > { %3395 = vrot.lane.b32.xlu0 %v11525_v32, %s9378_s29 }
 0x409   : > { %v11531_v33 = vpop.permute.xlu1 %2887 }
 0x40a   : > { %v11533_v51 = vpop.permute.xlu0 %2885 }
 0x40b   : > { %3141 = vrot.lane.b32.xlu1 %v11164_v1, %s9376_s18 }
 0x40c   : > { %3015 = vrot.lane.b32.xlu0 %v11525_v32, %s9374_s12 }
 0x40d   : > { %v11539_v61 = vpop.permute.xlu1 %2891 }
 0x40e   : > { %v11541_v53 = vpop.permute.xlu0 %2889 }
 0x40f   : > { %3649 = vrot.lane.b32.xlu1 %v11274_v10, %s9380_s26 }
 0x410   : > { %3523 = vrot.lane.b32.xlu0 %v11159_v19, %s9379_s14 }
 0x411   : > { %v11547_v27 = vpop.permute.xlu1 %2895 }
 0x412   : > { %16459 = vst [vmem:[#allocation59_spill] sm:$0xff] %v11547_v27  ;;  %v11549_v49 = vpop.permute.xlu0 %2893 }
 0x413   : > { %3269 = vrot.lane.b32.xlu1 %v11274_v10, %s9377_s16 }
 0x414   : > { %3143 = vrot.lane.b32.xlu0 %v11159_v19, %s9376_s18 }
 0x415   : > { %v11555_v1 = vpop.permute.xlu1 %2899 }
 0x416   : > { %16460 = vst [vmem:[#allocation80_spill] sm:$0xff] %v11555_v1  ;;  %v11557_v3 = vpop.permute.xlu0 %2897 }
 0x417   : > { %16461 = vst [vmem:[#allocation12_spill] sm:$0xff] %v11557_v3  ;;  %3271 = vrot.lane.b32.xlu1 %v11270_v0, %s9377_s16  ;;  %v11601_v3 = vld [vmem:[#allocation3 + $0xc0] sm:$0xff] }
 0x418   : > { %3651 = vrot.lane.b32.xlu0 %v11270_v0, %s9380_s26 }
 0x419   : > { %v11563_v44 = vpop.permute.xlu1 %2903 }
 0x41a   : > { %16462 = vst [vmem:[#allocation109_spill] sm:$0xff] %v11563_v44  ;;  %v11567_v35 = vpop.permute.xlu0 %2901 }
 0x41b   : > { %16463 = vst [vmem:[#allocation37_spill] sm:$0xff] %v11567_v35  ;;  %3017 = vrot.lane.b32.xlu1 %v11565_v42, %s9374_s12 }
 0x41c   : > { %3397 = vrot.lane.b32.xlu0 %v11565_v42, %s9378_s29 }
 0x41d   : > { %v11573_v19 = vpop.permute.xlu1 %2907 }
 0x41e   : > { %16464 = vst [vmem:[#allocation62_spill] sm:$0xff] %v11573_v19  ;;  %v11575_v10 = vpop.permute.xlu0 %2905 }
 0x41f   : > { %16465 = vst [vmem:[#allocation83_spill] sm:$0xff] %v11575_v10  ;;  %3525 = vrot.lane.b32.xlu1 %v11176_v6, %s9379_s14 }
 0x420   : > { %3399 = vrot.lane.b32.xlu0 %v11577_v4, %s9378_s29 }
 0x421   : > { %v3000_v0 = vpop.permute.xlu1 %2999 }
 0x422   : > { %v2998_v44 = vpop.permute.xlu0 %2997 }
 0x423   : > { %3145 = vrot.lane.b32.xlu1 %v11176_v6, %s9376_s18 }
 0x424   : > { %3019 = vrot.lane.b32.xlu0 %v11577_v4, %s9374_s12 }
 0x425   : > { %v3128_v16 = vpop.permute.xlu1 %3127 }
 0x426   : > { %v3126_v19 = vpop.permute.xlu0 %3125 }
 0x427   : > { %3653 = vrot.lane.b32.xlu1 %v11282_v62, %s9380_s26 }
 0x428   : > { %3527 = vrot.lane.b32.xlu0 %v11171_v9, %s9379_s14 }
 0x429   : > { %v3256_v10 = vpop.permute.xlu1 %3255 }
 0x42a   : > { %v3254_v35 = vpop.permute.xlu0 %3253 }
 0x42b   : > { %3273 = vrot.lane.b32.xlu1 %v11282_v62, %s9377_s16  ;;  %v3731_v62 = vsel %vm15879_vm2, %v2418_v40, %v11348_v36  ;;  %v11615_v36 = vld [vmem:[#allocation3 + $0xc8] sm:$0xff] }
 0x42c   : > { %3147 = vrot.lane.b32.xlu0 %v11171_v9, %s9376_s18  ;;  %v3763_v9 = vsel %vm15935_vm5, %v3731_v62, %v11497_v18 }
 0x42d   : > { %v11595_v6 = vpop.permute.xlu1 %3001 }
 0x42e   : > { %v3382_v11 = vpop.permute.xlu0 %3381 }
 0x42f   : > { %3275 = vrot.lane.b32.xlu1 %v11278_v24, %s9377_s16 }
 0x430   : > { %3655 = vrot.lane.b32.xlu0 %v11278_v24, %s9380_s26  ;;  %v3795_v24 = vsel %vm15934_vm7, %v3763_v9, %v2998_v44 }
 0x431   : > { %v3510_v1 = vpop.permute.xlu1 %3509  ;;  %v3827_v4 = vsel %vm15933_vm9, %v3795_v24, %v3126_v19  ;;  %v2419_v24 = vld [vmem:[#allocation3 + $0x20] sm:$0xff] }
 0x432   : > { %v3384_v43 = vpop.permute.xlu0 %3383  ;;  %v3860_v40 = vsel %vm15975_vm12, %v3827_v4, %v3254_v35  ;;  %v3732_v4 = vsel %vm15879_vm2, %v2419_v24, %v11346_v15 }
 0x433   : > { %3021 = vrot.lane.b32.xlu1 %v11601_v3, %s9374_s12  ;;  %v3893_v18 = vsel %vm15971_vm13, %v3860_v40, %v3382_v11  ;;  %v3764_v35 = vsel %vm15935_vm5, %v3732_v4, %v11495_v57 }
 0x434   : > { %3401 = vrot.lane.b32.xlu0 %v11601_v3, %s9378_s29  ;;  %v3926_v44 = vsel %vm16026_vm14, %v3893_v18, %v3510_v1  ;;  %v3796_v1 = vsel %vm15934_vm7, %v3764_v35, %v3000_v0  ;;  %v11653_v0 = vld [vmem:[#allocation3 + $0xd8] sm:$0xff] }
 0x435   : > { %v3130_v27 = vpop.permute.xlu1 %3129  ;;  %v3828_v18 = vsel %vm15933_vm9, %v3796_v1, %v3128_v16  ;;  %v11669_v1 = vld [vmem:[#allocation3 + $0xe0] sm:$0xff] }
 0x436   : > { %v11613_v59 = vpop.permute.xlu0 %3003 }
 0x437   : > { %3529 = vrot.lane.b32.xlu1 %v11188_v7, %s9379_s14 }
 0x438   : > { %3403 = vrot.lane.b32.xlu0 %v11615_v36, %s9378_s29 }
 0x439   : > { %v3638_v19 = vpop.permute.xlu1 %3637 }
 0x43a   : > { %v3512_v62 = vpop.permute.xlu0 %3511  ;;  %v3959_v9 = vsel %vm16020_vm15, %v3926_v44, %v3638_v19 }
 0x43b   : > { %3149 = vrot.lane.b32.xlu1 %v11188_v7, %s9376_s18  ;;  %9101 = vmatprep.mubr.msk.f32.mxu1 %vm4005_vm0, %v3959_v9  ;;  %v3861_v7 = vsel %vm15975_vm12, %v3828_v18, %v3256_v10 }
 0x43c   : > { %3023 = vrot.lane.b32.xlu0 %v11615_v36, %s9374_s12  ;;  %v3894_v15 = vsel %vm15971_vm13, %v3861_v7, %v3384_v43 }
 0x43d   : > { %v3258_v11 = vpop.permute.xlu1 %3257  ;;  %v3927_v19 = vsel %vm16026_vm14, %v3894_v15, %v3512_v62 }
 0x43e   : > { %v3132_v40 = vpop.permute.xlu0 %3131 }
 0x43f   : > { %3657 = vrot.lane.b32.xlu1 %v11290_v48, %s9380_s26 }
 0x440   : > { %3531 = vrot.lane.b32.xlu0 %v11183_v5, %s9379_s14 }
 0x441   : > { %v3260_v44 = vpop.permute.xlu1 %3259 }
 0x442   : > { %v3640_v57 = vpop.permute.xlu0 %3639 }
 0x443   : > { %v3960_v9 = vsel %vm16020_vm15, %v3927_v19, %v3640_v57  ;;  %3277 = vrot.lane.b32.xlu1 %v11290_v48, %s9377_s16  ;;  %v3733_v48 = vsel %vm15879_vm2, %v11312_v31, %v11364_v56 }
 0x444   : > { %3151 = vrot.lane.b32.xlu0 %v11183_v5, %s9376_s18  ;;  %9102 = vmatmul.mubr.msk.f32.vlgmr.msra.gmra.mrb[0].mxu1 %vm4005_vm0, %v3960_v9  ;;  %v3765_v5 = vsel %vm15935_vm5, %v3733_v48, %v11505_v25 }
 0x445   : > { %v3006_v16 = vpop.permute.xlu1 %3005 }
 0x446   : > { %v3386_v10 = vpop.permute.xlu0 %3385 }
 0x447   : > { %3279 = vrot.lane.b32.xlu1 %v11286_v50, %s9377_s16 }
 0x448   : > { %3659 = vrot.lane.b32.xlu0 %v11286_v50, %s9380_s26  ;;  %v3797_v50 = vsel %vm15934_vm7, %v3765_v5, %v11595_v6 }
 0x449   : > { %v3514_v43 = vpop.permute.xlu1 %3513  ;;  %v3829_v4 = vsel %vm15933_vm9, %v3797_v50, %v3130_v27 }
 0x44a   : > { %v3388_v62 = vpop.permute.xlu0 %3387  ;;  %v3862_v31 = vsel %vm15975_vm12, %v3829_v4, %v3258_v11  ;;  %v3734_v11 = vsel %vm15879_vm2, %v11310_v20, %v11362_v37 }
 0x44b   : > { %3025 = vrot.lane.b32.xlu1 %v11653_v0, %s9374_s12  ;;  %v3895_v56 = vsel %vm15971_vm13, %v3862_v31, %v3386_v10  ;;  %v3766_v7 = vsel %vm15935_vm5, %v3734_v11, %v11503_v17 }
 0x44c   : > { %3405 = vrot.lane.b32.xlu0 %v11653_v0, %s9378_s29  ;;  %v3928_v25 = vsel %vm16026_vm14, %v3895_v56, %v3514_v43  ;;  %v3798_v19 = vsel %vm15934_vm7, %v3766_v7, %v11613_v59 }
 0x44d   : > { %v3134_v24 = vpop.permute.xlu1 %3133  ;;  %v3830_v9 = vsel %vm15933_vm9, %v3798_v19, %v3132_v40 }
 0x44e   : > { %v11667_v35 = vpop.permute.xlu0 %3007  ;;  %v3863_v10 = vsel %vm15975_vm12, %v3830_v9, %v3260_v44 }
 0x44f   : > { %3533 = vrot.lane.b32.xlu1 %v11197_v34, %s9379_s14  ;;  %v3896_v20 = vsel %vm15971_vm13, %v3863_v10, %v3388_v62  ;;  %v11707_v62 = vld [vmem:[#allocation3 + $0xf0] sm:$0xff] }
 0x450   : > { %3407 = vrot.lane.b32.xlu0 %v11669_v1, %s9378_s29 }
 0x451   : > { %v3642_v6 = vpop.permute.xlu1 %3641 }
 0x452   : > { %v3961_v18 = vsel %vm16020_vm15, %v3928_v25, %v3642_v6  ;;  %v3516_v27 = vpop.permute.xlu0 %3515  ;;  %v2657_v25 = vld [vmem:[#allocation3 + $0xf1] sm:$0xff] }
 0x453   : > { %3153 = vrot.lane.b32.xlu1 %v11197_v34, %s9376_s18  ;;  %9104 = vmatprep.mubr.msk.f32.mxu1 %vm4005_vm0, %v3961_v18  ;;  %v2656_v34 = vld [vmem:[#allocation3 + $0xe1] sm:$0xff]  ;;  %v3929_v17 = vsel %vm16026_vm14, %v3896_v20, %v3516_v27  ;;  %v11722_v6 = vld [vmem:[#allocation3 + $0xf8] sm:$0xff]  ;;  %v3736_v27 = vsel %vm15879_vm2, %v11366_v13, %v11372_v45 }
 0x454   : > { %3027 = vrot.lane.b32.xlu0 %v11669_v1, %s9374_s12  ;;  %v3768_v11 = vsel %vm15935_vm5, %v3736_v27, %v11511_v2  ;;  %v2660_v27 = vld [vmem:[#allocation3 + $0x111] sm:$0xff] }
 0x455   : > { %v3262_v15 = vpop.permute.xlu1 %3261 }
 0x456   : > { %v3136_v57 = vpop.permute.xlu0 %3135 }
 0x457   : > { %3661 = vrot.lane.b32.xlu1 %v11298_v28, %s9380_s26 }
 0x458   : > { %3535 = vrot.lane.b32.xlu0 %v2656_v34, %s9379_s14 }
 0x459   : > { %v3264_v37 = vpop.permute.xlu1 %3263 }
 0x45a   : > { %v3644_v43 = vpop.permute.xlu0 %3643 }
 0x45b   : > { %v3962_v48 = vsel %vm16020_vm15, %v3929_v17, %v3644_v43  ;;  %3281 = vrot.lane.b32.xlu1 %v11298_v28, %s9377_s16  ;;  %v3735_v28 = vsel %vm15879_vm2, %v11350_v26, %v11374_v46  ;;  %v11758_v43 = vld [vmem:[#allocation3 + $0x108] sm:$0xff] }
 0x45c   : > { %3155 = vrot.lane.b32.xlu0 %v2656_v34, %s9376_s18  ;;  %9105 = vmatmul.mubr.msk.f32.gmra.mrb[2].mxu1 %vm4005_vm0, %v3962_v48  ;;  %v3767_v50 = vsel %vm15935_vm5, %v3735_v28, %v11515_v47  ;;  %v2658_v34 = vld [vmem:[#allocation3 + $0xf9] sm:$0xff] }
 0x45d   : > { %v3010_v59 = vpop.permute.xlu1 %3009  ;;  %v3799_v4 = vsel %vm15934_vm7, %v3767_v50, %v3006_v16  ;;  %v2659_v50 = vld [vmem:[#allocation3 + $0x109] sm:$0xff] }
 0x45e   : > { %v3390_v40 = vpop.permute.xlu0 %3389  ;;  %v3831_v31 = vsel %vm15933_vm9, %v3799_v4, %v3134_v24  ;;  %v11773_v4 = vld [vmem:[#allocation3 + $0x110] sm:$0xff] }
 0x45f   : > { %3283 = vrot.lane.b32.xlu1 %v11294_v63, %s9377_s16  ;;  %v3864_v26 = vsel %vm15975_vm12, %v3831_v31, %v3262_v15  ;;  %v3800_v15 = vsel %vm15934_vm7, %v3768_v11, %v11667_v35 }
 0x460   : > { %3663 = vrot.lane.b32.xlu0 %v11294_v63, %s9380_s26  ;;  %v3897_v46 = vsel %vm15971_vm13, %v3864_v26, %v3390_v40  ;;  %v3832_v9 = vsel %vm15933_vm9, %v3800_v15, %v3136_v57 }
 0x461   : > { %v3518_v44 = vpop.permute.xlu1 %3517  ;;  %v3865_v10 = vsel %vm15975_vm12, %v3832_v9, %v3264_v37  ;;  %v2692_v9 = vld [vmem:[#allocation3 + $0x112] sm:$0xff] }
 0x462   : > { %v3392_v5 = vpop.permute.xlu0 %3391  ;;  %v3930_v47 = vsel %vm16026_vm14, %v3897_v46, %v3518_v44 }
 0x463   : > { %3029 = vrot.lane.b32.xlu1 %v11707_v62, %s9374_s12  ;;  %v3898_v13 = vsel %vm15971_vm13, %v3865_v10, %v3392_v5  ;;  %v11805_v10 = vld [vmem:[#allocation3 + $0x120] sm:$0xff] }
 0x464   : > { %3409 = vrot.lane.b32.xlu0 %v11707_v62, %s9378_s29 }
 0x465   : > { %v3138_v63 = vpop.permute.xlu1 %3137 }
 0x466   : > { %v11720_v56 = vpop.permute.xlu0 %3011 }
 0x467   : > { %3537 = vrot.lane.b32.xlu1 %v2657_v25, %s9379_s14 }
 0x468   : > { %3411 = vrot.lane.b32.xlu0 %v11722_v6, %s9378_s29 }
 0x469   : > { %v3646_v16 = vpop.permute.xlu1 %3645 }
 0x46a   : > { %v3963_v18 = vsel %vm16020_vm15, %v3930_v47, %v3646_v16  ;;  %v3520_v24 = vpop.permute.xlu0 %3519 }
 0x46b   : > { %3157 = vrot.lane.b32.xlu1 %v2657_v25, %s9376_s18  ;;  %9107 = vmatprep.mubr.msk.f32.mxu1 %vm4005_vm0, %v3963_v18  ;;  %v3931_v2 = vsel %vm16026_vm14, %v3898_v13, %v3520_v24  ;;  %v3738_v25 = vsel %vm15879_vm2, %v11421_v23, %v11383_v55  ;;  %v2691_v18 = vld [vmem:[#allocation3 + $0x10a] sm:$0xff] }
 0x46c   : > { %3031 = vrot.lane.b32.xlu0 %v11722_v6, %s9374_s12  ;;  %v3770_v26 = vsel %vm15935_vm5, %v3738_v25, %v11521_v39 }
 0x46d   : > { %v3266_v7 = vpop.permute.xlu1 %3265  ;;  %v3802_v47 = vsel %vm15934_vm7, %v3770_v26, %v11720_v56 }
 0x46e   : > { %v3140_v19 = vpop.permute.xlu0 %3139 }
 0x46f   : > { %3665 = vrot.lane.b32.xlu1 %v11306_v12, %s9380_s26  ;;  %v3834_v24 = vsel %vm15933_vm9, %v3802_v47, %v3140_v19 }
 0x470   : > { %3539 = vrot.lane.b32.xlu0 %v2658_v34, %s9379_s14 }
 0x471   : > { %v3268_v45 = vpop.permute.xlu1 %3267 }
 0x472   : > { %v3648_v20 = vpop.permute.xlu0 %3647  ;;  %v3867_v11 = vsel %vm15975_vm12, %v3834_v24, %v3268_v45  ;;  %v3739_v45 = vsel %vm15879_vm2, %v11461_v29, %v11393_v30  ;;  %v2694_v24 = vld [vmem:[#allocation3 + $0x12a] sm:$0xff] }
 0x473   : > { %v3964_v17 = vsel %vm16020_vm15, %v3931_v2, %v3648_v20  ;;  %3285 = vrot.lane.b32.xlu1 %v11306_v12, %s9377_s16  ;;  %v3737_v12 = vsel %vm15879_vm2, %v11409_v14, %v11385_v52  ;;  %v3771_v2 = vsel %vm15935_vm5, %v3739_v45, %v11533_v51 }
 0x474   : > { %3159 = vrot.lane.b32.xlu0 %v2658_v34, %s9376_s18  ;;  %9108 = vmatmul.mubr.msk.f32.gmra.mrb[4].mxu1 %vm4005_vm0, %v3964_v17  ;;  %v3769_v40 = vsel %vm15935_vm5, %v3737_v12, %v11523_v54 }
 0x475   : > { %v3014_v35 = vpop.permute.xlu1 %3013  ;;  %v3801_v44 = vsel %vm15934_vm7, %v3769_v40, %v3010_v59  ;;  %v2661_v40 = vld [vmem:[#allocation3 + $0x121] sm:$0xff] }
 0x476   : > { %v3394_v57 = vpop.permute.xlu0 %3393  ;;  %v3833_v5 = vsel %vm15933_vm9, %v3801_v44, %v3138_v63  ;;  %v3803_v20 = vsel %vm15934_vm7, %v3771_v2, %v3014_v35  ;;  %v11826_v44 = vld [vmem:[#allocation3 + $0x128] sm:$0xff] }
 0x477   : > { %3287 = vrot.lane.b32.xlu1 %v11302_v38, %s9377_s16  ;;  %v3866_v52 = vsel %vm15975_vm12, %v3833_v5, %v3266_v7 }
 0x478   : > { %3667 = vrot.lane.b32.xlu0 %v11302_v38, %s9380_s26  ;;  %v3899_v14 = vsel %vm15971_vm13, %v3866_v52, %v3394_v57 }
 0x479   : > { %v3522_v37 = vpop.permute.xlu1 %3521 }
 0x47a   : > { %v3396_v48 = vpop.permute.xlu0 %3395  ;;  %v3932_v54 = vsel %vm16026_vm14, %v3899_v14, %v3522_v37 }
 0x47b   : > { %3033 = vrot.lane.b32.xlu1 %v11758_v43, %s9374_s12  ;;  %v3900_v55 = vsel %vm15971_vm13, %v3867_v11, %v3396_v48 }
 0x47c   : > { %3413 = vrot.lane.b32.xlu0 %v11758_v43, %s9378_s29 }
 0x47d   : > { %v3142_v38 = vpop.permute.xlu1 %3141 }
 0x47e   : > { %v11771_v28 = vpop.permute.xlu0 %3015  ;;  %v3835_v57 = vsel %vm15933_vm9, %v3803_v20, %v3142_v38  ;;  %v3740_v38 = vsel %vm15879_vm2, %v11473_v8, %v11391_v22  ;;  %v2663_v20 = vld [vmem:[#allocation3 + $0x139] sm:$0xff] }
 0x47f   : > { %3541 = vrot.lane.b32.xlu1 %v2659_v50, %s9379_s14  ;;  %v3772_v5 = vsel %vm15935_vm5, %v3740_v38, %v11531_v33 }
 0x480   : > { %3415 = vrot.lane.b32.xlu0 %v11773_v4, %s9378_s29  ;;  %v3804_v52 = vsel %vm15934_vm7, %v3772_v5, %v11771_v28  ;;  %v2662_v28 = vld [vmem:[#allocation3 + $0x129] sm:$0xff]  ;;  %v3743_v5 = vsel %vm15879_vm2, %v11565_v42, %v11411_v60 }
 0x481   : > { %v3650_v59 = vpop.permute.xlu1 %3649 }
 0x482   : > { %v3965_v31 = vsel %vm16020_vm15, %v3932_v54, %v3650_v59  ;;  %v3524_v63 = vpop.permute.xlu0 %3523 }
 0x483   : > { %3161 = vrot.lane.b32.xlu1 %v2659_v50, %s9376_s18  ;;  %9110 = vmatprep.mubr.msk.f32.mxu1 %vm4005_vm0, %v3965_v31  ;;  %v3933_v39 = vsel %vm16026_vm14, %v3900_v55, %v3524_v63  ;;  %v2693_v63 = vld [vmem:[#allocation3 + $0x122] sm:$0xff] }
 0x484   : > { %3035 = vrot.lane.b32.xlu0 %v11773_v4, %s9374_s12 }
 0x485   : > { %v3270_v46 = vpop.permute.xlu1 %3269 }
 0x486   : > { %v3144_v16 = vpop.permute.xlu0 %3143  ;;  %v3868_v48 = vsel %vm15975_vm12, %v3835_v57, %v3270_v46 }
 0x487   : > { %3669 = vrot.lane.b32.xlu1 %v2691_v18, %s9380_s26  ;;  %v3836_v54 = vsel %vm15933_vm9, %v3804_v52, %v3144_v16 }
 0x488   : > { %3543 = vrot.lane.b32.xlu0 %v2660_v27, %s9379_s14 }
 0x489   : > { %v3272_v23 = vpop.permute.xlu1 %3271 }
 0x48a   : > { %v3652_v7 = vpop.permute.xlu0 %3651  ;;  %v3869_v59 = vsel %vm15975_vm12, %v3836_v54, %v3272_v23  ;;  %v11860_v23 = vld [vmem:[#allocation3 + $0x138] sm:$0xff] }
 0x48b   : > { %v3966_v15 = vsel %vm16020_vm15, %v3933_v39, %v3652_v7  ;;  %3289 = vrot.lane.b32.xlu1 %v2691_v18, %s9377_s16 }
 0x48c   : > { %3163 = vrot.lane.b32.xlu0 %v2660_v27, %s9376_s18  ;;  %9111 = vmatmul.mubr.msk.f32.gmra.mrb[6].mxu1 %vm4005_vm0, %v3966_v15 }
 0x48d   : > { %v3018_v56 = vpop.permute.xlu1 %3017 }
 0x48e   : > { %v3398_v19 = vpop.permute.xlu0 %3397 }
 0x48f   : > { %2909 = vrot.lane.b32.xlu1 %v2691_v18, %s9372_s17  ;;  %v3901_v30 = vsel %vm15971_vm13, %v3868_v48, %v3398_v19  ;;  %v3741_v18 = vsel %vm15879_vm2, %v11513_v21, %v11401_v41 }
 0x490   : > { %3671 = vrot.lane.b32.xlu0 %v2692_v9, %s9380_s26  ;;  %v3773_v27 = vsel %vm15935_vm5, %v3741_v18, %v11541_v53 }
 0x491   : > { %v3526_v34 = vpop.permute.xlu1 %3525  ;;  %v3805_v11 = vsel %vm15934_vm7, %v3773_v27, %v3018_v56 }
 0x492   : > { %v3400_v13 = vpop.permute.xlu0 %3399  ;;  %v3934_v29 = vsel %vm16026_vm14, %v3901_v30, %v3526_v34 }
 0x493   : > { %3417 = vrot.lane.b32.xlu1 %v11805_v10, %s9378_s29  ;;  %v3902_v22 = vsel %vm15971_vm13, %v3869_v59, %v3400_v13 }
 0x494   : > { %3291 = vrot.lane.b32.xlu0 %v2692_v9, %s9377_s16 }
 0x495   : > { %v3146_v17 = vpop.permute.xlu1 %3145 }
 0x496   : > { %v11817_v37 = vpop.permute.xlu0 %3019  ;;  %v3837_v39 = vsel %vm15933_vm9, %v3805_v11, %v3146_v17  ;;  %v11883_v17 = vld [vmem:[#allocation3 + $0x140] sm:$0xff] }
 0x497   : > { %3037 = vrot.lane.b32.xlu1 %v11805_v10, %s9374_s12 }
 0x498   : > { %2911 = vrot.lane.b32.xlu0 %v2692_v9, %s9372_s17  ;;  %v3742_v9 = vsel %vm15879_vm2, %v11525_v32, %v11399_v58 }
 0x499   : > { %v3654_v51 = vpop.permute.xlu1 %3653  ;;  %v3774_v34 = vsel %vm15935_vm5, %v3742_v9, %v11539_v61 }
 0x49a   : > { %v3967_v12 = vsel %vm16020_vm15, %v3934_v29, %v3654_v51  ;;  %v3528_v35 = vpop.permute.xlu0 %3527  ;;  %v3806_v45 = vsel %vm15934_vm7, %v3774_v34, %v11817_v37 }
 0x49b   : > { %3545 = vrot.lane.b32.xlu1 %v2661_v40, %s9379_s14  ;;  %9113 = vmatprep.mubr.msk.f32.mxu1 %vm4005_vm0, %v3967_v12  ;;  %v3935_v31 = vsel %vm16026_vm14, %v3902_v22, %v3528_v35  ;;  %v2695_v12 = vld [vmem:[#allocation3 + $0x13a] sm:$0xff] }
 0x49c   : > { %3419 = vrot.lane.b32.xlu0 %v11826_v44, %s9378_s29  ;;  %v2664_v35 = vld [vmem:[#allocation3 + $0x141] sm:$0xff] }
 0x49d   : > { %v3274_v50 = vpop.permute.xlu1 %3273 }
 0x49e   : > { %v3148_v14 = vpop.permute.xlu0 %3147  ;;  %v3870_v15 = vsel %vm15975_vm12, %v3837_v39, %v3274_v50  ;;  %v3775_v50 = vsel %vm15935_vm5, %v3743_v5, %v11549_v49 }
 0x49f   : > { %3165 = vrot.lane.b32.xlu1 %v2661_v40, %s9376_s18  ;;  %v3838_v57 = vsel %vm15933_vm9, %v3806_v45, %v3148_v14  ;;  %v16470_v45 = vld [vmem:[#allocation21_spill] sm:$0xff] }
 0x4a0   : > { %3039 = vrot.lane.b32.xlu0 %v11826_v44, %s9374_s12 }
 0x4a1   : > { %v3276_v8 = vpop.permute.xlu1 %3275 }
 0x4a2   : > { %v3656_v33 = vpop.permute.xlu0 %3655  ;;  %v3871_v48 = vsel %vm15975_vm12, %v3838_v57, %v3276_v8  ;;  %v2696_v8 = vld [vmem:[#allocation3 + $0x142] sm:$0xff] }
 0x4a3   : > { %v3968_v25 = vsel %vm16020_vm15, %v3935_v31, %v3656_v33  ;;  %3673 = vrot.lane.b32.xlu1 %v2693_v63, %s9380_s26  ;;  %v11915_v31 = vld [vmem:[#allocation3 + $0x150] sm:$0xff]  ;;  %v16471_v57 = vld [vmem:[#allocation12_spill] sm:$0xff] }
 0x4a4   : > { %3547 = vrot.lane.b32.xlu0 %v2662_v28, %s9379_s14  ;;  %9114 = vmatmul.mubr.msk.f32.gmra.mrb[8].mxu1 %vm4005_vm0, %v3968_v25  ;;  %v16467_v25 = vld [vmem:[#allocation13_spill] sm:$0xff] }
 0x4a5   : > { %v3022_v26 = vpop.permute.xlu1 %3021 }
 0x4a6   : > { %v3402_v46 = vpop.permute.xlu0 %3401  ;;  %v3807_v52 = vsel %vm15934_vm7, %v3775_v50, %v3022_v26  ;;  %v16473_v50 = vld [vmem:[#allocation80_spill] sm:$0xff] }
 0x4a7   : > { %3293 = vrot.lane.b32.xlu1 %v2693_v63, %s9377_s16  ;;  %v3903_v41 = vsel %vm15971_vm13, %v3870_v15, %v3402_v46  ;;  %v16469_v46 = vld [vmem:[#allocation59_spill] sm:$0xff] }
 0x4a8   : > { %3167 = vrot.lane.b32.xlu0 %v2662_v28, %s9376_s18  ;;  %v16468_v28 = vld [vmem:[#allocation18_spill] sm:$0xff] }
 0x4a9   : > { %v3530_v47 = vpop.permute.xlu1 %3529  ;;  %v3744_v26 = vsel %vm15879_vm2, %v16468_v28, %v16467_v25  ;;  %v2512_v25 = vld [vmem:[#allocation3 + $0x18] sm:$0xff] }
 0x4aa   : > { %v3404_v16 = vpop.permute.xlu0 %3403  ;;  %v3936_v53 = vsel %vm16026_vm14, %v3903_v41, %v3530_v47  ;;  %v3776_v47 = vsel %vm15935_vm5, %v3744_v26, %v16469_v46  ;;  %v2636_v46 = vld [vmem:[#allocation3 + $0x170] sm:$0xff] }
 0x4ab   : > { %2913 = vrot.lane.b32.xlu1 %v2693_v63, %s9372_s17  ;;  %v3904_v58 = vsel %vm15971_vm13, %v3871_v48, %v3404_v16 }
 0x4ac   : > { %3675 = vrot.lane.b32.xlu0 %v2694_v24, %s9380_s26 }
 0x4ad   : > { %v3150_v55 = vpop.permute.xlu1 %3149 }
 0x4ae   : > { %v11863_v7 = vpop.permute.xlu0 %3023  ;;  %v3839_v54 = vsel %vm15933_vm9, %v3807_v52, %v3150_v55 }
 0x4af   : > { %3421 = vrot.lane.b32.xlu1 %v11860_v23, %s9378_s29  ;;  %v3808_v18 = vsel %vm15934_vm7, %v3776_v47, %v11863_v7  ;;  %v2634_v7 = vld [vmem:[#allocation3 + $0x158] sm:$0xff] }
 0x4b0   : > { %3295 = vrot.lane.b32.xlu0 %v2694_v24, %s9377_s16 }
 0x4b1   : > { %v3658_v21 = vpop.permute.xlu1 %3657 }
 0x4b2   : > { %v3969_v56 = vsel %vm16020_vm15, %v3936_v53, %v3658_v21  ;;  %v3532_v19 = vpop.permute.xlu0 %3531  ;;  %v2665_v53 = vld [vmem:[#allocation3 + $0x151] sm:$0xff] }
 0x4b3   : > { %3041 = vrot.lane.b32.xlu1 %v11860_v23, %s9374_s12  ;;  %9116 = vmatprep.mubr.msk.f32.mxu1 %vm4005_vm0, %v3969_v56  ;;  %v3937_v32 = vsel %vm16026_vm14, %v3904_v58, %v3532_v19 }
 0x4b4   : > { %2915 = vrot.lane.b32.xlu0 %v2694_v24, %s9372_s17 }
 0x4b5   : > { %v3278_v13 = vpop.permute.xlu1 %3277 }
 0x4b6   : > { %v3152_v2 = vpop.permute.xlu0 %3151  ;;  %v3872_v22 = vsel %vm15975_vm12, %v3839_v54, %v3278_v13  ;;  %v2697_v13 = vld [vmem:[#allocation3 + $0x152] sm:$0xff] }
 0x4b7   : > { %3549 = vrot.lane.b32.xlu1 %v2663_v20, %s9379_s14  ;;  %v3840_v27 = vsel %vm15933_vm9, %v3808_v18, %v3152_v2  ;;  %v3745_v2 = vsel %vm15879_vm2, %v11601_v3, %v16470_v45  ;;  %v2513_v18 = vld [vmem:[#allocation3 + $0x20] sm:$0xff]  ;;  %v2668_v45 = vld [vmem:[#allocation3 + $0x171] sm:$0xff] }
 0x4b8   : > { %3423 = vrot.lane.b32.xlu0 %v11883_v17, %s9378_s29  ;;  %v3777_v48 = vsel %vm15935_vm5, %v3745_v2, %v16471_v57  ;;  %v4395_v2 = vlaneseq }
 0x4b9   : > { %v3280_v61 = vpop.permute.xlu1 %3279 }
 0x4ba   : > { %v3660_v30 = vpop.permute.xlu0 %3659  ;;  %v3873_v11 = vsel %vm15975_vm12, %v3840_v27, %v3280_v61 }
 0x4bb   : > { %v3970_v37 = vsel %vm16020_vm15, %v3937_v32, %v3660_v30  ;;  %3169 = vrot.lane.b32.xlu1 %v2663_v20, %s9376_s18  ;;  %v2666_v20 = vld [vmem:[#allocation3 + $0x159] sm:$0xff] }
 0x4bc   : > { %3043 = vrot.lane.b32.xlu0 %v11883_v17, %s9374_s12  ;;  %9117 = vmatmul.mubr.msk.f32.gmra.mrb[10].mxu1 %vm4005_vm0, %v3970_v37 }
 0x4bd   : > { %v3026_v29 = vpop.permute.xlu1 %3025 }
 0x4be   : > { %v3406_v51 = vpop.permute.xlu0 %3405  ;;  %v3809_v58 = vsel %vm15934_vm7, %v3777_v48, %v3026_v29  ;;  %v2698_v29 = vld [vmem:[#allocation3 + $0x15a] sm:$0xff]  ;;  %v16477_v48 = vld [vmem:[#allocation109_spill] sm:$0xff] }
 0x4bf   : > { %3677 = vrot.lane.b32.xlu1 %v2695_v12, %s9380_s26  ;;  %v3905_v60 = vsel %vm15971_vm13, %v3872_v22, %v3406_v51 }
 0x4c0   : > { %3551 = vrot.lane.b32.xlu0 %v2664_v35, %s9379_s14 }
 0x4c1   : > { %v3534_v40 = vpop.permute.xlu1 %3533 }
 0x4c2   : > { %v3408_v38 = vpop.permute.xlu0 %3407  ;;  %v3938_v42 = vsel %vm16026_vm14, %v3905_v60, %v3534_v40 }
 0x4c3   : > { %3297 = vrot.lane.b32.xlu1 %v2695_v12, %s9377_s16  ;;  %v3906_v55 = vsel %vm15971_vm13, %v3873_v11, %v3408_v38  ;;  %v16472_v38 = vld [vmem:[#allocation15_spill] sm:$0xff]  ;;  %v2667_v11 = vld [vmem:[#allocation3 + $0x169] sm:$0xff] }
 0x4c4   : > { %3171 = vrot.lane.b32.xlu0 %v2664_v35, %s9376_s18  ;;  %v3746_v5 = vsel %vm15879_vm2, %v11615_v36, %v16472_v38  ;;  %v9381_v38 = vmov 1414812756  }
 0x4c5   : > { %v3154_v14 = vpop.permute.xlu1 %3153  ;;  %v3778_v52 = vsel %vm15935_vm5, %v3746_v5, %v16473_v50  ;;  %v5288_v5 = vunpack.c.l.s4 %v9381_v38 }
 0x4c6   : > { %v11908_v59 = vpop.permute.xlu0 %3027  ;;  %v3841_v32 = vsel %vm15933_vm9, %v3809_v58, %v3154_v14 }
 0x4c7   : > { %2917 = vrot.lane.b32.xlu1 %v2695_v12, %s9372_s17  ;;  %v3810_v54 = vsel %vm15934_vm7, %v3778_v52, %v11908_v59 }
 0x4c8   : > { %3679 = vrot.lane.b32.xlu0 %v2696_v8, %s9380_s26 }
 0x4c9   : > { %v3662_v49 = vpop.permute.xlu1 %3661 }
 0x4ca   : > { %v3971_v33 = vsel %vm16020_vm15, %v3938_v42, %v3662_v49  ;;  %v3536_v63 = vpop.permute.xlu0 %3535 }
 0x4cb   : > { %3425 = vrot.lane.b32.xlu1 %v11915_v31, %s9378_s29  ;;  %9119 = vmatprep.mubr.msk.f32.mxu1 %vm4005_vm0, %v3971_v33  ;;  %v3939_v15 = vsel %vm16026_vm14, %v3906_v55, %v3536_v63  ;;  %v16475_v55 = vld [vmem:[#allocation37_spill] sm:$0xff] }
 0x4cc   : > { %3299 = vrot.lane.b32.xlu0 %v2696_v8, %s9377_s16 }
 0x4cd   : > { %v3282_v16 = vpop.permute.xlu1 %3281 }
 0x4ce   : > { %v3156_v24 = vpop.permute.xlu0 %3155  ;;  %v3874_v37 = vsel %vm15975_vm12, %v3841_v32, %v3282_v16 }
 0x4cf   : > { %3045 = vrot.lane.b32.xlu1 %v11915_v31, %s9374_s12  ;;  %v3842_v60 = vsel %vm15933_vm9, %v3810_v54, %v3156_v24  ;;  %v16474_v24 = vld [vmem:[#allocation19_spill] sm:$0xff]  ;;  %v9382_v54 = vmov 1987475062  }
 0x4d0   : > { %2919 = vrot.lane.b32.xlu0 %v2696_v8, %s9372_s17  ;;  %v2635_v8 = vld [vmem:[#allocation3 + $0x168] sm:$0xff]  ;;  %v3747_v27 = vsel %vm15879_vm2, %v11653_v0, %v16474_v24 }
 0x4d1   : > { %v3284_v39 = vpop.permute.xlu1 %3283 }
 0x4d2   : > { %v3664_v41 = vpop.permute.xlu0 %3663  ;;  %v3875_v42 = vsel %vm15975_vm12, %v3842_v60, %v3284_v39  ;;  %v3779_v39 = vsel %vm15935_vm5, %v3747_v27, %v16475_v55  ;;  %v2417_v60 = vld [vmem:[#allocation3 + $0x8] sm:$0xff]  ;;  %v16479_v27 = vld [vmem:[#allocation56_spill] sm:$0xff] }
 0x4d3   : > { %v3972_v21 = vsel %vm16020_vm15, %v3939_v15, %v3664_v41  ;;  %3553 = vrot.lane.b32.xlu1 %v2665_v53, %s9379_s14 }
 0x4d4   : > { %3427 = vrot.lane.b32.xlu0 %v2634_v7, %s9378_s29  ;;  %9120 = vmatmul.mubr.msk.f32.gmra.mrb[12].mxu1 %vm4005_vm0, %v3972_v21 }
 0x4d5   : > { %v3030_v56 = vpop.permute.xlu1 %3029 }
 0x4d6   : > { %v3410_v19 = vpop.permute.xlu0 %3409  ;;  %v3811_v15 = vsel %vm15934_vm7, %v3779_v39, %v3030_v56  ;;  %v9385_v39 = vmov 1983009808  }
 0x4d7   : > { %3173 = vrot.lane.b32.xlu1 %v2665_v53, %s9376_s18  ;;  %v3907_v3 = vsel %vm15971_vm13, %v3874_v37, %v3410_v19 }
 0x4d8   : > { %3047 = vrot.lane.b32.xlu0 %v2634_v7, %s9374_s12  ;;  %v2544_v7 = vld [vmem:[#allocation3 + $0x19] sm:$0xff] }
 0x4d9   : > { %v3538_v9 = vpop.permute.xlu1 %3537 }
 0x4da   : > { %v3412_v34 = vpop.permute.xlu0 %3411  ;;  %v3940_v51 = vsel %vm16026_vm14, %v3907_v3, %v3538_v9  ;;  %v2545_v3 = vld [vmem:[#allocation3 + $0x21] sm:$0xff] }
 0x4db   : > { %3681 = vrot.lane.b32.xlu1 %v2697_v13, %s9380_s26  ;;  %v3908_v36 = vsel %vm15971_vm13, %v3875_v42, %v3412_v34 }
 0x4dc   : > { %3555 = vrot.lane.b32.xlu0 %v2666_v20, %s9379_s14 }
 0x4dd   : > { %v3158_v61 = vpop.permute.xlu1 %3157 }
 0x4de   : > { %v11951_v30 = vpop.permute.xlu0 %3031  ;;  %v3843_v53 = vsel %vm15933_vm9, %v3811_v15, %v3158_v61  ;;  %v4393_v15 = vunpack.c.l.s4 %v9385_v39 }
 0x4df   : > { %3301 = vrot.lane.b32.xlu1 %v2697_v13, %s9377_s16 }
 0x4e0   : > { %3175 = vrot.lane.b32.xlu0 %v2666_v20, %s9376_s18  ;;  %v16476_v20 = vld [vmem:[#allocation58_spill] sm:$0xff] }
 0x4e1   : > { %v3666_v12 = vpop.permute.xlu1 %3665  ;;  %v3748_v57 = vsel %vm15879_vm2, %v11669_v1, %v16476_v20  ;;  %v12020_v1 = vshrl.u32 %v4395_v2, 7  ;;  %v16482_v2 = vld [vmem:[#allocation23_spill] sm:$0xff] }
 0x4e2   : > { %v3973_v35 = vsel %vm16020_vm15, %v3940_v51, %v3666_v12  ;;  %v3540_v40 = vpop.permute.xlu0 %3539  ;;  %v3780_v58 = vsel %vm15935_vm5, %v3748_v57, %v16477_v48  ;;  %v12018_v12 = vld [vmem:[#allocation3 + $0x16a] sm:$0xff]  ;;  %v12074_v20 = vsel %vm15879_vm2, %v11773_v4, %v16482_v2  ;;  %v16483_v57 = vld [vmem:[#allocation20_spill] sm:$0xff] }
 0x4e3   : > { %2921 = vrot.lane.b32.xlu1 %v2697_v13, %s9372_s17  ;;  %9122 = vmatprep.mubr.msk.f32.mxu1 %vm4005_vm0, %v3973_v35  ;;  %v3941_v33 = vsel %vm16026_vm14, %v3908_v36, %v3540_v40  ;;  %v3812_v32 = vsel %vm15934_vm7, %v3780_v58, %v11951_v30  ;;  %v12029_v30 = vmul.u32 2, %v12020_v1  ;;  %v16500_v2 = vld [vmem:[#allocation62_spill] sm:$0xff] }
 0x4e4   : > { %3683 = vrot.lane.b32.xlu0 %v2698_v29, %s9380_s26 }
 0x4e5   : > { %v3286_v14 = vpop.permute.xlu1 %3285  ;;  %v12039_v36 = vadd.s32 1, %v12029_v30 }
 0x4e6   : > { %v3160_v22 = vpop.permute.xlu0 %3159  ;;  %v3876_v19 = vsel %vm15975_vm12, %v3843_v53, %v3286_v14  ;;  %v2576_v14 = vld [vmem:[#allocation3 + $0x1a] sm:$0xff] }
 0x4e7   : > { %3429 = vrot.lane.b32.xlu1 %v2635_v8, %s9378_s29  ;;  %v3844_v51 = vsel %vm15933_vm9, %v3812_v32, %v3160_v22  ;;  %v5295_v22 = vunpack.c.l.s4 %v9382_v54  ;;  %v5074_v53 = vadd.s32 32, %v12039_v36  ;;  %v16484_v32 = vld [vmem:[#allocation26_spill] sm:$0xff]  ;;  %v4394_v54 = vunpack.c.0.s8 %v4393_v15 }
 0x4e8   : > { %3303 = vrot.lane.b32.xlu0 %v2698_v29, %s9377_s16 }
 0x4e9   : > { %v3288_v49 = vpop.permute.xlu1 %3287 }
 0x4ea   : > { %v3668_v63 = vpop.permute.xlu0 %3667  ;;  %v3877_v35 = vsel %vm15975_vm12, %v3844_v51, %v3288_v49  ;;  %v5289_v49 = vunpack.c.0.s8 %v5288_v5  ;;  %v16485_v51 = vld [vmem:[#allocation24_spill] sm:$0xff]  ;;  %v2445_v5 = vld [vmem:[#allocation3 + $0x158] sm:$0xff] }
 0x4eb   : > { %v3974_v28 = vsel %vm16020_vm15, %v3941_v33, %v3668_v63  ;;  %2993 = vrot.lane.b32.xlu1 %v2512_v25, %s9374_s12  ;;  %v2416_v33 = vld [vmem:[#allocation3] sm:$0xff]  ;;  %v12043_v25 = vld [vmem:[#allocation3 + $0x172] sm:$0xff]  ;;  %v12091_v4 = vsel %vm15879_vm2, %v11805_v10, %v16485_v51 }
 0x4ec   : > { %2923 = vrot.lane.b32.xlu0 %v2698_v29, %s9372_s17  ;;  %9123 = vmatmul.mubr.msk.f32.gmra.mrb[14].mxu1 %vm4005_vm0, %v3974_v28  ;;  %v5296_v28 = vunpack.c.0.s8 %v5295_v22 }
 0x4ed   : > { %v11979_v59 = vpop.permute.xlu1 %3033 }
 0x4ee   : > { %v3414_v26 = vpop.permute.xlu0 %3413 }
 0x4ef   : > { %3431 = vrot.lane.b32.xlu1 %v2636_v46, %s9378_s29  ;;  %v3909_v0 = vsel %vm15971_vm13, %v3876_v19, %v3414_v26  ;;  %v9383_v26 = vmov 269488144   ;;  %v16480_v19 = vld [vmem:[#allocation27_spill] sm:$0xff] }
 0x4f0   : > { %3049 = vrot.lane.b32.xlu0 %v2635_v8, %s9374_s12 }
 0x4f1   : > { %v3542_v47 = vpop.permute.xlu1 %3541 }
 0x4f2   : > { %v3416_v16 = vpop.permute.xlu0 %3415  ;;  %v3942_v9 = vsel %vm16026_vm14, %v3909_v0, %v3542_v47  ;;  %v9384_v47 = vmov 842150450   ;;  %v3750_v0 = vsel %vm15879_vm2, %v11722_v6, %v16480_v19  ;;  %v12079_v6 = vsel %vm15879_vm2, %v11758_v43, %v16483_v57  ;;  %v16498_v19 = vld [vmem:[#allocation32_spill] sm:$0xff] }
 0x4f3   : > { %2995 = vrot.lane.b32.xlu1 %v2513_v18, %s9374_s12  ;;  %v3910_v40 = vsel %vm15971_vm13, %v3877_v35, %v3416_v16  ;;  %v5281_v16 = vunpack.c.l.s4 %v9384_v47  ;;  %v16478_v18 = vld [vmem:[#allocation10_spill] sm:$0xff]  ;;  %v3782_v57 = vsel %vm15935_vm5, %v3750_v0, %v16500_v2 }
 0x4f4   : > { %3557 = vrot.lane.b32.xlu0 %v2667_v11, %s9379_s14  ;;  %v3730_v24 = vsel %vm15879_vm2, %v2417_v60, %v16478_v18  ;;  %v16486_v35 = vld [vmem:[#allocation30_spill] sm:$0xff]  ;;  %v2446_v60 = vld [vmem:[#allocation3 + $0x168] sm:$0xff] }
 0x4f5   : > { %v11991_v41 = vpop.permute.xlu1 %3161  ;;  %v5282_v58 = vunpack.c.0.s8 %v5281_v16  ;;  %v12096_v43 = vsel %vm15879_vm2, %v11883_v17, %v16486_v35  ;;  %v16496_v16 = vld [vmem:[#allocation110_spill] sm:$0xff]  ;;  %v6754_v35 = vadd.s32 48, %v12039_v36 }
 0x4f6   : > { %v11994_v21 = vpop.permute.xlu0 %3035  ;;  %v12139_v18 = vsel %vm15935_vm5, %v3730_v24, %v16496_v16 }
 0x4f7   : > { %3121 = vrot.lane.b32.xlu1 %v2544_v7, %s9376_s18  ;;  %v12057_v7 = vsub.s32 %v5289_v49, %v12020_v1  ;;  %16497 = vst [vmem:[#allocation16_spill] sm:$0xff] %v12139_v18  ;;  %v12147_v15 = vsub.s32 %v5282_v58, %v12020_v1  ;;  %v12164_v58 = vsub.s32 %v4394_v54, %v12020_v1 }
 0x4f8   : > { %3051 = vrot.lane.b32.xlu0 %v2636_v46, %s9374_s12  ;;  %v5274_v46 = vunpack.c.l.s4 %v9383_v26 }
 0x4f9   : > { %v3670_v34 = vpop.permute.xlu1 %3669  ;;  %v12114_v22 = vrot.slane %v5074_v53, %v12057_v7 }
 0x4fa   : > { %v3975_v56 = vsel %vm16020_vm15, %v3942_v9, %v3670_v34  ;;  %v3544_v13 = vpop.permute.xlu0 %3543  ;;  %v16481_v9 = vld [vmem:[#allocation17_spill] sm:$0xff]  ;;  %v5275_v48 = vunpack.c.0.s8 %v5274_v46  ;;  %v16494_v46 = vld [vmem:[#allocation14_spill] sm:$0xff] }
 0x4fb   : > { %3559 = vrot.lane.b32.xlu1 %v2668_v45, %s9379_s14  ;;  %9125 = vmatprep.mubr.msk.f32.mxu1 %vm4005_vm0, %v3975_v56  ;;  %v3943_v50 = vsel %vm16026_vm14, %v3910_v40, %v3544_v13  ;;  %v3749_v34 = vsel %vm15879_vm2, %v11707_v62, %v16481_v9  ;;  %v5066_v13 = vadd.s32 32, %v12029_v30  ;;  %v2577_v62 = vld [vmem:[#allocation3 + $0x22] sm:$0xff]  ;;  %v12135_v47 = vsel %vm15879_vm2, %v2446_v60, %v16494_v46 }
 0x4fc   : > { %3177 = vrot.lane.b32.xlu0 %v2667_v11, %s9376_s18  ;;  %v3729_v11 = vsel %vm15879_vm2, %v2416_v33, %v16479_v27  ;;  %v16487_v40 = vld [vmem:[#allocation28_spill] sm:$0xff]  ;;  %16495 = vst [vmem:[#allocation82_spill] sm:$0xff] %v12135_v47  ;;  %v2609_v27 = vld [vmem:[#allocation3 + $0x30] sm:$0xff]  ;;  %v12144_v39 = vsub.s32 %v5275_v48, %v12020_v1 }
 0x4fd   : > { %v12010_v61 = vpop.permute.xlu1 %3289  ;;  %v12101_v38 = vsel %vm15879_vm2, %v11860_v23, %v16487_v40  ;;  %v16492_v23 = vld [vmem:[#allocation81_spill] sm:$0xff]  ;;  %v12122_v33 = vld [vmem:[#allocation3 + $0x180] sm:$0xff]  ;;  %v12151_v9 = vsel %vm15935_vm5, %v3729_v11, %v16498_v19  ;;  %v12204_v19 = vrot.slane %v6754_v35, %v12057_v7 }
 0x4fe   : > { %v12014_v37 = vpop.permute.xlu0 %3163  ;;  %16499 = vst [vmem:[#allocation111_spill] sm:$0xff] %v12151_v9  ;;  %v12172_v40 = vld [vmem:[#allocation3 + $0x188] sm:$0xff]  ;;  %v12182_v54 = vrot.slane %v5074_v53, %v12144_v39 }
 0x4ff   : > { %3123 = vrot.lane.b32.xlu1 %v2545_v3, %s9376_s18  ;;  %v12086_v3 = vsel %vm15879_vm2, %v11826_v44, %v16484_v32  ;;  %v16488_v44 = vld [vmem:[#allocation34_spill] sm:$0xff]  ;;  %v5914_v32 = vadd.s32 48, %v12029_v30  ;;  %16504 = vst [vmem:[#allocation85_spill] sm:$0xff] %v12204_v19  ;;  %v5068_v19 = vadd.s32 96, %v12029_v30 }
 0x500   : > { %3685 = vrot.lane.b32.xlu0 %v12018_v12, %s9380_s26 }
 0x501   : > { %v12026_v29 = vpop.permute.xlu1 %2909  ;;  %v12197_v46 = vrot.slane %v5914_v32, %v12057_v7 }
 0x502   : > { %v3672_v52 = vpop.permute.xlu0 %3671 }
 0x503   : > { %v3976_v8 = vsel %vm16020_vm15, %v3943_v50, %v3672_v52  ;;  %3249 = vrot.lane.b32.xlu1 %v2576_v14, %s9377_s16  ;;  %v12106_v50 = vsel %vm15879_vm2, %v2445_v5, %v16488_v44  ;;  %v16490_v52 = vld [vmem:[#allocation60_spill] sm:$0xff]  ;;  %v2447_v14 = vld [vmem:[#allocation3 + $0x170] sm:$0xff]  ;;  %16502 = vst [vmem:[#allocation40_spill] sm:$0xff] %v12197_v46 }
 0x504   : > { %3179 = vrot.lane.b32.xlu0 %v2668_v45, %s9376_s18  ;;  %9126 = vmatmul.mubr.msk.f32.gmra.mrb[16].mxu1 %vm4005_vm0, %v3976_v8  ;;  %v12069_v45 = vsub.s32 %v5296_v28, %v12020_v1  ;;  %16489 = vst [vmem:[#allocation112_spill] sm:$0xff] %v12106_v50  ;;  %v12111_v10 = vsel %vm15879_vm2, %v11915_v31, %v16490_v52 }
 0x505   : > { %v12036_v42 = vpop.permute.xlu1 %3417  ;;  %16491 = vst [vmem:[#allocation36_spill] sm:$0xff] %v12111_v10  ;;  %v12118_v8 = vsel %vm15879_vm2, %v2447_v14, %v16492_v23  ;;  %v12128_v31 = vrot.slane %v5066_v13, %v12057_v7  ;;  %v2610_v14 = vld [vmem:[#allocation3 + $0x38] sm:$0xff]  ;;  %v12188_v23 = vrot.slane %v5066_v13, %v12144_v39 }
 0x506   : > { %v12041_v63 = vpop.permute.xlu0 %3291  ;;  %16493 = vst [vmem:[#allocation61_spill] sm:$0xff] %v12118_v8  ;;  %v12125_v28 = vrot.slane %v5074_v53, %v12069_v45  ;;  %v12131_v26 = vrot.slane %v5066_v13, %v12069_v45  ;;  %v12200_v16 = vrot.slane %v5914_v32, %v12069_v45  ;;  %v12207_v2 = vrot.slane %v6754_v35, %v12069_v45 }
 0x507   : > { %3687 = vrot.lane.b32.xlu1 %v12043_v25, %s9380_s26  ;;  %v3814_v8 = vsel %vm15934_vm7, %v3782_v57, %v11994_v21  ;;  %v2642_v21 = vld [vmem:[#allocation3 + $0x39] sm:$0xff] }
 0x508   : > { %3305 = vrot.lane.b32.xlu0 %v12018_v12, %s9377_s16  ;;  %16503 = vst [vmem:[#allocation64_spill] sm:$0xff] %v12200_v16  ;;  %16505 = vst [vmem:[#allocation25_spill] sm:$0xff] %v12207_v2 }
 0x509   : > { %v12053_v55 = vpop.permute.xlu1 %3037 }
 0x50a   : > { %v12065_v56 = vpop.permute.xlu0 %2911 }
 0x50b   : > { %3307 = vrot.lane.b32.xlu1 %v12043_v25, %s9377_s16 }
 0x50c   : > { %3251 = vrot.lane.b32.xlu0 %v2577_v62, %s9377_s16  ;;  %v16501_v62 = vld [vmem:[#allocation83_spill] sm:$0xff] }
 0x50d   : > { %v3546_v17 = vpop.permute.xlu1 %3545  ;;  %v3781_v24 = vsel %vm15935_vm5, %v3749_v34, %v16501_v62 }
 0x50e   : > { %v12120_v49 = vpop.permute.xlu0 %3419  ;;  %v3813_v48 = vsel %vm15934_vm7, %v3781_v24, %v11979_v59  ;;  %v12213_v24 = vld [vmem:[#allocation3 + $0x181] sm:$0xff]  ;;  %v12250_v59 = vld [vmem:[#allocation3 + $0x189] sm:$0xff] }
 0x50f   : > { %3433 = vrot.lane.b32.xlu1 %v12122_v33, %s9378_s29  ;;  %v3845_v0 = vsel %vm15933_vm9, %v3813_v48, %v11991_v41  ;;  %v12185_v41 = vrot.slane %v5074_v53, %v12147_v15  ;;  %v12216_v48 = vrot.slane %v5914_v32, %v12147_v15 }
 0x510   : > { %3377 = vrot.lane.b32.xlu0 %v2609_v27, %s9378_s29  ;;  %v3878_v52 = vsel %vm15975_vm12, %v3845_v0, %v12010_v61  ;;  %v12194_v61 = vrot.slane %v5066_v13, %v12147_v15  ;;  %v5075_v0 = vadd.s32 64, %v12039_v36 }
 0x511   : > { %v12161_v51 = vpop.permute.xlu1 %3165  ;;  %v3911_v60 = vsel %vm15971_vm13, %v3878_v52, %v12036_v42  ;;  %v12210_v42 = vrot.slane %v5914_v32, %v12144_v39  ;;  %16507 = vst [vmem:[#allocation39_spill] sm:$0xff] %v12216_v48  ;;  %v5067_v32 = vadd.s32 64, %v12029_v30 }
 0x512   : > { %v12170_v34 = vpop.permute.xlu0 %3039  ;;  %v3944_v53 = vsel %vm16026_vm14, %v3911_v60, %v3546_v17  ;;  %v12219_v17 = vrot.slane %v6754_v35, %v12144_v39  ;;  %v12263_v11 = vrot.slane %v5075_v0, %v12069_v45  ;;  %v12275_v50 = vrot.slane %v5075_v0, %v12144_v39 }
 0x513   : > { %3435 = vrot.lane.b32.xlu1 %v12172_v40, %s9378_s29  ;;  %16506 = vst [vmem:[#allocation114_spill] sm:$0xff] %v12210_v42  ;;  %v12266_v18 = vrot.slane %v5067_v32, %v12057_v7  ;;  %v12272_v60 = vrot.slane %v5067_v32, %v12069_v45  ;;  %v12297_v42 = vrot.slane %v5067_v32, %v12144_v39 }
 0x514   : > { %3379 = vrot.lane.b32.xlu0 %v2610_v14, %s9378_s29  ;;  %16508 = vst [vmem:[#allocation63_spill] sm:$0xff] %v12219_v17  ;;  %v2641_v14 = vld [vmem:[#allocation3 + $0x31] sm:$0xff]  ;;  %16511 = vst [vmem:[#allocation113_spill] sm:$0xff] %v12263_v11  ;;  %v12288_v17 = vld [vmem:[#allocation3 + $0x182] sm:$0xff] }
 0x515   : > { %v3674_v27 = vpop.permute.xlu1 %3673  ;;  %16512 = vst [vmem:[#allocation43_spill] sm:$0xff] %v12266_v18  ;;  %16513 = vst [vmem:[#allocation66_spill] sm:$0xff] %v12272_v60  ;;  %v3783_v60 = vsel %vm15935_vm5, %v12079_v6, %v12026_v29 }
 0x516   : > { %v3977_v13 = vsel %vm16020_vm15, %v3944_v53, %v3674_v27  ;;  %v3548_v62 = vpop.permute.xlu0 %3547  ;;  %v12228_v27 = vrot.slane %v6754_v35, %v12147_v15  ;;  %v12255_v35 = vrot.slane %v5075_v0, %v12057_v7  ;;  %v3846_v53 = vsel %vm15933_vm9, %v3814_v8, %v12014_v37  ;;  %16514 = vst [vmem:[#allocation87_spill] sm:$0xff] %v12275_v50 }
 0x517   : > { %3561 = vrot.lane.b32.xlu1 %v12213_v24, %s9379_s14  ;;  %v9103_v52 = vpop.f32.mrb[0].mxu1  ;;  %9128 = vmatprep.mubr.msk.f32.mxu1 %vm4005_vm0, %v3977_v13  ;;  %v3879_v13 = vsel %vm15975_vm12, %v3846_v53, %v12041_v63  ;;  %v9386_v37 = vmov 1934713408   ;;  %v5915_v63 = vadd.s32 80, %v12029_v30  ;;  %16516 = vst [vmem:[#allocation116_spill] sm:$0xff] %v12297_v42 }
 0x518   : > { %16509 = vst [vmem:[#allocation84_spill] sm:$0xff] %v12228_v27  ;;  %v4178_v5 = vpop.f32.mrb[1].mxu1  ;;  %3505 = vrot.lane.b32.xlu0 %v2641_v14, %s9379_s14  ;;  %v12246_v14 = vld [vmem:[%s15790_s4] ss:$0 sm:$0xff]  ;;  %16510 = vst [vmem:[#allocation22_spill] sm:$0xff] %v12255_v35  ;;  %v7793_v8 = vunpack.c.l.s4 %v9386_v37  ;;  %v3912_v57 = vsel %vm15971_vm13, %v3879_v13, %v12120_v49  ;;  %v12283_v27 = vrot.slane %v5075_v0, %v12147_v15  ;;  %v6755_v49 = vadd.s32 80, %v12039_v36 }
 0x519   : > { %v12236_v47 = vpop.permute.xlu1 %3293  ;;  %v4184_v9 = vadd.f32 %v9103_v52, %v12246_v14  ;;  %v3945_v53 = vsel %vm16026_vm14, %v3912_v57, %v3548_v62  ;;  %v2673_v0 = vld [vmem:[#allocation3 + $0x32] sm:$0xff]  ;;  %v12311_v11 = vrot.slane %v5915_v63, %v12057_v7  ;;  %v12318_v62 = vld [vmem:[#allocation3 + $0x18a] sm:$0xff]  ;;  %v2674_v13 = vld [vmem:[#allocation3 + $0x3a] sm:$0xff] }
 0x51a   : > { %v12248_v44 = vpop.permute.xlu0 %3167  ;;  %16515 = vst [vmem:[#allocation31_spill] sm:$0xff] %v12283_v27  ;;  %v12334_v27 = vrot.slane %v5915_v63, %v12147_v15  ;;  %v12337_v50 = vrot.slane %v6755_v49, %v12144_v39  ;;  %v12347_v2 = vrot.slane %v6755_v49, %v12147_v15 }
 0x51b   : > { %3563 = vrot.lane.b32.xlu1 %v12250_v59, %s9379_s14  ;;  %v4330_v48 = vmax.f32 %v4184_v9, 0.0  ;;  %16518 = vst [vmem:[#allocation65_spill] sm:$0xff] %v12311_v11  ;;  %v12324_v9 = vrot.slane %v6755_v49, %v12069_v45 }
 0x51c   : > { %3507 = vrot.lane.b32.xlu0 %v2642_v21, %s9379_s14  ;;  %v4179_v21 = vadd.f32 %v12246_v14, %v4178_v5  ;;  %v12300_v5 = vrot.slane %v5067_v32, %v12147_v15  ;;  %v12314_v32 = vrot.slane %v5915_v63, %v12069_v45  ;;  %16522 = vst [vmem:[#allocation45_spill] sm:$0xff] %v12334_v27  ;;  %16524 = vst [vmem:[#allocation89_spill] sm:$0xff] %v12347_v2 }
 0x51d   : > { %v12280_v10 = vpop.permute.xlu1 %2913  ;;  %16521 = vst [vmem:[#allocation115_spill] sm:$0xff] %v12324_v9  ;;  %v4442_v57 = vcombine.high %v4330_v48, %v4330_v48 }
 0x51e   : > { %v3676_v37 = vpop.permute.xlu0 %3675  ;;  %16517 = vst [vmem:[#allocation42_spill] sm:$0xff] %v12300_v5  ;;  %16519 = vst [vmem:[#allocation86_spill] sm:$0xff] %v12314_v32 }
 0x51f   : > { %v3978_v52 = vsel %vm16020_vm15, %v3945_v53, %v3676_v37  ;;  %3689 = vrot.lane.b32.xlu1 %v12288_v17, %s9380_s26  ;;  %v7794_v53 = vunpack.c.0.s8 %v7793_v8  ;;  %v12321_v8 = vrot.slane %v6755_v49, %v12057_v7  ;;  %v12327_v37 = vrot.slane %v5915_v63, %v12144_v39 }
 0x520   : > { %3633 = vrot.lane.b32.xlu0 %v2673_v0, %s9380_s26  ;;  %9129 = vmatmul.mubr.msk.f32.gmra.mrb[18].mxu1 %vm4005_vm0, %v3978_v52  ;;  %v4329_v0 = vmax.f32 %v4179_v21, 0.0  ;;  %v5076_v21 = vadd.s32 96, %v12039_v36  ;;  %v3815_v49 = vsel %vm15934_vm7, %v3783_v60, %v12053_v55 }
 0x521   : > { %v12307_v35 = vpop.permute.xlu1 %3421  ;;  %16520 = vst [vmem:[#allocation29_spill] sm:$0xff] %v12321_v8  ;;  %v12344_v18 = vsub.s32 %v7794_v53, %v12020_v1  ;;  %v3784_v53 = vsel %vm15935_vm5, %v12074_v20, %v12065_v56  ;;  %v3847_v6 = vsel %vm15933_vm9, %v3815_v49, %v12161_v51  ;;  %v12368_v1 = vrot.slane %v4330_v48, %v12164_v58 }
 0x522   : > { %v12316_v52 = vpop.permute.xlu0 %3295  ;;  %v4425_v16 = vcombine.high %v4329_v0, %v4329_v0  ;;  %v12374_v56 = vrot.slane %v5076_v21, %v12057_v7  ;;  %v12380_v20 = vrot.slane %v4329_v0, %v12164_v58  ;;  %v12383_v51 = vrot.slane %v5076_v21, %v12069_v45 }
 0x523   : > { %3691 = vrot.lane.b32.xlu1 %v12318_v62, %s9380_s26  ;;  %16523 = vst [vmem:[#allocation68_spill] sm:$0xff] %v12344_v18  ;;  %16525 = vst [vmem:[#allocation33_spill] sm:$0xff] %v12368_v1  ;;  %v12386_v48 = vrot.slane %v5068_v19, %v12057_v7  ;;  %v12396_v0 = vrot.slane %v5068_v19, %v12069_v45  ;;  %v12404_v55 = vrot.slane %v5076_v21, %v12147_v15 }
 0x524   : > { %3635 = vrot.lane.b32.xlu0 %v2674_v13, %s9380_s26  ;;  %16526 = vst [vmem:[#allocation118_spill] sm:$0xff] %v12374_v56  ;;  %16528 = vst [vmem:[#allocation67_spill] sm:$0xff] %v12380_v20  ;;  %v12391_v49 = vrot.slane %v4425_v16, %v12164_v58  ;;  %v12401_v13 = vrot.slane %v5076_v21, %v12144_v39  ;;  %v12410_v16 = vrot.slane %v5068_v19, %v12147_v15 }
 0x525   : > { %v3042_v63 = vpop.permute.xlu1 %3041  ;;  %16529 = vst [vmem:[#allocation88_spill] sm:$0xff] %v12383_v51  ;;  %16530 = vst [vmem:[#allocation35_spill] sm:$0xff] %v12386_v48 }
 0x526   : > { %v2916_v29 = vpop.permute.xlu0 %2915  ;;  %16531 = vst [vmem:[#allocation117_spill] sm:$0xff] %v12391_v49  ;;  %16532 = vst [vmem:[#allocation47_spill] sm:$0xff] %v12396_v0 }
 0x527   : > { %2927 = vrot.lane.b32.xlu1 %v12043_v25, %s9372_s17  ;;  %v12377_v25 = vrot.slane %v4442_v57, %v12164_v58  ;;  %v3880_v57 = vsel %vm15975_vm12, %v3847_v6, %v12236_v47  ;;  %16533 = vst [vmem:[#allocation70_spill] sm:$0xff] %v12401_v13  ;;  %16534 = vst [vmem:[#allocation91_spill] sm:$0xff] %v12404_v55  ;;  %v12414_v47 = vcombine.high %v12368_v1, %v12368_v1 }
 0x528   : > { %2925 = vrot.lane.b32.xlu0 %v12018_v12, %s9372_s17  ;;  %v3816_v12 = vsel %vm15934_vm7, %v3784_v53, %v12170_v34  ;;  %v12407_v34 = vrot.slane %v5068_v19, %v12144_v39  ;;  %16536 = vst [vmem:[#allocation120_spill] sm:$0xff] %v12410_v16  ;;  %v12430_v53 = vcombine.high %v12380_v20, %v12380_v20 }
 0x529   : > { %16527 = vst [vmem:[#allocation44_spill] sm:$0xff] %v12377_v25  ;;  %v3550_v60 = vpop.permute.xlu1 %3549  ;;  %16537 = vst [vmem:[#allocation46_spill] sm:$0xff] %v12414_v47  ;;  %v3848_v6 = vsel %vm15933_vm9, %v3816_v12, %v12248_v44  ;;  %v12426_v19 = vcombine.high %v12377_v25, %v12377_v25 }
 0x52a   : > { %v3424_v42 = vpop.permute.xlu0 %3423  ;;  %16535 = vst [vmem:[#allocation38_spill] sm:$0xff] %v12407_v34  ;;  %16539 = vst [vmem:[#allocation90_spill] sm:$0xff] %v12430_v53 }
 0x52b   : > { %3055 = vrot.lane.b32.xlu1 %v12172_v40, %s9374_s12  ;;  %v3785_v40 = vsel %vm15935_vm5, %v12091_v4, %v12280_v10  ;;  %16538 = vst [vmem:[#allocation69_spill] sm:$0xff] %v12426_v19  ;;  %v12436_v4 = vcombine.high %v12391_v49, %v12391_v49  ;;  %v3913_v10 = vsel %vm15971_vm13, %v3880_v57, %v12307_v35 }
 0x52c   : > { %3053 = vrot.lane.b32.xlu0 %v12122_v33, %s9374_s12  ;;  %v3881_v33 = vsel %vm15975_vm12, %v3848_v6, %v12316_v52  ;;  %v3817_v35 = vsel %vm15934_vm7, %v3785_v40, %v3042_v63  ;;  %v3786_v52 = vsel %vm15935_vm5, %v12086_v3, %v2916_v29  ;;  %v12456_v6 = vadd.s32 112, %v12029_v30 }
 0x52d   : > { %v3170_v5 = vpop.permute.xlu1 %3169  ;;  %16540 = vst [vmem:[#allocation100_spill] sm:$0xff] %v12436_v4  ;;  %v3946_v12 = vsel %vm16026_vm14, %v3913_v10, %v3550_v60  ;;  %v3914_v44 = vsel %vm15971_vm13, %v3881_v33, %v3424_v42 }
 0x52e   : > { %v3044_v21 = vpop.permute.xlu0 %3043  ;;  %v3849_v4 = vsel %vm15933_vm9, %v3817_v35, %v3170_v5  ;;  %v2640_v35 = vld [vmem:[#allocation3 + $0x1a0] sm:$0xff] }
 0x52f   : > { %3183 = vrot.lane.b32.xlu1 %v12250_v59, %s9376_s18  ;;  %v9106_v53 = vpop.f32.mrb[2].mxu1  ;;  %v3818_v60 = vsel %vm15934_vm7, %v3786_v52, %v3044_v21 }
 0x530   : > { %v4194_v57 = vadd.f32 %v9106_v53, %v12246_v14  ;;  %3181 = vrot.lane.b32.xlu0 %v12213_v24, %s9376_s18  ;;  %v4188_v59 = vpop.f32.mrb[3].mxu1  ;;  %v12465_v24 = vrot.slane %v12456_v6, %v12057_v7  ;;  %v12469_v53 = vrot.slane %v12456_v6, %v12069_v45 }
 0x531   : > { %v4189_v63 = vadd.f32 %v12246_v14, %v4188_v59  ;;  %v3678_v40 = vpop.permute.xlu1 %3677  ;;  %v2639_v59 = vld [vmem:[#allocation3 + $0x198] sm:$0xff] }
 0x532   : > { %v4332_v49 = vmax.f32 %v4194_v57, 0.0  ;;  %v3979_v3 = vsel %vm16020_vm15, %v3946_v12, %v3678_v40  ;;  %v3552_v29 = vpop.permute.xlu0 %3551  ;;  %16541 = vst [vmem:[#allocation119_spill] sm:$0xff] %v12465_v24  ;;  %16542 = vst [vmem:[#allocation49_spill] sm:$0xff] %v12469_v53  ;;  %v12479_v12 = vadd.s32 112, %v12039_v36 }
 0x533   : > { %v4331_v42 = vmax.f32 %v4189_v63, 0.0  ;;  %v12473_v5 = vsel %vm16026_vm14, %v3914_v44, %v3552_v29  ;;  %3311 = vrot.lane.b32.xlu1 %v12318_v62, %s9377_s16  ;;  %9131 = vmatprep.mubr.msk.f32.mxu1 %vm4005_vm0, %v3979_v3 }
 0x534   : > { %v4476_v10 = vcombine.high %v4332_v49, %v4332_v49  ;;  %v4483_v33 = vrot.slane %v4332_v49, %v12164_v58  ;;  %3309 = vrot.lane.b32.xlu0 %v12288_v17, %s9377_s16  ;;  %v12491_v63 = vrot.slane %v12479_v12, %v12057_v7  ;;  %v12495_v49 = vrot.slane %v12479_v12, %v12069_v45 }
 0x535   : > { %v4459_v52 = vcombine.high %v4331_v42, %v4331_v42  ;;  %v12487_v57 = vrot.slane %v4331_v42, %v12164_v58  ;;  %v3298_v62 = vpop.permute.xlu1 %3297 }
 0x536   : > { %16543 = vst [vmem:[#allocation72_spill] sm:$0xff] %v12491_v63  ;;  %16544 = vst [vmem:[#allocation93_spill] sm:$0xff] %v12495_v49  ;;  %v4490_v17 = vrot.slane %v4476_v10, %v12164_v58  ;;  %v4491_v40 = vcombine.high %v4483_v33, %v4483_v33  ;;  %v5093_v3 = vrot.slane %v4483_v33, 7  ;;  %v12499_v29 = vsel %vm15975_vm12, %v3849_v4, %v3298_v62  ;;  %v3172_v44 = vpop.permute.xlu0 %3171  ;;  %v2672_v4 = vld [vmem:[#allocation3 + $0x1a1] sm:$0xff] }
 0x537   : > { %v4473_v42 = vrot.slane %v4459_v52, %v12164_v58  ;;  %v4474_v21 = vcombine.high %v12487_v57, %v12487_v57  ;;  %v5089_v19 = vrot.slane %v12487_v57, 7  ;;  %v12506_v20 = vsel %vm15933_vm9, %v3818_v60, %v3172_v44  ;;  %3439 = vrot.lane.b32.xlu1 %v2640_v35, %s9378_s29  ;;  %v2671_v44 = vld [vmem:[#allocation3 + $0x199] sm:$0xff] }
 0x538   : > { %v4492_v25 = vcombine.high %v4490_v17, %v4490_v17  ;;  %v5094_v10 = vrot.slane %v4491_v40, 7  ;;  %v5095_v47 = vrot.slane %v4490_v17, 7  ;;  %vm5221_vm1 = vcmp.gt.f32.partialorder %v4483_v33, %v5093_v3  ;;  %3437 = vrot.lane.b32.xlu0 %v2639_v59, %s9378_s29 }
 0x539   : > { %v16545_v62 = vrot.slane %v12128_v31, 7  ;;  %v16546_v52 = vrot.slane %v12114_v22, 7  ;;  %v5861_v18 = vsel %vm5221_vm1, %v4483_v33, %v5093_v3  ;;  %v4475_v53 = vcombine.high %v4473_v42, %v4473_v42  ;;  %v12516_v60 = vpop.permute.xlu1 %2917 }
 0x53a   : > { %v5090_v24 = vrot.slane %v4474_v21, 7  ;;  %v5096_v35 = vrot.slane %v4492_v25, 7  ;;  %vm12518_vm3 = vcmp.gt.f32.partialorder %v4491_v40, %v5094_v10  ;;  %vm5223_vm4 = vcmp.gt.f32.partialorder %v4490_v17, %v5095_v47  ;;  %v3680_v16 = vpop.permute.xlu0 %3679 }
 0x53b   : > { %v12514_v1 = vsel %vm5221_vm1, %v16546_v52, %v16545_v62  ;;  %v6009_v59 = vrot.slane %v5861_v18, 7  ;;  %v5798_v62 = vsel %vm12518_vm3, %v12114_v22, %v12128_v31  ;;  %v16549_v33 = vrot.slane %v12131_v26, 7  ;;  %3567 = vrot.lane.b32.xlu1 %v2672_v4, %s9379_s14  ;;  %v2704_v31 = vld [vmem:[#allocation3 + $0x1a2] sm:$0xff]  ;;  %v2703_v4 = vld [vmem:[#allocation3 + $0x19a] sm:$0xff] }
 0x53c   : > { %v16550_v3 = vrot.slane %v12125_v28, 7  ;;  %v5862_v13 = vsel %vm12518_vm3, %v4491_v40, %v5094_v10  ;;  %v5863_v34 = vsel %vm5223_vm4, %v4490_v17, %v5095_v47  ;;  %vm12535_vm6 = vcmp.gt.f32.partialorder %v4492_v25, %v5096_v35  ;;  %3565 = vrot.lane.b32.xlu0 %v2671_v44, %s9379_s14 }
 0x53d   : > { %v12539_v51 = vrot.slane %v6009_v59, 2  ;;  %v6011_v0 = vrot.slane %v5862_v13, 7  ;;  %v6013_v22 = vrot.slane %v5863_v34, 7  ;;  %v5800_v55 = vsel %vm12535_vm6, %v12125_v28, %v12131_v26  ;;  %v3426_v10 = vpop.permute.xlu1 %3425 }
 0x53e   : > { %v12530_v52 = vsel %vm5223_vm4, %v16550_v3, %v16549_v33  ;;  %v5864_v47 = vsel %vm12535_vm6, %v4492_v25, %v5096_v35  ;;  %v12549_v40 = vrot.slane %v5798_v62, 9  ;;  %v3300_v33 = vpop.permute.xlu0 %3299  ;;  %v12556_v3 = vrot.slane %v5800_v55, 9 }
 0x53f   : > { %v12551_v59 = vrot.slane %v6011_v0, 2  ;;  %v12553_v13 = vrot.slane %v6013_v22, 2  ;;  %v6015_v34 = vrot.slane %v5864_v47, 7  ;;  %v5091_v28 = vrot.slane %v4473_v42, 7  ;;  %3695 = vrot.lane.b32.xlu1 %v2704_v31, %s9380_s26 }
 0x540   : > { %16553 = vst [vmem:[#allocation102_spill] sm:$0xff] %v12549_v40  ;;  %16555 = vst [vmem:[#allocation48_spill] sm:$0xff] %v12556_v3  ;;  %v5092_v26 = vrot.slane %v4475_v53, 7  ;;  %vm5217_vm8 = vcmp.gt.f32.partialorder %v12487_v57, %v5089_v19  ;;  %vm12562_vm10 = vcmp.gt.f32.partialorder %v4474_v21, %v5090_v24  ;;  %v16559_v0 = vrot.slane %v12188_v23, 7  ;;  %3693 = vrot.lane.b32.xlu0 %v2703_v4, %s9380_s26 }
 0x541   : > { %16554 = vst [vmem:[#allocation122_spill] sm:$0xff] %v12551_v59  ;;  %v12560_v25 = vrot.slane %v6015_v34, 2  ;;  %v16560_v62 = vrot.slane %v12182_v54, 7  ;;  %v5857_v22 = vsel %vm5217_vm8, %v12487_v57, %v5089_v19  ;;  %vm5219_vm11 = vcmp.gt.f32.partialorder %v4473_v42, %v5091_v28  ;;  %v3046_v34 = vpop.permute.xlu1 %3045 }
 0x542   : > { %vm12574_vm1 = vcmp.gt.f32.partialorder %v4475_v53, %v5092_v26  ;;  %v5794_v31 = vsel %vm12562_vm10, %v12182_v54, %v12188_v23  ;;  %v5858_v47 = vsel %vm12562_vm10, %v4474_v21, %v5090_v24  ;;  %v16564_v19 = vrot.slane %v12185_v41, 7  ;;  %v2920_v54 = vpop.permute.xlu0 %2919 }
 0x543   : > { %16556 = vst [vmem:[#allocation71_spill] sm:$0xff] %v12560_v25  ;;  %v12570_v18 = vsel %vm5217_vm8, %v16560_v62, %v16559_v0  ;;  %v16563_v0 = vrot.slane %v12194_v61, 7  ;;  %v5796_v4 = vsel %vm12574_vm1, %v12185_v41, %v12194_v61  ;;  %v5859_v62 = vsel %vm5219_vm11, %v4473_v42, %v5091_v28 }
 0x544   : > { %v5860_v44 = vsel %vm12574_vm1, %v4475_v53, %v5092_v26  ;;  %v6001_v23 = vrot.slane %v5857_v22, 7  ;;  %v6003_v35 = vrot.slane %v5858_v47, 7  ;;  %v6005_v24 = vrot.slane %v5859_v62, 7 }
 0x545   : > { %v12588_v57 = vsel %vm5219_vm11, %v16564_v19, %v16563_v0  ;;  %v6007_v21 = vrot.slane %v5860_v44, 7  ;;  %v12597_v3 = vrot.slane %v5794_v31, 9  ;;  %v12600_v19 = vrot.slane %v5796_v4, 9  ;;  %v3554_v42 = vpop.permute.xlu1 %3553 }
 0x546   : > { %v12602_v40 = vrot.slane %v6001_v23, 2  ;;  %v12604_v41 = vrot.slane %v6003_v35, 2  ;;  %v12606_v61 = vrot.slane %v6005_v24, 2  ;;  %v3787_v44 = vsel %vm15935_vm5, %v12101_v38, %v12516_v60  ;;  %v3428_v55 = vpop.permute.xlu0 %3427 }
 0x547   : > { %16565 = vst [vmem:[#allocation92_spill] sm:$0xff] %v12600_v19  ;;  %v12608_v53 = vrot.slane %v6007_v21, 2  ;;  %v3980_v28 = vsel %vm16020_vm15, %v12473_v5, %v3680_v16  ;;  %v3915_v26 = vsel %vm15971_vm13, %v12499_v29, %v3426_v10  ;;  %v3883_v22 = vsel %vm15975_vm12, %v12506_v20, %v3300_v33  ;;  %v9109_v16 = vpop.f32.mrb[4].mxu1 }
 0x548   : > { %16566 = vst [vmem:[#allocation101_spill] sm:$0xff] %v12604_v41  ;;  %9132 = vmatmul.mubr.msk.f32.gmra.mrb[20].mxu1 %vm4005_vm0, %v3980_v28  ;;  %v3819_v31 = vsel %vm15934_vm7, %v3787_v44, %v3046_v34  ;;  %v3788_v47 = vsel %vm15935_vm5, %v12096_v43, %v2920_v54  ;;  %v3948_v4 = vsel %vm16026_vm14, %v3915_v26, %v3554_v42  ;;  %v4198_v29 = vpop.f32.mrb[5].mxu1  ;;  %v12652_v42 = vadd.s32 128, %v12029_v30 }
 0x549   : > { %16567 = vst [vmem:[#allocation121_spill] sm:$0xff] %v12608_v53  ;;  %v12625_v38 = vsel %vm15971_vm13, %v3883_v22, %v3428_v55  ;;  %v4204_v5 = vadd.f32 %v9109_v16, %v12246_v14  ;;  %v12632_v10 = vrot.slane %v12456_v6, %v12144_v39  ;;  %v4199_v33 = vadd.f32 %v12246_v14, %v4198_v29  ;;  %v3174_v43 = vpop.permute.xlu1 %3173 }
 0x54a   : > { %v12637_v34 = vrot.slane %v12456_v6, %v12147_v15  ;;  %v12641_v62 = vrot.slane %v12479_v12, %v12144_v39  ;;  %v12645_v54 = vrot.slane %v12479_v12, %v12147_v15  ;;  %v12648_v35 = vsel %vm15933_vm9, %v3819_v31, %v3174_v43  ;;  %v3048_v24 = vpop.permute.xlu0 %3047 }
 0x54b   : > { %16568 = vst [vmem:[#allocation51_spill] sm:$0xff] %v12632_v10  ;;  %v4334_v23 = vmax.f32 %v4204_v5, 0.0  ;;  %vm16163_vm3 = vcmask 1041409   ;;  %v4333_v6 = vmax.f32 %v4199_v33, 0.0  ;;  %v12655_v44 = vsel %vm15934_vm7, %v3788_v47, %v3048_v24 }
 0x54c   : > { %16569 = vst [vmem:[#allocation74_spill] sm:$0xff] %v12637_v34  ;;  %16570 = vst [vmem:[#allocation95_spill] sm:$0xff] %v12641_v62  ;;  %v12662_v31 = vadd.s32 128, %v12039_v36  ;;  %v12669_v47 = vrot.slane %v12652_v42, %v12057_v7  ;;  %v12673_v33 = vrot.slane %v12652_v42, %v12069_v45 }
 0x54d   : > { %16571 = vst [vmem:[#allocation104_spill] sm:$0xff] %v12645_v54  ;;  %v4510_v26 = vcombine.high %v4334_v23, %v4334_v23  ;;  %v4517_v22 = vrot.slane %v4334_v23, %v12164_v58  ;;  %v4493_v16 = vcombine.high %v4333_v6, %v4333_v6  ;;  %v12665_v5 = vrot.slane %v4333_v6, %v12164_v58  ;;  %v3682_v29 = vpop.permute.xlu1 %3681 }
 0x54e   : > { %16572 = vst [vmem:[#allocation124_spill] sm:$0xff] %v12669_v47  ;;  %16573 = vst [vmem:[#allocation50_spill] sm:$0xff] %v12673_v33  ;;  %v3981_v24 = vsel %vm16020_vm15, %v3948_v4, %v3682_v29  ;;  %v3556_v28 = vpop.permute.xlu0 %3555  ;;  %v16575_v6 = vrot.slane %v12514_v1, 9  ;;  %v16578_v4 = vrot.slane %v12530_v52, 9  ;;  %v16579_v29 = vld [vmem:[#allocation64_spill] sm:$0xff]  ;;  %v16621_v33 = vld [vmem:[#allocation66_spill] sm:$0xff] }
 0x54f   : > { %v4524_v43 = vrot.slane %v4510_v26, %v12164_v58  ;;  %v12676_v23 = vcombine.high %v4517_v22, %v4517_v22  ;;  %vm6189_vm4 = vcmp.gt.f32.partialorder %v4517_v22, %v12539_v51  ;;  %v4507_v12 = vrot.slane %v4493_v16, %v12164_v58  ;;  %9134 = vmatprep.mubr.msk.f32.mxu1 %vm4005_vm0, %v3981_v24  ;;  %v16623_v47 = vld [vmem:[#allocation113_spill] sm:$0xff] }
 0x550   : > { %v6637_v21 = vsel %vm6189_vm4, %v12197_v46, %v16575_v6  ;;  %v6701_v55 = vsel %vm6189_vm4, %v4517_v22, %v12539_v51  ;;  %v12687_v20 = vcombine.high %v12665_v5, %v12665_v5  ;;  %v16580_v46 = vld [vmem:[#allocation85_spill] sm:$0xff]  ;;  %v16624_v62 = vrot.slane %v16623_v47, 7 }
 0x551   : > { %16574 = vst [vmem:[#allocation73_spill] sm:$0xff] %v12676_v23  ;;  %v12690_v26 = vcombine.high %v4524_v43, %v4524_v43  ;;  %vm15904_vm6 = vcmp.gt.f32.partialorder %v12676_v23, %v12551_v59  ;;  %vm6191_vm8 = vcmp.gt.f32.partialorder %v4524_v43, %v12553_v13  ;;  %v6837_v1 = vrot.slane %v6701_v55, 7  ;;  %v3302_v60 = vpop.permute.xlu1 %3301 }
 0x552   : > { %16576 = vst [vmem:[#allocation94_spill] sm:$0xff] %v12687_v20  ;;  %v6639_v51 = vsel %vm6191_vm8, %v16579_v29, %v16578_v4  ;;  %v6702_v16 = vsel %vm15904_vm6, %v12676_v23, %v12551_v59  ;;  %v6703_v24 = vsel %vm6191_vm8, %v4524_v43, %v12553_v13  ;;  %v7285_v6 = vrot.slane %v6637_v21, 7  ;;  %v3176_v55 = vpop.permute.xlu0 %3175 }
 0x553   : > { %16577 = vst [vmem:[#allocation103_spill] sm:$0xff] %v12690_v26  ;;  %v6838_v0 = vrot.slane %v6702_v16, 7  ;;  %v6839_v17 = vrot.slane %v6703_v24, 7  ;;  %vm6965_vm11 = vcmp.gt.f32.partialorder %v4517_v22, %v6837_v1  ;;  %v7287_v52 = vrot.slane %v6639_v51, 7  ;;  %v16587_v24 = vld [vmem:[#allocation25_spill] sm:$0xff] }
 0x554   : > { %v16581_v4 = vrot.slane %v16580_v46, 7  ;;  %v7413_v19 = vsel %vm6965_vm11, %v4517_v22, %v6837_v1  ;;  %v12710_v54 = vcombine.high %v4507_v12, %v4507_v12  ;;  %v16584_v13 = vmov 0 }
 0x555   : > { %vm12713_vm1 = vcmp.gt.f32.partialorder %v12676_v23, %v6838_v0  ;;  %vm6967_vm4 = vcmp.gt.f32.partialorder %v4524_v43, %v6839_v17  ;;  %v7577_v21 = vrot.slane %v7413_v19, 1  ;;  %v16588_v26 = vrot.slane %v16587_v24, 7  ;;  %v2922_v1 = vpop.permute.xlu1 %2921 }
 0x556   : > { %v12708_v29 = vsel %vm6965_vm11, %v16581_v4, %v7285_v6  ;;  %16583 = vst [vmem:[#allocation53_spill] sm:$0xff] %v12710_v54  ;;  %v16585_v13 = vsel %vm12713_vm1, 4294967295, %v16584_v13  ;;  %v12725_v51 = vsel %vm12713_vm1, %v12676_v23, %v6838_v0  ;;  %v12727_v22 = vsel %vm6967_vm4, %v4524_v43, %v6839_v17  ;;  %v16594_v0 = vld [vmem:[#allocation114_spill] sm:$0xff]  ;;  %v16596_v6 = vld [vmem:[#allocation39_spill] sm:$0xff] }
 0x557   : > { %16582 = vst [vmem:[#allocation123_spill] sm:$0xff] %v12708_v29  ;;  %16586 = vst [vmem:[#allocation76_spill] sm:$0xff] %v16585_v13  ;;  %v12720_v25 = vsel %vm6967_vm4, %v16588_v26, %v7287_v52  ;;  %vm6185_vm8 = vcmp.gt.f32.partialorder %v12665_v5, %v12602_v40  ;;  %v12733_v19 = vsel %vm16163_vm3, %v12725_v51, %v7577_v21  ;;  %v3684_v52 = vpop.permute.xlu0 %3683  ;;  %v16593_v17 = vrot.slane %v12570_v18, 9 }
 0x558   : > { %16589 = vst [vmem:[#allocation97_spill] sm:$0xff] %v12720_v25  ;;  %16590 = vst [vmem:[#allocation41_spill] sm:$0xff] %v12725_v51  ;;  %vm6186_vm11 = vcmp.gt.f32.partialorder %v12687_v20, %v12604_v41  ;;  %vm6187_vm2 = vcmp.gt.f32.partialorder %v4507_v12, %v12606_v61  ;;  %v6697_v4 = vsel %vm6185_vm8, %v12665_v5, %v12602_v40  ;;  %v16595_v21 = vrot.slane %v12588_v57, 9 }
 0x559   : > { %16591 = vst [vmem:[#allocation126_spill] sm:$0xff] %v12727_v22  ;;  %16592 = vst [vmem:[#allocation52_spill] sm:$0xff] %v12733_v19  ;;  %v6633_v43 = vsel %vm6185_vm8, %v16594_v0, %v16593_v17  ;;  %v6698_v16 = vsel %vm6186_vm11, %v12687_v20, %v12604_v41  ;;  %v6699_v25 = vsel %vm6187_vm2, %v4507_v12, %v12606_v61  ;;  %v6833_v24 = vrot.slane %v6697_v4, 7  ;;  %v3430_v13 = vpop.permute.xlu1 %3429 }
 0x55a   : > { %v6635_v26 = vsel %vm6187_vm2, %v16596_v6, %v16595_v21  ;;  %v6834_v22 = vrot.slane %v6698_v16, 7  ;;  %v6835_v18 = vrot.slane %v6699_v25, 7  ;;  %v7281_v29 = vrot.slane %v6633_v43, 7  ;;  %v16600_v25 = vld [vmem:[#allocation63_spill] sm:$0xff] }
 0x55b   : > { %v7283_v17 = vrot.slane %v6635_v26, 7  ;;  %vm6961_vm8 = vcmp.gt.f32.partialorder %v12665_v5, %v6833_v24  ;;  %v3949_v40 = vsel %vm16026_vm14, %v12625_v38, %v3556_v28  ;;  %v3884_v57 = vsel %vm15975_vm12, %v12648_v35, %v3302_v60  ;;  %v3304_v46 = vpop.permute.xlu0 %3303  ;;  %v16603_v38 = vld [vmem:[#allocation84_spill] sm:$0xff] }
 0x55c   : > { %v3852_v21 = vsel %vm15933_vm9, %v12655_v44, %v3176_v55  ;;  %vm12764_vm2 = vcmp.gt.f32.partialorder %v12687_v20, %v6834_v22  ;;  %v16597_v61 = vmov 0  ;;  %vm6963_vm10 = vcmp.gt.f32.partialorder %v4507_v12, %v6835_v18  ;;  %v16609_v55 = vld [vmem:[#allocation112_spill] sm:$0xff] }
 0x55d   : > { %v16598_v61 = vsel %vm12764_vm2, 4294967295, %v16597_v61  ;;  %v16601_v16 = vrot.slane %v16600_v25, 7  ;;  %v7409_v43 = vsel %vm6961_vm8, %v12665_v5, %v6833_v24  ;;  %v16604_v28 = vrot.slane %v16603_v38, 7  ;;  %v2994_v24 = vpop.permute.xlu1 %2993  ;;  %v16616_v38 = vld [vmem:[#allocation16_spill] sm:$0xff]  ;;  %v16619_v25 = vld [vmem:[#allocation22_spill] sm:$0xff] }
 0x55e   : > { %16599 = vst [vmem:[#allocation75_spill] sm:$0xff] %v16598_v61  ;;  %v12780_v60 = vsel %vm12764_vm2, %v12687_v20, %v6834_v22  ;;  %v12782_v35 = vsel %vm6963_vm10, %v4507_v12, %v6835_v18  ;;  %v7563_v44 = vrot.slane %v7409_v43, 1  ;;  %v3982_v22 = vsel %vm16020_vm15, %v3949_v40, %v3684_v52  ;;  %v16617_v61 = vld [vmem:[#allocation43_spill] sm:$0xff] }
 0x55f   : > { %v12770_v26 = vsel %vm6961_vm8, %v16601_v16, %v7281_v29  ;;  %v12775_v4 = vsel %vm6963_vm10, %v16604_v28, %v7283_v17  ;;  %16606 = vst [vmem:[#allocation125_spill] sm:$0xff] %v12782_v35  ;;  %v16607_v16 = vld [vmem:[#allocation36_spill] sm:$0xff]  ;;  %v3917_v12 = vsel %vm15971_vm13, %v3884_v57, %v3430_v13  ;;  %v3885_v18 = vsel %vm15975_vm12, %v3852_v21, %v3304_v46  ;;  %v2924_v43 = vpop.permute.xlu0 %2923  ;;  %v16608_v28 = vld [vmem:[#allocation111_spill] sm:$0xff] }
 0x560   : > { %16602 = vst [vmem:[#allocation96_spill] sm:$0xff] %v12770_v26  ;;  %16605 = vst [vmem:[#allocation105_spill] sm:$0xff] %v12775_v4  ;;  %v3789_v5 = vsel %vm15935_vm5, %v16607_v16, %v2922_v1  ;;  %v12791_v17 = vsel %vm16163_vm3, %v12780_v60, %v7563_v44  ;;  %9135 = vmatmul.mubr.msk.f32.gmra.mrb[22].mxu1 %vm4005_vm0, %v3982_v22  ;;  %v12799_v29 = vsel %vm15934_vm7, %v16608_v28, %v2994_v24  ;;  %v9112_v16 = vpop.f32.mrb[6].mxu1 }
 0x561   : > { %v12803_v1 = vsel %vm15935_vm5, %v16609_v55, %v2924_v43  ;;  %v12807_v44 = vrot.slane %v12662_v31, %v12057_v7  ;;  %v12811_v13 = vrot.slane %v12662_v31, %v12069_v45  ;;  %v4214_v46 = vadd.f32 %v9112_v16, %v12246_v14  ;;  %v4208_v52 = vpop.f32.mrb[7].mxu1  ;;  %v3432_v24 = vpop.permute.xlu1 %3431 }
 0x562   : > { %v12818_v21 = vrot.slane %v12662_v31, %v12144_v39  ;;  %v4209_v55 = vadd.f32 %v12246_v14, %v4208_v52  ;;  %v12825_v28 = vrot.slane %v12662_v31, %v12147_v15  ;;  %v12828_v59 = vsel %vm15971_vm13, %v3885_v18, %v3432_v24 }
 0x563   : > { %16610 = vst [vmem:[#allocation55_spill] sm:$0xff] %v12807_v44  ;;  %16611 = vst [vmem:[#allocation78_spill] sm:$0xff] %v12811_v13  ;;  %v4336_v16 = vmax.f32 %v4214_v46, 0.0  ;;  %v3050_v57 = vpop.permute.xlu0 %3049  ;;  %v12833_v23 = vrot.slane %v12652_v42, %v12144_v39  ;;  %v12841_v31 = vrot.slane %v12652_v42, %v12147_v15  ;;  %v12846_v40 = vadd.s32 144, %v12029_v30 }
 0x564   : > { %16612 = vst [vmem:[#allocation99_spill] sm:$0xff] %v12818_v21  ;;  %16613 = vst [vmem:[#allocation107_spill] sm:$0xff] %v12825_v28  ;;  %v4335_v52 = vmax.f32 %v4209_v55, 0.0  ;;  %v12836_v22 = vsel %vm15934_vm7, %v3789_v5, %v3050_v57  ;;  %v12851_v57 = vadd.s32 144, %v12039_v36  ;;  %v16620_v28 = vrot.slane %v16619_v25, 7 }
 0x565   : > { %16614 = vst [vmem:[#allocation128_spill] sm:$0xff] %v12833_v23  ;;  %16615 = vst [vmem:[#allocation54_spill] sm:$0xff] %v12841_v31  ;;  %v4544_v46 = vcombine.high %v4336_v16, %v4336_v16  ;;  %v4551_v18 = vrot.slane %v4336_v16, %v12164_v58  ;;  %v2996_v19 = vpop.permute.xlu1 %2995  ;;  %v16622_v44 = vrot.slane %v16621_v33, 7 }
 0x566   : > { %v4527_v51 = vcombine.high %v4335_v52, %v4335_v52  ;;  %v4534_v55 = vrot.slane %v4335_v52, %v12164_v58  ;;  %v12856_v16 = vsel %vm15934_vm7, %v16616_v38, %v2996_v19 }
 0x567   : > { %v4558_v42 = vrot.slane %v4544_v46, %v12164_v58  ;;  %v4559_v43 = vcombine.high %v4551_v18, %v4551_v18  ;;  %v5101_v4 = vrot.slane %v4551_v18, 7  ;;  %v3558_v24 = vpop.permute.xlu0 %3557  ;;  %v16618_v46 = vrot.slane %v16617_v61, 7 }
 0x568   : > { %v4541_v6 = vrot.slane %v4527_v51, %v12164_v58  ;;  %v4542_v35 = vcombine.high %v4534_v55, %v4534_v55  ;;  %v5097_v54 = vrot.slane %v4534_v55, 7  ;;  %v12860_v52 = vsel %vm16026_vm14, %v3917_v12, %v3558_v24 }
 0x569   : > { %v4560_v5 = vcombine.high %v4558_v42, %v4558_v42  ;;  %v5102_v53 = vrot.slane %v4559_v43, 7  ;;  %v5103_v26 = vrot.slane %v4558_v42, 7  ;;  %vm5229_vm10 = vcmp.gt.f32.partialorder %v4551_v18, %v5101_v4  ;;  %v3122_v23 = vpop.permute.xlu1 %3121 }
 0x56a   : > { %v12866_v31 = vsel %vm5229_vm10, %v16620_v28, %v16618_v46  ;;  %v5869_v19 = vsel %vm5229_vm10, %v4551_v18, %v5101_v4  ;;  %v4543_v38 = vcombine.high %v4541_v6, %v4541_v6  ;;  %v5098_v21 = vrot.slane %v4542_v35, 7 }
 0x56b   : > { %v5104_v51 = vrot.slane %v4560_v5, 7  ;;  %vm5230_vm8 = vcmp.gt.f32.partialorder %v4559_v43, %v5102_v53  ;;  %vm5231_vm6 = vcmp.gt.f32.partialorder %v4558_v42, %v5103_v26  ;;  %v6025_v13 = vrot.slane %v5869_v19, 7  ;;  %v3052_v12 = vpop.permute.xlu0 %3051 }
 0x56c   : > { %v5806_v24 = vsel %vm5230_vm8, %v16619_v25, %v16617_v61  ;;  %v12874_v34 = vsel %vm5231_vm6, %v16624_v62, %v16622_v44  ;;  %v5870_v28 = vsel %vm5230_vm8, %v4559_v43, %v5102_v53  ;;  %v5871_v46 = vsel %vm5231_vm6, %v4558_v42, %v5103_v26  ;;  %v16637_v26 = vld [vmem:[#allocation42_spill] sm:$0xff] }
 0x56d   : > { %vm5232_vm10 = vcmp.gt.f32.partialorder %v4560_v5, %v5104_v51  ;;  %v12876_v4 = vrot.slane %v6025_v13, 2  ;;  %v6027_v18 = vrot.slane %v5870_v28, 7  ;;  %v6029_v10 = vrot.slane %v5871_v46, 7  ;;  %v3560_v25 = vpop.permute.xlu1 %3559 }
 0x56e   : > { %v5808_v19 = vsel %vm5232_vm10, %v16623_v47, %v16621_v33  ;;  %v5872_v49 = vsel %vm5232_vm10, %v4560_v5, %v5104_v51  ;;  %v12881_v61 = vrot.slane %v5806_v24, 9  ;;  %v5099_v43 = vrot.slane %v4541_v6, 7  ;;  %v16631_v5 = vld [vmem:[#allocation116_spill] sm:$0xff]  ;;  %v16633_v24 = vld [vmem:[#allocation87_spill] sm:$0xff] }
 0x56f   : > { %v12883_v56 = vrot.slane %v6027_v18, 2  ;;  %v12885_v62 = vrot.slane %v6029_v10, 2  ;;  %v6031_v53 = vrot.slane %v5872_v49, 7  ;;  %v3178_v44 = vpop.permute.xlu0 %3177  ;;  %v12888_v13 = vrot.slane %v5808_v19, 9 }
 0x570   : > { %16625 = vst [vmem:[#allocation77_spill] sm:$0xff] %v12881_v61  ;;  %v5100_v42 = vrot.slane %v4543_v38, 7  ;;  %vm5225_vm6 = vcmp.gt.f32.partialorder %v4534_v55, %v5097_v54  ;;  %vm12892_vm8 = vcmp.gt.f32.partialorder %v4542_v35, %v5098_v21  ;;  %v16632_v51 = vrot.slane %v16631_v5, 7 }
 0x571   : > { %16626 = vst [vmem:[#allocation98_spill] sm:$0xff] %v12883_v56  ;;  %16627 = vst [vmem:[#allocation106_spill] sm:$0xff] %v12888_v13  ;;  %v12890_v47 = vrot.slane %v6031_v53, 2  ;;  %v16634_v10 = vrot.slane %v16633_v24, 7  ;;  %v5865_v49 = vsel %vm5225_vm6, %v4534_v55, %v5097_v54  ;;  %vm5227_vm10 = vcmp.gt.f32.partialorder %v4541_v6, %v5099_v43  ;;  %v3124_v53 = vpop.permute.xlu1 %3123  ;;  %v16639_v13 = vld [vmem:[#allocation31_spill] sm:$0xff] }
 0x572   : > { %vm12902_vm4 = vcmp.gt.f32.partialorder %v4543_v38, %v5100_v42  ;;  %v5802_v18 = vsel %vm12892_vm8, %v16633_v24, %v16631_v5  ;;  %v5866_v19 = vsel %vm12892_vm8, %v4542_v35, %v5098_v21  ;;  %v16638_v63 = vrot.slane %v16637_v26, 7 }
 0x573   : > { %16628 = vst [vmem:[#allocation127_spill] sm:$0xff] %v12890_v47  ;;  %v12900_v28 = vsel %vm5225_vm6, %v16634_v10, %v16632_v51  ;;  %v16640_v51 = vrot.slane %v16639_v13, 7  ;;  %v5804_v54 = vsel %vm12902_vm4, %v16639_v13, %v16637_v26  ;;  %v5867_v55 = vsel %vm5227_vm10, %v4541_v6, %v5099_v43  ;;  %v3686_v5 = vpop.permute.xlu0 %3685 }
 0x574   : > { %v5868_v61 = vsel %vm12902_vm4, %v4543_v38, %v5100_v42  ;;  %v6017_v24 = vrot.slane %v5865_v49, 7  ;;  %v6019_v33 = vrot.slane %v5866_v19, 7  ;;  %v6021_v35 = vrot.slane %v5867_v55, 7 }
 0x575   : > { %v12916_v10 = vsel %vm5227_vm10, %v16640_v51, %v16638_v63  ;;  %v6023_v21 = vrot.slane %v5868_v61, 7  ;;  %v12925_v41 = vrot.slane %v5802_v18, 9  ;;  %v12928_v51 = vrot.slane %v5804_v54, 9  ;;  %v3250_v13 = vpop.permute.xlu1 %3249 }
 0x576   : > { %v12930_v20 = vrot.slane %v6017_v24, 2  ;;  %v12932_v26 = vrot.slane %v6019_v33, 2  ;;  %v12934_v6 = vrot.slane %v6021_v35, 2  ;;  %v3825_v61 = vsel %vm15933_vm9, %v12799_v29, %v3122_v23 }
 0x577   : > { %16641 = vst [vmem:[#allocation57_spill] sm:$0xff] %v12928_v51  ;;  %v12936_v38 = vrot.slane %v6023_v21, 2  ;;  %v3822_v43 = vsel %vm15934_vm7, %v12803_v1, %v3052_v12  ;;  %v3951_v42 = vsel %vm16026_vm14, %v12828_v59, %v3560_v25  ;;  %v3853_v49 = vsel %vm15933_vm9, %v12836_v22, %v3178_v44  ;;  %v3180_v46 = vpop.permute.xlu0 %3179  ;;  %v9115_v29 = vpop.f32.mrb[8].mxu1  ;;  %v16687_v51 = vld [vmem:[#allocation88_spill] sm:$0xff] }
 0x578   : > { %v12948_v18 = vsel %vm15933_vm9, %v12856_v16, %v3124_v53  ;;  %v3983_v19 = vsel %vm16020_vm15, %v12860_v52, %v3686_v5  ;;  %v12953_v54 = vsel %vm15975_vm12, %v3825_v61, %v3250_v13  ;;  %v3854_v23 = vsel %vm15933_vm9, %v3822_v43, %v3180_v46  ;;  %v4218_v1 = vpop.f32.mrb[9].mxu1 }
 0x579   : > { %16642 = vst [vmem:[#allocation79_spill] sm:$0xff] %v12936_v38  ;;  %9137 = vmatprep.mubr.msk.f32.mxu1 %vm4005_vm0, %v3983_v19  ;;  %v4224_v59 = vadd.f32 %v9115_v29, %v12246_v14  ;;  %v12960_v22 = vrot.slane %v12846_v40, %v12057_v7  ;;  %v12964_v16 = vrot.slane %v12846_v40, %v12069_v45  ;;  %v3688_v25 = vpop.permute.xlu1 %3687  ;;  %vm15964_vm10 = vcmask 1043459  }
 0x57a   : > { %v12968_v52 = vrot.slane %v12851_v57, %v12057_v7  ;;  %v4219_v12 = vadd.f32 %v12246_v14, %v4218_v1  ;;  %v12973_v44 = vrot.slane %v12851_v57, %v12069_v45  ;;  %v12977_v53 = vrot.slane %v12846_v40, %v12144_v39 }
 0x57b   : > { %16643 = vst [vmem:[#allocation11_spill] sm:$0xff] %v12960_v22  ;;  %16644 = vst [vmem:[#allocation108_spill] sm:$0xff] %v12964_v16  ;;  %v12981_v55 = vrot.slane %v12846_v40, %v12147_v15  ;;  %v4338_v5 = vmax.f32 %v4224_v59, 0.0  ;;  %v3984_v24 = vsel %vm16020_vm15, %v3951_v42, %v3688_v25  ;;  %v3306_v33 = vpop.permute.xlu0 %3305  ;;  %vm16165_vm7 = vcmask 1045509  }
 0x57c   : > { %16645 = vst [vmem:[#allocation129_spill] sm:$0xff] %v12968_v52  ;;  %16646 = vst [vmem:[#allocation13_spill] sm:$0xff] %v12973_v44  ;;  %v4337_v21 = vmax.f32 %v4219_v12, 0.0  ;;  %v12987_v13 = vsel %vm15975_vm12, %v3853_v49, %v3306_v33  ;;  %9138 = vmatmul.mubr.msk.f32.gmra.mrb[24].mxu1 %vm4005_vm0, %v3984_v24  ;;  %v13000_v49 = vrot.slane %v12851_v57, %v12144_v39 }
 0x57d   : > { %16647 = vst [vmem:[#allocation18_spill] sm:$0xff] %v12981_v55  ;;  %v4578_v40 = vcombine.high %v4338_v5, %v4338_v5  ;;  %v4585_v46 = vrot.slane %v4338_v5, %v12164_v58  ;;  %v3308_v1 = vpop.permute.xlu1 %3307  ;;  %v13004_v12 = vrot.slane %v12851_v57, %v12147_v15 }
 0x57e   : > { %v4561_v29 = vcombine.high %v4337_v21, %v4337_v21  ;;  %v12996_v59 = vrot.slane %v4337_v21, %v12164_v58  ;;  %v13011_v24 = vsel %vm15975_vm12, %v3854_v23, %v3308_v1  ;;  %v16650_v21 = vrot.slane %v12866_v31, 9 }
 0x57f   : > { %16648 = vst [vmem:[#allocation59_spill] sm:$0xff] %v13004_v12  ;;  %v4592_v25 = vrot.slane %v4578_v40, %v12164_v58  ;;  %v13007_v5 = vcombine.high %v4585_v46, %v4585_v46  ;;  %vm6197_vm4 = vcmp.gt.f32.partialorder %v4585_v46, %v12876_v4  ;;  %v3252_v33 = vpop.permute.xlu0 %3251  ;;  %v16652_v31 = vrot.slane %v12874_v34, 9 }
 0x580   : > { %v6645_v14 = vsel %vm6197_vm4, %v12311_v11, %v16650_v21  ;;  %v6709_v35 = vsel %vm6197_vm4, %v4585_v46, %v12876_v4  ;;  %v4575_v19 = vrot.slane %v4561_v29, %v12164_v58  ;;  %v13020_v57 = vcombine.high %v12996_v59, %v12996_v59  ;;  %v16683_v11 = vld [vmem:[#allocation118_spill] sm:$0xff] }
 0x581   : > { %16649 = vst [vmem:[#allocation21_spill] sm:$0xff] %v13007_v5  ;;  %v13022_v40 = vcombine.high %v4592_v25, %v4592_v25  ;;  %vm15930_vm6 = vcmp.gt.f32.partialorder %v13007_v5, %v12883_v56  ;;  %vm6199_vm8 = vcmp.gt.f32.partialorder %v4592_v25, %v12885_v62  ;;  %v6845_v23 = vrot.slane %v6709_v35, 7  ;;  %v3434_v42 = vpop.permute.xlu1 %3433 }
 0x582   : > { %v6647_v1 = vsel %vm6199_vm8, %v12314_v32, %v16652_v31  ;;  %v6710_v4 = vsel %vm15930_vm6, %v13007_v5, %v12883_v56  ;;  %v6711_v29 = vsel %vm6199_vm8, %v4592_v25, %v12885_v62  ;;  %v7293_v21 = vrot.slane %v6645_v14, 7 }
 0x583   : > { %16651 = vst [vmem:[#allocation12_spill] sm:$0xff] %v13022_v40  ;;  %v6846_v43 = vrot.slane %v6710_v4, 7  ;;  %v6847_v61 = vrot.slane %v6711_v29, 7  ;;  %vm6973_vm4 = vcmp.gt.f32.partialorder %v4585_v46, %v6845_v23  ;;  %v3378_v35 = vpop.permute.xlu0 %3377  ;;  %v7295_v34 = vrot.slane %v6647_v1, 7 }
 0x584   : > { %v16653_v31 = vrot.slane %v12321_v8, 7  ;;  %v7421_v48 = vsel %vm6973_vm4, %v4585_v46, %v6845_v23  ;;  %v13042_v32 = vcombine.high %v4575_v19, %v4575_v19  ;;  %v16656_v62 = vmov 0 }
 0x585   : > { %vm13045_vm6 = vcmp.gt.f32.partialorder %v13007_v5, %v6846_v43  ;;  %vm6975_vm8 = vcmp.gt.f32.partialorder %v4592_v25, %v6847_v61  ;;  %v7605_v14 = vrot.slane %v7421_v48, 1  ;;  %v16659_v29 = vrot.slane %v12324_v9, 7  ;;  %v3436_v23 = vpop.permute.xlu1 %3435 }
 0x586   : > { %v13040_v63 = vsel %vm6973_vm4, %v16653_v31, %v7293_v21  ;;  %16655 = vst [vmem:[#allocation80_spill] sm:$0xff] %v13042_v32  ;;  %v16657_v62 = vsel %vm13045_vm6, 4294967295, %v16656_v62  ;;  %v13057_v1 = vsel %vm13045_vm6, %v13007_v5, %v6846_v43  ;;  %v13059_v46 = vsel %vm6975_vm8, %v4592_v25, %v6847_v61 }
 0x587   : > { %16654 = vst [vmem:[#allocation15_spill] sm:$0xff] %v13040_v63  ;;  %16658 = vst [vmem:[#allocation19_spill] sm:$0xff] %v16657_v62  ;;  %v13052_v40 = vsel %vm6975_vm8, %v16659_v29, %v7295_v34  ;;  %vm6193_vm4 = vcmp.gt.f32.partialorder %v12996_v59, %v12930_v20  ;;  %v13065_v48 = vsel %vm16163_vm3, %v13057_v1, %v7605_v14  ;;  %v3380_v43 = vpop.permute.xlu0 %3379  ;;  %v16664_v61 = vrot.slane %v12900_v28, 9 }
 0x588   : > { %16660 = vst [vmem:[#allocation37_spill] sm:$0xff] %v13052_v40  ;;  %16661 = vst [vmem:[#allocation58_spill] sm:$0xff] %v13057_v1  ;;  %vm15963_vm9 = vcmp.gt.f32.partialorder %v13020_v57, %v12932_v26  ;;  %vm6195_vm8 = vcmp.gt.f32.partialorder %v4575_v19, %v12934_v6  ;;  %v6705_v31 = vsel %vm6193_vm4, %v12996_v59, %v12930_v20  ;;  %v16665_v14 = vrot.slane %v12916_v10, 9 }
 0x589   : > { %16662 = vst [vmem:[#allocation109_spill] sm:$0xff] %v13059_v46  ;;  %16663 = vst [vmem:[#allocation10_spill] sm:$0xff] %v13065_v48  ;;  %v6641_v25 = vsel %vm6193_vm4, %v12327_v37, %v16664_v61  ;;  %v6706_v34 = vsel %vm15963_vm9, %v13020_v57, %v12932_v26  ;;  %v6707_v21 = vsel %vm6195_vm8, %v4575_v19, %v12934_v6  ;;  %v6841_v4 = vrot.slane %v6705_v31, 7  ;;  %v3562_v46 = vpop.permute.xlu1 %3561 }
 0x58a   : > { %v6643_v29 = vsel %vm6195_vm8, %v12334_v27, %v16665_v14  ;;  %v6842_v40 = vrot.slane %v6706_v34, 7  ;;  %v6843_v28 = vrot.slane %v6707_v21, 7  ;;  %v7289_v9 = vrot.slane %v6641_v25, 7  ;;  %v16685_v27 = vld [vmem:[#allocation47_spill] sm:$0xff] }
 0x58b   : > { %v7291_v61 = vrot.slane %v6643_v29, 7  ;;  %vm6969_vm4 = vcmp.gt.f32.partialorder %v12996_v59, %v6841_v4  ;;  %v3859_v20 = vsel %vm15975_vm12, %v12948_v18, %v3252_v33  ;;  %v3919_v10 = vsel %vm15971_vm13, %v12987_v13, %v3434_v42  ;;  %v3506_v47 = vpop.permute.xlu0 %3505 }
 0x58c   : > { %v3891_v14 = vsel %vm15971_vm13, %v12953_v54, %v3378_v35  ;;  %vm13096_vm8 = vcmp.gt.f32.partialorder %v13020_v57, %v6842_v40  ;;  %v16666_v6 = vmov 0  ;;  %vm6971_vm5 = vcmp.gt.f32.partialorder %v4575_v19, %v6843_v28 }
 0x58d   : > { %v16667_v6 = vsel %vm13096_vm8, 4294967295, %v16666_v6  ;;  %v16669_v21 = vrot.slane %v12337_v50, 7  ;;  %v7417_v25 = vsel %vm6969_vm4, %v12996_v59, %v6841_v4  ;;  %v16671_v18 = vrot.slane %v12347_v2, 7  ;;  %v3564_v4 = vpop.permute.xlu1 %3563 }
 0x58e   : > { %16668 = vst [vmem:[#allocation56_spill] sm:$0xff] %v16667_v6  ;;  %v13112_v54 = vsel %vm13096_vm8, %v13020_v57, %v6842_v40  ;;  %v13114_v13 = vsel %vm6971_vm5, %v4575_v19, %v6843_v28  ;;  %v7591_v42 = vrot.slane %v7417_v25, 1  ;;  %v3920_v59 = vsel %vm15971_vm13, %v13011_v24, %v3436_v23  ;;  %v13133_v23 = vld [vmem:[%s15790_s4] ss:$0 sm:$0xff] }
 0x58f   : > { %v13102_v34 = vsel %vm6969_vm4, %v16669_v21, %v7289_v9  ;;  %v13107_v33 = vsel %vm6971_vm5, %v16671_v18, %v7291_v61  ;;  %16673 = vst [vmem:[#allocation23_spill] sm:$0xff] %v13114_v13  ;;  %v3892_v61 = vsel %vm15971_vm13, %v3859_v20, %v3380_v43  ;;  %v3952_v40 = vsel %vm16026_vm14, %v3919_v10, %v3562_v46  ;;  %v3508_v28 = vpop.permute.xlu0 %3507  ;;  %v9118_v18 = vpop.f32.mrb[10].mxu1 }
 0x590   : > { %16670 = vst [vmem:[#allocation27_spill] sm:$0xff] %v13102_v34  ;;  %16672 = vst [vmem:[#allocation17_spill] sm:$0xff] %v13107_v33  ;;  %v7594_v29 = vsel %vm16163_vm3, %v13112_v54, %v7591_v42  ;;  %v3924_v19 = vsel %vm16026_vm14, %v3891_v14, %v3506_v47  ;;  %v3953_v21 = vsel %vm16026_vm14, %v3920_v59, %v3564_v4  ;;  %v4228_v46 = vpop.f32.mrb[11].mxu1  ;;  %v13137_v47 = vadd.s32 160, %v12029_v30 }
 0x591   : > { %v3925_v25 = vsel %vm16026_vm14, %v3892_v61, %v3508_v28  ;;  %v4234_v43 = vadd.f32 %v13133_v23, %v9118_v18  ;;  %v13140_v20 = vadd.s32 160, %v12039_v36  ;;  %v7567_v10 = vsel %vm15964_vm10, %v12780_v60, %v12791_v17  ;;  %v3690_v42 = vpop.permute.xlu1 %3689 }
 0x592   : > { %v4229_v14 = vadd.f32 %v13133_v23, %v4228_v46  ;;  %v13148_v59 = vsel %vm16165_vm7, %v12780_v60, %v7567_v10  ;;  %v13152_v4 = vsel %vm15964_vm10, %v13112_v54, %v7594_v29  ;;  %v16674_v61 = vrot.slane %v16594_v0, 1 }
 0x593   : > { %v4340_v17 = vmax.f32 %v4234_v43, 0.0  ;;  %v3985_v46 = vsel %vm16020_vm15, %v3952_v40, %v3690_v42  ;;  %v3634_v31 = vpop.permute.xlu0 %3633  ;;  %v13165_v10 = vrot.slane %v13140_v20, %v12057_v7  ;;  %v13169_v29 = vrot.slane %v13140_v20, %v12069_v45 }
 0x594   : > { %v13160_v35 = vsel %vm6186_vm11, %v16674_v61, %v12597_v3  ;;  %v4339_v24 = vmax.f32 %v4229_v14, 0.0  ;;  %v3957_v0 = vsel %vm16020_vm15, %v3924_v19, %v3634_v31  ;;  %9140 = vmatprep.mubr.msk.f32.mxu1 %vm4005_vm0, %v3985_v46  ;;  %v13175_v3 = vrot.slane %v13137_v47, %v12057_v7 }
 0x595   : > { %16677 = vst [vmem:[#allocation20_spill] sm:$0xff] %v13165_v10  ;;  %16678 = vst [vmem:[#allocation26_spill] sm:$0xff] %v13169_v29  ;;  %v13179_v40 = vrot.slane %v13137_v47, %v12069_v45  ;;  %v4612_v43 = vcombine.high %v4340_v17, %v4340_v17  ;;  %v4619_v42 = vrot.slane %v4340_v17, %v12164_v58  ;;  %9098 = vmatprep.mubr.msk.f32.mxu0 %vm4005_vm0, %v3957_v0  ;;  %v3692_v28 = vpop.permute.xlu1 %3691  ;;  %vm16154_vm10 = vcmask 1047559  }
 0x596   : > { %16679 = vst [vmem:[#allocation24_spill] sm:$0xff] %v13175_v3  ;;  %v4595_v31 = vcombine.high %v4339_v24, %v4339_v24  ;;  %v4602_v19 = vrot.slane %v4339_v24, %v12164_v58  ;;  %v3986_v17 = vsel %vm16020_vm15, %v3953_v21, %v3692_v28  ;;  %v16684_v1 = vrot.slane %v16683_v11, 7 }
 0x597   : > { %16680 = vst [vmem:[#allocation30_spill] sm:$0xff] %v13179_v40  ;;  %v4626_v9 = vrot.slane %v4612_v43, %v12164_v58  ;;  %v4627_v63 = vcombine.high %v4619_v42, %v4619_v42  ;;  %v5109_v62 = vrot.slane %v4619_v42, 7  ;;  %v3636_v8 = vpop.permute.xlu0 %3635  ;;  %9141 = vmatmul.mubr.msk.f32.gmra.mrb[26].mxu1 %vm4005_vm0, %v3986_v17  ;;  %v16681_v43 = vld [vmem:[#allocation35_spill] sm:$0xff]  ;;  %v16688_v13 = vrot.slane %v16687_v51, 7 }
 0x598   : > { %v4609_v0 = vrot.slane %v4595_v31, %v12164_v58  ;;  %v4610_v61 = vcombine.high %v4602_v19, %v4602_v19  ;;  %v5105_v56 = vrot.slane %v4602_v19, 7  ;;  %v3958_v14 = vsel %vm16020_vm15, %v3925_v25, %v3636_v8 }
 0x599   : > { %v4628_v24 = vcombine.high %v4626_v9, %v4626_v9  ;;  %v5110_v5 = vrot.slane %v4627_v63, 7  ;;  %v5111_v18 = vrot.slane %v4626_v9, 7  ;;  %vm5237_vm5 = vcmp.gt.f32.partialorder %v4619_v42, %v5109_v62  ;;  %9099 = vmatmul.mubr.msk.f32.vlgmr.msra.gmra.mrb[32].mxu0 %vm4005_vm0, %v3958_v14  ;;  %v2928_v33 = vpop.permute.xlu1 %2927 }
 0x59a   : > { %v16682_v46 = vrot.slane %v16681_v43, 7  ;;  %v5877_v28 = vsel %vm5237_vm5, %v4619_v42, %v5109_v62  ;;  %v4611_v31 = vcombine.high %v4609_v0, %v4609_v0  ;;  %v5106_v48 = vrot.slane %v4610_v61, 7 }
 0x59b   : > { %v5112_v2 = vrot.slane %v4628_v24, 7  ;;  %vm5238_vm11 = vcmp.gt.f32.partialorder %v4627_v63, %v5110_v5  ;;  %vm5239_vm4 = vcmp.gt.f32.partialorder %v4626_v9, %v5111_v18  ;;  %v6041_v8 = vrot.slane %v5877_v28, 7  ;;  %v2926_v25 = vpop.permute.xlu0 %2925 }
 0x59c   : > { %v13198_v21 = vsel %vm5237_vm5, %v16684_v1, %v16682_v46  ;;  %v5814_v17 = vsel %vm5238_vm11, %v16683_v11, %v16681_v43  ;;  %v16686_v14 = vrot.slane %v16685_v27, 7  ;;  %v5878_v1 = vsel %vm5238_vm11, %v4627_v63, %v5110_v5  ;;  %v16701_v5 = vld [vmem:[#allocation120_spill] sm:$0xff] }
 0x59d   : > { %v5879_v46 = vsel %vm5239_vm4, %v4626_v9, %v5111_v18  ;;  %vm5240_vm5 = vcmp.gt.f32.partialorder %v4628_v24, %v5112_v2  ;;  %v13208_v62 = vrot.slane %v6041_v8, 2  ;;  %v6043_v42 = vrot.slane %v5878_v1, 7  ;;  %v3056_v43 = vpop.permute.xlu1 %3055 }
 0x59e   : > { %v13206_v29 = vsel %vm5239_vm4, %v16688_v13, %v16686_v14  ;;  %v6045_v40 = vrot.slane %v5879_v46, 7  ;;  %v5816_v28 = vsel %vm5240_vm5, %v16687_v51, %v16685_v27  ;;  %v5880_v10 = vsel %vm5240_vm5, %v4628_v24, %v5112_v2  ;;  %v16695_v51 = vld [vmem:[#allocation38_spill] sm:$0xff] }
 0x59f   : > { %v13213_v11 = vrot.slane %v5814_v17, 9  ;;  %v13215_v32 = vrot.slane %v6043_v42, 2  ;;  %v6047_v63 = vrot.slane %v5880_v10, 7  ;;  %v3054_v9 = vpop.permute.xlu0 %3053  ;;  %v13220_v18 = vrot.slane %v5816_v28, 9  ;;  %v16697_v17 = vld [vmem:[#allocation70_spill] sm:$0xff] }
 0x5a0   : > { %v13217_v13 = vrot.slane %v6045_v40, 2  ;;  %v5107_v8 = vrot.slane %v4609_v0, 7  ;;  %v5108_v14 = vrot.slane %v4611_v31, 7  ;;  %vm5233_vm11 = vcmp.gt.f32.partialorder %v4602_v19, %v5105_v56 }
 0x5a1   : > { %16689 = vst [vmem:[#allocation28_spill] sm:$0xff] %v13213_v11  ;;  %16690 = vst [vmem:[#allocation34_spill] sm:$0xff] %v13215_v32  ;;  %v13222_v27 = vrot.slane %v6047_v63, 2  ;;  %vm13224_vm4 = vcmp.gt.f32.partialorder %v4610_v61, %v5106_v48  ;;  %v16696_v24 = vrot.slane %v16695_v51, 7  ;;  %v16698_v40 = vrot.slane %v16697_v17, 7  ;;  %v3184_v63 = vpop.permute.xlu1 %3183 }
 0x5a2   : > { %16691 = vst [vmem:[#allocation60_spill] sm:$0xff] %v13220_v18  ;;  %v5873_v10 = vsel %vm5233_vm11, %v4602_v19, %v5105_v56  ;;  %vm5235_vm5 = vcmp.gt.f32.partialorder %v4609_v0, %v5107_v8  ;;  %vm13234_vm9 = vcmp.gt.f32.partialorder %v4611_v31, %v5108_v14  ;;  %v5810_v42 = vsel %vm13224_vm4, %v16697_v17, %v16695_v51 }
 0x5a3   : > { %16692 = vst [vmem:[#allocation81_spill] sm:$0xff] %v13222_v27  ;;  %v13232_v1 = vsel %vm5233_vm11, %v16698_v40, %v16696_v24  ;;  %v5874_v28 = vsel %vm13224_vm4, %v4610_v61, %v5106_v48  ;;  %v16702_v3 = vrot.slane %v16701_v5, 7  ;;  %v16703_v24 = vld [vmem:[#allocation91_spill] sm:$0xff]  ;;  %v5875_v18 = vsel %vm5235_vm5, %v4609_v0, %v5107_v8  ;;  %v3182_v17 = vpop.permute.xlu0 %3181 }
 0x5a4   : > { %v16704_v40 = vrot.slane %v16703_v24, 7  ;;  %v5812_v19 = vsel %vm13234_vm9, %v16703_v24, %v16701_v5  ;;  %v5876_v51 = vsel %vm13234_vm9, %v4611_v31, %v5108_v14  ;;  %v6033_v2 = vrot.slane %v5873_v10, 7  ;;  %v16707_v14 = vld [vmem:[#allocation61_spill] sm:$0xff]  ;;  %v16709_v10 = vld [vmem:[#allocation82_spill] sm:$0xff] }
 0x5a5   : > { %v6035_v48 = vrot.slane %v5874_v28, 7  ;;  %v6037_v61 = vrot.slane %v5875_v18, 7  ;;  %v6039_v11 = vrot.slane %v5876_v51, 7  ;;  %v13257_v34 = vrot.slane %v5810_v42, 9  ;;  %v3312_v8 = vpop.permute.xlu1 %3311 }
 0x5a6   : > { %v13248_v56 = vsel %vm5235_vm5, %v16704_v40, %v16702_v3  ;;  %v13260_v40 = vrot.slane %v5812_v19, 9  ;;  %v13262_v6 = vrot.slane %v6033_v2, 2  ;;  %vm16708_vm9 = vcmask 130048  }
 0x5a7   : > { %v13264_v5 = vrot.slane %v6035_v48, 2  ;;  %v13266_v0 = vrot.slane %v6037_v61, 2  ;;  %v13268_v31 = vrot.slane %v6039_v11, 2  ;;  %v3792_v18 = vsel %vm16708_vm9, %v16707_v14, %v2928_v33  ;;  %vm16710_vm11 = vmmov %vm16708_vm9  ;;  %v3310_v42 = vpop.permute.xlu0 %3309  ;;  %v9121_v51 = vpop.f32.mrb[12].mxu1 }
 0x5a8   : > { %16705 = vst [vmem:[#allocation14_spill] sm:$0xff] %v13260_v40  ;;  %v3791_v46 = vsel %vm16710_vm11, %v16709_v10, %v2926_v25  ;;  %v13276_v28 = vrot.slane %v13140_v20, %v12144_v39  ;;  %v13280_v24 = vrot.slane %v13140_v20, %v12147_v15  ;;  %vm16713_vm4 = vcmask 195584   ;;  %v4238_v61 = vpop.f32.mrb[13].mxu1  ;;  %v16728_v40 = vld [vmem:[#allocation72_spill] sm:$0xff] }
 0x5a9   : > { %16706 = vst [vmem:[#allocation110_spill] sm:$0xff] %v13268_v31  ;;  %v3824_v19 = vsel %vm16713_vm4, %v3792_v18, %v3056_v43  ;;  %vm16714_vm5 = vmmov %vm16713_vm4  ;;  %v13286_v33 = vrot.slane %v13137_v47, %v12144_v39  ;;  %v13290_v25 = vrot.slane %v13137_v47, %v12147_v15  ;;  %vm16717_vm9 = vcmask 261120   ;;  %v3440_v10 = vpop.permute.xlu1 %3439 }
 0x5aa   : > { %16711 = vst [vmem:[#allocation32_spill] sm:$0xff] %v13276_v28  ;;  %16712 = vst [vmem:[#allocation62_spill] sm:$0xff] %v13280_v24  ;;  %v3823_v11 = vsel %vm16714_vm5, %v3791_v46, %v3054_v9  ;;  %v3856_v2 = vsel %vm16717_vm9, %v3824_v19, %v3184_v63  ;;  %v4244_v20 = vadd.f32 %v13133_v23, %v9121_v51 }
 0x5ab   : > { %16715 = vst [vmem:[#allocation83_spill] sm:$0xff] %v13286_v33  ;;  %16716 = vst [vmem:[#allocation114_spill] sm:$0xff] %v13290_v25  ;;  %v3889_v9 = vsel %vm15975_vm12, %v3856_v2, %v3312_v8  ;;  %v4239_v18 = vadd.f32 %v13133_v23, %v4238_v61  ;;  %v3438_v63 = vpop.permute.xlu0 %3437  ;;  %v13307_v8 = vadd.s32 176, %v12029_v30  ;;  %v13321_v61 = vsel %vm16165_vm7, %v13112_v54, %v13152_v4 }
 0x5ac   : > { %vm16718_vm11 = vmmov %vm16717_vm9  ;;  %v4342_v47 = vmax.f32 %v4244_v20, 0.0  ;;  %v3922_v3 = vsel %vm15971_vm13, %v3889_v9, %v3440_v10  ;;  %v13316_v20 = vsel %vm16154_vm10, %v12780_v60, %v13148_v59 }
 0x5ad   : > { %v3855_v48 = vsel %vm16718_vm11, %v3823_v11, %v3182_v17  ;;  %v4341_v11 = vmax.f32 %v4239_v18, 0.0  ;;  %16719 = vst [vmem:[#allocation36_spill] sm:$0xff] %v13316_v20  ;;  %v3568_v18 = vpop.permute.xlu1 %3567  ;;  %v13328_v10 = vrot.slane %v13307_v8, %v12057_v7 }
 0x5ae   : > { %v3888_v14 = vsel %vm15975_vm12, %v3855_v48, %v3310_v42  ;;  %v13310_v42 = vadd.s32 176, %v12039_v36  ;;  %v4646_v2 = vcombine.high %v4342_v47, %v4342_v47  ;;  %v4653_v48 = vrot.slane %v4342_v47, %v12164_v58 }
 0x5af   : > { %v13304_v51 = vsel %vm15971_vm13, %v3888_v14, %v3438_v63  ;;  %v4629_v9 = vcombine.high %v4341_v11, %v4341_v11  ;;  %v13324_v14 = vrot.slane %v4341_v11, %v12164_v58  ;;  %16720 = vst [vmem:[#allocation111_spill] sm:$0xff] %v13328_v10  ;;  %v13332_v47 = vrot.slane %v13307_v8, %v12069_v45  ;;  %v16724_v11 = vld [vmem:[#allocation119_spill] sm:$0xff] }
 0x5b0   : > { %v4660_v60 = vrot.slane %v4646_v2, %v12164_v58  ;;  %v13335_v59 = vcombine.high %v4653_v48, %v4653_v48  ;;  %vm6205_vm4 = vcmp.gt.f32.partialorder %v4653_v48, %v13208_v62  ;;  %v3955_v4 = vsel %vm16026_vm14, %v3922_v3, %v3568_v18  ;;  %v16727_v2 = vld [vmem:[#allocation49_spill] sm:$0xff] }
 0x5b1   : > { %16721 = vst [vmem:[#allocation112_spill] sm:$0xff] %v13332_v47  ;;  %v16723_v63 = vrot.slane %v13198_v21, 9  ;;  %v6717_v19 = vsel %vm6205_vm4, %v4653_v48, %v13208_v62  ;;  %v4643_v43 = vrot.slane %v4629_v9, %v12164_v58  ;;  %v13346_v17 = vcombine.high %v13324_v14, %v13324_v14 }
 0x5b2   : > { %16722 = vst [vmem:[#allocation16_spill] sm:$0xff] %v13335_v59  ;;  %v13348_v38 = vcombine.high %v4660_v60, %v4660_v60  ;;  %vm15981_vm5 = vcmp.gt.f32.partialorder %v13335_v59, %v13215_v32  ;;  %vm6207_vm9 = vcmp.gt.f32.partialorder %v4660_v60, %v13217_v13  ;;  %v6853_v3 = vrot.slane %v6717_v19, 7 }
 0x5b3   : > { %v6653_v46 = vsel %vm6205_vm4, %v16724_v11, %v16723_v63  ;;  %v16726_v21 = vrot.slane %v13206_v29, 9  ;;  %v6718_v62 = vsel %vm15981_vm5, %v13335_v59, %v13215_v32  ;;  %v6719_v9 = vsel %vm6207_vm9, %v4660_v60, %v13217_v13 }
 0x5b4   : > { %16725 = vst [vmem:[#allocation43_spill] sm:$0xff] %v13348_v38  ;;  %v7301_v63 = vrot.slane %v6653_v46, 7  ;;  %v6854_v11 = vrot.slane %v6718_v62, 7  ;;  %v6855_v20 = vrot.slane %v6719_v9, 7  ;;  %vm6981_vm4 = vcmp.gt.f32.partialorder %v4653_v48, %v6853_v3  ;;  %v3566_v62 = vpop.permute.xlu0 %3565  ;;  %v16735_v9 = vld [vmem:[#allocation93_spill] sm:$0xff] }
 0x5b5   : > { %v6655_v18 = vsel %vm6207_vm9, %v16727_v2, %v16726_v21  ;;  %v16729_v29 = vrot.slane %v16728_v40, 7  ;;  %v7429_v21 = vsel %vm6981_vm4, %v4653_v48, %v6853_v3  ;;  %v13368_v2 = vcombine.high %v4643_v43, %v4643_v43 }
 0x5b6   : > { %v7303_v19 = vrot.slane %v6655_v18, 7  ;;  %vm13371_vm13 = vcmp.gt.f32.partialorder %v13335_v59, %v6854_v11  ;;  %v16732_v32 = vmov 0  ;;  %vm6983_vm9 = vcmp.gt.f32.partialorder %v4660_v60, %v6855_v20 }
 0x5b7   : > { %v13366_v24 = vsel %vm6981_vm4, %v16729_v29, %v7301_v63  ;;  %16731 = vst [vmem:[#allocation66_spill] sm:$0xff] %v13368_v2  ;;  %v16733_v32 = vsel %vm13371_vm13, 4294967295, %v16732_v32  ;;  %v7633_v13 = vrot.slane %v7429_v21, 1  ;;  %v16736_v38 = vrot.slane %v16735_v9, 7  ;;  %v16744_v29 = vld [vmem:[#allocation74_spill] sm:$0xff] }
 0x5b8   : > { %16730 = vst [vmem:[#allocation22_spill] sm:$0xff] %v13366_v24  ;;  %16734 = vst [vmem:[#allocation113_spill] sm:$0xff] %v16733_v32  ;;  %v13383_v48 = vsel %vm13371_vm13, %v13335_v59, %v6854_v11  ;;  %v13385_v3 = vsel %vm6983_vm9, %v4660_v60, %v6855_v20  ;;  %vm6201_vm4 = vcmp.gt.f32.partialorder %v13324_v14, %v13262_v6  ;;  %v16742_v20 = vld [vmem:[#allocation51_spill] sm:$0xff] }
 0x5b9   : > { %v13378_v18 = vsel %vm6983_vm9, %v16736_v38, %v7303_v19  ;;  %16738 = vst [vmem:[#allocation87_spill] sm:$0xff] %v13383_v48  ;;  %16739 = vst [vmem:[#allocation42_spill] sm:$0xff] %v13385_v3  ;;  %v13391_v63 = vsel %vm16163_vm3, %v13383_v48, %v7633_v13  ;;  %vm6202_vm12 = vcmp.gt.f32.partialorder %v13346_v17, %v13264_v5  ;;  %v16741_v38 = vrot.slane %v13232_v1, 9  ;;  %v3696_v19 = vpop.permute.xlu1 %3695 }
 0x5ba   : > { %16737 = vst [vmem:[#allocation116_spill] sm:$0xff] %v13378_v18  ;;  %16740 = vst [vmem:[#allocation31_spill] sm:$0xff] %v13391_v63  ;;  %vm6203_vm11 = vcmp.gt.f32.partialorder %v4643_v43, %v13266_v0  ;;  %vm6204_vm9 = vcmp.gt.f32.partialorder %v13368_v2, %v13268_v31  ;;  %v6713_v11 = vsel %vm6201_vm4, %v13324_v14, %v13262_v6  ;;  %v16743_v13 = vrot.slane %v13248_v56, 9 }
 0x5bb   : > { %v6649_v60 = vsel %vm6201_vm4, %v16742_v20, %v16741_v38  ;;  %v6714_v46 = vsel %vm6202_vm12, %v13346_v17, %v13264_v5  ;;  %v6715_v18 = vsel %vm6203_vm11, %v4643_v43, %v13266_v0  ;;  %v6849_v9 = vrot.slane %v6713_v11, 7  ;;  %v16747_v0 = vld [vmem:[#allocation95_spill] sm:$0xff] }
 0x5bc   : > { %v6651_v21 = vsel %vm6203_vm11, %v16744_v29, %v16743_v13  ;;  %v6850_v1 = vrot.slane %v6714_v46, 7  ;;  %v6851_v3 = vrot.slane %v6715_v18, 7  ;;  %v7297_v38 = vrot.slane %v6649_v60, 7  ;;  %v3694_v13 = vpop.permute.xlu0 %3693  ;;  %v16750_v60 = vld [vmem:[#allocation104_spill] sm:$0xff] }
 0x5bd   : > { %v7299_v27 = vrot.slane %v6651_v21, 7  ;;  %vm6977_vm4 = vcmp.gt.f32.partialorder %v13324_v14, %v6849_v9  ;;  %v3954_v6 = vsel %vm16026_vm14, %v13304_v51, %v3566_v62  ;;  %v3988_v56 = vsel %vm16020_vm15, %v3955_v4, %v3696_v19 }
 0x5be   : > { %vm13420_vm5 = vcmp.gt.f32.partialorder %v13346_v17, %v6850_v1  ;;  %vm6979_vm11 = vcmp.gt.f32.partialorder %v4643_v43, %v6851_v3  ;;  %v16748_v46 = vrot.slane %v16747_v0, 7  ;;  %v7425_v21 = vsel %vm6977_vm4, %v13324_v14, %v6849_v9 }
 0x5bf   : > { %v16751_v11 = vrot.slane %v16750_v60, 7  ;;  %v13436_v4 = vsel %vm13420_vm5, %v13346_v17, %v6850_v1  ;;  %v13438_v62 = vsel %vm6979_vm11, %v4643_v43, %v6851_v3  ;;  %v7619_v19 = vrot.slane %v7425_v21, 1  ;;  %v9124_v1 = vpop.f32.mrb[14].mxu1 }
 0x5c0   : > { %v13426_v18 = vsel %vm6977_vm4, %v16748_v46, %v7297_v38  ;;  %16753 = vst [vmem:[#allocation35_spill] sm:$0xff] %v13438_v62  ;;  %v3987_v14 = vsel %vm16020_vm15, %v3954_v6, %v3694_v13  ;;  %v13450_v43 = vrot.slane %v13310_v42, %v12057_v7  ;;  %v13454_v3 = vrot.slane %v13310_v42, %v12069_v45  ;;  %v16771_v62 = vld [vmem:[#allocation78_spill] sm:$0xff] }
 0x5c1   : > { %16749 = vst [vmem:[#allocation94_spill] sm:$0xff] %v13426_v18  ;;  %v13431_v51 = vsel %vm6979_vm11, %v16751_v11, %v7299_v27  ;;  %v7622_v27 = vsel %vm16163_vm3, %v13436_v4, %v7619_v19  ;;  %9143 = vmatprep.mubr.msk.f32.mxu1 %vm4005_vm0, %v3987_v14  ;;  %v13459_v6 = vrot.slane %v13307_v8, %v12144_v39  ;;  %v13477_v9 = vadd.s32 192, %v12029_v30 }
 0x5c2   : > { %16752 = vst [vmem:[#allocation101_spill] sm:$0xff] %v13431_v51  ;;  %16754 = vst [vmem:[#allocation118_spill] sm:$0xff] %v13450_v43  ;;  %9144 = vmatmul.mubr.msk.f32.gmra.mrb[28].mxu1 %vm4005_vm0, %v3988_v56  ;;  %v13463_v13 = vrot.slane %v13307_v8, %v12147_v15  ;;  %v13467_v46 = vrot.slane %v13310_v42, %v12144_v39  ;;  %v13471_v21 = vrot.slane %v13310_v42, %v12147_v15  ;;  %v4248_v56 = vpop.f32.mrb[15].mxu1  ;;  %vm16762_vm0 = vcmask 1043459  }
 0x5c3   : > { %16755 = vst [vmem:[#allocation47_spill] sm:$0xff] %v13454_v3  ;;  %16756 = vst [vmem:[#allocation88_spill] sm:$0xff] %v13459_v6  ;;  %v4254_v11 = vadd.f32 %v13133_v23, %v9124_v1  ;;  %v4249_v8 = vadd.f32 %v13133_v23, %v4248_v56  ;;  %v13485_v1 = vadd.s32 192, %v12039_v36  ;;  %v13489_v14 = vrot.slane %v13477_v9, %v12057_v7 }
 0x5c4   : > { %16757 = vst [vmem:[#allocation38_spill] sm:$0xff] %v13463_v13  ;;  %16758 = vst [vmem:[#allocation70_spill] sm:$0xff] %v13467_v46  ;;  %v13493_v56 = vrot.slane %v13477_v9, %v12069_v45  ;;  %v13498_v24 = vsel %vm16154_vm10, %v13112_v54, %v13321_v61  ;;  %v16772_v25 = vrot.slane %v16771_v62, 7  ;;  %v13641_v17 = vadd.s32 208, %v12039_v36 }
 0x5c5   : > { %16759 = vst [vmem:[#allocation120_spill] sm:$0xff] %v13471_v21  ;;  %v4344_v42 = vmax.f32 %v4254_v11, 0.0  ;;  %16760 = vst [vmem:[#allocation91_spill] sm:$0xff] %v13489_v14  ;;  %v4343_v19 = vmax.f32 %v4249_v8, 0.0  ;;  %v13502_v11 = vsel %vm16762_vm0, %v13436_v4, %v7622_v27  ;;  %v13507_v38 = vrot.slane %v13485_v1, %v12057_v7  ;;  %v16767_v14 = vld [vmem:[#allocation55_spill] sm:$0xff] }
 0x5c6   : > { %16761 = vst [vmem:[#allocation61_spill] sm:$0xff] %v13493_v56  ;;  %v13511_v8 = vrot.slane %v13485_v1, %v12069_v45  ;;  %v16768_v61 = vrot.slane %v16767_v14, 7 }
 0x5c7   : > { %v4680_v59 = vcombine.high %v4344_v42, %v4344_v42  ;;  %v4687_v40 = vrot.slane %v4344_v42, %v12164_v58  ;;  %16763 = vst [vmem:[#allocation82_spill] sm:$0xff] %v13507_v38  ;;  %v4663_v48 = vcombine.high %v4343_v19, %v4343_v19  ;;  %v4670_v63 = vrot.slane %v4343_v19, %v12164_v58  ;;  %v16765_v19 = vld [vmem:[#allocation124_spill] sm:$0xff] }
 0x5c8   : > { %16764 = vst [vmem:[#allocation51_spill] sm:$0xff] %v13511_v8  ;;  %v16766_v54 = vrot.slane %v16765_v19, 7  ;;  %v16769_v8 = vld [vmem:[#allocation50_spill] sm:$0xff] }
 0x5c9   : > { %v4694_v27 = vrot.slane %v4680_v59, %v12164_v58  ;;  %v4695_v51 = vcombine.high %v4687_v40, %v4687_v40  ;;  %v5117_v21 = vrot.slane %v4687_v40, 7  ;;  %v4677_v46 = vrot.slane %v4663_v48, %v12164_v58 }
 0x5ca   : > { %v4678_v13 = vcombine.high %v4670_v63, %v4670_v63  ;;  %v5113_v6 = vrot.slane %v4670_v63, 7  ;;  %v16770_v38 = vrot.slane %v16769_v8, 7 }
 0x5cb   : > { %v4696_v43 = vcombine.high %v4694_v27, %v4694_v27  ;;  %v5118_v47 = vrot.slane %v4695_v51, 7  ;;  %v5119_v10 = vrot.slane %v4694_v27, 7  ;;  %vm5245_vm4 = vcmp.gt.f32.partialorder %v4687_v40, %v5117_v21 }
 0x5cc   : > { %v13524_v56 = vsel %vm5245_vm4, %v16768_v61, %v16766_v54  ;;  %v5885_v59 = vsel %vm5245_vm4, %v4687_v40, %v5117_v21  ;;  %v4679_v60 = vcombine.high %v4677_v46, %v4677_v46  ;;  %v5114_v29 = vrot.slane %v4678_v13, 7 }
 0x5cd   : > { %v5120_v42 = vrot.slane %v4696_v43, 7  ;;  %vm5246_vm11 = vcmp.gt.f32.partialorder %v4695_v51, %v5118_v47  ;;  %vm5247_vm0 = vcmp.gt.f32.partialorder %v4694_v27, %v5119_v10  ;;  %v6057_v48 = vrot.slane %v5885_v59, 7 }
 0x5ce   : > { %v5822_v3 = vsel %vm5246_vm11, %v16767_v14, %v16765_v19  ;;  %v13532_v28 = vsel %vm5247_vm0, %v16772_v25, %v16770_v38  ;;  %v5886_v33 = vsel %vm5246_vm11, %v4695_v51, %v5118_v47  ;;  %v5887_v2 = vsel %vm5247_vm0, %v4694_v27, %v5119_v10  ;;  %v16779_v38 = vld [vmem:[#allocation128_spill] sm:$0xff] }
 0x5cf   : > { %vm5248_vm15 = vcmp.gt.f32.partialorder %v4696_v43, %v5120_v42  ;;  %v13534_v54 = vrot.slane %v6057_v48, 2  ;;  %v6059_v40 = vrot.slane %v5886_v33, 7  ;;  %v6061_v21 = vrot.slane %v5887_v2, 7 }
 0x5d0   : > { %v5824_v61 = vsel %vm5248_vm15, %v16771_v62, %v16769_v8  ;;  %v5888_v59 = vsel %vm5248_vm15, %v4696_v43, %v5120_v42  ;;  %v13539_v14 = vrot.slane %v5822_v3, 9  ;;  %v5115_v51 = vrot.slane %v4677_v46, 7  ;;  %v16781_v3 = vld [vmem:[#allocation99_spill] sm:$0xff] }
 0x5d1   : > { %v13541_v19 = vrot.slane %v6059_v40, 2  ;;  %v13543_v18 = vrot.slane %v6061_v21, 2  ;;  %v6063_v25 = vrot.slane %v5888_v59, 7  ;;  %v13546_v47 = vrot.slane %v5824_v61, 9  ;;  %v16783_v21 = vld [vmem:[#allocation54_spill] sm:$0xff]  ;;  %v16785_v59 = vld [vmem:[#allocation107_spill] sm:$0xff] }
 0x5d2   : > { %16773 = vst [vmem:[#allocation95_spill] sm:$0xff] %v13539_v14  ;;  %v5116_v33 = vrot.slane %v4679_v60, 7  ;;  %vm5241_vm4 = vcmp.gt.f32.partialorder %v4670_v63, %v5113_v6  ;;  %vm13550_vm11 = vcmp.gt.f32.partialorder %v4678_v13, %v5114_v29  ;;  %v16780_v43 = vrot.slane %v16779_v38, 7 }
 0x5d3   : > { %16774 = vst [vmem:[#allocation124_spill] sm:$0xff] %v13541_v19  ;;  %16775 = vst [vmem:[#allocation55_spill] sm:$0xff] %v13546_v47  ;;  %v13548_v2 = vrot.slane %v6063_v25, 2  ;;  %v16782_v8 = vrot.slane %v16781_v3, 7  ;;  %v5881_v42 = vsel %vm5241_vm4, %v4670_v63, %v5113_v6  ;;  %vm5243_vm15 = vcmp.gt.f32.partialorder %v4677_v46, %v5115_v51 }
 0x5d4   : > { %vm5244_vm0 = vcmp.gt.f32.partialorder %v4679_v60, %v5116_v33  ;;  %v5818_v48 = vsel %vm13550_vm11, %v16781_v3, %v16779_v38  ;;  %v5882_v40 = vsel %vm13550_vm11, %v4678_v13, %v5114_v29  ;;  %v16784_v61 = vrot.slane %v16783_v21, 7 }
 0x5d5   : > { %16776 = vst [vmem:[#allocation50_spill] sm:$0xff] %v13548_v2  ;;  %v13558_v27 = vsel %vm5241_vm4, %v16782_v8, %v16780_v43  ;;  %v16786_v25 = vrot.slane %v16785_v59, 7  ;;  %v5820_v43 = vsel %vm5244_vm0, %v16785_v59, %v16783_v21  ;;  %v5883_v63 = vsel %vm5243_vm15, %v4677_v46, %v5115_v51  ;;  %v16843_v2 = vld [vmem:[#allocation80_spill] sm:$0xff] }
 0x5d6   : > { %v5884_v6 = vsel %vm5244_vm0, %v4679_v60, %v5116_v33  ;;  %v6049_v8 = vrot.slane %v5881_v42, 7  ;;  %v6051_v31 = vrot.slane %v5882_v40, 7  ;;  %v6053_v47 = vrot.slane %v5883_v63, 7 }
 0x5d7   : > { %v13570_v10 = vsel %vm5243_vm15, %v16786_v25, %v16784_v61  ;;  %v6055_v14 = vrot.slane %v5884_v6, 7  ;;  %v13575_v3 = vrot.slane %v5818_v48, 9  ;;  %v13578_v13 = vrot.slane %v5820_v43, 9 }
 0x5d8   : > { %v13580_v62 = vrot.slane %v6049_v8, 2  ;;  %v13582_v61 = vrot.slane %v6051_v31, 2  ;;  %v13584_v25 = vrot.slane %v6053_v47, 2  ;;  %v13590_v60 = vrot.slane %v13485_v1, %v12144_v39  ;;  %v9127_v47 = vpop.f32.mrb[16].mxu1 }
 0x5d9   : > { %16787 = vst [vmem:[#allocation78_spill] sm:$0xff] %v13578_v13  ;;  %v13586_v46 = vrot.slane %v6055_v14, 2  ;;  %v13594_v51 = vrot.slane %v13485_v1, %v12147_v15  ;;  %v13598_v33 = vrot.slane %v13477_v9, %v12144_v39  ;;  %v13602_v31 = vrot.slane %v13477_v9, %v12147_v15  ;;  %v4258_v59 = vpop.f32.mrb[17].mxu1 }
 0x5da   : > { %v13605_v14 = vadd.s32 208, %v12029_v30  ;;  %v7624_v42 = vsel %vm16165_vm7, %v13436_v4, %v13502_v11  ;;  %v16788_v1 = vrot.slane %v12327_v37, 1  ;;  %vm16789_vm4 = vcmp.gt.f32.partialorder %v13020_v57, %v12932_v26 }
 0x5db   : > { %v16790_v9 = vrot.slane %v16742_v20, 1  ;;  %v4264_v21 = vadd.f32 %v13133_v23, %v9127_v47  ;;  %v7625_v20 = vsel %vm16154_vm10, %v13436_v4, %v7624_v42  ;;  %v13656_v37 = vrot.slane %v13641_v17, %v12069_v45 }
 0x5dc   : > { %v13616_v48 = vsel %vm16789_vm4, %v16788_v1, %v12925_v41  ;;  %v4259_v41 = vadd.f32 %v13133_v23, %v4258_v59  ;;  %v13634_v57 = vrot.slane %v13605_v14, %v12057_v7  ;;  %v7800_v1 = vcombine.low %v13498_v24, %v7625_v20 }
 0x5dd   : > { %v13624_v40 = vsel %vm6202_vm12, %v16790_v9, %v13257_v34  ;;  %v13638_v34 = vrot.slane %v13605_v14, %v12069_v45  ;;  %v4346_v5 = vmax.f32 %v4264_v21, 0.0  ;;  %v13652_v21 = vrot.slane %v13641_v17, %v12057_v7  ;;  %16794 = vst [vmem:[#allocation107_spill] sm:$0xff] %v13656_v37 }
 0x5de   : > { %16791 = vst [vmem:[#allocation128_spill] sm:$0xff] %v13634_v57  ;;  %v4345_v6 = vmax.f32 %v4259_v41, 0.0  ;;  %v16795_v41 = vld [vmem:[#allocation68_spill] sm:$0xff]  ;;  %v16798_v26 = vrot.slane %v13524_v56, 9 }
 0x5df   : > { %16792 = vst [vmem:[#allocation99_spill] sm:$0xff] %v13638_v34  ;;  %v4714_v9 = vcombine.high %v4346_v5, %v4346_v5  ;;  %v4721_v59 = vrot.slane %v4346_v5, %v12164_v58  ;;  %16793 = vst [vmem:[#allocation54_spill] sm:$0xff] %v13652_v21  ;;  %v13660_v8 = vrot.slane %v7800_v1, %v16795_v41  ;;  %v16800_v5 = vrot.slane %v13532_v28, 9  ;;  %v16857_v21 = vld [vmem:[#allocation26_spill] sm:$0xff] }
 0x5e0   : > { %v4697_v4 = vcombine.high %v4345_v6, %v4345_v6  ;;  %v4704_v42 = vrot.slane %v4345_v6, %v12164_v58  ;;  %v16801_v28 = vrot.slane %v12968_v52, 7  ;;  %v16858_v34 = vrot.slane %v16857_v21, 7 }
 0x5e1   : > { %16796 = vst [vmem:[#allocation68_spill] sm:$0xff] %v13660_v8  ;;  %v4728_v24 = vrot.slane %v4714_v9, %v12164_v58  ;;  %v13664_v20 = vcombine.high %v4721_v59, %v4721_v59  ;;  %vm6213_vm12 = vcmp.gt.f32.partialorder %v4721_v59, %v13534_v54 }
 0x5e2   : > { %v6661_v11 = vsel %vm6213_vm12, %v12960_v22, %v16798_v26  ;;  %v6725_v43 = vsel %vm6213_vm12, %v4721_v59, %v13534_v54  ;;  %v4711_v6 = vrot.slane %v4697_v4, %v12164_v58  ;;  %v13673_v1 = vcombine.high %v4704_v42, %v4704_v42 }
 0x5e3   : > { %16797 = vst [vmem:[#allocation130_spill] sm:$0xff] %v13664_v20  ;;  %v13675_v63 = vcombine.high %v4728_v24, %v4728_v24  ;;  %vm16027_vm11 = vcmp.gt.f32.partialorder %v13664_v20, %v13541_v19  ;;  %vm6215_vm15 = vcmp.gt.f32.partialorder %v4728_v24, %v13543_v18  ;;  %v6861_v9 = vrot.slane %v6725_v43, 7 }
 0x5e4   : > { %v6663_v56 = vsel %vm6215_vm15, %v12964_v16, %v16800_v5  ;;  %v6726_v54 = vsel %vm16027_vm11, %v13664_v20, %v13541_v19  ;;  %v6727_v26 = vsel %vm6215_vm15, %v4728_v24, %v13543_v18  ;;  %v7309_v4 = vrot.slane %v6661_v11, 7 }
 0x5e5   : > { %16799 = vst [vmem:[#allocation131_spill] sm:$0xff] %v13675_v63  ;;  %v6862_v47 = vrot.slane %v6726_v54, 7  ;;  %v6863_v29 = vrot.slane %v6727_v26, 7  ;;  %vm6989_vm4 = vcmp.gt.f32.partialorder %v4721_v59, %v6861_v9  ;;  %v7311_v43 = vrot.slane %v6663_v56, 7 }
 0x5e6   : > { %v13693_v38 = vsel %vm6989_vm4, %v16801_v28, %v7309_v4  ;;  %v7437_v5 = vsel %vm6989_vm4, %v4721_v59, %v6861_v9  ;;  %v13695_v16 = vcombine.high %v4711_v6, %v4711_v6  ;;  %v16803_v19 = vmov 0 }
 0x5e7   : > { %16802 = vst [vmem:[#allocation132_spill] sm:$0xff] %v13693_v38  ;;  %vm13698_vm12 = vcmp.gt.f32.partialorder %v13664_v20, %v6862_v47  ;;  %vm6991_vm15 = vcmp.gt.f32.partialorder %v4728_v24, %v6863_v29  ;;  %v7661_v18 = vrot.slane %v7437_v5, 1  ;;  %v16806_v54 = vrot.slane %v12973_v44, 7 }
 0x5e8   : > { %v16804_v19 = vsel %vm13698_vm12, 4294967295, %v16803_v19  ;;  %v13710_v56 = vsel %vm13698_vm12, %v13664_v20, %v6862_v47  ;;  %v13712_v59 = vsel %vm6991_vm15, %v4728_v24, %v6863_v29  ;;  %vm6209_vm4 = vcmp.gt.f32.partialorder %v4704_v42, %v13580_v62 }
 0x5e9   : > { %16805 = vst [vmem:[#allocation133_spill] sm:$0xff] %v16804_v19  ;;  %v13705_v26 = vsel %vm6991_vm15, %v16806_v54, %v7311_v43  ;;  %16808 = vst [vmem:[#allocation135_spill] sm:$0xff] %v13710_v56  ;;  %v13717_v9 = vsel %vm16163_vm3, %v13710_v56, %v7661_v18  ;;  %vm6210_vm14 = vcmp.gt.f32.partialorder %v13673_v1, %v13582_v61  ;;  %v16811_v29 = vrot.slane %v13558_v27, 9 }
 0x5ea   : > { %16807 = vst [vmem:[#allocation134_spill] sm:$0xff] %v13705_v26  ;;  %16809 = vst [vmem:[#allocation136_spill] sm:$0xff] %v13712_v59  ;;  %vm6211_vm0 = vcmp.gt.f32.partialorder %v4711_v6, %v13584_v25  ;;  %vm6212_vm11 = vcmp.gt.f32.partialorder %v13695_v16, %v13586_v46  ;;  %v6721_v24 = vsel %vm6209_vm4, %v4704_v42, %v13580_v62  ;;  %v16812_v43 = vrot.slane %v13570_v10, 9 }
 0x5eb   : > { %16810 = vst [vmem:[#allocation137_spill] sm:$0xff] %v13717_v9  ;;  %v6657_v47 = vsel %vm6209_vm4, %v12977_v53, %v16811_v29  ;;  %v6722_v18 = vsel %vm6210_vm14, %v13673_v1, %v13582_v61  ;;  %v6723_v54 = vsel %vm6211_vm0, %v4711_v6, %v13584_v25  ;;  %v6857_v28 = vrot.slane %v6721_v24, 7 }
 0x5ec   : > { %v6659_v5 = vsel %vm6211_vm0, %v12981_v55, %v16812_v43  ;;  %v6858_v4 = vrot.slane %v6722_v18, 7  ;;  %v6859_v11 = vrot.slane %v6723_v54, 7  ;;  %v7305_v27 = vrot.slane %v6657_v47, 7 }
 0x5ed   : > { %v7307_v26 = vrot.slane %v6659_v5, 7  ;;  %vm6985_vm15 = vcmp.gt.f32.partialorder %v4704_v42, %v6857_v28  ;;  %v13742_v10 = vrot.slane %v13605_v14, %v12144_v39  ;;  %v13746_v29 = vrot.slane %v13605_v14, %v12147_v15 }
 0x5ee   : > { %vm13749_vm4 = vcmp.gt.f32.partialorder %v13673_v1, %v6858_v4  ;;  %vm6987_vm0 = vcmp.gt.f32.partialorder %v4711_v6, %v6859_v11  ;;  %v16817_v25 = vrot.slane %v13000_v49, 7  ;;  %v7433_v24 = vsel %vm6985_vm15, %v4704_v42, %v6857_v28 }
 0x5ef   : > { %16813 = vst [vmem:[#allocation138_spill] sm:$0xff] %v13742_v10  ;;  %16814 = vst [vmem:[#allocation139_spill] sm:$0xff] %v13746_v29  ;;  %v16818_v5 = vrot.slane %v13004_v12, 7  ;;  %v7434_v14 = vsel %vm13749_vm4, %v13673_v1, %v6858_v4  ;;  %v13764_v54 = vsel %vm6987_vm0, %v4711_v6, %v6859_v11  ;;  %v7647_v62 = vrot.slane %v7433_v24, 1 }
 0x5f0   : > { %v13755_v47 = vsel %vm6985_vm15, %v16817_v25, %v7305_v27  ;;  %v13774_v28 = vrot.slane %v13641_v17, %v12144_v39  ;;  %v13778_v6 = vrot.slane %v13641_v17, %v12147_v15  ;;  %vm16822_vm15 = vcmask 1043459  }
 0x5f1   : > { %v13759_v18 = vsel %vm6987_vm0, %v16818_v5, %v7307_v26  ;;  %v7650_v42 = vsel %vm16163_vm3, %v7434_v14, %v7647_v62  ;;  %v16823_v4 = vrot.slane %v12977_v53, 1  ;;  %v7298_v62 = vrot.slane %v13624_v40, 7  ;;  %v16825_v5 = vld [vmem:[#allocation63_spill] sm:$0xff]  ;;  %v16829_v26 = vld [vmem:[#allocation96_spill] sm:$0xff]  ;;  %v16836_v40 = vld [vmem:[#allocation121_spill] sm:$0xff] }
 0x5f2   : > { %16819 = vst [vmem:[#allocation140_spill] sm:$0xff] %v13759_v18  ;;  %16820 = vst [vmem:[#allocation141_spill] sm:$0xff] %v13774_v28  ;;  %v7651_v11 = vsel %vm16822_vm15, %v7434_v14, %v7650_v42  ;;  %v16824_v24 = vrot.slane %v13160_v35, 7 }
 0x5f3   : > { %16821 = vst [vmem:[#allocation142_spill] sm:$0xff] %v13778_v6  ;;  %v13787_v25 = vsel %vm6210_vm14, %v16823_v4, %v13575_v3  ;;  %v7652_v63 = vsel %vm16165_vm7, %v7434_v14, %v7651_v11  ;;  %v16827_v3 = vrot.slane %v13616_v48, 7  ;;  %v7362_v1 = vsel %vm13420_vm5, %v16747_v0, %v7298_v62  ;;  %vm16831_vm14 = vmmov %vm16822_vm15  ;;  %v9130_v0 = vpop.f32.mrb[18].mxu1 }
 0x5f4   : > { %v7346_v27 = vsel %vm12764_vm2, %v16825_v5, %v16824_v24  ;;  %v13800_v61 = vsel %vm16154_vm10, %v7434_v14, %v7652_v63  ;;  %v16830_v4 = vrot.slane %v16829_v26, 1  ;;  %v16832_v5 = vld [vmem:[#allocation27_spill] sm:$0xff]  ;;  %v16834_v14 = vld [vmem:[#allocation94_spill] sm:$0xff]  ;;  %v13828_v62 = vadd.s32 224, %v12029_v30 }
 0x5f5   : > { %v7354_v35 = vsel %vm13096_vm8, %v12337_v50, %v16827_v3  ;;  %v16833_v42 = vrot.slane %v16832_v5, 1  ;;  %v16835_v48 = vrot.slane %v16834_v14, 1  ;;  %v16837_v50 = vld [vmem:[#allocation53_spill] sm:$0xff]  ;;  %v13831_v3 = vadd.s32 224, %v12039_v36  ;;  %vm16839_vm8 = vmmov %vm16831_vm14 }
 0x5f6   : > { %v8164_v24 = vsel %vm16163_vm3, %v7346_v27, %v16830_v4  ;;  %vm16838_vm2 = vcmp.gt.f32.partialorder %v16837_v50, %v16836_v40  ;;  %v4274_v4 = vadd.f32 %v13133_v23, %v9130_v0  ;;  %vm16841_vm5 = vmmov %vm16839_vm8 }
 0x5f7   : > { %v8165_v11 = vsel %vm16831_vm14, %v7346_v27, %v8164_v24  ;;  %v8192_v63 = vsel %vm16163_vm3, %v7354_v35, %v16833_v42  ;;  %v8220_v17 = vsel %vm16163_vm3, %v7362_v1, %v16835_v48  ;;  %v13825_v32 = vsel %vm16838_vm2, %v16837_v50, %v16836_v40  ;;  %v4268_v24 = vpop.f32.mrb[19].mxu1 }
 0x5f8   : > { %v8166_v42 = vsel %vm16165_vm7, %v7346_v27, %v8165_v11  ;;  %v8193_v26 = vsel %vm16839_vm8, %v7354_v35, %v8192_v63  ;;  %v8221_v48 = vsel %vm16841_vm5, %v7362_v1, %v8220_v17  ;;  %v4269_v44 = vadd.f32 %v13133_v23, %v4268_v24  ;;  %v16842_v11 = vld [vmem:[#allocation79_spill] sm:$0xff]  ;;  %v16846_v17 = vld [vmem:[#allocation66_spill] sm:$0xff] }
 0x5f9   : > { %v13837_v5 = vsel %vm16154_vm10, %v7346_v27, %v8166_v42  ;;  %v8194_v14 = vsel %vm16165_vm7, %v7354_v35, %v8193_v26  ;;  %v8222_v53 = vsel %vm16165_vm7, %v7362_v1, %v8221_v48  ;;  %vm16844_vm0 = vcmp.gt.f32.partialorder %v16843_v2, %v16842_v11  ;;  %v16845_v42 = vld [vmem:[#allocation110_spill] sm:$0xff] }
 0x5fa   : > { %16840 = vst [vmem:[#allocation63_spill] sm:$0xff] %v13837_v5  ;;  %v13843_v59 = vsel %vm16154_vm10, %v7354_v35, %v8194_v14  ;;  %v13851_v63 = vsel %vm16844_vm0, %v16843_v2, %v16842_v11  ;;  %v4348_v27 = vmax.f32 %v4274_v4, 0.0  ;;  %v13854_v0 = vsel %vm16154_vm10, %v7362_v1, %v8222_v53 }
 0x5fb   : > { %v13861_v23 = vsel %vm6204_vm9, %v16846_v17, %v16845_v42  ;;  %v4347_v26 = vmax.f32 %v4269_v44, 0.0  ;;  %v13866_v24 = vrot.slane %v13831_v3, %v12057_v7  ;;  %v13870_v4 = vrot.slane %v13831_v3, %v12069_v45  ;;  %v14146_v42 = vld [vmem:[%s15790_s4] ss:$0 sm:$0xff] }
 0x5fc   : > { %v13874_v53 = vrot.slane %v13828_v62, %v12057_v7  ;;  %v4748_v1 = vcombine.high %v4348_v27, %v4348_v27  ;;  %v4755_v14 = vrot.slane %v4348_v27, %v12164_v58  ;;  %v13879_v48 = vrot.slane %v13828_v62, %v12069_v45 }
 0x5fd   : > { %16847 = vst [vmem:[#allocation75_spill] sm:$0xff] %v13866_v24  ;;  %16848 = vst [vmem:[#allocation56_spill] sm:$0xff] %v13870_v4  ;;  %v4731_v35 = vcombine.high %v4347_v26, %v4347_v26  ;;  %v4738_v38 = vrot.slane %v4347_v26, %v12164_v58  ;;  %v16851_v26 = vld [vmem:[#allocation24_spill] sm:$0xff]  ;;  %v6844_v43 = vrot.slane %v13851_v63, 7  ;;  %v16891_v63 = vrot.slane %v13825_v32, 7 }
 0x5fe   : > { %16849 = vst [vmem:[#allocation96_spill] sm:$0xff] %v13874_v53  ;;  %16850 = vst [vmem:[#allocation27_spill] sm:$0xff] %v13879_v48  ;;  %v4762_v20 = vrot.slane %v4748_v1, %v12164_v58  ;;  %v4763_v22 = vcombine.high %v4755_v14, %v4755_v14  ;;  %v5125_v5 = vrot.slane %v4755_v14, 7  ;;  %v16852_v19 = vrot.slane %v16851_v26, 7  ;;  %v16853_v24 = vld [vmem:[#allocation20_spill] sm:$0xff]  ;;  %v16855_v48 = vld [vmem:[#allocation30_spill] sm:$0xff] }
 0x5ff   : > { %v4745_v8 = vrot.slane %v4731_v35, %v12164_v58  ;;  %v4746_v56 = vcombine.high %v4738_v38, %v4738_v38  ;;  %v5121_v9 = vrot.slane %v4738_v38, 7  ;;  %v16854_v52 = vrot.slane %v16853_v24, 7 }
 0x600   : > { %v4764_v44 = vcombine.high %v4762_v20, %v4762_v20  ;;  %v5126_v28 = vrot.slane %v4763_v22, 7  ;;  %v5127_v29 = vrot.slane %v4762_v20, 7  ;;  %vm5253_vm15 = vcmp.gt.f32.partialorder %v4755_v14, %v5125_v5 }
 0x601   : > { %v13894_v4 = vsel %vm5253_vm15, %v16854_v52, %v16852_v19  ;;  %v5893_v1 = vsel %vm5253_vm15, %v4755_v14, %v5125_v5  ;;  %v4747_v10 = vcombine.high %v4745_v8, %v4745_v8  ;;  %v5122_v37 = vrot.slane %v4746_v56, 7 }
 0x602   : > { %v5128_v27 = vrot.slane %v4764_v44, 7  ;;  %vm5254_vm14 = vcmp.gt.f32.partialorder %v4763_v22, %v5126_v28  ;;  %vm5255_vm2 = vcmp.gt.f32.partialorder %v4762_v20, %v5127_v29  ;;  %v6073_v35 = vrot.slane %v5893_v1, 7 }
 0x603   : > { %v5830_v6 = vsel %vm5254_vm14, %v16853_v24, %v16851_v26  ;;  %v16856_v53 = vrot.slane %v16855_v48, 7  ;;  %v5894_v18 = vsel %vm5254_vm14, %v4763_v22, %v5126_v28  ;;  %v5895_v12 = vsel %vm5255_vm2, %v4762_v20, %v5127_v29  ;;  %v16865_v28 = vld [vmem:[#allocation83_spill] sm:$0xff] }
 0x604   : > { %vm5256_vm8 = vcmp.gt.f32.partialorder %v4764_v44, %v5128_v27  ;;  %v13904_v52 = vrot.slane %v6073_v35, 2  ;;  %v6075_v19 = vrot.slane %v5894_v18, 7  ;;  %v6077_v5 = vrot.slane %v5895_v12, 7 }
 0x605   : > { %v13902_v57 = vsel %vm5255_vm2, %v16858_v34, %v16856_v53  ;;  %v5832_v14 = vsel %vm5256_vm8, %v16857_v21, %v16855_v48  ;;  %v5896_v1 = vsel %vm5256_vm8, %v4764_v44, %v5128_v27  ;;  %v13909_v24 = vrot.slane %v5830_v6, 9  ;;  %v16867_v53 = vld [vmem:[#allocation32_spill] sm:$0xff] }
 0x606   : > { %v13911_v26 = vrot.slane %v6075_v19, 2  ;;  %v13913_v13 = vrot.slane %v6077_v5, 2  ;;  %v6079_v34 = vrot.slane %v5896_v1, 7  ;;  %v13916_v20 = vrot.slane %v5832_v14, 9  ;;  %v16869_v5 = vld [vmem:[#allocation114_spill] sm:$0xff] }
 0x607   : > { %16859 = vst [vmem:[#allocation94_spill] sm:$0xff] %v13909_v24  ;;  %v5123_v29 = vrot.slane %v4745_v8, 7  ;;  %v5124_v18 = vrot.slane %v4747_v10, 7  ;;  %vm5249_vm5 = vcmp.gt.f32.partialorder %v4738_v38, %v5121_v9  ;;  %vm13920_vm0 = vcmp.gt.f32.partialorder %v4746_v56, %v5122_v37  ;;  %v16871_v1 = vld [vmem:[#allocation62_spill] sm:$0xff] }
 0x608   : > { %16860 = vst [vmem:[#allocation121_spill] sm:$0xff] %v13911_v26  ;;  %16861 = vst [vmem:[#allocation53_spill] sm:$0xff] %v13916_v20  ;;  %v13918_v12 = vrot.slane %v6079_v34, 2  ;;  %v16866_v6 = vrot.slane %v16865_v28, 7  ;;  %v16868_v48 = vrot.slane %v16867_v53, 7  ;;  %v5889_v27 = vsel %vm5249_vm5, %v4738_v38, %v5121_v9 }
 0x609   : > { %vm5251_vm15 = vcmp.gt.f32.partialorder %v4745_v8, %v5123_v29  ;;  %vm5252_vm14 = vcmp.gt.f32.partialorder %v4747_v10, %v5124_v18  ;;  %v5826_v35 = vsel %vm13920_vm0, %v16867_v53, %v16865_v28  ;;  %v5890_v19 = vsel %vm13920_vm0, %v4746_v56, %v5122_v37 }
 0x60a   : > { %16862 = vst [vmem:[#allocation79_spill] sm:$0xff] %v13918_v12  ;;  %v13928_v44 = vsel %vm5249_vm5, %v16868_v48, %v16866_v6  ;;  %v16870_v14 = vrot.slane %v16869_v5, 7  ;;  %v16872_v34 = vrot.slane %v16871_v1, 7  ;;  %v5828_v6 = vsel %vm5252_vm14, %v16871_v1, %v16869_v5 }
 0x60b   : > { %v5891_v38 = vsel %vm5251_vm15, %v4745_v8, %v5123_v29  ;;  %v5892_v9 = vsel %vm5252_vm14, %v4747_v10, %v5124_v18  ;;  %v6065_v48 = vrot.slane %v5889_v27, 7  ;;  %v6067_v55 = vrot.slane %v5890_v19, 7 }
 0x60c   : > { %v13940_v22 = vsel %vm5251_vm15, %v16872_v34, %v16870_v14  ;;  %v6069_v20 = vrot.slane %v5891_v38, 7  ;;  %v6071_v24 = vrot.slane %v5892_v9, 7  ;;  %v13945_v53 = vrot.slane %v5826_v35, 9 }
 0x60d   : > { %v13948_v56 = vrot.slane %v5828_v6, 9  ;;  %v13950_v21 = vrot.slane %v6065_v48, 2  ;;  %v13952_v14 = vrot.slane %v6067_v55, 2  ;;  %v13960_v10 = vrot.slane %v12039_v36, %v12057_v7 }
 0x60e   : > { %v13954_v34 = vrot.slane %v6069_v20, 2  ;;  %v13956_v8 = vrot.slane %v6071_v24, 2  ;;  %v13964_v29 = vrot.slane %v12039_v36, %v12069_v45  ;;  %v13968_v18 = vrot.slane %v12029_v30, %v12057_v7 }
 0x60f   : > { %v13972_v55 = vrot.slane %v12029_v30, %v12069_v45  ;;  %v13975_v20 = vadd.s32 16, %v12029_v30  ;;  %v13978_v24 = vadd.s32 16, %v12039_v36  ;;  %v13982_v27 = vrot.slane %v13831_v3, %v12144_v39 }
 0x610   : > { %16873 = vst [vmem:[#allocation80_spill] sm:$0xff] %v13964_v29  ;;  %v13986_v35 = vrot.slane %v13831_v3, %v12147_v15  ;;  %v14012_v19 = vrot.slane %v13828_v62, %v12144_v39  ;;  %v14016_v1 = vrot.slane %v13828_v62, %v12147_v15  ;;  %v16883_v62 = vcombine.low %v13843_v59, %v13854_v0 }
 0x611   : > { %16874 = vst [vmem:[#allocation110_spill] sm:$0xff] %v13972_v55  ;;  %16875 = vst [vmem:[#allocation66_spill] sm:$0xff] %v13982_v27  ;;  %v13994_v38 = vrot.slane %v13975_v20, %v12057_v7  ;;  %v13998_v9 = vrot.slane %v13975_v20, %v12069_v45  ;;  %v14002_v3 = vrot.slane %v13978_v24, %v12057_v7  ;;  %v6852_v0 = vrot.slane %v13861_v23, 7  ;;  %v16898_v55 = vld [vmem:[#allocation125_spill] sm:$0xff] }
 0x612   : > { %16876 = vst [vmem:[#allocation24_spill] sm:$0xff] %v13986_v35  ;;  %v14006_v48 = vrot.slane %v13978_v24, %v12069_v45  ;;  %16880 = vst [vmem:[#allocation83_spill] sm:$0xff] %v14012_v19  ;;  %v16882_v35 = vrot.slane %v13787_v25, 7  ;;  %v14033_v37 = vrot.slane %v16883_v62, %v16795_v41  ;;  %v14037_v29 = vrot.slane %v12039_v36, %v12144_v39 }
 0x613   : > { %16877 = vst [vmem:[#allocation20_spill] sm:$0xff] %v13998_v9  ;;  %16878 = vst [vmem:[#allocation30_spill] sm:$0xff] %v14002_v3  ;;  %v14041_v5 = vrot.slane %v12029_v30, %v12144_v39  ;;  %v16887_v25 = vrot.slane %v13755_v47, 1  ;;  %v14059_v47 = vrot.slane %v12039_v36, %v12147_v15  ;;  %vm14071_vm2 = vcmp.gt.f32.partialorder %v16837_v50, %v16891_v63  ;;  %v16910_v9 = vld [vmem:[#allocation45_spill] sm:$0xff] }
 0x614   : > { %16879 = vst [vmem:[#allocation26_spill] sm:$0xff] %v14006_v48  ;;  %16881 = vst [vmem:[#allocation32_spill] sm:$0xff] %v14016_v1  ;;  %v7370_v27 = vsel %vm13749_vm4, %v13000_v49, %v16882_v35  ;;  %v14051_v49 = vsel %vm6212_vm11, %v13695_v16, %v13586_v46  ;;  %vm16888_vm4 = vcmask 1043459   ;;  %vm14076_vm8 = vcmp.gt.f32.partialorder %v16843_v2, %v6844_v43  ;;  %v16905_v1 = vld [vmem:[#allocation23_spill] sm:$0xff] }
 0x615   : > { %16884 = vst [vmem:[#allocation114_spill] sm:$0xff] %v14033_v37  ;;  %16885 = vst [vmem:[#allocation62_spill] sm:$0xff] %v14037_v29  ;;  %v8248_v6 = vsel %vm16163_vm3, %v7370_v27, %v16887_v25  ;;  %v14064_v25 = vrot.slane %v12029_v30, %v12147_v15  ;;  %vm14081_vm5 = vcmp.gt.f32.partialorder %v16846_v17, %v6852_v0  ;;  %v16906_v19 = vrot.slane %v16905_v1, 1  ;;  %v16907_v48 = vld [vmem:[#allocation35_spill] sm:$0xff]  ;;  %v16914_v1 = vld [vmem:[#allocation14_spill] sm:$0xff] }
 0x616   : > { %16886 = vst [vmem:[#allocation143_spill] sm:$0xff] %v14041_v5  ;;  %v8249_v59 = vsel %vm16888_vm4, %v7370_v27, %v8248_v6  ;;  %16889 = vst [vmem:[#allocation144_spill] sm:$0xff] %v14059_v47  ;;  %v7412_v37 = vsel %vm14071_vm2, %v16837_v50, %v16891_v63  ;;  %v7420_v29 = vsel %vm14076_vm8, %v16843_v2, %v6844_v43  ;;  %v16899_v47 = vrot.slane %v16898_v55, 1  ;;  %v16909_v55 = vld [vmem:[#allocation57_spill] sm:$0xff] }
 0x617   : > { %16890 = vst [vmem:[#allocation145_spill] sm:$0xff] %v14064_v25  ;;  %v8250_v6 = vsel %vm16165_vm7, %v7370_v27, %v8249_v59  ;;  %v7428_v5 = vsel %vm14081_vm5, %v16846_v17, %v6852_v0  ;;  %vm16903_vm0 = vcmp.gt.f32.partialorder %v16837_v50, %v16836_v40  ;;  %vm16904_vm15 = vmmov %vm16888_vm4  ;;  %v7601_v43 = vsel %vm16163_vm3, %v7420_v29, %v16906_v19 }
 0x618   : > { %v14088_v35 = vsel %vm16154_vm10, %v7370_v27, %v8250_v6  ;;  %v7573_v59 = vsel %vm16163_vm3, %v7412_v37, %v16899_v47  ;;  %v16900_v27 = vld [vmem:[#allocation92_spill] sm:$0xff]  ;;  %v16901_v6 = vld [vmem:[#allocation39_spill] sm:$0xff]  ;;  %v16908_v3 = vrot.slane %v16907_v48, 1  ;;  %v16911_v47 = vrot.slane %v16910_v9, 1 }
 0x619   : > { %v16902_v25 = vrot.slane %v16901_v6, 1  ;;  %v7574_v63 = vsel %vm16904_vm15, %v7412_v37, %v7573_v59  ;;  %vm16912_vm14 = vcmp.gt.f32.partialorder %v16843_v2, %v16842_v11  ;;  %v7602_v50 = vsel %vm16888_vm4, %v7420_v29, %v7601_v43  ;;  %v16915_v59 = vld [vmem:[#allocation74_spill] sm:$0xff] }
 0x61a   : > { %v7629_v0 = vsel %vm16163_vm3, %v7428_v5, %v16908_v3  ;;  %v6644_v6 = vsel %vm16912_vm14, %v16911_v47, %v16909_v55  ;;  %v7575_v40 = vsel %vm16165_vm7, %v7412_v37, %v7574_v63  ;;  %v16916_v19 = vrot.slane %v16915_v59, 1 }
 0x61b   : > { %v6636_v32 = vsel %vm16903_vm0, %v16902_v25, %v16900_v27  ;;  %vm16913_vm0 = vmmov %vm16888_vm4  ;;  %v14134_v9 = vrot.slane %v13975_v20, %v12144_v39  ;;  %v14137_v2 = vsel %vm16154_vm10, %v7412_v37, %v7575_v40  ;;  %v7603_v11 = vsel %vm16165_vm7, %v7420_v29, %v7602_v50  ;;  %v9133_v27 = vpop.f32.mrb[20].mxu1 }
 0x61c   : > { %v7630_v25 = vsel %vm16913_vm0, %v7428_v5, %v7629_v0  ;;  %v6652_v3 = vsel %vm6204_vm9, %v16916_v19, %v16914_v1  ;;  %16917 = vst [vmem:[#allocation125_spill] sm:$0xff] %v14137_v2  ;;  %v7604_v63 = vsel %vm16154_vm10, %v7420_v29, %v7603_v11  ;;  %v7284_v0 = vrot.slane %v6636_v32, 7  ;;  %v4278_v37 = vpop.f32.mrb[21].mxu1  ;;  %v16919_v32 = vld [vmem:[#allocation84_spill] sm:$0xff]  ;;  %v16922_v11 = vld [vmem:[#allocation105_spill] sm:$0xff]  ;;  %vm16927_vm9 = vmmov %vm16913_vm0 }
 0x61d   : > { %v7631_v48 = vsel %vm16165_vm7, %v7428_v5, %v7630_v25  ;;  %v7292_v55 = vrot.slane %v6644_v6, 7  ;;  %v4284_v17 = vadd.f32 %v14146_v42, %v9133_v27  ;;  %v14151_v47 = vrot.slane %v13975_v20, %v12147_v15  ;;  %v16920_v25 = vld [vmem:[#allocation89_spill] sm:$0xff] }
 0x61e   : > { %v7632_v43 = vsel %vm16154_vm10, %v7428_v5, %v7631_v48  ;;  %v4279_v29 = vadd.f32 %v14146_v42, %v4278_v37  ;;  %v7300_v5 = vrot.slane %v6652_v3, 7  ;;  %v14158_v6 = vsel %vm14071_vm2, %v16919_v32, %v7284_v0  ;;  %v16928_v37 = vld [vmem:[#allocation17_spill] sm:$0xff] }
 0x61f   : > { %16918 = vst [vmem:[#allocation92_spill] sm:$0xff] %v14151_v47  ;;  %v7836_v50 = vcombine.low %v7604_v63, %v7632_v43  ;;  %v14163_v1 = vsel %vm14076_vm8, %v16920_v25, %v7292_v55  ;;  %v4350_v59 = vmax.f32 %v4284_v17, 0.0  ;;  %v16923_v48 = vrot.slane %v16922_v11, 1  ;;  %v16926_v63 = vld [vmem:[#allocation104_spill] sm:$0xff] }
 0x620   : > { %v4349_v27 = vmax.f32 %v4279_v29, 0.0  ;;  %v14175_v23 = vrot.slane %v13978_v24, %v12144_v39  ;;  %v14179_v28 = vrot.slane %v13978_v24, %v12147_v15  ;;  %v14184_v43 = vsel %vm14081_vm5, %v16926_v63, %v7300_v5  ;;  %v16935_v25 = vld [vmem:[#allocation112_spill] sm:$0xff] }
 0x621   : > { %v14167_v19 = vrot.slane %v7836_v50, %v16795_v41  ;;  %v8171_v3 = vsel %vm16163_vm3, %v14158_v6, %v16923_v48  ;;  %v4782_v0 = vcombine.high %v4350_v59, %v4350_v59  ;;  %v4789_v55 = vrot.slane %v4350_v59, %v12164_v58 }
 0x622   : > { %16924 = vst [vmem:[#allocation23_spill] sm:$0xff] %v14175_v23  ;;  %16925 = vst [vmem:[#allocation35_spill] sm:$0xff] %v14179_v28  ;;  %v8172_v17 = vsel %vm16927_vm9, %v14158_v6, %v8171_v3  ;;  %v16929_v50 = vrot.slane %v16928_v37, 1  ;;  %v4765_v32 = vcombine.high %v4349_v27, %v4349_v27  ;;  %v4772_v24 = vrot.slane %v4349_v27, %v12164_v58  ;;  %v16932_v3 = vld [vmem:[#allocation111_spill] sm:$0xff] }
 0x623   : > { %16921 = vst [vmem:[#allocation39_spill] sm:$0xff] %v14167_v19  ;;  %v4796_v5 = vrot.slane %v4782_v0, %v12164_v58  ;;  %v14199_v11 = vcombine.high %v4789_v55, %v4789_v55  ;;  %vm6221_vm2 = vcmp.gt.f32.partialorder %v4789_v55, %v13904_v52  ;;  %v14204_v59 = vsel %vm16165_vm7, %v14158_v6, %v8172_v17 }
 0x624   : > { %v14193_v29 = vsel %vm16163_vm3, %v14163_v1, %v16929_v50  ;;  %v16931_v48 = vrot.slane %v13894_v4, 9  ;;  %v6733_v27 = vsel %vm6221_vm2, %v4789_v55, %v13904_v52  ;;  %v4779_v37 = vrot.slane %v4765_v32, %v12164_v58 }
 0x625   : > { %16930 = vst [vmem:[#allocation57_spill] sm:$0xff] %v14199_v11  ;;  %v4780_v50 = vcombine.high %v4772_v24, %v4772_v24  ;;  %v14211_v62 = vcombine.high %v4796_v5, %v4796_v5  ;;  %vm16152_vm8 = vcmp.gt.f32.partialorder %v14199_v11, %v13911_v26  ;;  %vm6223_vm5 = vcmp.gt.f32.partialorder %v4796_v5, %v13913_v13 }
 0x626   : > { %v6669_v63 = vsel %vm6221_vm2, %v16932_v3, %v16931_v48  ;;  %v6869_v0 = vrot.slane %v6733_v27, 7  ;;  %v16934_v17 = vrot.slane %v13902_v57, 9  ;;  %v6734_v4 = vsel %vm16152_vm8, %v14199_v11, %v13911_v26  ;;  %v16936_v3 = vld [vmem:[#allocation118_spill] sm:$0xff] }
 0x627   : > { %16933 = vst [vmem:[#allocation45_spill] sm:$0xff] %v14211_v62  ;;  %v6735_v52 = vsel %vm6223_vm5, %v4796_v5, %v13913_v13  ;;  %v7317_v32 = vrot.slane %v6669_v63, 7  ;;  %v6870_v48 = vrot.slane %v6734_v4, 7  ;;  %v16937_v57 = vrot.slane %v16936_v3, 7  ;;  %v16942_v4 = vld [vmem:[#allocation47_spill] sm:$0xff] }
 0x628   : > { %v6671_v20 = vsel %vm6223_vm5, %v16935_v25, %v16934_v17  ;;  %v6871_v40 = vrot.slane %v6735_v52, 7  ;;  %vm6997_vm14 = vcmp.gt.f32.partialorder %v4789_v55, %v6869_v0  ;;  %v14231_v25 = vcombine.high %v4779_v37, %v4779_v37 }
 0x629   : > { %v7319_v27 = vrot.slane %v6671_v20, 7  ;;  %v14229_v19 = vsel %vm6997_vm14, %v16937_v57, %v7317_v32  ;;  %v7445_v17 = vsel %vm6997_vm14, %v4789_v55, %v6869_v0  ;;  %vm14234_vm4 = vcmp.gt.f32.partialorder %v14199_v11, %v6870_v48 }
 0x62a   : > { %16938 = vst [vmem:[#allocation14_spill] sm:$0xff] %v14229_v19  ;;  %v16939_v26 = vmov 0  ;;  %vm6999_vm0 = vcmp.gt.f32.partialorder %v4796_v5, %v6871_v40  ;;  %v7689_v13 = vrot.slane %v7445_v17, 1  ;;  %v16943_v52 = vrot.slane %v16942_v4, 7 }
 0x62b   : > { %v16940_v26 = vsel %vm14234_vm4, 4294967295, %v16939_v26  ;;  %v14246_v20 = vsel %vm14234_vm4, %v14199_v11, %v6870_v48  ;;  %v14248_v55 = vsel %vm6999_vm0, %v4796_v5, %v6871_v40  ;;  %vm6217_vm9 = vcmp.gt.f32.partialorder %v4772_v24, %v13950_v21  ;;  %v16947_v5 = vld [vmem:[#allocation88_spill] sm:$0xff]  ;;  %v16972_v11 = vld [vmem:[#allocation82_spill] sm:$0xff] }
 0x62c   : > { %16941 = vst [vmem:[#allocation74_spill] sm:$0xff] %v16940_v26  ;;  %v14241_v62 = vsel %vm6999_vm0, %v16943_v52, %v7319_v27  ;;  %16945 = vst [vmem:[#allocation89_spill] sm:$0xff] %v14248_v55  ;;  %v14253_v0 = vsel %vm16163_vm3, %v14246_v20, %v7689_v13  ;;  %vm6218_vm2 = vcmp.gt.f32.partialorder %v4780_v50, %v13952_v14  ;;  %v16946_v40 = vrot.slane %v13928_v44, 9  ;;  %v16949_v13 = vld [vmem:[#allocation38_spill] sm:$0xff] }
 0x62d   : > { %16944 = vst [vmem:[#allocation84_spill] sm:$0xff] %v14241_v62  ;;  %vm6219_vm5 = vcmp.gt.f32.partialorder %v4779_v37, %v13954_v34  ;;  %vm6220_vm14 = vcmp.gt.f32.partialorder %v14231_v25, %v13956_v8  ;;  %v6729_v27 = vsel %vm6217_vm9, %v4772_v24, %v13950_v21  ;;  %v16948_v17 = vrot.slane %v13940_v22, 9 }
 0x62e   : > { %v6665_v48 = vsel %vm6217_vm9, %v16947_v5, %v16946_v40  ;;  %v6730_v57 = vsel %vm6218_vm2, %v4780_v50, %v13952_v14  ;;  %v6731_v32 = vsel %vm6219_vm5, %v4779_v37, %v13954_v34  ;;  %v6865_v63 = vrot.slane %v6729_v27, 7  ;;  %v16953_v34 = vld [vmem:[#allocation70_spill] sm:$0xff]  ;;  %v16955_v27 = vld [vmem:[#allocation120_spill] sm:$0xff] }
 0x62f   : > { %v6667_v52 = vsel %vm6219_vm5, %v16949_v13, %v16948_v17  ;;  %v6866_v62 = vrot.slane %v6730_v57, 7  ;;  %v6867_v4 = vrot.slane %v6731_v32, 7  ;;  %v7313_v55 = vrot.slane %v6665_v48, 7 }
 0x630   : > { %v7315_v12 = vrot.slane %v6667_v52, 7  ;;  %vm6993_vm0 = vcmp.gt.f32.partialorder %v4772_v24, %v6865_v63  ;;  %v5920_v44 = vadd.s32 240, %v12029_v30  ;;  %v6760_v21 = vadd.s32 240, %v12039_v36 }
 0x631   : > { %v16950_v22 = vrot.slane %v16947_v5, 1  ;;  %vm14279_vm9 = vcmp.gt.f32.partialorder %v4780_v50, %v6866_v62  ;;  %vm6995_vm5 = vcmp.gt.f32.partialorder %v4779_v37, %v6867_v4  ;;  %v16954_v32 = vrot.slane %v16953_v34, 7 }
 0x632   : > { %v7441_v48 = vsel %vm6993_vm0, %v4772_v24, %v6865_v63  ;;  %v16956_v52 = vrot.slane %v16955_v27, 7  ;;  %v7442_v36 = vsel %vm14279_vm9, %v4780_v50, %v6866_v62  ;;  %v14291_v5 = vsel %vm6995_vm5, %v4779_v37, %v6867_v4 }
 0x633   : > { %v6666_v40 = vsel %vm6218_vm2, %v16950_v22, %v13945_v53  ;;  %v7377_v57 = vsel %vm6993_vm0, %v16954_v32, %v7313_v55  ;;  %v7675_v14 = vrot.slane %v7441_v48, 1  ;;  %v14296_v26 = vrot.slane %v5920_v44, %v12057_v7  ;;  %v9136_v37 = vpop.f32.mrb[22].mxu1  ;;  %vm16965_vm2 = vmmov %vm16904_vm15 }
 0x634   : > { %v14287_v30 = vsel %vm6995_vm5, %v16956_v52, %v7315_v12  ;;  %v8273_v22 = vrot.slane %v7377_v57, 1  ;;  %v14300_v63 = vrot.slane %v5920_v44, %v12069_v45  ;;  %v14303_v12 = vrot.slane %v6760_v21, %v12057_v7  ;;  %v4288_v48 = vpop.f32.mrb[23].mxu1 }
 0x635   : > { %16957 = vst [vmem:[#allocation105_spill] sm:$0xff] %v14296_v26  ;;  %v7678_v24 = vsel %vm16163_vm3, %v7442_v36, %v7675_v14  ;;  %v14306_v62 = vrot.slane %v6760_v21, %v12069_v45  ;;  %v14310_v4 = vrot.slane %v5920_v44, %v12144_v39  ;;  %v14313_v55 = vrot.slane %v5920_v44, %v12147_v15 }
 0x636   : > { %16958 = vst [vmem:[#allocation104_spill] sm:$0xff] %v14300_v63  ;;  %16959 = vst [vmem:[#allocation17_spill] sm:$0xff] %v14303_v12  ;;  %v14316_v32 = vrot.slane %v6760_v21, %v12144_v39  ;;  %v4294_v57 = vadd.f32 %v14146_v42, %v9136_v37  ;;  %v4289_v14 = vadd.f32 %v14146_v42, %v4288_v48  ;;  %v7314_v3 = vrot.slane %v6666_v40, 7 }
 0x637   : > { %16960 = vst [vmem:[#allocation88_spill] sm:$0xff] %v14306_v62  ;;  %16961 = vst [vmem:[#allocation38_spill] sm:$0xff] %v14310_v4  ;;  %v14326_v44 = vrot.slane %v6760_v21, %v12147_v15  ;;  %v7679_v37 = vsel %vm16965_vm2, %v7442_v36, %v7678_v24  ;;  %v16966_v48 = vrot.slane %v14051_v49, 7  ;;  %v16976_v62 = vld [vmem:[#allocation51_spill] sm:$0xff]  ;;  %v14464_v46 = vsel %vm16154_vm10, %v14158_v6, %v14204_v59  ;;  %v16997_v6 = vld [vmem:[#allocation101_spill] sm:$0xff] }
 0x638   : > { %16962 = vst [vmem:[#allocation70_spill] sm:$0xff] %v14313_v55  ;;  %16963 = vst [vmem:[#allocation120_spill] sm:$0xff] %v14316_v32  ;;  %v4352_v39 = vmax.f32 %v4294_v57, 0.0  ;;  %v4351_v7 = vmax.f32 %v4289_v14, 0.0  ;;  %v7680_v52 = vsel %vm16165_vm7, %v7442_v36, %v7679_v37  ;;  %v14344_v40 = vsel %vm14279_vm9, %v16953_v34, %v7314_v3 }
 0x639   : > { %16964 = vst [vmem:[#allocation146_spill] sm:$0xff] %v14326_v44  ;;  %vm14335_vm0 = vcmp.gt.f32.partialorder %v13695_v16, %v16966_v48  ;;  %v7681_v57 = vsel %vm16154_vm10, %v7442_v36, %v7680_v52  ;;  %v8276_v3 = vsel %vm16163_vm3, %v14344_v40, %v8273_v22  ;;  %v16977_v12 = vrot.slane %v16976_v62, 7 }
 0x63a   : > { %v4816_v15 = vcombine.high %v4352_v39, %v4352_v39  ;;  %v4823_v21 = vrot.slane %v4352_v39, %v12164_v58  ;;  %v4799_v24 = vcombine.high %v4351_v7, %v4351_v7  ;;  %v4806_v14 = vrot.slane %v4351_v7, %v12164_v58 }
 0x63b   : > { %v7809_v37 = vcombine.low %v13800_v61, %v7681_v57  ;;  %v14353_v19 = vsel %vm14335_vm0, %v13695_v16, %v16966_v48  ;;  %v16970_v48 = vld [vmem:[#allocation91_spill] sm:$0xff]  ;;  %v16998_v59 = vrot.slane %v16997_v6, 1 }
 0x63c   : > { %v4830_v39 = vrot.slane %v4816_v15, %v12164_v58  ;;  %v4831_v36 = vcombine.high %v4823_v21, %v4823_v21  ;;  %v5133_v52 = vrot.slane %v4823_v21, 7  ;;  %v4813_v17 = vrot.slane %v4799_v24, %v12164_v58 }
 0x63d   : > { %v4814_v34 = vcombine.high %v4806_v14, %v4806_v14  ;;  %v5129_v7 = vrot.slane %v4806_v14, 7  ;;  %v14360_v61 = vrot.slane %v7809_v37, %v16795_v41  ;;  %v16971_v53 = vrot.slane %v16970_v48, 7 }
 0x63e   : > { %v4832_v49 = vcombine.high %v4830_v39, %v4830_v39  ;;  %v5134_v57 = vrot.slane %v4831_v36, 7  ;;  %v5135_v45 = vrot.slane %v4830_v39, 7  ;;  %vm5261_vm9 = vcmp.gt.f32.partialorder %v4823_v21, %v5133_v52 }
 0x63f   : > { %16969 = vst [vmem:[#allocation147_spill] sm:$0xff] %v14360_v61  ;;  %v16973_v15 = vrot.slane %v16972_v11, 7  ;;  %v5901_v44 = vsel %vm5261_vm9, %v4823_v21, %v5133_v52  ;;  %v4815_v32 = vcombine.high %v4813_v17, %v4813_v17  ;;  %v5130_v22 = vrot.slane %v4814_v34, 7  ;;  %v16974_v61 = vld [vmem:[#allocation61_spill] sm:$0xff] }
 0x640   : > { %v5136_v55 = vrot.slane %v4832_v49, 7  ;;  %vm5262_vm5 = vcmp.gt.f32.partialorder %v4831_v36, %v5134_v57  ;;  %vm5263_vm2 = vcmp.gt.f32.partialorder %v4830_v39, %v5135_v45  ;;  %v6089_v24 = vrot.slane %v5901_v44, 7 }
 0x641   : > { %v14366_v2 = vsel %vm5261_vm9, %v16973_v15, %v16971_v53  ;;  %v5838_v37 = vsel %vm5262_vm5, %v16972_v11, %v16970_v48  ;;  %v16975_v4 = vrot.slane %v16974_v61, 7  ;;  %v5902_v26 = vsel %vm5262_vm5, %v4831_v36, %v5134_v57 }
 0x642   : > { %v5903_v28 = vsel %vm5263_vm2, %v4830_v39, %v5135_v45  ;;  %vm5264_vm15 = vcmp.gt.f32.partialorder %v4832_v49, %v5136_v55  ;;  %v14376_v53 = vrot.slane %v6089_v24, 2  ;;  %v6091_v21 = vrot.slane %v5902_v26, 7 }
 0x643   : > { %v14374_v63 = vsel %vm5263_vm2, %v16977_v12, %v16975_v4  ;;  %v6093_v52 = vrot.slane %v5903_v28, 7  ;;  %v5840_v15 = vsel %vm5264_vm15, %v16976_v62, %v16974_v61  ;;  %v5904_v44 = vsel %vm5264_vm15, %v4832_v49, %v5136_v55 }
 0x644   : > { %v8909_v23 = vrot.slane %v14366_v2, 9  ;;  %v14381_v11 = vrot.slane %v5838_v37, 9  ;;  %v14383_v48 = vrot.slane %v6091_v21, 2  ;;  %v6095_v12 = vrot.slane %v5904_v44, 7 }
 0x645   : > { %v14385_v47 = vrot.slane %v6093_v52, 2  ;;  %v8911_v4 = vrot.slane %v14374_v63, 9  ;;  %v14388_v45 = vrot.slane %v5840_v15, 9  ;;  %v5131_v39 = vrot.slane %v4813_v17, 7 }
 0x646   : > { %16978 = vst [vmem:[#allocation91_spill] sm:$0xff] %v14381_v11  ;;  %16979 = vst [vmem:[#allocation82_spill] sm:$0xff] %v14383_v48  ;;  %v5132_v26 = vrot.slane %v4815_v32, 7  ;;  %vm5257_vm9 = vcmp.gt.f32.partialorder %v4806_v14, %v5129_v7  ;;  %v14390_v28 = vrot.slane %v6095_v12, 2  ;;  %vm14392_vm5 = vcmp.gt.f32.partialorder %v4814_v34, %v5130_v22 }
 0x647   : > { %16980 = vst [vmem:[#allocation61_spill] sm:$0xff] %v14388_v45  ;;  %v16984_v55 = vrot.slane %v13598_v33, 7  ;;  %v16985_v36 = vrot.slane %v13590_v60, 7  ;;  %v5897_v49 = vsel %vm5257_vm9, %v4806_v14, %v5129_v7  ;;  %vm5259_vm15 = vcmp.gt.f32.partialorder %v4813_v17, %v5131_v39 }
 0x648   : > { %16981 = vst [vmem:[#allocation51_spill] sm:$0xff] %v14390_v28  ;;  %vm5260_vm2 = vcmp.gt.f32.partialorder %v4815_v32, %v5132_v26  ;;  %v5834_v57 = vsel %vm14392_vm5, %v13590_v60, %v13598_v33  ;;  %v5898_v24 = vsel %vm14392_vm5, %v4814_v34, %v5130_v22  ;;  %v16986_v37 = vrot.slane %v13602_v31, 7 }
 0x649   : > { %v14400_v61 = vsel %vm5257_vm9, %v16985_v36, %v16984_v55  ;;  %v16987_v21 = vrot.slane %v13594_v51, 7  ;;  %v5836_v15 = vsel %vm5260_vm2, %v13594_v51, %v13602_v31  ;;  %v5899_v14 = vsel %vm5259_vm15, %v4813_v17, %v5131_v39 }
 0x64a   : > { %v5900_v7 = vsel %vm5260_vm2, %v4815_v32, %v5132_v26  ;;  %v6081_v44 = vrot.slane %v5897_v49, 7  ;;  %v6083_v12 = vrot.slane %v5898_v24, 7  ;;  %v6085_v55 = vrot.slane %v5899_v14, 7  ;;  %v16990_v26 = vld [vmem:[#allocation78_spill] sm:$0xff] }
 0x64b   : > { %v14412_v52 = vsel %vm5259_vm15, %v16987_v21, %v16986_v37  ;;  %v6087_v36 = vrot.slane %v5900_v7, 7  ;;  %v8905_v60 = vrot.slane %v14400_v61, 9  ;;  %v14417_v33 = vrot.slane %v5834_v57, 9  ;;  %v16991_v49 = vld [vmem:[#allocation18_spill] sm:$0xff] }
 0x64c   : > { %v8907_v34 = vrot.slane %v14412_v52, 9  ;;  %v14420_v22 = vrot.slane %v5836_v15, 9  ;;  %v14422_v62 = vrot.slane %v6081_v44, 2  ;;  %v14424_v37 = vrot.slane %v6083_v12, 2 }
 0x64d   : > { %v14426_v21 = vrot.slane %v6085_v55, 2  ;;  %v14428_v51 = vrot.slane %v6087_v36, 2  ;;  %vm16988_vm9 = vcmask 1043459   ;;  %v6732_v32 = vsel %vm6220_vm14, %v14231_v25, %v13956_v8 }
 0x64e   : > { %v8277_v31 = vsel %vm16988_vm9, %v14344_v40, %v8276_v3  ;;  %v16989_v17 = vrot.slane %v13764_v54, 1  ;;  %v16992_v57 = vrot.slane %v16991_v49, 1  ;;  %v6868_v15 = vrot.slane %v6732_v32, 7  ;;  %vm16993_vm5 = vmmov %vm16988_vm9 }
 0x64f   : > { %v8278_v3 = vsel %vm16165_vm7, %v14344_v40, %v8277_v31  ;;  %v16994_v12 = vrot.slane %v16949_v13, 1  ;;  %v16995_v13 = vld [vmem:[#allocation59_spill] sm:$0xff]  ;;  %v9139_v32 = vpop.f32.mrb[24].mxu1 }
 0x650   : > { %v7657_v39 = vsel %vm16163_vm3, %v14353_v19, %v16989_v17  ;;  %v6660_v24 = vsel %vm6212_vm11, %v16992_v57, %v16990_v26  ;;  %v8279_v54 = vsel %vm16154_vm10, %v14344_v40, %v8278_v3  ;;  %vm6996_vm11 = vcmp.gt.f32.partialorder %v14231_v25, %v6868_v15  ;;  %v4298_v26 = vpop.f32.mrb[25].mxu1 }
 0x651   : > { %v7658_v14 = vsel %vm16993_vm5, %v14353_v19, %v7657_v39  ;;  %v7308_v7 = vrot.slane %v6660_v24, 7  ;;  %v6668_v16 = vsel %vm6220_vm14, %v16994_v12, %v13948_v56  ;;  %v8375_v55 = vcombine.low %v14088_v35, %v8279_v54  ;;  %vm16996_vm14 = vmmov %vm16993_vm5 }
 0x652   : > { %v7659_v44 = vsel %vm16165_vm7, %v14353_v19, %v7658_v14  ;;  %v7316_v36 = vrot.slane %v6668_v16, 7  ;;  %v7444_v31 = vsel %vm6996_vm11, %v14231_v25, %v6868_v15  ;;  %v8200_v56 = vsel %vm16996_vm14, %v14163_v1, %v14193_v29  ;;  %v17002_v15 = vld [vmem:[#allocation140_spill] sm:$0xff] }
 0x653   : > { %v7660_v40 = vsel %vm16154_vm10, %v14353_v19, %v7659_v44  ;;  %v7372_v8 = vsel %vm14335_vm0, %v16995_v13, %v7308_v7  ;;  %v8227_v35 = vsel %vm16163_vm3, %v14184_v43, %v16998_v59  ;;  %v14482_v17 = vrot.slane %v8375_v55, %v16795_v41  ;;  %vm17000_vm0 = vmmov %vm16993_vm5 }
 0x654   : > { %v16999_v19 = vrot.slane %v14291_v5, 1  ;;  %v7380_v50 = vsel %vm6996_vm11, %v16955_v27, %v7316_v36  ;;  %v8201_v39 = vsel %vm16165_vm7, %v14163_v1, %v8200_v56  ;;  %v4304_v29 = vadd.f32 %v14146_v42, %v9139_v32  ;;  %vm17001_vm15 = vmmov %vm17000_vm0 }
 0x655   : > { %v14494_v57 = vsel %vm16154_vm10, %v14163_v1, %v8201_v39  ;;  %v8228_v24 = vsel %vm17001_vm15, %v14184_v43, %v8227_v35  ;;  %v4299_v5 = vadd.f32 %v14146_v42, %v4298_v26  ;;  %v17003_v14 = vrot.slane %v17002_v15, 1  ;;  %vm17004_vm2 = vmmov %vm17000_vm0 }
 0x656   : > { %v7685_v25 = vsel %vm16163_vm3, %v7444_v31, %v16999_v19  ;;  %v8229_v27 = vsel %vm16165_vm7, %v14184_v43, %v8228_v24  ;;  %v4354_v54 = vmax.f32 %v4304_v29, 0.0  ;;  %v17005_v13 = vrot.slane %v14287_v30, 1  ;;  %vm17006_vm9 = vmmov %vm17000_vm0 }
 0x657   : > { %v7686_v49 = vsel %vm17000_vm0, %v7444_v31, %v7685_v25  ;;  %v8255_v7 = vsel %vm16163_vm3, %v7372_v8, %v17003_v14  ;;  %v14508_v1 = vsel %vm16154_vm10, %v14184_v43, %v8229_v27  ;;  %v4353_v16 = vmax.f32 %v4299_v5, 0.0 }
 0x658   : > { %v7687_v3 = vsel %vm16165_vm7, %v7444_v31, %v7686_v49  ;;  %v8256_v12 = vsel %vm17004_vm2, %v7372_v8, %v8255_v7  ;;  %v8283_v56 = vsel %vm16163_vm3, %v7380_v50, %v17005_v13  ;;  %v4850_v6 = vcombine.high %v4354_v54, %v4354_v54 }
 0x659   : > { %v7688_v44 = vsel %vm16154_vm10, %v7444_v31, %v7687_v3  ;;  %v8257_v36 = vsel %vm16165_vm7, %v7372_v8, %v8256_v12  ;;  %v4857_v59 = vrot.slane %v4354_v54, %v12164_v58  ;;  %v8284_v31 = vsel %vm17006_vm9, %v7380_v50, %v8283_v56  ;;  %v17011_v54 = vld [vmem:[#allocation54_spill] sm:$0xff] }
 0x65a   : > { %v7845_v55 = vcombine.low %v7660_v40, %v7688_v44  ;;  %v14517_v35 = vsel %vm16154_vm10, %v7372_v8, %v8257_v36  ;;  %v4833_v43 = vcombine.high %v4353_v16, %v4353_v16  ;;  %v4840_v32 = vrot.slane %v4353_v16, %v12164_v58  ;;  %v17008_v8 = vld [vmem:[#allocation128_spill] sm:$0xff]  ;;  %v17017_v36 = vld [vmem:[#allocation107_spill] sm:$0xff] }
 0x65b   : > { %v8285_v40 = vsel %vm16165_vm7, %v7380_v50, %v8284_v31  ;;  %v4864_v30 = vrot.slane %v4850_v6, %v12164_v58  ;;  %v14526_v25 = vcombine.high %v4857_v59, %v4857_v59  ;;  %vm6229_vm5 = vcmp.gt.f32.partialorder %v4857_v59, %v14376_v53 }
 0x65c   : > { %v14522_v19 = vrot.slane %v7845_v55, %v16795_v41  ;;  %v14530_v39 = vsel %vm16154_vm10, %v7380_v50, %v8285_v40  ;;  %v6677_v29 = vsel %vm6229_vm5, %v17008_v8, %v8909_v23  ;;  %v6741_v26 = vsel %vm6229_vm5, %v4857_v59, %v14376_v53  ;;  %v17010_v50 = vld [vmem:[#allocation99_spill] sm:$0xff] }
 0x65d   : > { %17007 = vst [vmem:[#allocation78_spill] sm:$0xff] %v14526_v25  ;;  %v4847_v49 = vrot.slane %v4833_v43, %v12164_v58  ;;  %v4848_v24 = vcombine.high %v4840_v32, %v4840_v32  ;;  %v14537_v5 = vcombine.high %v4864_v30, %v4864_v30  ;;  %vm16140_vm11 = vcmp.gt.f32.partialorder %v14526_v25, %v14383_v48 }
 0x65e   : > { %vm6231_vm14 = vcmp.gt.f32.partialorder %v4864_v30, %v14385_v47  ;;  %v6877_v3 = vrot.slane %v6741_v26, 7  ;;  %v6742_v2 = vsel %vm16140_vm11, %v14526_v25, %v14383_v48  ;;  %v7325_v53 = vrot.slane %v6677_v29, 7 }
 0x65f   : > { %17009 = vst [vmem:[#allocation18_spill] sm:$0xff] %v14537_v5  ;;  %v6679_v27 = vsel %vm6231_vm14, %v17010_v50, %v8911_v4  ;;  %v6743_v23 = vsel %vm6231_vm14, %v4864_v30, %v14385_v47  ;;  %v6878_v15 = vrot.slane %v6742_v2, 7  ;;  %v17012_v63 = vrot.slane %v17011_v54, 7 }
 0x660   : > { %v6879_v14 = vrot.slane %v6743_v23, 7  ;;  %vm7005_vm15 = vcmp.gt.f32.partialorder %v4857_v59, %v6877_v3  ;;  %v7327_v7 = vrot.slane %v6679_v27, 7  ;;  %v4849_v12 = vcombine.high %v4847_v49, %v4847_v49 }
 0x661   : > { %v14555_v44 = vsel %vm7005_vm15, %v17012_v63, %v7325_v53  ;;  %v7453_v4 = vsel %vm7005_vm15, %v4857_v59, %v6877_v3  ;;  %vm14558_vm2 = vcmp.gt.f32.partialorder %v14526_v25, %v6878_v15  ;;  %v17014_v16 = vmov 0  ;;  %v17022_v3 = vld [vmem:[#allocation139_spill] sm:$0xff] }
 0x662   : > { %17013 = vst [vmem:[#allocation59_spill] sm:$0xff] %v14555_v44  ;;  %v17015_v16 = vsel %vm14558_vm2, 4294967295, %v17014_v16  ;;  %vm7007_vm9 = vcmp.gt.f32.partialorder %v4864_v30, %v6879_v14  ;;  %v7717_v47 = vrot.slane %v7453_v4, 1  ;;  %v17018_v13 = vrot.slane %v17017_v36, 7  ;;  %v17052_v36 = vld [vmem:[#allocation56_spill] sm:$0xff] }
 0x663   : > { %17016 = vst [vmem:[#allocation101_spill] sm:$0xff] %v17015_v16  ;;  %v14570_v6 = vsel %vm14558_vm2, %v14526_v25, %v6878_v15  ;;  %v14572_v59 = vsel %vm7007_vm9, %v4864_v30, %v6879_v14  ;;  %vm6225_vm5 = vcmp.gt.f32.partialorder %v4840_v32, %v14422_v62  ;;  %vm6226_vm14 = vcmp.gt.f32.partialorder %v4848_v24, %v14424_v37  ;;  %v17021_v30 = vld [vmem:[#allocation138_spill] sm:$0xff] }
 0x664   : > { %v14565_v56 = vsel %vm7007_vm9, %v17018_v13, %v7327_v7  ;;  %17020 = vst [vmem:[#allocation148_spill] sm:$0xff] %v14572_v59  ;;  %v14577_v31 = vsel %vm16163_vm3, %v14570_v6, %v7717_v47  ;;  %vm6227_vm15 = vcmp.gt.f32.partialorder %v4847_v49, %v14426_v21  ;;  %vm6228_vm0 = vcmp.gt.f32.partialorder %v4849_v12, %v14428_v51 }
 0x665   : > { %17019 = vst [vmem:[#allocation140_spill] sm:$0xff] %v14565_v56  ;;  %v6673_v29 = vsel %vm6225_vm5, %v17021_v30, %v8905_v60  ;;  %v6737_v26 = vsel %vm6225_vm5, %v4840_v32, %v14422_v62  ;;  %v6675_v27 = vsel %vm6227_vm15, %v17022_v3, %v8907_v34  ;;  %v6738_v2 = vsel %vm6226_vm14, %v4848_v24, %v14424_v37 }
 0x666   : > { %v6739_v23 = vsel %vm6227_vm15, %v4847_v49, %v14426_v21  ;;  %v6873_v53 = vrot.slane %v6737_v26, 7  ;;  %v6874_v15 = vrot.slane %v6738_v2, 7  ;;  %v7321_v7 = vrot.slane %v6673_v29, 7  ;;  %v17027_v21 = vld [vmem:[#allocation141_spill] sm:$0xff]  ;;  %v17029_v29 = vld [vmem:[#allocation142_spill] sm:$0xff] }
 0x667   : > { %v6875_v14 = vrot.slane %v6739_v23, 7  ;;  %v7323_v63 = vrot.slane %v6675_v27, 7  ;;  %v17023_v61 = vrot.slane %v17021_v30, 1  ;;  %v6740_v62 = vsel %vm6228_vm0, %v4849_v12, %v14428_v51 }
 0x668   : > { %vm7001_vm9 = vcmp.gt.f32.partialorder %v4840_v32, %v6873_v53  ;;  %v17024_v52 = vrot.slane %v17022_v3, 1  ;;  %vm14600_vm5 = vcmp.gt.f32.partialorder %v4848_v24, %v6874_v15  ;;  %v17028_v4 = vrot.slane %v17027_v21, 7 }
 0x669   : > { %v6674_v60 = vsel %vm6226_vm14, %v17023_v61, %v14417_v33  ;;  %vm7003_vm15 = vcmp.gt.f32.partialorder %v4847_v49, %v6875_v14  ;;  %v7449_v13 = vsel %vm7001_vm9, %v4840_v32, %v6873_v53  ;;  %v17030_v26 = vrot.slane %v17029_v29, 7 }
 0x66a   : > { %v6676_v34 = vsel %vm6228_vm0, %v17024_v52, %v14420_v22  ;;  %v7385_v47 = vsel %vm7001_vm9, %v17028_v4, %v7321_v7  ;;  %v7450_v33 = vsel %vm14600_vm5, %v4848_v24, %v6874_v15  ;;  %v7451_v51 = vsel %vm7003_vm15, %v4847_v49, %v6875_v14  ;;  %v17032_v24 = vld [vmem:[#allocation52_spill] sm:$0xff]  ;;  %v17033_v15 = vld [vmem:[#allocation41_spill] sm:$0xff] }
 0x66b   : > { %v7387_v27 = vsel %vm7003_vm15, %v17030_v26, %v7323_v63  ;;  %v7703_v30 = vrot.slane %v7449_v13, 1  ;;  %v7710_v2 = vrot.slane %v7451_v51, 1  ;;  %v8301_v3 = vrot.slane %v7385_v47, 1  ;;  %v9142_v47 = vpop.f32.mrb[26].mxu1 }
 0x66c   : > { %v8308_v22 = vrot.slane %v7387_v27, 1  ;;  %v7322_v23 = vrot.slane %v6674_v60, 7  ;;  %v6876_v52 = vrot.slane %v6740_v62, 7  ;;  %v7324_v40 = vrot.slane %v6676_v34, 7 }
 0x66d   : > { %v7706_v61 = vsel %vm16163_vm3, %v7450_v33, %v7703_v30  ;;  %v8402_v7 = vcombine.low %v14494_v57, %v14508_v1  ;;  %vm17031_vm0 = vcmask 1043459   ;;  %v8411_v49 = vcombine.low %v14517_v35, %v14530_v39 }
 0x66e   : > { %v7707_v32 = vsel %vm17031_vm0, %v7450_v33, %v7706_v61  ;;  %v7386_v53 = vsel %vm14600_vm5, %v17027_v21, %v7322_v23  ;;  %vm17034_vm14 = vmmov %vm17031_vm0  ;;  %vm7004_vm9 = vcmp.gt.f32.partialorder %v4849_v12, %v6876_v52  ;;  %v17053_v50 = vrot.slane %v17052_v36, 7 }
 0x66f   : > { %v7581_v14 = vsel %vm17034_vm14, %v17033_v15, %v17032_v24  ;;  %v7708_v63 = vsel %vm16165_vm7, %v7450_v33, %v7707_v32  ;;  %v8304_v60 = vsel %vm16163_vm3, %v7386_v53, %v8301_v3  ;;  %v14625_v57 = vrot.slane %v8402_v7, %v16795_v41  ;;  %vm17035_vm15 = vmmov %vm17031_vm0 }
 0x670   : > { %v14628_v1 = vsel %vm16154_vm10, %v7450_v33, %v7708_v63  ;;  %v8305_v62 = vsel %vm17035_vm15, %v7386_v53, %v8304_v60  ;;  %v7452_v34 = vsel %vm7004_vm9, %v4849_v12, %v6876_v52  ;;  %v7388_v35 = vsel %vm7004_vm9, %v17029_v29, %v7324_v40  ;;  %vm17037_vm5 = vmmov %vm17031_vm0  ;;  %v9100_v29 = vpop.f32.mrb[32].mxu0  ;;  %v4308_v33 = vpop.f32.mrb[27].mxu1 }
 0x671   : > { %v8306_v39 = vsel %vm16165_vm7, %v7386_v53, %v8305_v62  ;;  %v7713_v37 = vsel %vm16163_vm3, %v7452_v34, %v7710_v2  ;;  %v8311_v21 = vsel %vm16163_vm3, %v7388_v35, %v8308_v22  ;;  %v14636_v4 = vrot.slane %v8411_v49, %v16795_v41  ;;  %v4168_v23 = vpop.f32.mrb[33].mxu0  ;;  %v17040_v49 = vld [vmem:[#allocation58_spill] sm:$0xff]  ;;  %vm17041_vm14 = vmmov %vm17031_vm0 }
 0x672   : > { %v14639_v13 = vsel %vm16154_vm10, %v7386_v53, %v8306_v39  ;;  %v7714_v26 = vsel %vm17037_vm5, %v7452_v34, %v7713_v37  ;;  %v8312_v27 = vsel %vm17031_vm0, %v7388_v35, %v8311_v21  ;;  %v7582_v12 = vsel %vm16165_vm7, %v17033_v15, %v7581_v14  ;;  %v17039_v53 = vld [vmem:[#allocation10_spill] sm:$0xff]  ;;  %v17043_v14 = vld [vmem:[#allocation87_spill] sm:$0xff]  ;;  %vm17044_vm9 = vmmov %vm17031_vm0 }
 0x673   : > { %17036 = vst [vmem:[#allocation138_spill] sm:$0xff] %v14636_v4  ;;  %v4314_v40 = vadd.f32 %v14146_v42, %v9142_v47  ;;  %v7715_v51 = vsel %vm16165_vm7, %v7452_v34, %v7714_v26  ;;  %v8313_v30 = vsel %vm16165_vm7, %v7388_v35, %v8312_v27  ;;  %v14650_v2 = vsel %vm16154_vm10, %v17033_v15, %v7582_v12  ;;  %v17042_v15 = vld [vmem:[#allocation31_spill] sm:$0xff] }
 0x674   : > { %17038 = vst [vmem:[#allocation139_spill] sm:$0xff] %v14650_v2  ;;  %v4174_v3 = vadd.f32 %v14146_v42, %v9100_v29  ;;  %v4309_v22 = vadd.f32 %v14146_v42, %v4308_v33  ;;  %v14655_v61 = vsel %vm16154_vm10, %v7452_v34, %v7715_v51  ;;  %v14658_v52 = vsel %vm16154_vm10, %v7388_v35, %v8313_v30  ;;  %v17050_v30 = vld [vmem:[#allocation27_spill] sm:$0xff] }
 0x675   : > { %v4356_v7 = vmax.f32 %v4314_v40, 0.0  ;;  %v4169_v32 = vadd.f32 %v14146_v42, %v4168_v23  ;;  %v7609_v24 = vsel %vm17041_vm14, %v17040_v49, %v17039_v53  ;;  %v7637_v63 = vsel %vm17044_vm9, %v17043_v14, %v17042_v15 }
 0x676   : > { %v4328_v60 = vmax.f32 %v4174_v3, 0.0  ;;  %v4355_v62 = vmax.f32 %v4309_v22, 0.0  ;;  %v7610_v34 = vsel %vm16165_vm7, %v17040_v49, %v7609_v24  ;;  %v14671_v35 = vsel %vm16165_vm7, %v17043_v14, %v7637_v63  ;;  %v17046_v24 = vld [vmem:[#allocation96_spill] sm:$0xff]  ;;  %v17048_v63 = vld [vmem:[#allocation75_spill] sm:$0xff] }
 0x677   : > { %v4884_v39 = vcombine.high %v4356_v7, %v4356_v7  ;;  %v4891_v37 = vrot.slane %v4356_v7, %v12164_v58  ;;  %v14674_v21 = vmax.f32 %v4169_v32, 0.0  ;;  %v14678_v47 = vsel %vm16154_vm10, %v17040_v49, %v7610_v34 }
 0x678   : > { %17045 = vst [vmem:[#allocation141_spill] sm:$0xff] %v14678_v47  ;;  %v4408_v26 = vcombine.high %v4328_v60, %v4328_v60  ;;  %v4415_v27 = vrot.slane %v4328_v60, %v12164_v58  ;;  %v4867_v12 = vcombine.high %v4355_v62, %v4355_v62  ;;  %v14682_v40 = vrot.slane %v4355_v62, %v12164_v58 }
 0x679   : > { %v4898_v29 = vrot.slane %v4884_v39, %v12164_v58  ;;  %v4899_v33 = vcombine.high %v4891_v37, %v4891_v37  ;;  %v5141_v51 = vrot.slane %v4891_v37, 7  ;;  %v17047_v15 = vrot.slane %v17046_v24, 7 }
 0x67a   : > { %v4422_v3 = vrot.slane %v4408_v26, %v12164_v58  ;;  %v4423_v22 = vcombine.high %v4415_v27, %v4415_v27  ;;  %v5085_v23 = vrot.slane %v4415_v27, 7  ;;  %v14689_v7 = vrot.slane %v4867_v12, %v12164_v58 }
 0x67b   : > { %v4900_v32 = vcombine.high %v4898_v29, %v4898_v29  ;;  %v5142_v53 = vrot.slane %v4899_v33, 7  ;;  %v5143_v49 = vrot.slane %v4898_v29, 7  ;;  %vm5269_vm15 = vcmp.gt.f32.partialorder %v4891_v37, %v5141_v51 }
 0x67c   : > { %v17049_v60 = vrot.slane %v17048_v63, 7  ;;  %v5909_v34 = vsel %vm5269_vm15, %v4891_v37, %v5141_v51  ;;  %v4424_v39 = vcombine.high %v4422_v3, %v4422_v3  ;;  %v5086_v43 = vrot.slane %v4423_v22, 7 }
 0x67d   : > { %v5144_v55 = vrot.slane %v4900_v32, 7  ;;  %vm5270_vm5 = vcmp.gt.f32.partialorder %v4899_v33, %v5142_v53  ;;  %vm5271_vm0 = vcmp.gt.f32.partialorder %v4898_v29, %v5143_v49  ;;  %v6105_v26 = vrot.slane %v5909_v34, 7 }
 0x67e   : > { %v14695_v62 = vsel %vm5269_vm15, %v17049_v60, %v17047_v15  ;;  %v5846_v12 = vsel %vm5270_vm5, %v17048_v63, %v17046_v24  ;;  %v17051_v56 = vrot.slane %v17050_v30, 7  ;;  %v5910_v59 = vsel %vm5270_vm5, %v4899_v33, %v5142_v53 }
 0x67f   : > { %v5911_v5 = vsel %vm5271_vm0, %v4898_v29, %v5143_v49  ;;  %vm5272_vm14 = vcmp.gt.f32.partialorder %v4900_v32, %v5144_v55  ;;  %v14705_v15 = vrot.slane %v6105_v26, 2  ;;  %v6107_v37 = vrot.slane %v5910_v59, 7 }
 0x680   : > { %v14703_v45 = vsel %vm5271_vm0, %v17053_v50, %v17051_v56  ;;  %v6109_v51 = vrot.slane %v5911_v5, 7  ;;  %v5848_v60 = vsel %vm5272_vm14, %v17052_v36, %v17050_v30  ;;  %v5912_v34 = vsel %vm5272_vm14, %v4900_v32, %v5144_v55 }
 0x681   : > { %v14710_v24 = vrot.slane %v5846_v12, 9  ;;  %v14712_v63 = vrot.slane %v6107_v37, 2  ;;  %v6111_v50 = vrot.slane %v5912_v34, 7  ;;  %v14717_v29 = vrot.slane %v5848_v60, 9  ;;  %v17061_v12 = vld [vmem:[#allocation110_spill] sm:$0xff] }
 0x682   : > { %v14714_v44 = vrot.slane %v6109_v51, 2  ;;  %v5087_v33 = vrot.slane %v4422_v3, 7  ;;  %v5088_v59 = vrot.slane %v4424_v39, 7  ;;  %vm5213_vm9 = vcmp.gt.f32.partialorder %v4415_v27, %v5085_v23  ;;  %v17063_v51 = vld [vmem:[#allocation80_spill] sm:$0xff] }
 0x683   : > { %17054 = vst [vmem:[#allocation142_spill] sm:$0xff] %v14710_v24  ;;  %17055 = vst [vmem:[#allocation52_spill] sm:$0xff] %v14717_v29  ;;  %v14719_v5 = vrot.slane %v6111_v50, 2  ;;  %vm14721_vm15 = vcmp.gt.f32.partialorder %v4423_v22, %v5086_v43  ;;  %v17059_v36 = vrot.slane %v13968_v18, 7  ;;  %v17060_v30 = vrot.slane %v13960_v10, 7 }
 0x684   : > { %v5853_v53 = vsel %vm5213_vm9, %v4415_v27, %v5085_v23  ;;  %vm5215_vm5 = vcmp.gt.f32.partialorder %v4422_v3, %v5087_v33  ;;  %vm5216_vm0 = vcmp.gt.f32.partialorder %v4424_v39, %v5088_v59  ;;  %v5790_v49 = vsel %vm14721_vm15, %v13960_v10, %v13968_v18 }
 0x685   : > { %17056 = vst [vmem:[#allocation41_spill] sm:$0xff] %v14719_v5  ;;  %v5789_v32 = vsel %vm5213_vm9, %v17060_v30, %v17059_v36  ;;  %v5854_v26 = vsel %vm14721_vm15, %v4423_v22, %v5086_v43  ;;  %v17062_v37 = vrot.slane %v17061_v12, 7  ;;  %v17064_v60 = vrot.slane %v17063_v51, 7 }
 0x686   : > { %v5792_v50 = vsel %vm5216_vm0, %v17063_v51, %v17061_v12  ;;  %v5855_v36 = vsel %vm5215_vm5, %v4422_v3, %v5087_v33  ;;  %v5856_v27 = vsel %vm5216_vm0, %v4424_v39, %v5088_v59  ;;  %v5993_v23 = vrot.slane %v5853_v53, 7  ;;  %v17065_v33 = vld [vmem:[#allocation33_spill] sm:$0xff]  ;;  %v17066_v59 = vld [vmem:[#allocation46_spill] sm:$0xff] }
 0x687   : > { %v5791_v34 = vsel %vm5215_vm5, %v17064_v60, %v17062_v37  ;;  %v5995_v30 = vrot.slane %v5854_v26, 7  ;;  %v5997_v56 = vrot.slane %v5855_v36, 7  ;;  %v5999_v28 = vrot.slane %v5856_v27, 7  ;;  %v17068_v53 = vld [vmem:[#allocation69_spill] sm:$0xff]  ;;  %v17071_v26 = vld [vmem:[#allocation20_spill] sm:$0xff] }
 0x688   : > { %v8861_v29 = vrot.slane %v5789_v32, 9  ;;  %v8862_v16 = vrot.slane %v5790_v49, 9  ;;  %v8863_v10 = vrot.slane %v5791_v34, 9  ;;  %v8864_v18 = vrot.slane %v5792_v50, 9  ;;  %v17067_v32 = vld [vmem:[#allocation44_spill] sm:$0xff] }
 0x689   : > { %v5994_v55 = vrot.slane %v5993_v23, 2  ;;  %v5996_v43 = vrot.slane %v5995_v30, 2  ;;  %v5998_v22 = vrot.slane %v5997_v56, 2  ;;  %v6000_v54 = vrot.slane %v5999_v28, 2 }
 0x68a   : > { %v4882_v37 = vcombine.high %v14682_v40, %v14682_v40  ;;  %v4883_v12 = vcombine.high %v14689_v7, %v14689_v7  ;;  %v5137_v3 = vrot.slane %v14682_v40, 7  ;;  %v5139_v39 = vrot.slane %v14689_v7, 7 }
 0x68b   : > { %vm6181_vm14 = vcmp.gt.f32.partialorder %v17065_v33, %v5994_v55  ;;  %vm6182_vm9 = vcmp.gt.f32.partialorder %v17066_v59, %v5996_v43  ;;  %vm6183_vm15 = vcmp.gt.f32.partialorder %v17067_v32, %v5998_v22  ;;  %vm6184_vm5 = vcmp.gt.f32.partialorder %v17068_v53, %v6000_v54 }
 0x68c   : > { %v6629_v28 = vsel %vm6181_vm14, %v13994_v38, %v8861_v29  ;;  %v17069_v56 = vrot.slane %v13994_v38, 1  ;;  %v6631_v51 = vsel %vm6183_vm15, %v17071_v26, %v8863_v10  ;;  %v17072_v60 = vrot.slane %v17071_v26, 1 }
 0x68d   : > { %v6693_v50 = vsel %vm6181_vm14, %v17065_v33, %v5994_v55  ;;  %v6694_v36 = vsel %vm6182_vm9, %v17066_v59, %v5996_v43  ;;  %v6695_v27 = vsel %vm6183_vm15, %v17067_v32, %v5998_v22  ;;  %v14765_v23 = vsel %vm6184_vm5, %v17068_v53, %v6000_v54  ;;  %v17075_v22 = vld [vmem:[#allocation30_spill] sm:$0xff] }
 0x68e   : > { %v14754_v49 = vsel %vm6182_vm9, %v17069_v56, %v8862_v16  ;;  %v14759_v34 = vsel %vm6184_vm5, %v17072_v60, %v8864_v18  ;;  %17074 = vst [vmem:[#allocation31_spill] sm:$0xff] %v14765_v23  ;;  %v6829_v29 = vrot.slane %v6693_v50, 7  ;;  %v6830_v30 = vrot.slane %v6694_v36, 7  ;;  %v17078_v50 = vld [vmem:[#allocation26_spill] sm:$0xff]  ;;  %v17092_v16 = vld [vmem:[#allocation24_spill] sm:$0xff] }
 0x68f   : > { %17070 = vst [vmem:[#allocation10_spill] sm:$0xff] %v14754_v49  ;;  %17073 = vst [vmem:[#allocation58_spill] sm:$0xff] %v14759_v34  ;;  %v6831_v38 = vrot.slane %v6695_v27, 7  ;;  %v7277_v56 = vrot.slane %v6629_v28, 7  ;;  %v7279_v26 = vrot.slane %v6631_v51, 7  ;;  %v5138_v55 = vrot.slane %v4882_v37, 7 }
 0x690   : > { %vm6957_vm0 = vcmp.gt.f32.partialorder %v17065_v33, %v6829_v29  ;;  %v5140_v43 = vrot.slane %v4883_v12, 7  ;;  %v17076_v54 = vrot.slane %v17075_v22, 7  ;;  %v17079_v36 = vrot.slane %v17078_v50, 7 }
 0x691   : > { %vm6959_vm14 = vcmp.gt.f32.partialorder %v17067_v32, %v6831_v38  ;;  %v7405_v28 = vsel %vm6957_vm0, %v17065_v33, %v6829_v29  ;;  %vm5265_vm9 = vcmp.gt.f32.partialorder %v14682_v40, %v5137_v3  ;;  %vm14788_vm15 = vcmp.gt.f32.partialorder %v4882_v37, %v5138_v55 }
 0x692   : > { %v14774_v60 = vsel %vm6957_vm0, %v17076_v54, %v7277_v56  ;;  %v14778_v27 = vsel %vm6959_vm14, %v17079_v36, %v7279_v26  ;;  %v14782_v51 = vsel %vm6959_vm14, %v17067_v32, %v6831_v38  ;;  %v7549_v18 = vrot.slane %v7405_v28, 1  ;;  %v17086_v32 = vld [vmem:[#allocation83_spill] sm:$0xff]  ;;  %v17088_v38 = vld [vmem:[#allocation66_spill] sm:$0xff]  ;;  %v17090_v28 = vld [vmem:[#allocation32_spill] sm:$0xff] }
 0x693   : > { %17077 = vst [vmem:[#allocation87_spill] sm:$0xff] %v14774_v60  ;;  %17080 = vst [vmem:[#allocation96_spill] sm:$0xff] %v14778_v27  ;;  %vm5267_vm5 = vcmp.gt.f32.partialorder %v14689_v7, %v5139_v39  ;;  %vm14793_vm11 = vcmp.gt.f32.partialorder %v4883_v12, %v5140_v43  ;;  %v17087_v29 = vrot.slane %v17086_v32, 7  ;;  %v17089_v26 = vrot.slane %v17088_v38, 7 }
 0x694   : > { %17081 = vst [vmem:[#allocation75_spill] sm:$0xff] %v14782_v51  ;;  %v5842_v36 = vsel %vm14788_vm15, %v17088_v38, %v17086_v32  ;;  %v17091_v34 = vrot.slane %v17090_v28, 7  ;;  %v17093_v10 = vrot.slane %v17092_v16, 7  ;;  %v5844_v50 = vsel %vm14793_vm11, %v17092_v16, %v17090_v28 }
 0x695   : > { %v14801_v54 = vsel %vm5265_vm9, %v17089_v26, %v17087_v29  ;;  %v5905_v51 = vsel %vm5265_vm9, %v14682_v40, %v5137_v3  ;;  %v5906_v29 = vsel %vm14788_vm15, %v4882_v37, %v5138_v55  ;;  %v5907_v26 = vsel %vm5267_vm5, %v14689_v7, %v5139_v39 }
 0x696   : > { %v14811_v27 = vsel %vm5267_vm5, %v17093_v10, %v17091_v34  ;;  %v5908_v32 = vsel %vm14793_vm11, %v4883_v12, %v5140_v43  ;;  %v6097_v38 = vrot.slane %v5905_v51, 7  ;;  %v6099_v53 = vrot.slane %v5906_v29, 7  ;;  %v17100_v51 = vld [vmem:[#allocation135_spill] sm:$0xff]  ;;  %v17108_v10 = vld [vmem:[#allocation145_spill] sm:$0xff] }
 0x697   : > { %v6101_v23 = vrot.slane %v5907_v26, 7  ;;  %v6103_v34 = vrot.slane %v5908_v32, 7  ;;  %v14824_v60 = vrot.slane %v5842_v36, 9  ;;  %v14827_v28 = vrot.slane %v5844_v50, 9  ;;  %v17099_v50 = vld [vmem:[#allocation137_spill] sm:$0xff]  ;;  %v9145_v26 = vpop.f32.mrb[28].mxu1 }
 0x698   : > { %v14829_v40 = vrot.slane %v6097_v38, 2  ;;  %v14831_v37 = vrot.slane %v6099_v53, 2  ;;  %v4398_v12 = vrot.slane %v14674_v21, %v12164_v58  ;;  %v17094_v39 = vcombine.high %v14674_v21, %v14674_v21 }
 0x699   : > { %v14833_v7 = vrot.slane %v6101_v23, 2  ;;  %v14835_v3 = vrot.slane %v6103_v34, 2  ;;  %vm14844_vm11 = vcmp.gt.f32.partialorder %v17066_v59, %v6830_v30  ;;  %v17095_v43 = vmov 0 }
 0x69a   : > { %v4405_v55 = vrot.slane %v17094_v39, %v12164_v58  ;;  %v17096_v43 = vsel %vm14844_vm11, 4294967295, %v17095_v43  ;;  %v14851_v53 = vsel %vm16154_vm10, %v17043_v14, %v14671_v35  ;;  %v14856_v23 = vsel %vm14844_vm11, %v17066_v59, %v6830_v30  ;;  %v4318_v30 = vpop.f32.mrb[29].mxu1  ;;  %v17104_v39 = vld [vmem:[#allocation143_spill] sm:$0xff] }
 0x69b   : > { %17097 = vst [vmem:[#allocation27_spill] sm:$0xff] %v17096_v43  ;;  %17098 = vst [vmem:[#allocation56_spill] sm:$0xff] %v14851_v53  ;;  %vm17101_vm0 = vcmask 1043459   ;;  %v4406_v14 = vcombine.high %v4398_v12, %v4398_v12  ;;  %v5081_v36 = vrot.slane %v4398_v12, 7  ;;  %v4324_v59 = vadd.f32 %v14146_v42, %v9145_v26  ;;  %v17106_v42 = vld [vmem:[#allocation62_spill] sm:$0xff]  ;;  %v17110_v43 = vld [vmem:[#allocation144_spill] sm:$0xff] }
 0x69c   : > { %v7665_v21 = vsel %vm17101_vm0, %v17100_v51, %v17099_v50  ;;  %vm17102_vm14 = vmmov %vm17101_vm0  ;;  %v4407_v35 = vcombine.high %v4405_v55, %v4405_v55  ;;  %v5083_v29 = vrot.slane %v4405_v55, 7  ;;  %v14872_v32 = vsel %vm16163_vm3, %v14856_v23, %v7549_v18 }
 0x69d   : > { %v7693_v56 = vsel %vm17102_vm14, %v14246_v20, %v14253_v0  ;;  %vm17103_vm9 = vmmov %vm17101_vm0  ;;  %v14876_v0 = vsel %vm16165_vm7, %v17100_v51, %v7665_v21  ;;  %v5082_v38 = vrot.slane %v4406_v14, 7  ;;  %vm5209_vm15 = vcmp.gt.f32.partialorder %v4398_v12, %v5081_v36 }
 0x69e   : > { %v14867_v33 = vsel %vm17103_vm9, %v14570_v6, %v14577_v31  ;;  %v14880_v31 = vsel %vm16165_vm7, %v14246_v20, %v7693_v56  ;;  %v5084_v34 = vrot.slane %v4407_v35, 7  ;;  %vm5211_vm5 = vcmp.gt.f32.partialorder %v4405_v55, %v5083_v29 }
 0x69f   : > { %v17105_v50 = vrot.slane %v17104_v39, 7  ;;  %v17107_v26 = vrot.slane %v17106_v42, 7  ;;  %v17109_v18 = vrot.slane %v17108_v10, 7  ;;  %v17111_v22 = vrot.slane %v17110_v43, 7 }
 0x6a0   : > { %v5849_v21 = vsel %vm5209_vm15, %v4398_v12, %v5081_v36  ;;  %v5851_v24 = vsel %vm5211_vm5, %v4405_v55, %v5083_v29  ;;  %vm5210_vm0 = vcmp.gt.f32.partialorder %v4406_v14, %v5082_v38  ;;  %vm5212_vm14 = vcmp.gt.f32.partialorder %v4407_v35, %v5084_v34 }
 0x6a1   : > { %v5785_v16 = vsel %vm5209_vm15, %v17107_v26, %v17105_v50  ;;  %v5787_v49 = vsel %vm5211_vm5, %v17111_v22, %v17109_v18  ;;  %v5985_v56 = vrot.slane %v5849_v21, 7  ;;  %v5989_v48 = vrot.slane %v5851_v24, 7  ;;  %v17112_v18 = vld [vmem:[#allocation67_spill] sm:$0xff]  ;;  %v17113_v24 = vld [vmem:[#allocation117_spill] sm:$0xff] }
 0x6a2   : > { %v5786_v25 = vsel %vm5210_vm0, %v17106_v42, %v17104_v39  ;;  %v5788_v8 = vsel %vm5212_vm14, %v17110_v43, %v17108_v10  ;;  %v5850_v11 = vsel %vm5210_vm0, %v4406_v14, %v5082_v38  ;;  %v5852_v47 = vsel %vm5212_vm14, %v4407_v35, %v5084_v34  ;;  %v17114_v42 = vld [vmem:[#allocation92_spill] sm:$0xff] }
 0x6a3   : > { %v5986_v50 = vrot.slane %v5985_v56, 2  ;;  %v5987_v26 = vrot.slane %v5850_v11, 7  ;;  %v5990_v53 = vrot.slane %v5989_v48, 2  ;;  %v5991_v2 = vrot.slane %v5852_v47, 7  ;;  %v17115_v48 = vld [vmem:[#allocation90_spill] sm:$0xff]  ;;  %v17116_v47 = vld [vmem:[#allocation100_spill] sm:$0xff] }
 0x6a4   : > { %v8857_v4 = vrot.slane %v5785_v16, 9  ;;  %v8858_v22 = vrot.slane %v5786_v25, 9  ;;  %v8859_v12 = vrot.slane %v5787_v49, 9  ;;  %v8860_v55 = vrot.slane %v5788_v8, 9 }
 0x6a5   : > { %v5988_v36 = vrot.slane %v5987_v26, 2  ;;  %v5992_v29 = vrot.slane %v5991_v2, 2  ;;  %vm6177_vm9 = vcmp.gt.f32.partialorder %v17112_v18, %v5986_v50  ;;  %vm6179_vm15 = vcmp.gt.f32.partialorder %v17113_v24, %v5990_v53 }
 0x6a6   : > { %v6625_v39 = vsel %vm6177_vm9, %v14134_v9, %v8857_v4  ;;  %v6627_v10 = vsel %vm6179_vm15, %v17114_v42, %v8859_v12  ;;  %v6689_v43 = vsel %vm6177_vm9, %v17112_v18, %v5986_v50  ;;  %v6691_v11 = vsel %vm6179_vm15, %v17113_v24, %v5990_v53  ;;  %v9271_v12 = vld [vmem:[%s15790_s4] ss:$0 sm:$0xff] }
 0x6a7   : > { %vm6178_vm5 = vcmp.gt.f32.partialorder %v17115_v48, %v5988_v36  ;;  %vm6180_vm0 = vcmp.gt.f32.partialorder %v17116_v47, %v5992_v29  ;;  %v6825_v25 = vrot.slane %v6689_v43, 7  ;;  %v6827_v8 = vrot.slane %v6691_v11, 7 }
 0x6a8   : > { %v17117_v2 = vrot.slane %v14134_v9, 1  ;;  %v17118_v16 = vrot.slane %v17114_v42, 1  ;;  %v6690_v4 = vsel %vm6178_vm5, %v17115_v48, %v5988_v36  ;;  %v14912_v35 = vsel %vm6180_vm0, %v17116_v47, %v5992_v29  ;;  %v17119_v36 = vld [vmem:[#allocation23_spill] sm:$0xff] }
 0x6a9   : > { %v6826_v53 = vrot.slane %v6690_v4, 7  ;;  %v16153_v38 = vrot.slane %v14912_v35, 7  ;;  %vm6953_vm14 = vcmp.gt.f32.partialorder %v17112_v18, %v6825_v25  ;;  %vm6955_vm9 = vcmp.gt.f32.partialorder %v17113_v24, %v6827_v8 }
 0x6aa   : > { %v14904_v49 = vsel %vm6178_vm5, %v17117_v2, %v8858_v22  ;;  %v14908_v14 = vsel %vm6180_vm0, %v17118_v16, %v8860_v55  ;;  %v7273_v34 = vrot.slane %v6625_v39, 7  ;;  %v7275_v21 = vrot.slane %v6627_v10, 7  ;;  %v17121_v39 = vld [vmem:[#allocation35_spill] sm:$0xff] }
 0x6ab   : > { %v7401_v50 = vsel %vm6953_vm14, %v17112_v18, %v6825_v25  ;;  %v14921_v26 = vsel %vm6955_vm9, %v17113_v24, %v6827_v8  ;;  %v4358_v22 = vmax.f32 %v4324_v59, 0.0  ;;  %v4319_v55 = vadd.f32 %v9271_v12, %v4318_v30  ;;  %v17129_v12 = vld [vmem:[#allocation105_spill] sm:$0xff] }
 0x6ac   : > { %v17120_v29 = vrot.slane %v17119_v36, 7  ;;  %v17122_v43 = vrot.slane %v17121_v39, 7  ;;  %v7529_v11 = vrot.slane %v7401_v50, 1  ;;  %vm14939_vm15 = vcmp.gt.f32.partialorder %v17115_v48, %v6826_v53 }
 0x6ad   : > { %v4918_v25 = vcombine.high %v4358_v22, %v4358_v22  ;;  %v4925_v8 = vrot.slane %v4358_v22, %v12164_v58  ;;  %v4357_v2 = vmax.f32 %v4319_v55, 0.0  ;;  %vm14946_vm5 = vcmp.gt.f32.partialorder %v17116_v47, %v16153_v38  ;;  %v17133_v38 = vld [vmem:[#allocation17_spill] sm:$0xff] }
 0x6ae   : > { %v14928_v42 = vsel %vm6953_vm14, %v17120_v29, %v7273_v34  ;;  %v14932_v10 = vsel %vm6955_vm9, %v17122_v43, %v7275_v21  ;;  %vm17127_vm0 = vcmask 1043459   ;;  %v14962_v50 = vsel %vm14939_vm15, %v17115_v48, %v6826_v53  ;;  %v17132_v53 = vld [vmem:[#allocation104_spill] sm:$0xff] }
 0x6af   : > { %v14953_v4 = vsel %vm17127_vm0, %v14856_v23, %v14872_v32  ;;  %v4932_v34 = vrot.slane %v4918_v25, %v12164_v58  ;;  %v14956_v21 = vcombine.high %v4925_v8, %v4925_v8  ;;  %vm6237_vm14 = vcmp.gt.f32.partialorder %v4925_v8, %v14705_v15 }
 0x6b0   : > { %v17128_v22 = vrot.slane %v14695_v62, 9  ;;  %v6749_v29 = vsel %vm6237_vm14, %v4925_v8, %v14705_v15  ;;  %v4901_v43 = vcombine.high %v4357_v2, %v4357_v2  ;;  %v4908_v32 = vrot.slane %v4357_v2, %v12164_v58 }
 0x6b1   : > { %v14969_v59 = vcombine.high %v4932_v34, %v4932_v34  ;;  %vm16157_vm9 = vcmp.gt.f32.partialorder %v14956_v21, %v14712_v63  ;;  %vm6239_vm0 = vcmp.gt.f32.partialorder %v4932_v34, %v14714_v44  ;;  %v6885_v25 = vrot.slane %v6749_v29, 7 }
 0x6b2   : > { %v6685_v55 = vsel %vm6237_vm14, %v17129_v12, %v17128_v22  ;;  %v17131_v48 = vrot.slane %v14703_v45, 9  ;;  %v6750_v62 = vsel %vm16157_vm9, %v14956_v21, %v14712_v63  ;;  %v6751_v15 = vsel %vm6239_vm0, %v4932_v34, %v14714_v44 }
 0x6b3   : > { %17130 = vst [vmem:[#allocation110_spill] sm:$0xff] %v14969_v59  ;;  %v7333_v2 = vrot.slane %v6685_v55, 7  ;;  %v6886_v22 = vrot.slane %v6750_v62, 7  ;;  %v6887_v18 = vrot.slane %v6751_v15, 7  ;;  %vm7013_vm8 = vcmp.gt.f32.partialorder %v4925_v8, %v6885_v25  ;;  %v17139_v62 = vld [vmem:[#allocation88_spill] sm:$0xff] }
 0x6b4   : > { %v6687_v56 = vsel %vm6239_vm0, %v17132_v53, %v17131_v48  ;;  %v17134_v45 = vrot.slane %v17133_v38, 7  ;;  %v7461_v48 = vsel %vm7013_vm8, %v4925_v8, %v6885_v25  ;;  %v4915_v9 = vrot.slane %v4901_v43, %v12164_v58 }
 0x6b5   : > { %v7335_v29 = vrot.slane %v6687_v56, 7  ;;  %vm14991_vm10 = vcmp.gt.f32.partialorder %v14956_v21, %v6886_v22  ;;  %v17136_v53 = vmov 0  ;;  %vm7015_vm0 = vcmp.gt.f32.partialorder %v4932_v34, %v6887_v18 }
 0x6b6   : > { %v14987_v24 = vsel %vm7013_vm8, %v17134_v45, %v7333_v2  ;;  %v17137_v53 = vsel %vm14991_vm10, 4294967295, %v17136_v53  ;;  %v7745_v44 = vrot.slane %v7461_v48, 1  ;;  %v17140_v15 = vrot.slane %v17139_v62, 7 }
 0x6b7   : > { %17135 = vst [vmem:[#allocation80_spill] sm:$0xff] %v14987_v24  ;;  %17138 = vst [vmem:[#allocation33_spill] sm:$0xff] %v17137_v53  ;;  %v15003_v56 = vsel %vm14991_vm10, %v14956_v21, %v6886_v22  ;;  %v15005_v8 = vsel %vm7015_vm0, %v4932_v34, %v6887_v18  ;;  %v4916_v43 = vcombine.high %v4908_v32, %v4908_v32  ;;  %v17143_v34 = vrot.slane %v14801_v54, 9  ;;  %v17144_v22 = vld [vmem:[#allocation38_spill] sm:$0xff] }
 0x6b8   : > { %v14998_v59 = vsel %vm7015_vm0, %v17140_v15, %v7335_v29  ;;  %17142 = vst [vmem:[#allocation44_spill] sm:$0xff] %v15005_v8  ;;  %v15009_v25 = vsel %vm16163_vm3, %v15003_v56, %v7745_v44  ;;  %v15013_v48 = vcombine.high %v4915_v9, %v4915_v9  ;;  %vm6233_vm8 = vcmp.gt.f32.partialorder %v4908_v32, %v14829_v40  ;;  %v17146_v15 = vld [vmem:[#allocation70_spill] sm:$0xff] }
 0x6b9   : > { %17141 = vst [vmem:[#allocation46_spill] sm:$0xff] %v14998_v59  ;;  %vm6234_vm14 = vcmp.gt.f32.partialorder %v4916_v43, %v14831_v37  ;;  %vm6235_vm9 = vcmp.gt.f32.partialorder %v4915_v9, %v14833_v7  ;;  %v7535_v18 = vsel %vm16163_vm3, %v14962_v50, %v7529_v11  ;;  %v6681_v29 = vsel %vm6233_vm8, %v17144_v22, %v17143_v34 }
 0x6ba   : > { %v17145_v44 = vrot.slane %v14811_v27, 9  ;;  %v6745_v2 = vsel %vm6233_vm8, %v4908_v32, %v14829_v40  ;;  %v6746_v55 = vsel %vm6234_vm14, %v4916_v43, %v14831_v37  ;;  %v6747_v59 = vsel %vm6235_vm9, %v4915_v9, %v14833_v7 }
 0x6bb   : > { %v6881_v11 = vrot.slane %v6745_v2, 7  ;;  %v7329_v62 = vrot.slane %v6681_v29, 7  ;;  %v6882_v8 = vrot.slane %v6746_v55, 7  ;;  %v6883_v5 = vrot.slane %v6747_v59, 7  ;;  %v17152_v2 = vld [vmem:[#allocation120_spill] sm:$0xff] }
 0x6bc   : > { %v6683_v45 = vsel %vm6235_vm9, %v17146_v15, %v17145_v44  ;;  %vm17147_vm0 = vcmask 1043459   ;;  %v17148_v40 = vrot.slane %v17144_v22, 1  ;;  %v17149_v7 = vrot.slane %v14904_v49, 7  ;;  %v17154_v44 = vld [vmem:[#allocation146_spill] sm:$0xff] }
 0x6bd   : > { %v7331_v24 = vrot.slane %v6683_v45, 7  ;;  %v7537_v54 = vsel %vm17147_vm0, %v14962_v50, %v7535_v18  ;;  %vm7009_vm3 = vcmp.gt.f32.partialorder %v4908_v32, %v6881_v11  ;;  %vm15047_vm9 = vcmp.gt.f32.partialorder %v4916_v43, %v6882_v8 }
 0x6be   : > { %v7539_v27 = vsel %vm16165_vm7, %v14962_v50, %v7537_v54  ;;  %v6682_v34 = vsel %vm6234_vm14, %v17148_v40, %v14824_v60  ;;  %v7338_v59 = vsel %vm14939_vm15, %v17119_v36, %v17149_v7  ;;  %vm7011_vm8 = vcmp.gt.f32.partialorder %v4915_v9, %v6883_v5 }
 0x6bf   : > { %v17153_v45 = vrot.slane %v17152_v2, 7  ;;  %v7457_v29 = vsel %vm7009_vm3, %v4908_v32, %v6881_v11  ;;  %v17155_v22 = vrot.slane %v17154_v44, 7  ;;  %v7458_v60 = vsel %vm15047_vm9, %v4916_v43, %v6882_v8 }
 0x6c0   : > { %v7459_v37 = vsel %vm7011_vm8, %v4915_v9, %v6883_v5  ;;  %v7731_v49 = vrot.slane %v7457_v29, 1  ;;  %vm17156_vm15 = vcmask 1047559   ;;  %vm17157_vm14 = vcmask 1041409  }
 0x6c1   : > { %v7393_v18 = vsel %vm7009_vm3, %v17153_v45, %v7329_v62  ;;  %v15055_v54 = vsel %vm7011_vm8, %v17155_v22, %v7331_v24  ;;  %v7738_v30 = vrot.slane %v7459_v37, 1  ;;  %v7541_v7 = vsel %vm17156_vm15, %v14962_v50, %v7539_v27  ;;  %v17158_v62 = vld [vmem:[#allocation36_spill] sm:$0xff]  ;;  %vm17160_vm3 = vmmov %vm17157_vm14 }
 0x6c2   : > { %v8329_v36 = vrot.slane %v7393_v18, 1  ;;  %v8336_v40 = vrot.slane %v15055_v54, 1  ;;  %v7734_v53 = vsel %vm17157_vm14, %v7458_v60, %v7731_v49  ;;  %v7791_v32 = vcombine.low %v7541_v7, %v17158_v62  ;;  %vm17161_vm8 = vmmov %vm17147_vm0  ;;  %v17169_v54 = vld [vmem:[#allocation68_spill] sm:$0xff]  ;;  %v17170_v7 = vld [vmem:[#allocation63_spill] sm:$0xff] }
 0x6c3   : > { %v7330_v11 = vrot.slane %v6682_v34, 7  ;;  %v17159_v24 = vrot.slane %v14928_v42, 1  ;;  %v7735_v8 = vsel %vm17147_vm0, %v7458_v60, %v7734_v53  ;;  %vm17162_vm7 = vcmp.gt.f32.partialorder %v15013_v48, %v14835_v3 }
 0x6c4   : > { %v6748_v9 = vsel %vm17162_vm7, %v15013_v48, %v14835_v3  ;;  %v17163_v50 = vrot.slane %v14912_v35, 7  ;;  %vm17164_vm15 = vcmask 1045509   ;;  %v15081_v27 = vrot.slane %v7791_v32, %v16795_v41 }
 0x6c5   : > { %v8136_v45 = vsel %vm17160_vm3, %v7338_v59, %v17159_v24  ;;  %v7736_v42 = vsel %vm17164_vm15, %v7458_v60, %v7735_v8  ;;  %v7394_v53 = vsel %vm15047_vm9, %v17152_v2, %v7330_v11  ;;  %vm17165_vm14 = vmmov %vm17164_vm15  ;;  %vm17166_vm3 = vcmask 1047559   ;;  %v17195_v2 = vld [vmem:[#allocation39_spill] sm:$0xff] }
 0x6c6   : > { %v8137_v5 = vsel %vm17161_vm8, %v7338_v59, %v8136_v45  ;;  %v7404_v43 = vsel %vm14946_vm5, %v17116_v47, %v17163_v50  ;;  %v7737_v18 = vsel %vm17166_vm3, %v7458_v60, %v7736_v42  ;;  %vm17167_vm7 = vmmov %vm17166_vm3  ;;  %vm17168_vm0 = vcmask 1041409  }
 0x6c7   : > { %v8138_v34 = vsel %vm17165_vm14, %v7338_v59, %v8137_v5  ;;  %v8332_v35 = vsel %vm17168_vm0, %v7394_v53, %v8329_v36  ;;  %v6884_v22 = vrot.slane %v6748_v9, 7  ;;  %v7818_v47 = vcombine.low %v14628_v1, %v7737_v18  ;;  %vm17171_vm15 = vmmov %vm17165_vm14  ;;  %v17180_v9 = vld [vmem:[#allocation114_spill] sm:$0xff] }
 0x6c8   : > { %v8139_v29 = vsel %vm17167_vm7, %v7338_v59, %v8138_v34  ;;  %v8921_v37 = vcombine.high %v15081_v27, %v17169_v54  ;;  %v8333_v49 = vsel %vm17161_vm8, %v7394_v53, %v8332_v35  ;;  %v17174_v59 = vrot.slane %v14921_v26, 1  ;;  %vm17175_vm14 = vmmov %vm17168_vm0 }
 0x6c9   : > { %v8357_v62 = vcombine.low %v8139_v29, %v17170_v7  ;;  %v8334_v55 = vsel %vm17171_vm15, %v7394_v53, %v8333_v49  ;;  %vm15097_vm9 = vcmp.gt.f32.partialorder %v15013_v48, %v6884_v22  ;;  %v17176_v1 = vrot.slane %v17146_v15, 1  ;;  %vm17178_vm0 = vmmov %vm17161_vm8 }
 0x6ca   : > { %v7545_v60 = vsel %vm17175_vm14, %v7404_v43, %v17174_v59  ;;  %vm17177_vm3 = vcmp.gt.f32.partialorder %v15013_v48, %v14835_v3  ;;  %v15111_v32 = vrot.slane %v7818_v47, %v16795_v41  ;;  %v7969_v11 = vrot.slane %v8921_v37, %v12164_v58  ;;  %vm17181_vm8 = vmmov %vm17171_vm15 }
 0x6cb   : > { %v6684_v36 = vsel %vm17177_vm3, %v17176_v1, %v14827_v28  ;;  %v8335_v24 = vsel %vm17167_vm7, %v7394_v53, %v8334_v55  ;;  %v15116_v45 = vrot.slane %v8357_v62, %v16795_v41  ;;  %v7460_v15 = vsel %vm15097_vm9, %v15013_v48, %v6884_v22  ;;  %v17179_v28 = vld [vmem:[#allocation147_spill] sm:$0xff]  ;;  %vm17182_vm15 = vmmov %vm17175_vm14 }
 0x6cc   : > { %v8384_v26 = vcombine.low %v14639_v13, %v8335_v24  ;;  %v7546_v8 = vsel %vm17178_vm0, %v7404_v43, %v7545_v60  ;;  %v7332_v3 = vrot.slane %v6684_v36, 7  ;;  %v8922_v5 = vcombine.high %v17179_v28, %v15111_v32  ;;  %vm17183_vm14 = vmmov %vm17167_vm7 }
 0x6cd   : > { %v8929_v50 = vcombine.high %v15116_v45, %v17180_v9  ;;  %v7547_v42 = vsel %vm17181_vm8, %v7404_v43, %v7546_v8  ;;  %v7741_v53 = vsel %vm17182_vm15, %v7460_v15, %v7738_v30  ;;  %vm17184_vm3 = vmmov %vm17178_vm0  ;;  %v17185_v18 = vrot.slane %v14908_v14, 7  ;;  %v17187_v30 = vld [vmem:[#allocation125_spill] sm:$0xff] }
 0x6ce   : > { %v15130_v34 = vrot.slane %v8384_v26, %v16795_v41  ;;  %v7548_v13 = vsel %vm17183_vm14, %v7404_v43, %v7547_v42  ;;  %v7742_v48 = vsel %vm17184_vm3, %v7460_v15, %v7741_v53  ;;  %v7976_v35 = vrot.slane %v8922_v5, %v12164_v58  ;;  %vm17186_vm7 = vmmov %vm17181_vm8 }
 0x6cf   : > { %v7340_v29 = vsel %vm14946_vm5, %v17121_v39, %v17185_v18  ;;  %v8526_v22 = vrot.slane %v8929_v50, %v12164_v58  ;;  %v7743_v47 = vsel %vm17186_vm7, %v7460_v15, %v7742_v48  ;;  %v7827_v37 = vcombine.low %v7548_v13, %v17187_v30  ;;  %vm17188_vm0 = vmmov %vm17183_vm14 }
 0x6d0   : > { %v8930_v49 = vcombine.high %v14482_v17, %v15130_v34  ;;  %v7744_v43 = vsel %vm17188_vm0, %v7460_v15, %v7743_v47  ;;  %v7396_v14 = vsel %vm15097_vm9, %v17154_v44, %v7332_v3  ;;  %v17189_v16 = vrot.slane %v14932_v10, 1  ;;  %vm17190_vm5 = vmmov %vm17182_vm15 }
 0x6d1   : > { %v7977_v7 = vcombine.low %v7969_v11, %v7976_v35  ;;  %v7834_v62 = vrot.slane %v7827_v37, %v16795_v41  ;;  %v7854_v55 = vcombine.low %v14655_v61, %v7744_v43  ;;  %vm17191_vm8 = vmmov %vm17184_vm3  ;;  %v17205_v43 = vld [vmem:[#allocation139_spill] sm:$0xff] }
 0x6d2   : > { %v8143_v39 = vsel %vm17190_vm5, %v7340_v29, %v17189_v16  ;;  %v8533_v60 = vrot.slane %v8930_v49, %v12164_v58  ;;  %vm17192_vm15 = vmmov %vm17186_vm7  ;;  %v17207_v16 = vld [vmem:[#allocation141_spill] sm:$0xff] }
 0x6d3   : > { %v8144_v59 = vsel %vm17191_vm8, %v7340_v29, %v8143_v39  ;;  %vm17193_vm14 = vmmov %vm17190_vm5  ;;  %7978 = vrot.lane.b32.xlu0 %v7977_v7, %s9370_s15  ;;  %v7861_v10 = vrot.slane %v7854_v55, %v16795_v41  ;;  %v7985_v11 = vcombine.low %v7834_v62, %v17195_v2 }
 0x6d4   : > { %v8145_v1 = vsel %vm17192_vm15, %v7340_v29, %v8144_v59  ;;  %v8339_v36 = vsel %vm17193_vm14, %v7396_v14, %v8336_v40  ;;  %vm17194_vm9 = vmmov %vm17186_vm7  ;;  %v8534_v26 = vcombine.low %v8526_v22, %v8533_v60  ;;  %v8923_v40 = vcombine.high %v7834_v62, %v17195_v2  ;;  %v17209_v59 = vld [vmem:[#allocation102_spill] sm:$0xff]  ;;  %v17210_v60 = vld [vmem:[#allocation40_spill] sm:$0xff] }
 0x6d5   : > { %v7554_v44 = vsel %vm17194_vm9, %v14856_v23, %v14953_v4  ;;  %vm17196_vm3 = vmmov %vm17188_vm0  ;;  %v7986_v3 = vcombine.low %v14522_v19, %v7861_v10  ;;  %v7993_v4 = vrot.slane %v7985_v11, %v12164_v58  ;;  %v8924_v50 = vcombine.high %v14522_v19, %v7861_v10 }
 0x6d6   : > { %v8146_v61 = vsel %vm17196_vm3, %v7340_v29, %v8145_v1  ;;  %vm17197_vm7 = vmmov %vm17191_vm8  ;;  %8535 = vrot.lane.b32.xlu1 %v8534_v26, %s9370_s15  ;;  %v8017_v13 = vrot.slane %v8923_v40, %v12164_v58  ;;  %v17211_v1 = vrot.slane %v17210_v60, 1  ;;  %s15675_s15 = sand.u32 1, %s9358_s22  }
 0x6d7   : > { %v8340_v24 = vsel %vm17197_vm7, %v7396_v14, %v8339_v36  ;;  %vm17198_vm0 = vmmov %vm17194_vm9  ;;  %v8393_v8 = vcombine.low %v8146_v61, %v14464_v46  ;;  %v8000_v48 = vrot.slane %v7986_v3, %v12164_v58  ;;  %v8024_v18 = vrot.slane %v8924_v50, %v12164_v58  ;;  %v17212_v36 = vld [vmem:[#allocation73_spill] sm:$0xff]  ;;  %v17221_v50 = vld [vmem:[#allocation28_spill] sm:$0xff]  ;;  %s8660_s9 = scalar_lea.sflag [#allocation5], %s15675_s15 }
 0x6d8   : > { %v8341_v15 = vsel %vm17198_vm0, %v7396_v14, %v8340_v24  ;;  %vm17199_vm5 = vmmov %vm17196_vm3  ;;  %v17218_v3 = vld [vmem:[#allocation21_spill] sm:$0xff] }
 0x6d9   : > { %v8342_v5 = vsel %vm17199_vm5, %v7396_v14, %v8341_v15  ;;  %v8400_v42 = vrot.slane %v8393_v8, %v16795_v41  ;;  %vm17200_vm8 = vmmov %vm17196_vm3  ;;  %v8001_v47 = vcombine.low %v7993_v4, %v8000_v48  ;;  %v8025_v30 = vcombine.low %v8017_v13, %v8024_v18  ;;  %v17216_v8 = vld [vmem:[#allocation65_spill] sm:$0xff]  ;;  %v17219_v4 = vld [vmem:[#allocation98_spill] sm:$0xff] }
 0x6da   : > { %v8420_v53 = vcombine.low %v14658_v52, %v8342_v5  ;;  %v7555_v46 = vsel %vm17200_vm8, %v14856_v23, %v7554_v44  ;;  %vm17201_vm15 = vmmov %vm17196_vm3  ;;  %v17213_v44 = vld [vmem:[#allocation122_spill] sm:$0xff]  ;;  %v17217_v40 = vrot.slane %v17216_v8, 1  ;;  %v17224_v13 = vld [vmem:[#allocation16_spill] sm:$0xff] }
 0x6db   : > { %v7667_v29 = vsel %vm17201_vm15, %v17100_v51, %v14876_v0  ;;  %vm17202_vm14 = vmmov %vm17196_vm3  ;;  %v8537_v52 = vcombine.low %v8400_v42, %v14625_v57  ;;  %v8931_v22 = vcombine.high %v8400_v42, %v14625_v57  ;;  %v7749_v51 = vsel %vm17197_vm7, %v15003_v56, %v15009_v25  ;;  %8002 = vrot.lane.b32.xlu0 %v8001_v47, %s9372_s17  ;;  %v17222_v42 = vld [vmem:[#allocation119_spill] sm:$0xff]  ;;  %v17250_v8 = vld [vmem:[#allocation30_spill] sm:$0xff] }
 0x6dc   : > { %v7695_v19 = vsel %vm17202_vm14, %v14246_v20, %v14880_v31  ;;  %v8427_v35 = vrot.slane %v8420_v53, %v16795_v41  ;;  %vm17203_vm9 = vmmov %vm17198_vm0  ;;  %v17204_v20 = vld [vmem:[#allocation138_spill] sm:$0xff]  ;;  %v7863_v14 = vcombine.low %v7555_v46, %v17205_v43  ;;  %vm17214_vm8 = vcmp.gt.f32.partialorder %v17212_v36, %v17213_v44 }
 0x6dd   : > { %v7722_v23 = vsel %vm17203_vm9, %v14570_v6, %v14867_v33  ;;  %v8545_v31 = vrot.slane %v8537_v52, %v12164_v58  ;;  %v8564_v57 = vrot.slane %v8931_v22, %v12164_v58  ;;  %v7750_v33 = vsel %vm17198_vm0, %v15003_v56, %v7749_v51  ;;  %vm17208_vm5 = vmmov %vm17196_vm3  ;;  %v17225_v46 = vld [vmem:[#allocation34_spill] sm:$0xff]  ;;  %v17234_v51 = vld [vmem:[#allocation111_spill] sm:$0xff] }
 0x6de   : > { %v7723_v37 = vsel %vm17196_vm3, %v14570_v6, %v7722_v23  ;;  %v8538_v0 = vcombine.low %v17204_v20, %v8427_v35  ;;  %v8932_v49 = vcombine.high %v17204_v20, %v8427_v35  ;;  %v17206_v6 = vld [vmem:[#allocation56_spill] sm:$0xff]  ;;  %v7881_v7 = vcombine.low %v7667_v29, %v7695_v19  ;;  %v17227_v19 = vld [vmem:[#allocation95_spill] sm:$0xff]  ;;  %v17230_v22 = vld [vmem:[#allocation130_spill] sm:$0xff] }
 0x6df   : > { %v7872_v39 = vcombine.low %v17207_v16, %v17206_v6  ;;  %v7751_v55 = vsel %vm17208_vm5, %v15003_v56, %v7750_v33  ;;  %v6638_v10 = vsel %vm17214_vm8, %v17211_v1, %v17209_v59  ;;  %v15219_v2 = vrot.slane %v7863_v14, %v16795_v41  ;;  %v17215_v56 = vld [vmem:[#allocation77_spill] sm:$0xff]  ;;  %8026 = vrot.lane.b32.xlu0 %v8025_v30, %s9374_s12  ;;  %v17228_v35 = vld [vmem:[#allocation11_spill] sm:$0xff]  ;;  %v17231_v23 = vld [vmem:[#allocation124_spill] sm:$0xff] }
 0x6e0   : > { %v8552_v25 = vrot.slane %v8538_v0, %v12164_v58  ;;  %v8571_v62 = vrot.slane %v8932_v49, %v12164_v58  ;;  %v15225_v61 = vrot.slane %v7881_v7, %v16795_v41  ;;  %v7890_v24 = vcombine.low %v7723_v37, %v7751_v55  ;;  %v17233_v37 = vld [vmem:[#allocation94_spill] sm:$0xff]  ;;  %v17236_v0 = vld [vmem:[#allocation57_spill] sm:$0xff]  ;;  %v17239_v49 = vld [vmem:[#allocation91_spill] sm:$0xff] }
 0x6e1   : > { %v15222_v11 = vrot.slane %v7872_v39, %v16795_v41  ;;  %vm17220_vm15 = vcmp.gt.f32.partialorder %v17218_v3, %v17219_v4  ;;  %v17223_v53 = vrot.slane %v17222_v42, 1  ;;  %vm17226_vm14 = vcmp.gt.f32.partialorder %v17224_v13, %v17225_v46  ;;  %v17242_v43 = vld [vmem:[#allocation78_spill] sm:$0xff]  ;;  %v17254_v4 = vld [vmem:[#allocation29_spill] sm:$0xff]  ;;  %v17256_v42 = vld [vmem:[#allocation72_spill] sm:$0xff] }
 0x6e2   : > { %v8553_v26 = vcombine.low %v8545_v31, %v8552_v25  ;;  %v8572_v15 = vcombine.low %v8564_v57, %v8571_v62  ;;  %v6646_v5 = vsel %vm17220_vm15, %v17217_v40, %v17215_v56  ;;  %v15241_v18 = vrot.slane %v7890_v24, %v16795_v41  ;;  %v17237_v31 = vld [vmem:[#allocation121_spill] sm:$0xff]  ;;  %v17240_v57 = vld [vmem:[#allocation128_spill] sm:$0xff]  ;;  %v17243_v14 = vld [vmem:[#allocation82_spill] sm:$0xff] }
 0x6e3   : > { %v6654_v48 = vsel %vm17226_vm14, %v17223_v53, %v17221_v50  ;;  %v8033_v29 = vcombine.low %v15219_v2, %v15222_v11  ;;  %v17229_v52 = vrot.slane %v17228_v35, 1  ;;  %vm17232_vm9 = vcmp.gt.f32.partialorder %v17230_v22, %v17231_v23  ;;  %v17245_v16 = vld [vmem:[#allocation142_spill] sm:$0xff]  ;;  %v17258_v46 = vld [vmem:[#allocation129_spill] sm:$0xff]  ;;  %v17299_v53 = vld [vmem:[#allocation80_spill] sm:$0xff] }
 0x6e4   : > { %v17235_v20 = vrot.slane %v17234_v51, 1  ;;  %vm17238_vm3 = vcmp.gt.f32.partialorder %v17236_v0, %v17237_v31  ;;  %8554 = vrot.lane.b32.xlu1 %v8553_v26, %s9372_s17  ;;  %v17241_v33 = vrot.slane %v17240_v57, 1  ;;  %vm17244_vm7 = vcmp.gt.f32.partialorder %v17242_v43, %v17243_v14  ;;  %v17248_v26 = vld [vmem:[#allocation10_spill] sm:$0xff]  ;;  %v17265_v0 = vld [vmem:[#allocation87_spill] sm:$0xff]  ;;  %s8786_s17 = sshll.u32 %s15675_s15, 3 }
 0x6e5   : > { %v6662_v47 = vsel %vm17232_vm9, %v17229_v52, %v17227_v19  ;;  %v17246_v39 = vrot.slane %v17129_v12, 1  ;;  %vm17247_vm0 = vcmp.gt.f32.partialorder %v14956_v21, %v14712_v63  ;;  %v7286_v25 = vrot.slane %v6638_v10, 7  ;;  %v17252_v21 = vld [vmem:[#allocation85_spill] sm:$0xff]  ;;  %v17260_v19 = vld [vmem:[#allocation118_spill] sm:$0xff] }
 0x6e6   : > { %v6670_v30 = vsel %vm17238_vm3, %v17235_v20, %v17233_v37  ;;  %v6678_v6 = vsel %vm17244_vm7, %v17241_v33, %v17239_v49  ;;  %v7294_v62 = vrot.slane %v6646_v5, 7  ;;  %v8034_v55 = vcombine.low %v15225_v61, %v15241_v18  ;;  %v17262_v22 = vld [vmem:[#allocation54_spill] sm:$0xff]  ;;  %v17271_v33 = vld [vmem:[#allocation15_spill] sm:$0xff] }
 0x6e7   : > { %v6686_v7 = vsel %vm17247_vm0, %v17246_v39, %v17245_v16  ;;  %v8041_v59 = vrot.slane %v8033_v29, %v12164_v58  ;;  %v7302_v60 = vrot.slane %v6654_v48, 7  ;;  %v7310_v1 = vrot.slane %v6662_v47, 7 }
 0x6e8   : > { %v7318_v36 = vrot.slane %v6670_v30, 7  ;;  %v7326_v44 = vrot.slane %v6678_v6, 7  ;;  %v7334_v24 = vrot.slane %v6686_v7, 7  ;;  %v17249_v56 = vrot.slane %v17248_v26, 7  ;;  %8573 = vrot.lane.b32.xlu1 %v8572_v15, %s9374_s12  ;;  %v17268_v30 = vld [vmem:[#allocation123_spill] sm:$0xff]  ;;  %s8939_s12 = sshll.u32 %s9445_s25, 7 }
 0x6e9   : > { %v8048_v63 = vrot.slane %v8034_v55, %v12164_v58  ;;  %v7350_v3 = vsel %vm12713_vm1, %v17252_v21, %v7286_v25  ;;  %v7358_v50 = vsel %vm13045_vm6, %v17254_v4, %v7294_v62  ;;  %v7366_v13 = vsel %vm13371_vm13, %v17256_v42, %v7302_v60  ;;  %v17294_v4 = vld [vmem:[#allocation59_spill] sm:$0xff]  ;;  %s15700_s28 = scalar_lea.hbm %s15791_s5, %s8939_s12 }
 0x6ea   : > { %v7342_v40 = vsel %vm14844_vm11, %v17250_v8, %v17249_v56  ;;  %v7374_v29 = vsel %vm13698_vm12, %v17258_v46, %v7310_v1  ;;  %v7382_v52 = vsel %vm14234_vm4, %v17260_v19, %v7318_v36  ;;  %v7390_v47 = vsel %vm14558_vm2, %v17262_v22, %v7326_v44  ;;  %v17289_v56 = vld [vmem:[#allocation132_spill] sm:$0xff] }
 0x6eb   : > { %v7398_v51 = vsel %vm14991_vm10, %v17133_v38, %v7334_v24  ;;  %v8049_v20 = vcombine.low %v8041_v59, %v8048_v63  ;;  %v17266_v31 = vrot.slane %v17265_v0, 1  ;;  %vm17267_vm13 = vcmask 1041409   ;;  %v17277_v38 = vld [vmem:[#allocation22_spill] sm:$0xff] }
 0x6ec   : > { %v17269_v49 = vrot.slane %v17268_v30, 1  ;;  %vm17270_vm1 = vmmov %vm17267_vm13  ;;  %v17272_v43 = vrot.slane %v17271_v33, 1  ;;  %vm17274_vm12 = vcmask 1043459   ;;  %v17278_v7 = vrot.slane %v17277_v38, 1  ;;  %v17292_v63 = vld [vmem:[#allocation14_spill] sm:$0xff]  ;;  %v17315_v38 = vld [vmem:[#allocation81_spill] sm:$0xff] }
 0x6ed   : > { %v8150_v15 = vsel %vm17267_vm13, %v7342_v40, %v17266_v31  ;;  %vm17273_vm6 = vmmov %vm17270_vm1  ;;  %8050 = vrot.lane.b32.xlu0 %v8049_v20, %s9376_s18  ;;  %vm17280_vm11 = vcmask 1045509   ;;  %vm17284_vm14 = vcmask 1047559   ;;  %v17290_v8 = vrot.slane %v17289_v56, 1 }
 0x6ee   : > { %v8178_v57 = vsel %vm17270_vm1, %v7350_v3, %v17269_v49  ;;  %v8206_v14 = vsel %vm17273_vm6, %v7358_v50, %v17272_v43  ;;  %v8151_v6 = vsel %vm17274_vm12, %v7342_v40, %v8150_v15  ;;  %vm17275_vm4 = vmmov %vm17274_vm12  ;;  %v17293_v21 = vrot.slane %v17292_v63, 1  ;;  %v17325_v63 = vld [vmem:[#allocation18_spill] sm:$0xff] }
 0x6ef   : > { %v8179_v16 = vsel %vm17275_vm4, %v7350_v3, %v8178_v57  ;;  %vm17276_vm2 = vmmov %vm17275_vm4  ;;  %v8152_v62 = vsel %vm17280_vm11, %v7342_v40, %v8151_v6  ;;  %v17295_v5 = vrot.slane %v17294_v4, 1  ;;  %v8925_v33 = vcombine.high %v15219_v2, %v15222_v11 }
 0x6f0   : > { %v8207_v39 = vsel %vm17276_vm2, %v7358_v50, %v8206_v14  ;;  %vm17279_vm10 = vmmov %vm17270_vm1  ;;  %v8153_v1 = vsel %vm17284_vm14, %v7342_v40, %v8152_v62  ;;  %v8290_v10 = vsel %vm17270_vm1, %v7382_v52, %v17293_v21  ;;  %v8926_v43 = vcombine.high %v15225_v61, %v15241_v18  ;;  %v17309_v14 = vld [vmem:[#allocation71_spill] sm:$0xff] }
 0x6f1   : > { %v8234_v25 = vsel %vm17279_vm10, %v7366_v13, %v17278_v7  ;;  %vm17281_vm5 = vmmov %vm17280_vm11  ;;  %v8065_v61 = vrot.slane %v8925_v33, %v12164_v58  ;;  %v17316_v7 = vld [vmem:[#allocation43_spill] sm:$0xff] }
 0x6f2   : > { %v8180_v55 = vsel %vm17281_vm5, %v7350_v3, %v8179_v16  ;;  %vm17282_vm8 = vmmov %vm17281_vm5  ;;  %v17312_v16 = vld [vmem:[#allocation127_spill] sm:$0xff]  ;;  %v8072_v18 = vrot.slane %v8926_v43, %v12164_v58  ;;  %v17343_v43 = vmov 0 }
 0x6f3   : > { %v8208_v59 = vsel %vm17282_vm8, %v7358_v50, %v8207_v39  ;;  %vm17283_vm15 = vmmov %vm17276_vm2  ;;  %v17313_v39 = vld [vmem:[#allocation12_spill] sm:$0xff] }
 0x6f4   : > { %v8235_v60 = vsel %vm17283_vm15, %v7366_v13, %v8234_v25  ;;  %vm17285_vm9 = vmmov %vm17284_vm14  ;;  %v8073_v56 = vcombine.low %v8065_v61, %v8072_v18 }
 0x6f5   : > { %v8181_v36 = vsel %vm17285_vm9, %v7350_v3, %v8180_v55  ;;  %vm17286_vm3 = vmmov %vm17285_vm9 }
 0x6f6   : > { %v8209_v44 = vsel %vm17286_vm3, %v7358_v50, %v8208_v59  ;;  %vm17287_vm7 = vmmov %vm17281_vm5  ;;  %v8429_v15 = vcombine.low %v8153_v1, %v8181_v36  ;;  %v17318_v59 = vld [vmem:[#allocation50_spill] sm:$0xff]  ;;  %v17321_v36 = vld [vmem:[#allocation79_spill] sm:$0xff]  ;;  %8074 = vrot.lane.b32.xlu0 %v8073_v56, %s9377_s16 }
 0x6f7   : > { %v8236_v24 = vsel %vm17287_vm7, %v7366_v13, %v8235_v60  ;;  %vm17288_vm0 = vmmov %vm17286_vm3  ;;  %v17319_v60 = vld [vmem:[#allocation131_spill] sm:$0xff]  ;;  %v17353_v56 = vld [vmem:[#allocation126_spill] sm:$0xff] }
 0x6f8   : > { %v8237_v26 = vsel %vm17288_vm0, %v7366_v13, %v8236_v24  ;;  %vm17291_vm13 = vmmov %vm17270_vm1  ;;  %v17300_v13 = vrot.slane %v17299_v53, 1 }
 0x6f9   : > { %v8262_v12 = vsel %vm17291_vm13, %v7374_v29, %v17290_v8  ;;  %vm17296_vm6 = vmmov %vm17270_vm1  ;;  %v8438_v30 = vcombine.low %v8209_v44, %v8237_v26  ;;  %v17322_v44 = vld [vmem:[#allocation45_spill] sm:$0xff] }
 0x6fa   : > { %v8318_v40 = vsel %vm17296_vm6, %v7390_v47, %v17295_v5  ;;  %vm17297_vm12 = vmmov %vm17276_vm2  ;;  %vm17317_vm6 = vcmp.gt.f32.partialorder %v17316_v7, %v17315_v38  ;;  %v17327_v5 = vld [vmem:[#allocation41_spill] sm:$0xff] }
 0x6fb   : > { %v8263_v3 = vsel %vm17297_vm12, %v7374_v29, %v8262_v12  ;;  %vm17298_vm4 = vmmov %vm17276_vm2  ;;  %v8319_v42 = vsel %vm17276_vm2, %v7390_v47, %v8318_v40  ;;  %v6720_v25 = vsel %vm17317_vm6, %v17316_v7, %v17315_v38  ;;  %vm17320_vm12 = vcmp.gt.f32.partialorder %v17319_v60, %v17318_v59  ;;  %v17324_v12 = vld [vmem:[#allocation51_spill] sm:$0xff]  ;;  %v17328_v40 = vld [vmem:[#allocation110_spill] sm:$0xff] }
 0x6fc   : > { %v8291_v50 = vsel %vm17298_vm4, %v7382_v52, %v8290_v10  ;;  %vm17301_vm10 = vmmov %vm17270_vm1  ;;  %vm17314_vm1 = vcmp.gt.f32.partialorder %v17313_v39, %v17312_v16  ;;  %v6728_v1 = vsel %vm17320_vm12, %v17319_v60, %v17318_v59  ;;  %vm17323_vm4 = vcmp.gt.f32.partialorder %v17322_v44, %v17321_v36 }
 0x6fd   : > { %v8346_v46 = vsel %vm17301_vm10, %v7398_v51, %v17300_v13  ;;  %vm17302_vm11 = vmmov %vm17281_vm5  ;;  %v8292_v19 = vsel %vm17281_vm5, %v7382_v52, %v8291_v50  ;;  %v6712_v2 = vsel %vm17314_vm1, %v17313_v39, %v17312_v16  ;;  %v6736_v24 = vsel %vm17323_vm4, %v17322_v44, %v17321_v36 }
 0x6fe   : > { %v8264_v48 = vsel %vm17302_vm11, %v7374_v29, %v8263_v3  ;;  %vm17303_vm8 = vmmov %vm17281_vm5  ;;  %vm17329_vm10 = vcmp.gt.f32.partialorder %v17328_v40, %v17327_v5  ;;  %v6848_v13 = vrot.slane %v6712_v2, 7  ;;  %vm17356_vm1 = vcmask 1043459  }
 0x6ff   : > { %v8320_v35 = vsel %vm17303_vm8, %v7390_v47, %v8319_v42  ;;  %vm17304_vm15 = vmmov %vm17276_vm2  ;;  %vm17326_vm2 = vcmp.gt.f32.partialorder %v17325_v63, %v17324_v12  ;;  %v6752_v3 = vsel %vm17329_vm10, %v17328_v40, %v17327_v5 }
 0x700   : > { %v8347_v22 = vsel %vm17304_vm15, %v7398_v51, %v8346_v46  ;;  %vm17305_vm14 = vmmov %vm17288_vm0  ;;  %v6744_v21 = vsel %vm17326_vm2, %v17325_v63, %v17324_v12  ;;  %v6856_v46 = vrot.slane %v6720_v25, 7  ;;  %vm15413_vm8 = vcmp.gt.f32.partialorder %v17313_v39, %v6848_v13 }
 0x701   : > { %v8265_v23 = vsel %vm17305_vm14, %v7374_v29, %v8264_v48  ;;  %vm17306_vm9 = vmmov %vm17288_vm0  ;;  %v17310_v29 = vld [vmem:[#allocation103_spill] sm:$0xff]  ;;  %v6864_v48 = vrot.slane %v6728_v1, 7  ;;  %vm17364_vm2 = vcmask 1045509  }
 0x702   : > { %v8293_v37 = vsel %vm17306_vm9, %v7382_v52, %v8292_v19  ;;  %vm17307_vm3 = vmmov %vm17288_vm0  ;;  %vm17311_vm13 = vcmp.gt.f32.partialorder %v17310_v29, %v17309_v14  ;;  %v6872_v19 = vrot.slane %v6736_v24, 7  ;;  %vm15418_vm15 = vcmp.gt.f32.partialorder %v17316_v7, %v6856_v46  ;;  %v17350_v1 = vld [vmem:[#allocation75_spill] sm:$0xff] }
 0x703   : > { %v8321_v20 = vsel %vm17307_vm3, %v7390_v47, %v8320_v35  ;;  %vm17308_vm7 = vmmov %vm17281_vm5  ;;  %v8447_v49 = vcombine.low %v8265_v23, %v8293_v37  ;;  %v6704_v52 = vsel %vm17311_vm13, %v17310_v29, %v17309_v14  ;;  %v8436_v47 = vrot.slane %v8429_v15, %v16795_v41  ;;  %v17432_v15 = vld [vmem:[#allocation47_spill] sm:$0xff] }
 0x704   : > { %v8348_v0 = vsel %vm17308_vm7, %v7398_v51, %v8347_v22  ;;  %v6840_v50 = vrot.slane %v6704_v52, 7  ;;  %v6880_v35 = vrot.slane %v6744_v21, 7  ;;  %v6888_v22 = vrot.slane %v6752_v3, 7  ;;  %vm17357_vm6 = vmmov %vm17356_vm1  ;;  %v17358_v3 = vld [vmem:[#allocation109_spill] sm:$0xff] }
 0x705   : > { %v8349_v31 = vsel %vm17288_vm0, %v7398_v51, %v8348_v0  ;;  %v8445_v51 = vrot.slane %v8438_v30, %v16795_v41  ;;  %v8454_v6 = vrot.slane %v8447_v49, %v16795_v41  ;;  %vm15423_vm14 = vcmp.gt.f32.partialorder %v17319_v60, %v6864_v48  ;;  %vm17365_vm10 = vmmov %vm17364_vm2 }
 0x706   : > { %v8456_v57 = vcombine.low %v8321_v20, %v8349_v31  ;;  %v17330_v20 = vld [vmem:[#allocation31_spill] sm:$0xff]  ;;  %v17332_v31 = vld [vmem:[#allocation69_spill] sm:$0xff]  ;;  %vm15408_vm5 = vcmp.gt.f32.partialorder %v17310_v29, %v6840_v50  ;;  %vm15428_vm9 = vcmp.gt.f32.partialorder %v17322_v44, %v6872_v19  ;;  %vm15434_vm3 = vcmp.gt.f32.partialorder %v17325_v63, %v6880_v35 }
 0x707   : > { %v8575_v62 = vcombine.low %v8436_v47, %v8445_v51  ;;  %v8933_v55 = vcombine.high %v8436_v47, %v8445_v51  ;;  %v17331_v0 = vrot.slane %v17330_v20, 7  ;;  %v17344_v43 = vsel %vm15428_vm9, 4294967295, %v17343_v43 }
 0x708   : > { %v8463_v11 = vrot.slane %v8456_v57, %v16795_v41  ;;  %v17345_v52 = vmov 0  ;;  %vm15439_vm7 = vcmp.gt.f32.partialorder %v17328_v40, %v6888_v22  ;;  %v17347_v47 = vmov 0 }
 0x709   : > { %v8583_v10 = vrot.slane %v8575_v62, %v12164_v58  ;;  %v8602_v4 = vrot.slane %v8933_v55, %v12164_v58  ;;  %vm15403_vm11 = vcmp.gt.f32.partialorder %v17332_v31, %v17331_v0  ;;  %v17346_v52 = vsel %vm15434_vm3, 4294967295, %v17345_v52 }
 0x70a   : > { %v8576_v26 = vcombine.low %v8454_v6, %v8463_v11  ;;  %v8934_v8 = vcombine.high %v8454_v6, %v8463_v11  ;;  %v17348_v47 = vsel %vm15439_vm7, 4294967295, %v17347_v47  ;;  %v17349_v51 = vmov %v17331_v0 }
 0x70b   : > { %v7408_v6 = vsel %vm15403_vm11, %v17332_v31, %v17349_v51  ;;  %v7416_v2 = vsel %vm15408_vm5, %v17310_v29, %v6840_v50  ;;  %v7424_v11 = vsel %vm15413_vm8, %v17313_v39, %v6848_v13  ;;  %v7432_v61 = vsel %vm15418_vm15, %v17316_v7, %v6856_v46 }
 0x70c   : > { %v8590_v42 = vrot.slane %v8576_v26, %v12164_v58  ;;  %v8609_v53 = vrot.slane %v8934_v8, %v12164_v58  ;;  %v7440_v18 = vsel %vm15423_vm14, %v17319_v60, %v6864_v48  ;;  %v7448_v25 = vsel %vm15428_vm9, %v17322_v44, %v6872_v19 }
 0x70d   : > { %v7456_v62 = vsel %vm15434_vm3, %v17325_v63, %v6880_v35  ;;  %v7464_v55 = vsel %vm15439_vm7, %v17328_v40, %v6888_v22  ;;  %v17351_v24 = vrot.slane %v17350_v1, 1  ;;  %vm17352_vm0 = vcmask 1041409   ;;  %vm17370_vm7 = vmmov %vm17364_vm2  ;;  %v17374_v1 = vld [vmem:[#allocation136_spill] sm:$0xff] }
 0x70e   : > { %v8591_v23 = vcombine.low %v8583_v10, %v8590_v42  ;;  %v8610_v37 = vcombine.low %v8602_v4, %v8609_v53  ;;  %v17354_v8 = vrot.slane %v17353_v56, 1  ;;  %vm17355_vm13 = vmmov %vm17352_vm0  ;;  %v17359_v50 = vrot.slane %v17358_v3, 1  ;;  %v17361_v53 = vld [vmem:[#allocation42_spill] sm:$0xff]  ;;  %v17377_v56 = vld [vmem:[#allocation89_spill] sm:$0xff] }
 0x70f   : > { %v7559_v26 = vsel %vm17352_vm0, %v7408_v6, %v17351_v24  ;;  %vm17360_vm12 = vmmov %vm17352_vm0  ;;  %v17362_v13 = vrot.slane %v17361_v53, 1  ;;  %v17375_v24 = vrot.slane %v17374_v1, 1 }
 0x710   : > { %8592 = vrot.lane.b32.xlu1 %v8591_v23, %s9376_s18  ;;  %v7587_v21 = vsel %vm17355_vm13, %v7416_v2, %v17354_v8  ;;  %v7560_v10 = vsel %vm17356_vm1, %v7408_v6, %v7559_v26  ;;  %v7615_v42 = vsel %vm17360_vm12, %v7424_v11, %v17359_v50  ;;  %vm17363_vm4 = vmmov %vm17352_vm0  ;;  %v17378_v8 = vrot.slane %v17377_v56, 1  ;;  %v17384_v50 = vld [vmem:[#allocation44_spill] sm:$0xff]  ;;  %s248_s18 = scalar_lea.vmem [#allocation4], %s8786_s17 }
 0x711   : > { %v7588_v4 = vsel %vm17357_vm6, %v7416_v2, %v7587_v21  ;;  %v7643_v46 = vsel %vm17363_vm4, %v7432_v61, %v17362_v13  ;;  %v7561_v48 = vsel %vm17364_vm2, %v7408_v6, %v7560_v10  ;;  %vm17366_vm0 = vmmov %vm17356_vm1  ;;  %vm17368_vm1 = vcmask 1047559   ;;  %v17381_v10 = vld [vmem:[#allocation148_spill] sm:$0xff] }
 0x712   : > { %v7589_v19 = vsel %vm17365_vm10, %v7416_v2, %v7588_v4  ;;  %v7616_v35 = vsel %vm17366_vm0, %v7424_v11, %v7615_v42  ;;  %vm17367_vm13 = vmmov %vm17366_vm0  ;;  %v7562_v23 = vsel %vm17368_vm1, %v7408_v6, %v7561_v48  ;;  %v17382_v4 = vrot.slane %v17381_v10, 1 }
 0x713   : > { %v7644_v22 = vsel %vm17367_vm13, %v7432_v61, %v7643_v46  ;;  %vm17369_vm6 = vmmov %vm17368_vm1  ;;  %v7617_v0 = vsel %vm17370_vm7, %v7424_v11, %v7616_v35 }
 0x714   : > { %8611 = vrot.lane.b32.xlu1 %v8610_v37, %s9377_s16  ;;  %v7590_v20 = vsel %vm17369_vm6, %v7416_v2, %v7589_v19  ;;  %vm17371_vm12 = vmmov %vm17364_vm2  ;;  %vm17376_vm2 = vcmask 1041409   ;;  %s8678_s16 = sshll.u32 %s248_s18, 4  ;;  %s15702_s16 = int_to_ptr.vmem [resolvable:$true] %s8678_s16 }
 0x715   : > { %v7645_v31 = vsel %vm17371_vm12, %v7432_v61, %v7644_v22  ;;  %vm17372_vm3 = vmmov %vm17368_vm1  ;;  %v7671_v26 = vsel %vm17376_vm2, %v7440_v18, %v17375_v24  ;;  %v7899_v1 = vcombine.low %v7562_v23, %v7590_v20  ;;  %v17405_v20 = vld [vmem:[#allocation60_spill] sm:$0xff]  ;;  %s9272_s10 = scalar_lea.vmem %s15702_s16, 128  ;;  %p9279_p0 = scmp.lt.s32.totalorder %s15702_s16, %s9277_s13 }
 0x716   : > { %v7618_v51 = vsel %vm17372_vm3, %v7424_v11, %v7617_v0  ;;  %vm17373_vm4 = vmmov %vm17368_vm1  ;;  %v7672_v6 = vsel %vm17366_vm0, %v7440_v18, %v7671_v26  ;;  %v17385_v11 = vrot.slane %v17384_v50, 1  ;;  %p9273_p11 = scmp.ne.s32.totalorder %s15702_s16, %s9272_s10  ;;  %p9280_p1 = scmp.lt.s32.totalorder %s9278_s19, %s9272_s10 }
 0x717   : > { %v7646_v37 = vsel %vm17373_vm4, %v7432_v61, %v7645_v31  ;;  %vm17379_vm10 = vmmov %vm17376_vm2 }
 0x718   : > { %v7699_v21 = vsel %vm17379_vm10, %v7448_v25, %v17378_v8  ;;  %vm17380_vm13 = vmmov %vm17366_vm0  ;;  %v7908_v24 = vcombine.low %v7618_v51, %v7646_v37  ;;  %v17397_v8 = vld [vmem:[#allocation48_spill] sm:$0xff]  ;;  %v17406_v51 = vld [vmem:[#allocation49_spill] sm:$0xff]  ;;  %p9274_p12 = pnand %p9273_p11, %p9462_p5  ;;  %p9281_p2 = por %p9280_p1, %p9279_p0 }
 0x719   : > { %v7700_v2 = vsel %vm17380_vm13, %v7448_v25, %v7699_v21  ;;  %vm17383_vm7 = vmmov %vm17376_vm2  ;;  %v17398_v21 = vld [vmem:[#allocation64_spill] sm:$0xff]  ;;  %v17407_v37 = vrot.slane %v17406_v51, 1 }
 0x71a   : > { %v7727_v3 = vsel %vm17383_vm7, %v7456_v62, %v17382_v4  ;;  %vm17386_vm3 = vmmov %vm17376_vm2  ;;  %vm17391_vm2 = vcmask 1047559   ;;  %v15534_v23 = vrot.slane %v7908_v24, %v16795_v41  ;;  %v17410_v4 = vld [vmem:[#allocation108_spill] sm:$0xff]  ;;  %p9275_p13 = pneg %p9274_p12 }
 0x71b   : > { %v7755_v61 = vsel %vm17386_vm3, %v7464_v55, %v17385_v11  ;;  %vm17387_vm1 = vmmov %vm17371_vm12  ;;  %vm17400_vm3 = vcmp.gt.f32.partialorder %v17310_v29, %v17309_v14  ;;  %v17409_v29 = vld [vmem:[#allocation55_spill] sm:$0xff]  ;;  %v17413_v11 = vld [vmem:[#allocation53_spill] sm:$0xff] }
 0x71c   : > { %v7673_v42 = vsel %vm17387_vm1, %v7440_v18, %v7672_v6  ;;  %vm17388_vm6 = vmmov %vm17387_vm1  ;;  %v17399_v6 = vrot.slane %v17398_v21, 1  ;;  %p9282_p3 = pnand %p9281_p2, %p9275_p13 }
 0x71d   : > { %v7701_v53 = vsel %vm17388_vm6, %v7448_v25, %v7700_v2  ;;  %vm17389_vm12 = vmmov %vm17366_vm0  ;;  %v7674_v48 = vsel %vm17391_vm2, %v7440_v18, %v7673_v42  ;;  %v17402_v2 = vld [vmem:[#allocation86_spill] sm:$0xff]  ;;  %vm17412_vm6 = vcmp.gt.f32.partialorder %v17319_v60, %v17318_v59 }
 0x71e   : > { %v7728_v13 = vsel %vm17389_vm12, %v7456_v62, %v7727_v3  ;;  %vm17390_vm4 = vmmov %vm17366_vm0  ;;  %v6640_v18 = vsel %vm17400_vm3, %v17399_v6, %v17397_v8  ;;  %v17403_v10 = vrot.slane %v17402_v2, 1  ;;  %v17411_v3 = vrot.slane %v17410_v4, 1  ;;  %v17427_v8 = vld [vmem:[#allocation26_spill] sm:$0xff]  ;;  %v17430_v2 = vld [vmem:[#allocation93_spill] sm:$0xff] }
 0x71f   : > { %v7756_v46 = vsel %vm17390_vm4, %v7464_v55, %v7755_v61  ;;  %vm17392_vm10 = vmmov %vm17391_vm2  ;;  %v17414_v61 = vld [vmem:[#allocation112_spill] sm:$0xff]  ;;  %vm17416_vm12 = vcmp.gt.f32.partialorder %v17322_v44, %v17321_v36  ;;  %vm17420_vm4 = vcmp.gt.f32.partialorder %v17325_v63, %v17324_v12 }
 0x720   : > { %v7702_v19 = vsel %vm17392_vm10, %v7448_v25, %v7701_v53  ;;  %vm17393_vm0 = vmmov %vm17387_vm1  ;;  %v17401_v25 = vld [vmem:[#allocation106_spill] sm:$0xff]  ;;  %vm17404_vm1 = vcmp.gt.f32.partialorder %v17313_v39, %v17312_v16  ;;  %v6664_v16 = vsel %vm17412_vm6, %v17411_v3, %v17409_v29  ;;  %v17415_v42 = vrot.slane %v17414_v61, 1  ;;  %v17418_v53 = vld [vmem:[#allocation99_spill] sm:$0xff] }
 0x721   : > { %v7729_v35 = vsel %vm17393_vm0, %v7456_v62, %v7728_v13  ;;  %vm17394_vm13 = vmmov %vm17393_vm0  ;;  %v7917_v26 = vcombine.low %v7674_v48, %v7702_v19  ;;  %v17419_v13 = vrot.slane %v17418_v53, 1  ;;  %v17422_v48 = vld [vmem:[#allocation104_spill] sm:$0xff]  ;;  %vm17435_vm10 = vnez %v17346_v52  ;;  %v17444_v61 = vld [vmem:[#allocation37_spill] sm:$0xff] }
 0x722   : > { %v7757_v22 = vsel %vm17394_vm13, %v7464_v55, %v7756_v46  ;;  %vm17395_vm7 = vmmov %vm17391_vm2  ;;  %v17421_v46 = vld [vmem:[#allocation52_spill] sm:$0xff]  ;;  %v17423_v19 = vrot.slane %v17422_v48, 1  ;;  %vm17447_vm0 = vcmask 1043459  }
 0x723   : > { %v7730_v0 = vsel %vm17395_vm7, %v7456_v62, %v7729_v35  ;;  %vm17396_vm9 = vmmov %vm17391_vm2  ;;  %v6648_v62 = vsel %vm17404_vm1, %v17403_v10, %v17401_v25  ;;  %v15549_v39 = vrot.slane %v7917_v26, %v16795_v41  ;;  %vm17424_vm2 = vcmp.gt.f32.partialorder %v17328_v40, %v17327_v5  ;;  %v17425_v26 = vld [vmem:[#allocation58_spill] sm:$0xff]  ;;  %v17428_v40 = vld [vmem:[#allocation25_spill] sm:$0xff] }
 0x724   : > { %v7758_v31 = vsel %vm17396_vm9, %v7464_v55, %v7757_v22  ;;  %v15531_v55 = vrot.slane %v7899_v1, %v16795_v41  ;;  %vm17408_vm9 = vcmp.gt.f32.partialorder %v17316_v7, %v17315_v38  ;;  %v6672_v38 = vsel %vm17416_vm12, %v17415_v42, %v17413_v11  ;;  %v17417_v7 = vld [vmem:[#allocation61_spill] sm:$0xff]  ;;  %v17438_v4 = vld [vmem:[#allocation96_spill] sm:$0xff]  ;;  %vm17448_vm13 = vmmov %vm17447_vm0 }
 0x725   : > { %v7926_v56 = vcombine.low %v7730_v0, %v7758_v31  ;;  %v6656_v14 = vsel %vm17408_vm9, %v17407_v37, %v17405_v20  ;;  %v6680_v59 = vsel %vm17420_vm4, %v17419_v13, %v17417_v7  ;;  %v6688_v35 = vsel %vm17424_vm2, %v17423_v19, %v17421_v46  ;;  %v17434_v37 = vld [vmem:[#allocation107_spill] sm:$0xff]  ;;  %vm17449_vm7 = vmmov %vm17447_vm0  ;;  %v17450_v7 = vld [vmem:[#allocation116_spill] sm:$0xff] }
 0x726   : > { %v8081_v60 = vcombine.low %v15531_v55, %v15534_v23  ;;  %v7288_v22 = vrot.slane %v6640_v18, 7  ;;  %v7296_v36 = vrot.slane %v6648_v62, 7  ;;  %v7304_v0 = vrot.slane %v6656_v14, 7  ;;  %v17429_v18 = vld [vmem:[#allocation115_spill] sm:$0xff]  ;;  %v17431_v62 = vld [vmem:[#allocation13_spill] sm:$0xff]  ;;  %v17436_v14 = vld [vmem:[#allocation88_spill] sm:$0xff] }
 0x727   : > { %v15552_v50 = vrot.slane %v7926_v56, %v16795_v41  ;;  %v7312_v31 = vrot.slane %v6664_v16, 7  ;;  %v7320_v1 = vrot.slane %v6672_v38, 7  ;;  %v7328_v63 = vrot.slane %v6680_v59, 7  ;;  %v17441_v16 = vld [vmem:[#allocation97_spill] sm:$0xff]  ;;  %vm17456_vm12 = vmmov %vm17447_vm0 }
 0x728   : > { %v8089_v12 = vrot.slane %v8081_v60, %v12164_v58  ;;  %v7336_v24 = vrot.slane %v6688_v35, 7  ;;  %v17426_v56 = vrot.slane %v17425_v26, 7  ;;  %v7352_v6 = vsel %vm15408_vm5, %v17428_v40, %v7288_v22  ;;  %v17468_v26 = vld [vmem:[#allocation140_spill] sm:$0xff] }
 0x729   : > { %v8082_v44 = vcombine.low %v15549_v39, %v15552_v50  ;;  %v7360_v25 = vsel %vm15413_vm8, %v17429_v18, %v7296_v36  ;;  %v7368_v10 = vsel %vm15418_vm15, %v17430_v2, %v7304_v0  ;;  %v7376_v20 = vsel %vm15423_vm14, %v17431_v62, %v7312_v31  ;;  %v17462_v0 = vld [vmem:[#allocation134_spill] sm:$0xff] }
 0x72a   : > { %v7344_v21 = vsel %vm15403_vm11, %v17427_v8, %v17426_v56  ;;  %vm17433_vm11 = vnez %v17344_v43  ;;  %v7392_v30 = vsel %vm17435_vm10, %v17434_v37, %v7328_v63  ;;  %vm17437_vm5 = vnez %v17348_v47 }
 0x72b   : > { %v8096_v5 = vrot.slane %v8082_v44, %v12164_v58  ;;  %v7384_v51 = vsel %vm17433_vm11, %v17432_v15, %v7320_v1  ;;  %v7400_v49 = vsel %vm17437_vm5, %v17436_v14, %v7336_v24  ;;  %v17439_v57 = vrot.slane %v17438_v4, 1 }
 0x72c   : > { %vm17440_vm8 = vcmask 1041409   ;;  %v17442_v33 = vrot.slane %v17441_v16, 1  ;;  %v17445_v43 = vrot.slane %v17444_v61, 1  ;;  %v17451_v53 = vrot.slane %v17450_v7, 1 }
 0x72d   : > { %v8097_v29 = vcombine.low %v8089_v12, %v8096_v5  ;;  %v8157_v3 = vsel %vm17440_vm8, %v7344_v21, %v17439_v57  ;;  %vm17443_vm15 = vmmov %vm17440_vm8  ;;  %vm17453_vm1 = vcmask 1045509   ;;  %vm17457_vm4 = vcmask 1047559   ;;  %v17465_v12 = vld [vmem:[#allocation84_spill] sm:$0xff] }
 0x72e   : > { %v8185_v11 = vsel %vm17443_vm15, %v7352_v6, %v17442_v33  ;;  %vm17446_vm14 = vmmov %vm17440_vm8  ;;  %v8158_v52 = vsel %vm17447_vm0, %v7344_v21, %v8157_v3  ;;  %v17463_v31 = vrot.slane %v17462_v0, 1  ;;  %v17466_v63 = vrot.slane %v17465_v12, 1 }
 0x72f   : > { %v8213_v42 = vsel %vm17446_vm14, %v7360_v25, %v17445_v43  ;;  %v8186_v38 = vsel %vm17448_vm13, %v7352_v6, %v8185_v11  ;;  %vm17452_vm3 = vmmov %vm17440_vm8  ;;  %8098 = vrot.lane.b32.xlu0 %v8097_v29, %s9378_s29  ;;  %v8159_v59 = vsel %vm17453_vm1, %v7344_v21, %v8158_v52  ;;  %v17469_v56 = vrot.slane %v17468_v26, 1 }
 0x730   : > { %v8214_v47 = vsel %vm17449_vm7, %v7360_v25, %v8213_v42  ;;  %v8241_v13 = vsel %vm17452_vm3, %v7368_v10, %v17451_v53  ;;  %vm17454_vm9 = vmmov %vm17453_vm1  ;;  %v8160_v19 = vsel %vm17457_vm4, %v7344_v21, %v8159_v59  ;;  %v8927_v61 = vcombine.high %v15531_v55, %v15534_v23 }
 0x731   : > { %v8187_v60 = vsel %vm17454_vm9, %v7352_v6, %v8186_v38  ;;  %vm17455_vm6 = vmmov %vm17453_vm1  ;;  %v8242_v48 = vsel %vm17456_vm12, %v7368_v10, %v8241_v13  ;;  %v8928_v43 = vcombine.high %v15549_v39, %v15552_v50  ;;  %v7939_v0 = vcombine.low %v15081_v27, %v17169_v54 }
 0x732   : > { %v8215_v46 = vsel %vm17455_vm6, %v7360_v25, %v8214_v47  ;;  %vm17458_vm2 = vmmov %vm17457_vm4  ;;  %v8501_v27 = vcombine.low %v15116_v45, %v17180_v9 }
 0x733   : > { %v8188_v35 = vsel %vm17458_vm2, %v7352_v6, %v8187_v60  ;;  %vm17459_vm11 = vmmov %vm17458_vm2  ;;  %v17473_v6 = vld [vmem:[#allocation46_spill] sm:$0xff]  ;;  %v8120_v52 = vrot.slane %v8928_v43, %v12164_v58  ;;  %v7947_v12 = vrot.slane %v7939_v0, %v12164_v58 }
 0x734   : > { %v8216_v22 = vsel %vm17459_vm11, %v7360_v25, %v8215_v46  ;;  %vm17460_vm10 = vmmov %vm17453_vm1  ;;  %v17474_v18 = vrot.slane %v17473_v6, 1  ;;  %v8465_v3 = vcombine.low %v8160_v19, %v8188_v35 }
 0x735   : > { %v8243_v36 = vsel %vm17460_vm10, %v7368_v10, %v8242_v48  ;;  %vm17461_vm5 = vmmov %vm17458_vm2 }
 0x736   : > { %v8244_v44 = vsel %vm17461_vm5, %v7368_v10, %v8243_v36  ;;  %vm17464_vm8 = vmmov %vm17452_vm3  ;;  %v8353_v25 = vsel %vm17452_vm3, %v7400_v49, %v17474_v18  ;;  %v7940_v36 = vcombine.low %v17179_v28, %v15111_v32  ;;  %v8502_v32 = vcombine.low %v14482_v17, %v15130_v34 }
 0x737   : > { %v8269_v1 = vsel %vm17464_vm8, %v7376_v20, %v17463_v31  ;;  %vm17467_vm15 = vmmov %vm17452_vm3  ;;  %v8474_v16 = vcombine.low %v8216_v22, %v8244_v44  ;;  %vm17482_vm8 = vcmask 64512  }
 0x738   : > { %v8297_v24 = vsel %vm17467_vm15, %v7384_v51, %v17466_v63  ;;  %vm17470_vm14 = vmmov %vm17452_vm3  ;;  %v8270_v21 = vsel %vm17447_vm0, %v7376_v20, %v8269_v1  ;;  %v7954_v1 = vrot.slane %v7940_v36, %v12164_v58  ;;  %vm17483_vm15 = vcmask 130048  }
 0x739   : > { %v8325_v8 = vsel %vm17470_vm14, %v7392_v30, %v17469_v56  ;;  %vm17471_vm13 = vmmov %vm17447_vm0  ;;  %v8271_v2 = vsel %vm17453_vm1, %v7376_v20, %v8270_v21  ;;  %v8516_v56 = vrot.slane %v8502_v32, %v12164_v58  ;;  %vm17484_vm14 = vcmask 195584  }
 0x73a   : > { %v8298_v5 = vsel %vm17471_vm13, %v7384_v51, %v8297_v24  ;;  %vm17472_vm7 = vmmov %vm17447_vm0  ;;  %v7955_v24 = vcombine.low %v7947_v12, %v7954_v1  ;;  %v8509_v21 = vrot.slane %v8501_v27, %v12164_v58  ;;  %vm17486_vm13 = vcmask 326656  }
 0x73b   : > { %v8326_v40 = vsel %vm17472_vm7, %v7392_v30, %v8325_v8  ;;  %vm17475_vm9 = vmmov %vm17453_vm1  ;;  %vm17487_vm7 = vcmask 392192   ;;  %vm17488_vm3 = vcmask 457728  }
 0x73c   : > { %v8299_v10 = vsel %vm17475_vm9, %v7384_v51, %v8298_v5  ;;  %vm17476_vm6 = vmmov %vm17453_vm1 }
 0x73d   : > { %v8327_v62 = vsel %vm17476_vm6, %v7392_v30, %v8326_v40  ;;  %vm17477_vm12 = vmmov %vm17447_vm0  ;;  %v8300_v14 = vsel %vm17458_vm2, %v7384_v51, %v8299_v10  ;;  %v8481_v51 = vrot.slane %v8474_v16, %v16795_v41  ;;  %vm17485_vm0 = vcmask 261120  }
 0x73e   : > { %v8354_v15 = vsel %vm17477_vm12, %v7400_v49, %v8353_v25  ;;  %vm17478_vm4 = vmmov %vm17458_vm2  ;;  %v8517_v40 = vcombine.low %v8509_v21, %v8516_v56 }
 0x73f   : > { %v8272_v37 = vsel %vm17478_vm4, %v7376_v20, %v8271_v2  ;;  %vm17479_vm11 = vmmov %vm17458_vm2  ;;  %v8472_v20 = vrot.slane %v8465_v3, %v16795_v41 }
 0x740   : > { %v8328_v29 = vsel %vm17479_vm11, %v7392_v30, %v8327_v62  ;;  %vm17480_vm10 = vmmov %vm17453_vm1  ;;  %v8483_v33 = vcombine.low %v8272_v37, %v8300_v14  ;;  %vm17489_vm1 = vcmask 523264  }
 0x741   : > { %v8355_v4 = vsel %vm17480_vm10, %v7400_v49, %v8354_v15  ;;  %vm17481_vm5 = vmmov %vm17458_vm2  ;;  %v8613_v38 = vcombine.low %v8472_v20, %v8481_v51  ;;  %v8935_v47 = vcombine.high %v8472_v20, %v8481_v51 }
 0x742   : > { %v8356_v57 = vsel %vm17481_vm5, %v7400_v49, %v8355_v4  ;;  %v8490_v30 = vrot.slane %v8483_v33, %v16795_v41  ;;  %v8113_v49 = vrot.slane %v8927_v61, %v12164_v58  ;;  %vm17490_vm9 = vmmov %vm17482_vm8 }
 0x743   : > { %v8492_v11 = vcombine.low %v8328_v29, %v8356_v57  ;;  %v8621_v23 = vrot.slane %v8613_v38, %v12164_v58  ;;  %v8640_v50 = vrot.slane %v8935_v47, %v12164_v58 }
 0x744   : > { %v8121_v53 = vcombine.low %v8113_v49, %v8120_v52 }
 0x745   : > { %v8499_v42 = vrot.slane %v8492_v11, %v16795_v41  ;;  %v7979_v60 = vpop.permute.xlu0 %7978 }
 0x746   : > { %8122 = vrot.lane.b32.xlu0 %v8121_v53, %s9379_s14  ;;  %v8125_v26 = vsel %vm17482_vm8, %v7955_v24, %v7979_v60 }
 0x747   : > { %v8614_v7 = vcombine.low %v8490_v30, %v8499_v42  ;;  %v8936_v55 = vcombine.high %v8490_v30, %v8499_v42 }
 0x748   : > { %v8536_v48 = vpop.permute.xlu1 %8535 }
 0x749   : > { %v8628_v39 = vrot.slane %v8614_v7, %v12164_v58  ;;  %v8647_v41 = vrot.slane %v8936_v55, %v12164_v58  ;;  %v8651_v58 = vsel %vm17490_vm9, %v8517_v40, %v8536_v48 }
 0x74b   : > { %v8629_v13 = vcombine.low %v8621_v23, %v8628_v39  ;;  %v8648_v59 = vcombine.low %v8640_v50, %v8647_v41 }
 0x74d   : > { %8630 = vrot.lane.b32.xlu1 %v8629_v13, %s9378_s29  ;;  %v8003_v46 = vpop.permute.xlu0 %8002 }
 0x74e   : > { %v8126_v54 = vsel %vm17483_vm15, %v8125_v26, %v8003_v46 }
 0x751   : > { %8649 = vrot.lane.b32.xlu1 %v8648_v59, %s9379_s14  ;;  %v8027_v19 = vpop.permute.xlu0 %8026 }
 0x752   : > { %v8127_v8 = vsel %vm17484_vm14, %v8126_v54, %v8027_v19 }
 0x756   : > { %v8555_v35 = vpop.permute.xlu1 %8554 }
 0x75a   : > { %v8574_v44 = vpop.permute.xlu1 %8573 }
 0x75f   : > { %v8051_v22 = vpop.permute.xlu0 %8050 }
 0x760   : > { %v8128_v17 = vsel %vm17485_vm0, %v8127_v8, %v8051_v22 }
 0x768   : > { %v8075_v31 = vpop.permute.xlu0 %8074 }
 0x769   : > { %v8129_v5 = vsel %vm17486_vm13, %v8128_v17, %v8075_v31 }
 0x782   : > { %v8593_v63 = vpop.permute.xlu1 %8592 }
 0x786   : > { %v8612_v34 = vpop.permute.xlu1 %8611 }
 0x7a1   : > { %v8099_v28 = vpop.permute.xlu0 %8098 }
 0x7a2   : > { %v8130_v45 = vsel %vm17487_vm7, %v8129_v5, %v8099_v28 }
 0x7b8   : > { %v8123_v9 = vpop.permute.xlu0 %8122 }
 0x7b9   : > { %v8131_v6 = vsel %vm17488_vm3, %v8130_v45, %v8123_v9 }
 0x7ba   : > { %8132 = vst.msk [vmem:[%s248_s18] sm:$0xff] %vm17489_vm1, %v8131_v6 }
 0x7bb   : > { %9285 = shalt.err (!%p9282_p3)
}
 0x7bc   : > { %s9286_s20 = scalar_lea.hbm %s15700_s28, 128  ;;  %s9290_s29 = scalar_lea.hbm %s15791_s5, 256 }
 0x7bd   : > { %p9287_p4 = scmp.ne.s32.totalorder %s15700_s28, %s9286_s20  ;;  %p9291_p9 = scmp.lt.u32.totalorder %s15700_s28, %s15791_s5 }
 0x7be   : > { %p9292_p10 = scmp.lt.u32.totalorder %s9290_s29, %s9286_s20  ;;  %p9294_p12 = scmp.lt.u32.totalorder %s9286_s20, %s15700_s28 }
 0x7bf   : > { %p9288_p7 = pnand %p9287_p4, %p9462_p5 }
 0x7c0   : > { %p9293_p11 = por %p9292_p10, %p9291_p9 }
 0x7c1   : > { %p9289_p8 = pneg %p9288_p7 }
 0x7c2   : > { %p9295_p13 = por %p9294_p12, %p9293_p11 }
 0x7c4   : > { %p9296_p0 = pnand %p9295_p13, %p9289_p8 }
 0x7c6   : > { %9299 = shalt.err (!%p9296_p0)
}
 0x7c7   : > { %9180 = dma.vmem_to_hbm [thread:$0]  (%p9462_p5), %s15702_s16, 128, %s15700_s28, %s8660_s9   ;;  %vm17491_vm6 = vmmov %vm17483_vm15  ;;  %v8631_v25 = vpop.permute.xlu1 %8630 }
 0x7c8   : > { %v8652_v18 = vsel %vm17491_vm6, %v8651_v58, %v8555_v35  ;;  %vm17492_vm12 = vmmov %vm17484_vm14  ;;  %s255_s10 = scalar_lea.vmem [#allocation6], %s8786_s17  ;;  %s15741_s16 = scalar_lea.hbm %s15792_s6, %s8939_s12 }
 0x7c9   : > { %v8653_v2 = vsel %vm17492_vm12, %v8652_v18, %v8574_v44  ;;  %s8691_s13 = sshll.u32 %s255_s10, 4  ;;  %vm17493_vm4 = vmmov %vm17485_vm0  ;;  %s8665_s17 = scalar_lea.sflag [#allocation7], %s15675_s15  ;;  %s15743_s13 = int_to_ptr.vmem [resolvable:$true] %s8691_s13 }
 0x7ca   : > { %v8654_v10 = vsel %vm17493_vm4, %v8653_v2, %v8593_v63  ;;  %vm17494_vm2 = vmmov %vm17486_vm13  ;;  %s9300_s28 = scalar_lea.vmem %s15743_s13, 128  ;;  %s9388_s25 = smov [#allocation6]  }
 0x7cb   : > { %v8655_v62 = vsel %vm17494_vm2, %v8654_v10, %v8612_v34  ;;  %vm17495_vm11 = vmmov %vm17487_vm7  ;;  %v8650_v37 = vpop.permute.xlu1 %8649  ;;  %p9301_p1 = scmp.ne.s32.totalorder %s15743_s13, %s9300_s28  ;;  %s9304_s9 = sshll.u32 %s9388_s25, 4  ;;  %s9305_s9 = int_to_ptr.vmem [resolvable:$false] %s9304_s9 }
 0x7cc   : > { %v8656_v15 = vsel %vm17495_vm11, %v8655_v62, %v8631_v25  ;;  %vm17496_vm10 = vmmov %vm17488_vm3  ;;  %s9306_s12 = scalar_lea.vmem %s9305_s9, 256  ;;  %p9307_p4 = scmp.lt.s32.totalorder %s15743_s13, %s9305_s9 }
 0x7cd   : > { %v8657_v14 = vsel %vm17496_vm10, %v8656_v15, %v8650_v37  ;;  %vm17497_vm5 = vmmov %vm17489_vm1  ;;  %p9302_p2 = pnand %p9301_p1, %p9462_p5  ;;  %p9308_p7 = scmp.lt.s32.totalorder %s9306_s12, %s9300_s28 }
 0x7ce   : > { %8658 = vst.msk [vmem:[%s255_s10] sm:$0xff] %vm17497_vm5, %v8657_v14 }
 0x7cf   : > { %p9303_p3 = pneg %p9302_p2  ;;  %p9309_p8 = por %p9308_p7, %p9307_p4 }
 0x7d1   : > { %p9310_p9 = pnand %p9309_p8, %p9303_p3 }
 0x7d3   : > { %9313 = shalt.err (!%p9310_p9)
}
 0x7d4   : > { %s9314_s15 = scalar_lea.hbm %s15741_s16, 128  ;;  %s9318_s29 = scalar_lea.hbm %s15792_s6, 256 }
 0x7d5   : > { %p9315_p10 = scmp.ne.s32.totalorder %s15741_s16, %s9314_s15  ;;  %p9319_p13 = scmp.lt.u32.totalorder %s15741_s16, %s15792_s6 }
 0x7d6   : > { %p9320_p0 = scmp.lt.u32.totalorder %s9318_s29, %s9314_s15  ;;  %p9322_p2 = scmp.lt.u32.totalorder %s9314_s15, %s15741_s16 }
 0x7d7   : > { %p9316_p11 = pnand %p9315_p10, %p9462_p5 }
 0x7d8   : > { %p9321_p1 = por %p9320_p0, %p9319_p13 }
 0x7d9   : > { %p9317_p12 = pneg %p9316_p11 }
 0x7da   : > { %p9323_p3 = por %p9322_p2, %p9321_p1 }
 0x7dc   : > { %p9324_p4 = pnand %p9323_p3, %p9317_p12 }
 0x7de   : > { %9327 = shalt.err (!%p9324_p4)
}
 0x7df   : > { %9181 = dma.vmem_to_hbm [thread:$0]  (%p9462_p5), %s15743_s13, 128, %s15741_s16, %s8665_s17  }
 0x7e0 PF: > { %p9191_p7 = scmp.ge.s32.totalorder %s9366_s24, 2  ;;  %s8703_s10 = sand.u32 1, %s9354_s21  }
 0x7e1   : > { %s8704_s19 = scalar_lea.sflag [#allocation5], %s8703_s10 }
 0x7e2   : > { %p9185_p8 = pnand %p9191_p7, %p9466_p6 }
 0x7e4   : > { %9345 = dma.done.wait (!%p9185_p8), %s8704_s19, 128  }
 0x7e5   : > { %9347 = vsyncadd (!%p9185_p8), %s8704_s19, 4294967168  ;;  %s8713_s20 = scalar_lea.sflag [#allocation7], %s8703_s10 }
 0x7e6   : > { %9349 = dma.done.wait (!%p9185_p8), %s8713_s20, 128  }
 0x7e7   : > { %9351 = vsyncadd (!%p9185_p8), %s8713_s20, 4294967168  ;;  %p20_p5 = scmp.ge.s32.totalorder %s9449_s27, 4   ;;  %s17498_s21 = smov %s9358_s22 }
 0x7e8   : > { %s17499_s22 = smov %s9362_s23  ;;  %s17500_s23 = smov %s9460_s30 }
 0x7e9   : > { %s17501_s24 = smov %s9449_s27  ;;  %22 = sbr.rel (!%p20_p5) target bundleno = 5 (0x5), region = 96 }
 0x7f0   :  { %8718 = vsyncpa [#allocation5], 1 }
 0x7f1   :  { %8720 = vsyncpa [#allocation5 + $0x1], 1 }
 0x7f2   :  { %8721 = vsyncpa [#allocation7], 1 }
 0x7f3   :  { %8723 = vsyncpa [#allocation7 + $0x1], 1 }

</bundles_post_ra>
